<compile_context>
chip_gen: v7x
topology: tpu7x:2x2x1
jax: 0.10.0
libtpu: 0.0.40
codegen_flags: <defaults>
</compile_context>

<pallas_src>
import functools

import jax
import jax.numpy as jnp
from jax import lax
from jax.experimental import pallas as pl
from jax.experimental.pallas import tpu as pltpu


def weierstrass_kernel(x_ref, w1t_ref, b1_ref, cf_ref, cb_ref, wf_ref, w4_ref,
                       b4_ref, o_ref, *, q, receptive_field, hidden, fuse_mm):
    x = x_ref[...]                                   # (N, 1) f32
    n = x.shape[0]
    w = hidden

    # ---- enc: u = sin(fc1(receptive_field * x)) ----
    # fc1 has in_features=1, so fc1(z) = z * W1^T + b1 (broadcast outer product, VPU).
    u = jnp.sin((receptive_field * x) * w1t_ref[...] + b1_ref[...])   # (N, w) f32

    # ---- loop-invariant data ----
    cf = cf_ref[...]                                 # (N, 1) forward-diff coefficient
    cb = cb_ref[...]                                 # (N, 1) backward-diff coefficient
    w4 = w4_ref[...]                                 # (1, w) f32 decoder row
    b4 = b4_ref[0]                                   # scalar (SMEM)

    # Default MXU precision (single-pass bf16 operands), f32 accumulation.
    mm = functools.partial(jnp.dot, preferred_element_type=jnp.float32)

    # Conservation u_k + v_k == 2*u_0  (u += adv', v -= adv'), hence
    #   fc3(v_k) = 2*fc3(u_0) - fc3(u_k) = c3 - u_k @ W3^T.
    w3t = wf_ref[pl.ds(w, w), pl.ds(w, w)]           # (w, w) bf16 lower-right block
    c3 = 2.0 * mm(u.astype(jnp.bfloat16), w3t)       # (N, w) f32, loop-invariant

    def step(_, u):
        # Two independent sublane rolls of u (co-issue on the XLU units).
        u_next = pltpu.roll(u, shift=n - 1, axis=0)  # u[(i+1) % n]
        u_prev = pltpu.roll(u, shift=1, axis=0)      # u[(i-1) % n]
        # Forward / central / backward finite differences via (N,1) coefficients;
        # cf[n-1] == 0 and cb[0] == 0, so the wrapped rows contribute exactly 0.
        du = cf * (u_next - u) + cb * (u - u_prev)   # (N, w) f32

        du16 = du.astype(jnp.bfloat16)
        u16 = u.astype(jnp.bfloat16)
        if fuse_mm:
            # One MXU-filling (N, 2w) @ (2w, 2w) matmul against the block-diagonal
            # weight diag(dt/q * W2^T, W3^T); split the result at lane w.
            both = mm(jnp.concatenate([du16, u16], axis=1), wf_ref[...])  # (N, 2w) f32
            grad = both[:, :w]                       # fc2(du) * dt/q
            f3u = both[:, w:]                        # fc3(u)
        else:
            # v5e path: 128x128 MXU already fits the un-fused shapes exactly.
            grad = mm(du16, wf_ref[pl.ds(0, w), pl.ds(0, w)])
            f3u = mm(u16, wf_ref[pl.ds(w, w), pl.ds(w, w)])

        # dt/q is already folded into grad; fc3(v) = c3 - f3u.
        return u + (c3 - f3u) * grad

    # Carry bounded to u only; unrolled for LLO scheduling visibility.
    u = lax.fori_loop(0, q, step, u, unroll=True)

    # ---- dec: fc4(u) as VPU multiply + cross-lane reduce (no 1-col MXU matmul) ----
    o_ref[...] = jnp.sum(u * w4, axis=-1, keepdims=True) + b4         # (N, 1)


@functools.partial(jax.jit, static_argnames=("q", "receptive_field", "fuse_mm"))
def weierstrass_forward(x, w1, b1, w2, w3, w4, b4, dt, *, q, receptive_field,
                        fuse_mm=True):
    """Takes the module's raw parameters; does all layout prep once under jit."""
    n = x.shape[0]
    w = w1.shape[0]

    # ---- weight layout prep (one-time) ----
    w1t = w1.reshape(1, w)                           # fc1 weight (w,1) -> (1,w)
    b1r = b1.reshape(1, w)
    w2t_scaled = (dt[0] / q) * w2.T                  # fold dt/q into fc2 (W2^T)
    w3t = w3.T
    zeros = jnp.zeros((w, w), jnp.float32)
    # Block-diagonal diag(dt/q*W2^T, W3^T), bf16 (MXU truncates to bf16 per pass anyway).
    wf = jnp.concatenate(
        [jnp.concatenate([w2t_scaled, zeros], axis=1),
         jnp.concatenate([zeros, w3t], axis=1)], axis=0).astype(jnp.bfloat16)
    w4r = w4.reshape(1, w)                           # fc4 row for the lane-reduce decoder

    # ---- loop-invariant finite-difference coefficients (N, 1) ----
    #   du[i] = cf[i]*(u[i+1]-u[i]) + cb[i]*(u[i]-u[i-1])
    # row 0:   cf = 1/dx_f,     cb = 0       (forward diff)
    # row n-1: cf = 0,          cb = 1/dx_b  (backward diff)
    # else:    cf = 0.5/dx_f,   cb = 0.5/dx_b (central diff)
    # The wrapped 1/(x[0]-x[n-1]) entries are exactly zeroed by cf[n-1]=0 / cb[0]=0.
    x_next = jnp.roll(x, -1, axis=0)
    x_prev = jnp.roll(x, 1, axis=0)
    inv_dx_f = 1.0 / (x_next - x)                    # garbage at row n-1 (masked)
    inv_dx_b = 1.0 / (x - x_prev)                    # garbage at row 0   (masked)
    row = jnp.arange(n, dtype=jnp.int32).reshape(n, 1)
    is_first = row == 0
    is_last = row == n - 1
    cf = jnp.where(is_last, 0.0, jnp.where(is_first, inv_dx_f, 0.5 * inv_dx_f))
    cb = jnp.where(is_first, 0.0, jnp.where(is_last, inv_dx_b, 0.5 * inv_dx_b))

    kernel = functools.partial(weierstrass_kernel, q=q,
                               receptive_field=receptive_field,
                               hidden=w, fuse_mm=fuse_mm)
    vmem = lambda: pl.BlockSpec(memory_space=pltpu.MemorySpace.VMEM)
    smem = lambda: pl.BlockSpec(memory_space=pltpu.MemorySpace.SMEM)
    return pl.pallas_call(
        kernel,
        out_shape=jax.ShapeDtypeStruct((n, 1), jnp.float32),
        in_specs=[vmem(), vmem(), vmem(), vmem(), vmem(), vmem(), vmem(), smem()],
        out_specs=vmem(),
    )(x, w1t, b1r, cf, cb, wf, w4r, b4)


def weierstrass_ref(x, w1, b1, w2, w3, w4, b4, dt, *, q, receptive_field):
    """Pure-JAX reference mirroring the PyTorch forward exactly (full f32)."""
    hp = lax.Precision.HIGHEST
    u = jnp.sin(jnp.dot(receptive_field * x, w1.T, precision=hp) + b1)
    v = u
    dtq = dt / q
    for _ in range(q):
        du_f = jnp.diff(u, axis=0) / jnp.diff(x, axis=0)   # du_b == du_f in the module
        du_c = (du_f[1:] + du_f[:-1]) / 2.0
        du = jnp.concatenate([du_f[:1], du_c, du_f[-1:]], axis=0)
        grad = jnp.dot(du, w2.T, precision=hp)
        adv = jnp.dot(v, w3.T, precision=hp) * grad
        u = u + dtq * adv
        v = v - dtq * adv
    return jnp.dot(u, w4.T, precision=hp) + b4


if __name__ == "__main__":
    N = 256          # number of sample points along the 1-D domain
    w = 128          # hidden width (param.w)
    q = 4            # number of advection sub-steps
    receptive_field = 5.0   # param.receptive_field

    key = jax.random.PRNGKey(0)
    k1, k2, k3, k4, kx = jax.random.split(key, 5)

    # Parameter init matching the module's __init__ (fc2/fc3 get a small deterministic
    # perturbation on top of eye_ so the bf16 MXU path is actually exercised by the check).
    W1 = jax.random.normal(k1, (w, 1), jnp.float32) / jnp.sqrt(w)
    b1 = jnp.zeros((w,), jnp.float32)
    W2 = jnp.eye(w, dtype=jnp.float32) + 0.05 * jax.random.normal(k3, (w, w), jnp.float32) / jnp.sqrt(w)
    W3 = jnp.eye(w, dtype=jnp.float32) + 0.05 * jax.random.normal(k4, (w, w), jnp.float32) / jnp.sqrt(w)
    W4 = jax.random.normal(k2, (1, w), jnp.float32) / jnp.sqrt(w)
    b4 = jnp.zeros((1,), jnp.float32)
    dt_ = jnp.array([0.01], jnp.float32)

    # x: monotone grid with deterministic jitter (well-conditioned finite differences),
    # shape (N, 1) as implied by Linear(1, w) + diff(dim=0).
    base = jnp.linspace(-1.0, 1.0, N, dtype=jnp.float32).reshape(N, 1)
    jitter = 0.3 * (2.0 / (N - 1)) * (jax.random.uniform(kx, (N, 1), jnp.float32) - 0.5)
    x = base + jitter

    # Fuse the two per-step matmuls into one 256-wide matmul on 256x256-MXU chips
    # (v6e/v7x); keep them separate on older 128x128-MXU chips (v5e and earlier).
    kind = jax.devices()[0].device_kind.lower()
    fuse_mm = not any(t in kind for t in ("v2", "v3", "v4", "v5"))

    out = weierstrass_forward(x, W1, b1, W2, W3, W4, b4, dt_,
                              q=q, receptive_field=receptive_field, fuse_mm=fuse_mm)
    out = jax.block_until_ready(out)

    ref = weierstrass_ref(x, W1, b1, W2, W3, W4, b4, dt_,
                          q=q, receptive_field=receptive_field)
    assert out.shape == (N, 1) and out.dtype == jnp.float32
    # Kernel matmuls run as bf16 MXU passes with f32 accumulation and v is folded away
    # via u+v conservation, so allow bf16-matmul-scale deviation from the
    # HIGHEST-precision, explicit-v f32 reference.
    err = jnp.max(jnp.abs(out - ref))
    assert jnp.allclose(out, ref, atol=3e-4, rtol=2e-3), f"max abs err {err}"

    print("KERNEL_OK")
</pallas_src>

<mosaic_0001>
module attributes {stable_mosaic.version = 11 : i64} {
  func.func @weierstrass_kernel(%arg0: memref<256x1xf32, #tpu.memory_space<vmem>>, %arg1: memref<1x128xf32, #tpu.memory_space<vmem>>, %arg2: memref<1x128xf32, #tpu.memory_space<vmem>>, %arg3: memref<256x1xf32, #tpu.memory_space<vmem>>, %arg4: memref<256x1xf32, #tpu.memory_space<vmem>>, %arg5: memref<256x256xbf16, #tpu.memory_space<vmem>>, %arg6: memref<1x128xf32, #tpu.memory_space<vmem>>, %arg7: memref<1xf32, #tpu.memory_space<smem>>, %arg8: memref<256x1xf32, #tpu.memory_space<vmem>>) attributes {dimension_semantics = [], scalar_prefetch = 0 : i64, scratch_operands = 0 : i64, tpu.core_type = #tpu.core_type<tc>} {
    %c0 = arith.constant 0 : index
    %c0_0 = arith.constant 0 : index
    %0 = vector.load %arg0[%c0, %c0_0] : memref<256x1xf32, #tpu.memory_space<vmem>>, vector<256x1xf32>
    %cst = arith.constant 5.000000e+00 : f32
    %1 = vector.broadcast %cst : f32 to vector<256x1xf32>
    %2 = arith.mulf %1, %0 : vector<256x1xf32>
    %c0_1 = arith.constant 0 : index
    %c0_2 = arith.constant 0 : index
    %3 = vector.load %arg1[%c0_1, %c0_2] : memref<1x128xf32, #tpu.memory_space<vmem>>, vector<1x128xf32>
    %4 = vector.broadcast %2 : vector<256x1xf32> to vector<256x128xf32>
    %5 = vector.broadcast %3 : vector<1x128xf32> to vector<256x128xf32>
    %6 = arith.mulf %4, %5 : vector<256x128xf32>
    %c0_3 = arith.constant 0 : index
    %c0_4 = arith.constant 0 : index
    %7 = vector.load %arg2[%c0_3, %c0_4] : memref<1x128xf32, #tpu.memory_space<vmem>>, vector<1x128xf32>
    %8 = vector.broadcast %7 : vector<1x128xf32> to vector<256x128xf32>
    %9 = arith.addf %6, %8 : vector<256x128xf32>
    %10 = math.sin %9 : vector<256x128xf32>
    %c0_5 = arith.constant 0 : index
    %c0_6 = arith.constant 0 : index
    %11 = vector.load %arg3[%c0_5, %c0_6] : memref<256x1xf32, #tpu.memory_space<vmem>>, vector<256x1xf32>
    %c0_7 = arith.constant 0 : index
    %c0_8 = arith.constant 0 : index
    %12 = vector.load %arg4[%c0_7, %c0_8] : memref<256x1xf32, #tpu.memory_space<vmem>>, vector<256x1xf32>
    %c0_9 = arith.constant 0 : index
    %c0_10 = arith.constant 0 : index
    %13 = vector.load %arg6[%c0_9, %c0_10] : memref<1x128xf32, #tpu.memory_space<vmem>>, vector<1x128xf32>
    %c0_11 = arith.constant 0 : index
    %14 = memref.load %arg7[%c0_11] : memref<1xf32, #tpu.memory_space<smem>>
    %c128 = arith.constant 128 : index
    %c128_12 = arith.constant 128 : index
    %15 = vector.load %arg5[%c128, %c128_12] : memref<256x256xbf16, #tpu.memory_space<vmem>>, vector<128x128xbf16>
    %16 = arith.truncf %10 : vector<256x128xf32> to vector<256x128xbf16>
    %cst_13 = arith.constant dense<0.000000e+00> : vector<256x128xf32>
    %17 = tpu.matmul %16, %15, %cst_13 {dimension_numbers = #tpu.dot_dimension_numbers<[1], [0], [0], [1], [0, 0, 1, 1], [], []>} : vector<256x128xbf16>, vector<128x128xbf16>, vector<256x128xf32> -> vector<256x128xf32>
    %cst_14 = arith.constant 2.000000e+00 : f32
    %18 = vector.broadcast %cst_14 : f32 to vector<256x128xf32>
    %19 = arith.mulf %18, %17 : vector<256x128xf32>
    %c0_i32 = arith.constant 0 : i32
    %c255_i32 = arith.constant 255 : i32
    %20 = tpu.dynamic_rotate %10 by %c255_i32 dim 0 : vector<256x128xf32>, i32 -> vector<256x128xf32>
    %c1_i32 = arith.constant 1 : i32
    %21 = tpu.dynamic_rotate %10 by %c1_i32 dim 0 : vector<256x128xf32>, i32 -> vector<256x128xf32>
    %22 = arith.subf %20, %10 : vector<256x128xf32>
    %23 = vector.broadcast %11 : vector<256x1xf32> to vector<256x128xf32>
    %24 = arith.mulf %23, %22 : vector<256x128xf32>
    %25 = arith.subf %10, %21 : vector<256x128xf32>
    %26 = vector.broadcast %12 : vector<256x1xf32> to vector<256x128xf32>
    %27 = arith.mulf %26, %25 : vector<256x128xf32>
    %28 = arith.addf %24, %27 : vector<256x128xf32>
    %29 = arith.truncf %28 : vector<256x128xf32> to vector<256x128xbf16>
    %30 = arith.truncf %10 : vector<256x128xf32> to vector<256x128xbf16>
    %31 = tpu.concatenate %29, %30 in 1 : vector<256x128xbf16>, vector<256x128xbf16> -> vector<256x256xbf16>
    %c0_15 = arith.constant 0 : index
    %c0_16 = arith.constant 0 : index
    %32 = vector.load %arg5[%c0_15, %c0_16] : memref<256x256xbf16, #tpu.memory_space<vmem>>, vector<256x256xbf16>
    %cst_17 = arith.constant dense<0.000000e+00> : vector<256x256xf32>
    %33 = tpu.matmul %31, %32, %cst_17 {dimension_numbers = #tpu.dot_dimension_numbers<[1], [0], [0], [1], [0, 0, 1, 1], [], []>} : vector<256x256xbf16>, vector<256x256xbf16>, vector<256x256xf32> -> vector<256x256xf32>
    %34 = vector.extract_strided_slice %33 {offsets = [0, 0], sizes = [256, 128], strides = [1, 1]} : vector<256x256xf32> to vector<256x128xf32>
    %35 = vector.extract_strided_slice %33 {offsets = [0, 128], sizes = [256, 128], strides = [1, 1]} : vector<256x256xf32> to vector<256x128xf32>
    %36 = arith.subf %19, %35 : vector<256x128xf32>
    %37 = arith.mulf %36, %34 : vector<256x128xf32>
    %38 = arith.addf %10, %37 : vector<256x128xf32>
    %c1_i32_18 = arith.constant 1 : i32
    %c255_i32_19 = arith.constant 255 : i32
    %39 = tpu.dynamic_rotate %38 by %c255_i32_19 dim 0 : vector<256x128xf32>, i32 -> vector<256x128xf32>
    %c1_i32_20 = arith.constant 1 : i32
    %40 = tpu.dynamic_rotate %38 by %c1_i32_20 dim 0 : vector<256x128xf32>, i32 -> vector<256x128xf32>
    %41 = arith.subf %39, %38 : vector<256x128xf32>
    %42 = vector.broadcast %11 : vector<256x1xf32> to vector<256x128xf32>
    %43 = arith.mulf %42, %41 : vector<256x128xf32>
    %44 = arith.subf %38, %40 : vector<256x128xf32>
    %45 = vector.broadcast %12 : vector<256x1xf32> to vector<256x128xf32>
    %46 = arith.mulf %45, %44 : vector<256x128xf32>
    %47 = arith.addf %43, %46 : vector<256x128xf32>
    %48 = arith.truncf %47 : vector<256x128xf32> to vector<256x128xbf16>
    %49 = arith.truncf %38 : vector<256x128xf32> to vector<256x128xbf16>
    %50 = tpu.concatenate %48, %49 in 1 : vector<256x128xbf16>, vector<256x128xbf16> -> vector<256x256xbf16>
    %c0_21 = arith.constant 0 : index
    %c0_22 = arith.constant 0 : index
    %51 = vector.load %arg5[%c0_21, %c0_22] : memref<256x256xbf16, #tpu.memory_space<vmem>>, vector<256x256xbf16>
    %cst_23 = arith.constant dense<0.000000e+00> : vector<256x256xf32>
    %52 = tpu.matmul %50, %51, %cst_23 {dimension_numbers = #tpu.dot_dimension_numbers<[1], [0], [0], [1], [0, 0, 1, 1], [], []>} : vector<256x256xbf16>, vector<256x256xbf16>, vector<256x256xf32> -> vector<256x256xf32>
    %53 = vector.extract_strided_slice %52 {offsets = [0, 0], sizes = [256, 128], strides = [1, 1]} : vector<256x256xf32> to vector<256x128xf32>
    %54 = vector.extract_strided_slice %52 {offsets = [0, 128], sizes = [256, 128], strides = [1, 1]} : vector<256x256xf32> to vector<256x128xf32>
    %55 = arith.subf %19, %54 : vector<256x128xf32>
    %56 = arith.mulf %55, %53 : vector<256x128xf32>
    %57 = arith.addf %38, %56 : vector<256x128xf32>
    %c2_i32 = arith.constant 2 : i32
    %c255_i32_24 = arith.constant 255 : i32
    %58 = tpu.dynamic_rotate %57 by %c255_i32_24 dim 0 : vector<256x128xf32>, i32 -> vector<256x128xf32>
    %c1_i32_25 = arith.constant 1 : i32
    %59 = tpu.dynamic_rotate %57 by %c1_i32_25 dim 0 : vector<256x128xf32>, i32 -> vector<256x128xf32>
    %60 = arith.subf %58, %57 : vector<256x128xf32>
    %61 = vector.broadcast %11 : vector<256x1xf32> to vector<256x128xf32>
    %62 = arith.mulf %61, %60 : vector<256x128xf32>
    %63 = arith.subf %57, %59 : vector<256x128xf32>
    %64 = vector.broadcast %12 : vector<256x1xf32> to vector<256x128xf32>
    %65 = arith.mulf %64, %63 : vector<256x128xf32>
    %66 = arith.addf %62, %65 : vector<256x128xf32>
    %67 = arith.truncf %66 : vector<256x128xf32> to vector<256x128xbf16>
    %68 = arith.truncf %57 : vector<256x128xf32> to vector<256x128xbf16>
    %69 = tpu.concatenate %67, %68 in 1 : vector<256x128xbf16>, vector<256x128xbf16> -> vector<256x256xbf16>
    %c0_26 = arith.constant 0 : index
    %c0_27 = arith.constant 0 : index
    %70 = vector.load %arg5[%c0_26, %c0_27] : memref<256x256xbf16, #tpu.memory_space<vmem>>, vector<256x256xbf16>
    %cst_28 = arith.constant dense<0.000000e+00> : vector<256x256xf32>
    %71 = tpu.matmul %69, %70, %cst_28 {dimension_numbers = #tpu.dot_dimension_numbers<[1], [0], [0], [1], [0, 0, 1, 1], [], []>} : vector<256x256xbf16>, vector<256x256xbf16>, vector<256x256xf32> -> vector<256x256xf32>
    %72 = vector.extract_strided_slice %71 {offsets = [0, 0], sizes = [256, 128], strides = [1, 1]} : vector<256x256xf32> to vector<256x128xf32>
    %73 = vector.extract_strided_slice %71 {offsets = [0, 128], sizes = [256, 128], strides = [1, 1]} : vector<256x256xf32> to vector<256x128xf32>
    %74 = arith.subf %19, %73 : vector<256x128xf32>
    %75 = arith.mulf %74, %72 : vector<256x128xf32>
    %76 = arith.addf %57, %75 : vector<256x128xf32>
    %c3_i32 = arith.constant 3 : i32
    %c255_i32_29 = arith.constant 255 : i32
    %77 = tpu.dynamic_rotate %76 by %c255_i32_29 dim 0 : vector<256x128xf32>, i32 -> vector<256x128xf32>
    %c1_i32_30 = arith.constant 1 : i32
    %78 = tpu.dynamic_rotate %76 by %c1_i32_30 dim 0 : vector<256x128xf32>, i32 -> vector<256x128xf32>
    %79 = arith.subf %77, %76 : vector<256x128xf32>
    %80 = vector.broadcast %11 : vector<256x1xf32> to vector<256x128xf32>
    %81 = arith.mulf %80, %79 : vector<256x128xf32>
    %82 = arith.subf %76, %78 : vector<256x128xf32>
    %83 = vector.broadcast %12 : vector<256x1xf32> to vector<256x128xf32>
    %84 = arith.mulf %83, %82 : vector<256x128xf32>
    %85 = arith.addf %81, %84 : vector<256x128xf32>
    %86 = arith.truncf %85 : vector<256x128xf32> to vector<256x128xbf16>
    %87 = arith.truncf %76 : vector<256x128xf32> to vector<256x128xbf16>
    %88 = tpu.concatenate %86, %87 in 1 : vector<256x128xbf16>, vector<256x128xbf16> -> vector<256x256xbf16>
    %c0_31 = arith.constant 0 : index
    %c0_32 = arith.constant 0 : index
    %89 = vector.load %arg5[%c0_31, %c0_32] : memref<256x256xbf16, #tpu.memory_space<vmem>>, vector<256x256xbf16>
    %cst_33 = arith.constant dense<0.000000e+00> : vector<256x256xf32>
    %90 = tpu.matmul %88, %89, %cst_33 {dimension_numbers = #tpu.dot_dimension_numbers<[1], [0], [0], [1], [0, 0, 1, 1], [], []>} : vector<256x256xbf16>, vector<256x256xbf16>, vector<256x256xf32> -> vector<256x256xf32>
    %91 = vector.extract_strided_slice %90 {offsets = [0, 0], sizes = [256, 128], strides = [1, 1]} : vector<256x256xf32> to vector<256x128xf32>
    %92 = vector.extract_strided_slice %90 {offsets = [0, 128], sizes = [256, 128], strides = [1, 1]} : vector<256x256xf32> to vector<256x128xf32>
    %93 = arith.subf %19, %92 : vector<256x128xf32>
    %94 = arith.mulf %93, %91 : vector<256x128xf32>
    %95 = arith.addf %76, %94 : vector<256x128xf32>
    %96 = vector.broadcast %13 : vector<1x128xf32> to vector<256x128xf32>
    %97 = arith.mulf %95, %96 : vector<256x128xf32>
    %cst_34 = arith.constant dense<0.000000e+00> : vector<256xf32>
    %98 = vector.multi_reduction <add>, %97, %cst_34 [1] : vector<256x128xf32> to vector<256xf32>
    %99 = vector.shape_cast %98 : vector<256xf32> to vector<256x1xf32>
    %100 = vector.broadcast %14 : f32 to vector<256x1xf32>
    %101 = arith.addf %99, %100 : vector<256x1xf32>
    %c0_35 = arith.constant 0 : index
    %c0_36 = arith.constant 0 : index
    %102 = vector.load %arg8[%c0_35, %c0_36] : memref<256x1xf32, #tpu.memory_space<vmem>>, vector<256x1xf32>
    tpu.vector_store %arg8[%c0_35, %c0_36], %101 {strides = array<i32>} : memref<256x1xf32, #tpu.memory_space<vmem>>, vector<256x1xf32>,
    return
  }
}

</mosaic_0001>

<bundles_post_ra>
// kernel: weierstrass_forward.1
= control target key start
LH: loop header
LB: loop body
LE: loop exit
PB: predicated region body
PF: predicated region fallthrough
CT: control target
= control target key end

     0   :  { %v7809_v0 = vmov 0   ;;  %s15452_s0 = inlined_call_operand.vmem [shape: f32[256,1], index: 0, kind: input, shape index: {}]   ;;  %s15453_s3 = inlined_call_operand.vmem [shape: f32[256,1], index: 3, kind: input, shape index: {}]   ;;  %s15454_s4 = inlined_call_operand.vmem [shape: f32[256,1], index: 4, kind: input, shape index: {}]   ;;  %s15455_s1 = inlined_call_operand.vmem [shape: f32[1,128], index: 1, kind: input, shape index: {}]   ;;  %s15456_s2 = inlined_call_operand.vmem [shape: f32[1,128], index: 2, kind: input, shape index: {}]   ;;  %s15457_s5 = inlined_call_operand.vmem [shape: bf16[256,256], index: 5, kind: input, shape index: {}]   ;;  %s15458_s6 = inlined_call_operand.vmem [shape: f32[1,128], index: 6, kind: input, shape index: {}]   ;;  %s15459_s7 = inlined_call_operand.<no memory space> [shape: f32[1], index: 7, kind: input, shape index: {}]   ;;  %s15460_s8 = inlined_call_operand.vmem [shape: f32[256,1], index: 8, kind: output, shape index: {}]  }
   0x1   :  { %7519 = vset.pattern.permute.xlu1 %v7809_v0  ;;  %7518 = vset.pattern.permute.xlu0 %v7809_v0  ;;  %v33_v1 = vld [vmem:[%s15452_s0 + $0x10] sm:$0xff]  ;;  %v31_v2 = vld [vmem:[%s15452_s0] sm:$0xff]  ;;  %v62_v3 = vld [vmem:[%s15452_s0 + $0xf8] sm:$0xff] }
   0x2   :  { %v65_v4 = vmul.f32 5.0, %v33_v1  ;;  %v63_v5 = vmul.f32 5.0, %v31_v2  ;;  %v32_v6 = vld [vmem:[%s15452_s0 + $0x8] sm:$0xff]  ;;  %v94_v7 = vmul.f32 5.0, %v62_v3  ;;  %v35_v9 = vld [vmem:[%s15452_s0 + $0x20] sm:$0xff]  ;;  %v34_v10 = vld [vmem:[%s15452_s0 + $0x18] sm:$0xff] }
   0x3   :  { %v64_v8 = vmul.f32 5.0, %v32_v6  ;;  %v67_v11 = vmul.f32 5.0, %v35_v9  ;;  %v66_v12 = vmul.f32 5.0, %v34_v10  ;;  %v37_v13 = vld [vmem:[%s15452_s0 + $0x30] sm:$0xff]  ;;  %v36_v14 = vld [vmem:[%s15452_s0 + $0x28] sm:$0xff]  ;;  %v39_v17 = vld [vmem:[%s15452_s0 + $0x40] sm:$0xff] }
   0x4   :  { %108 = vperm.xlu1 %7519, %v65_v4   ;;  %98 = vperm.xlu0 %7518, %v63_v5   ;;  %v69_v15 = vmul.f32 5.0, %v37_v13  ;;  %v68_v16 = vmul.f32 5.0, %v36_v14  ;;  %v38_v18 = vld [vmem:[%s15452_s0 + $0x38] sm:$0xff]  ;;  %v71_v19 = vmul.f32 5.0, %v39_v17  ;;  %v41_v21 = vld [vmem:[%s15452_s0 + $0x50] sm:$0xff]  ;;  %v40_v22 = vld [vmem:[%s15452_s0 + $0x48] sm:$0xff] }
   0x5   :  { %v70_v20 = vmul.f32 5.0, %v38_v18  ;;  %v73_v23 = vmul.f32 5.0, %v41_v21  ;;  %v72_v24 = vmul.f32 5.0, %v40_v22  ;;  %v43_v25 = vld [vmem:[%s15452_s0 + $0x60] sm:$0xff]  ;;  %v42_v26 = vld [vmem:[%s15452_s0 + $0x58] sm:$0xff]  ;;  %v45_v29 = vld [vmem:[%s15452_s0 + $0x70] sm:$0xff] }
   0x6   :  { %v75_v27 = vmul.f32 5.0, %v43_v25  ;;  %v74_v28 = vmul.f32 5.0, %v42_v26  ;;  %v44_v30 = vld [vmem:[%s15452_s0 + $0x68] sm:$0xff]  ;;  %v77_v31 = vmul.f32 5.0, %v45_v29  ;;  %v47_v33 = vld [vmem:[%s15452_s0 + $0x80] sm:$0xff]  ;;  %v46_v34 = vld [vmem:[%s15452_s0 + $0x78] sm:$0xff] }
   0x7   :  { %v76_v32 = vmul.f32 5.0, %v44_v30  ;;  %v79_v35 = vmul.f32 5.0, %v47_v33  ;;  %v78_v36 = vmul.f32 5.0, %v46_v34  ;;  %v49_v37 = vld [vmem:[%s15452_s0 + $0x90] sm:$0xff]  ;;  %v48_v38 = vld [vmem:[%s15452_s0 + $0x88] sm:$0xff]  ;;  %v51_v41 = vld [vmem:[%s15452_s0 + $0xa0] sm:$0xff] }
   0x8   :  { %253 = vperm.xlu1 %7519, %v94_v7   ;;  %103 = vperm.xlu0 %7518, %v64_v8   ;;  %v81_v39 = vmul.f32 5.0, %v49_v37  ;;  %v80_v40 = vmul.f32 5.0, %v48_v38  ;;  %v50_v42 = vld [vmem:[%s15452_s0 + $0x98] sm:$0xff]  ;;  %v83_v43 = vmul.f32 5.0, %v51_v41  ;;  %v53_v45 = vld [vmem:[%s15452_s0 + $0xb0] sm:$0xff]  ;;  %v52_v46 = vld [vmem:[%s15452_s0 + $0xa8] sm:$0xff] }
   0x9   :  { %v82_v44 = vmul.f32 5.0, %v50_v42  ;;  %v85_v47 = vmul.f32 5.0, %v53_v45  ;;  %v84_v48 = vmul.f32 5.0, %v52_v46  ;;  %v55_v49 = vld [vmem:[%s15452_s0 + $0xc0] sm:$0xff]  ;;  %v54_v50 = vld [vmem:[%s15452_s0 + $0xb8] sm:$0xff]  ;;  %v3662_v53 = vld [vmem:[%s15453_s3 + $0x8] sm:$0xff] }
   0xa   :  { %v87_v51 = vmul.f32 5.0, %v55_v49  ;;  %v86_v52 = vmul.f32 5.0, %v54_v50  ;;  %v3661_v54 = vld [vmem:[%s15453_s3] sm:$0xff]  ;;  %v3694_v55 = vld [vmem:[%s15454_s4 + $0x8] sm:$0xff]  ;;  %v57_v57 = vld [vmem:[%s15452_s0 + $0xd0] sm:$0xff] }
   0xb   :  { %v3693_v56 = vld [vmem:[%s15454_s4] sm:$0xff]  ;;  %v56_v58 = vld [vmem:[%s15452_s0 + $0xc8] sm:$0xff]  ;;  %v89_v59 = vmul.f32 5.0, %v57_v57  ;;  %v3664_v61 = vld [vmem:[%s15453_s3 + $0x18] sm:$0xff] }
   0xc   :  { %118 = vperm.xlu1 %7519, %v67_v11   ;;  %113 = vperm.xlu0 %7518, %v66_v12   ;;  %v88_v60 = vmul.f32 5.0, %v56_v58  ;;  %v3663_v62 = vld [vmem:[%s15453_s3 + $0x10] sm:$0xff]  ;;  %v3696_v63 = vld [vmem:[%s15454_s4 + $0x18] sm:$0xff]  ;;  %v59_v1 = vld [vmem:[%s15452_s0 + $0xe0] sm:$0xff] }
   0xd   :  { %v3695_v0 = vld [vmem:[%s15454_s4 + $0x10] sm:$0xff]  ;;  %v58_v2 = vld [vmem:[%s15452_s0 + $0xd8] sm:$0xff]  ;;  %v91_v3 = vmul.f32 5.0, %v59_v1  ;;  %v3666_v5 = vld [vmem:[%s15453_s3 + $0x28] sm:$0xff] }
   0xe   :  { %v90_v4 = vmul.f32 5.0, %v58_v2  ;;  %v3665_v6 = vld [vmem:[%s15453_s3 + $0x20] sm:$0xff]  ;;  %v3698_v7 = vld [vmem:[%s15454_s4 + $0x28] sm:$0xff]  ;;  %v61_v9 = vld [vmem:[%s15452_s0 + $0xf0] sm:$0xff] }
   0xf   :  { %v3697_v8 = vld [vmem:[%s15454_s4 + $0x20] sm:$0xff]  ;;  %v60_v10 = vld [vmem:[%s15452_s0 + $0xe8] sm:$0xff]  ;;  %v93_v11 = vmul.f32 5.0, %v61_v9  ;;  %v3668_v13 = vld [vmem:[%s15453_s3 + $0x38] sm:$0xff] }
  0x10   :  { %128 = vperm.xlu1 %7519, %v69_v15   ;;  %123 = vperm.xlu0 %7518, %v68_v16   ;;  %v92_v12 = vmul.f32 5.0, %v60_v10  ;;  %v3667_v14 = vld [vmem:[%s15453_s3 + $0x30] sm:$0xff]  ;;  %v3700_v15 = vld [vmem:[%s15454_s4 + $0x38] sm:$0xff]  ;;  %v3670_v17 = vld [vmem:[%s15453_s3 + $0x48] sm:$0xff]  ;;  %v15467_v10 = vmov 2131351028  }
  0x11   :  { %v3699_v16 = vld [vmem:[%s15454_s4 + $0x30] sm:$0xff]  ;;  %v3669_v18 = vld [vmem:[%s15453_s3 + $0x40] sm:$0xff]  ;;  %v3672_v21 = vld [vmem:[%s15453_s3 + $0x58] sm:$0xff] }
  0x12   :  { %v3671_v22 = vld [vmem:[%s15453_s3 + $0x50] sm:$0xff]  ;;  %v3674_v25 = vld [vmem:[%s15453_s3 + $0x68] sm:$0xff]  ;;  %v3673_v26 = vld [vmem:[%s15453_s3 + $0x60] sm:$0xff] }
  0x13   :  { %v3676_v29 = vld [vmem:[%s15453_s3 + $0x78] sm:$0xff]  ;;  %v3675_v30 = vld [vmem:[%s15453_s3 + $0x70] sm:$0xff]  ;;  %v8056_v33 = vld [vmem:[%s15455_s1] ss:$0 sm:$0xff] }
  0x14   :  { %138 = vperm.xlu1 %7519, %v71_v19   ;;  %133 = vperm.xlu0 %7518, %v70_v20   ;;  %v3702_v19 = vld [vmem:[%s15454_s4 + $0x48] sm:$0xff]  ;;  %v3701_v20 = vld [vmem:[%s15454_s4 + $0x40] sm:$0xff] }
  0x15   :  { %v3678_v34 = vld [vmem:[%s15453_s3 + $0x88] sm:$0xff]  ;;  %v3709_v42 = vld [vmem:[%s15454_s4 + $0x80] sm:$0xff] }
  0x16   :  { %v3710_v41 = vld [vmem:[%s15454_s4 + $0x88] sm:$0xff] }
  0x18   :  { %148 = vperm.xlu1 %7519, %v73_v23   ;;  %143 = vperm.xlu0 %7518, %v72_v24   ;;  %v3704_v23 = vld [vmem:[%s15454_s4 + $0x58] sm:$0xff]  ;;  %v3703_v24 = vld [vmem:[%s15454_s4 + $0x50] sm:$0xff] }
  0x1c   :  { %158 = vperm.xlu1 %7519, %v75_v27   ;;  %153 = vperm.xlu0 %7518, %v74_v28   ;;  %v3706_v27 = vld [vmem:[%s15454_s4 + $0x68] sm:$0xff]  ;;  %v3705_v28 = vld [vmem:[%s15454_s4 + $0x60] sm:$0xff] }
  0x20   :  { %168 = vperm.xlu1 %7519, %v77_v31   ;;  %163 = vperm.xlu0 %7518, %v76_v32   ;;  %v3708_v31 = vld [vmem:[%s15454_s4 + $0x78] sm:$0xff]  ;;  %v3707_v32 = vld [vmem:[%s15454_s4 + $0x70] sm:$0xff] }
  0x24   :  { %178 = vperm.xlu1 %7519, %v79_v35   ;;  %173 = vperm.xlu0 %7518, %v78_v36   ;;  %v3677_v35 = vld [vmem:[%s15453_s3 + $0x80] sm:$0xff] }
  0x25   :  { %v8067_v36 = vld [vmem:[%s15456_s2] ss:$0 sm:$0xff] }
  0x28   :  { %188 = vperm.xlu1 %7519, %v81_v39   ;;  %183 = vperm.xlu0 %7518, %v80_v40  }
  0x2c   :  { %198 = vperm.xlu1 %7519, %v83_v43   ;;  %193 = vperm.xlu0 %7518, %v82_v44  }
  0x30   :  { %208 = vperm.xlu1 %7519, %v85_v47   ;;  %203 = vperm.xlu0 %7518, %v84_v48   ;;  %v3680_v47 = vld [vmem:[%s15453_s3 + $0x98] sm:$0xff]  ;;  %v3679_v48 = vld [vmem:[%s15453_s3 + $0x90] sm:$0xff] }
  0x34   :  { %218 = vperm.xlu1 %7519, %v87_v51   ;;  %213 = vperm.xlu0 %7518, %v86_v52  }
  0x38   :  { %4171 = vperm.xlu1 %7519, %v3662_v53   ;;  %4166 = vperm.xlu0 %7518, %v3661_v54  }
  0x3c   :  { %4395 = vperm.xlu1 %7519, %v3694_v55   ;;  %4390 = vperm.xlu0 %7518, %v3693_v56  }
  0x40   :  { %228 = vperm.xlu1 %7519, %v89_v59   ;;  %223 = vperm.xlu0 %7518, %v88_v60  }
  0x44   :  { %4181 = vperm.xlu1 %7519, %v3664_v61   ;;  %4176 = vperm.xlu0 %7518, %v3663_v62  }
  0x48   :  { %4405 = vperm.xlu1 %7519, %v3696_v63   ;;  %4400 = vperm.xlu0 %7518, %v3695_v0  }
  0x4c   :  { %238 = vperm.xlu1 %7519, %v91_v3   ;;  %233 = vperm.xlu0 %7518, %v90_v4   ;;  %v15471_v4 = vmov 683565275  }
  0x50   :  { %4191 = vperm.xlu1 %7519, %v3666_v5   ;;  %4186 = vperm.xlu0 %7518, %v3665_v6   ;;  %v15465_v6 = vmov 2475754826  }
  0x54   :  { %4415 = vperm.xlu1 %7519, %v3698_v7   ;;  %4410 = vperm.xlu0 %7518, %v3697_v8  }
  0x58   :  { %248 = vperm.xlu1 %7519, %v93_v11   ;;  %243 = vperm.xlu0 %7518, %v92_v12  }
  0x5c   :  { %4201 = vperm.xlu1 %7519, %v3668_v13   ;;  %4196 = vperm.xlu0 %7518, %v3667_v14   ;;  %v15469_v13 = vmov 2102212464  }
  0x60   :  { %4425 = vperm.xlu1 %7519, %v3700_v15   ;;  %4420 = vperm.xlu0 %7518, %v3699_v16   ;;  %v15475_v16 = vmov 920167782  }
  0x64   :  { %4211 = vperm.xlu1 %7519, %v3670_v17   ;;  %4206 = vperm.xlu0 %7518, %v3669_v18  }
  0x68   :  { %4435 = vperm.xlu1 %7519, %v3702_v19   ;;  %4430 = vperm.xlu0 %7518, %v3701_v20   ;;  %v15473_v19 = vmov 1326507024  }
  0x6c   :  { %4221 = vperm.xlu1 %7519, %v3672_v21   ;;  %4216 = vperm.xlu0 %7518, %v3671_v22  }
  0x70   :  { %4445 = vperm.xlu1 %7519, %v3704_v23   ;;  %4440 = vperm.xlu0 %7518, %v3703_v24  }
  0x74   :  { %4231 = vperm.xlu1 %7519, %v3674_v25   ;;  %4226 = vperm.xlu0 %7518, %v3673_v26  }
  0x78   :  { %4455 = vperm.xlu1 %7519, %v3706_v27   ;;  %4450 = vperm.xlu0 %7518, %v3705_v28  }
  0x7c   :  { %4241 = vperm.xlu1 %7519, %v3676_v29   ;;  %4236 = vperm.xlu0 %7518, %v3675_v30  }
  0x80   :  { %4465 = vperm.xlu1 %7519, %v3708_v31   ;;  %4460 = vperm.xlu0 %7518, %v3707_v32  }
  0x83   :  { %v109_v37 = vpop.permute.xlu1 %108  ;;  %v99_v38 = vpop.permute.xlu0 %98 }
  0x84   :  { %v264_v39 = vmul.f32 %v8056_v33, %v109_v37  ;;  %v262_v40 = vmul.f32 %v8056_v33, %v99_v38  ;;  %4251 = vperm.xlu1 %7519, %v3678_v34   ;;  %4246 = vperm.xlu0 %7518, %v3677_v35  }
  0x86   :  { %v8078_v43 = vadd.f32 %v8067_v36, %v264_v39  ;;  %v8081_v44 = vadd.f32 %v8067_v36, %v262_v40 }
  0x87   :  { %v254_v50 = vpop.permute.xlu1 %253 }
  0x88   :  { %15905 = vst [vmem:[#allocation3_spill] sm:$0xff] %v8078_v43  ;;  %v544_v45 = vand.u32 2139095040, %v8078_v43  ;;  %4475 = vperm.xlu1 %7519, %v3710_v41   ;;  %4470 = vperm.xlu0 %7518, %v3709_v42   ;;  %v336_v46 = vand.u32 2139095040, %v8081_v44  ;;  %v293_v54 = vmul.f32 %v8056_v33, %v254_v50  ;;  %v541_v57 = vand.u32 2147483647, %v8078_v43 }
  0x89   :  { %v333_v58 = vand.u32 2147483647, %v8081_v44 }
  0x8a   :  { %v545_v49 = vshrl.u32 %v544_v45, 23  ;;  %v337_v51 = vshrl.u32 %v336_v46, 23  ;;  %v8095_v60 = vadd.f32 %v8067_v36, %v293_v54  ;;  %v548_v63 = vand.u32 8388607, %v541_v57 }
  0x8b   :  { %v8103_v1 = vand.u32 8388607, %v333_v58 }
  0x8c   :  { %v7118_v52 = vadd.s32 4294967169, %v545_v49  ;;  %4261 = vperm.xlu1 %7519, %v3680_v47   ;;  %4256 = vperm.xlu0 %7518, %v3679_v48   ;;  %v7110_v53 = vadd.s32 4294967169, %v337_v51  ;;  %v3560_v8 = vand.u32 2139095040, %v8095_v60  ;;  %v549_v25 = vor.u32 8388608, %v548_v63  ;;  %v3712_v63 = vld [vmem:[%s15454_s4 + $0x98] sm:$0xff] }
  0x8d   :  { %v341_v28 = vor.u32 8388608, %v8103_v1  ;;  %v3711_v1 = vld [vmem:[%s15454_s4 + $0x90] sm:$0xff] }
  0x8e   :  { %v551_v55 = vadd.s32 1, %v7118_v52  ;;  %v343_v56 = vadd.s32 1, %v7110_v53  ;;  %v3561_v38 = vshrl.u32 %v3560_v8, 23  ;;  %v8163_v46 = vshll.u32 %v549_v25, 8 }
  0x90   :  { %vm552_vm0 = vcmp.gt.s32.totalorder %v551_v55, 0  ;;  %vm344_vm1 = vcmp.gt.s32.totalorder %v343_v56, 0  ;;  %4485 = vperm.xlu1 %7519, %v3712_v63   ;;  %4480 = vperm.xlu0 %7518, %v3711_v1  }
  0x91   :  { %v553_v59 = vsel %vm552_vm0, %v551_v55, 0  ;;  %v345_v62 = vsel %vm344_vm1, %v343_v56, 0  ;;  %v7234_v55 = vadd.s32 4294967169, %v3561_v38 }
  0x92   :  { %v555_v61 = vand.u32 31, %v553_v59  ;;  %v347_v2 = vand.u32 31, %v345_v62  ;;  %v8105_v3 = vshrl.u32 %v553_v59, 5  ;;  %v346_v47 = vshrl.u32 %v345_v62, 5 }
  0x93   :  { %v3567_v25 = vadd.s32 1, %v7234_v55 }
  0x94   :  { %v8099_v0 = vsub.s32 32, %v555_v61  ;;  %v558_v5 = vshll.u32 %v15471_v4, %v555_v61  ;;  %v561_v7 = vshll.u32 %v15465_v6, %v555_v61  ;;  %v564_v12 = vshll.u32 %v15467_v10, %v555_v61 }
  0x95   :  { %v567_v15 = vshll.u32 %v15469_v13, %v555_v61  ;;  %v570_v18 = vshll.u32 %v15475_v16, %v555_v61  ;;  %v8129_v24 = vsub.s32 32, %v347_v2  ;;  %vm573_vm2 = vcmp.lt.s32.totalorder %v8105_v3, 1 }
  0x96   :  { %v559_v9 = vshrl.u32 %v15465_v6, %v8099_v0  ;;  %v562_v11 = vshrl.u32 %v15467_v10, %v8099_v0  ;;  %v565_v14 = vshrl.u32 %v15469_v13, %v8099_v0  ;;  %v568_v17 = vshrl.u32 %v15475_v16, %v8099_v0 }
  0x97   :  { %v571_v20 = vshrl.u32 %v15473_v19, %v8099_v0  ;;  %vm575_vm3 = vcmp.lt.s32.totalorder %v8105_v3, 3  ;;  %vm576_vm4 = vcmp.lt.s32.totalorder %v8105_v3, 4  ;;  %v351_v37 = vshrl.u32 %v15465_v6, %v8129_v24 }
  0x98   :  { %v8123_v21 = vor.u32 %v559_v9, %v558_v5  ;;  %v8125_v22 = vor.u32 %v562_v11, %v561_v7  ;;  %v8127_v23 = vor.u32 %v565_v14, %v564_v12  ;;  %v569_v26 = vor.u32 %v568_v17, %v567_v15 }
  0x99   :  { %v572_v27 = vor.u32 %v571_v20, %v570_v18  ;;  %vm574_vm5 = vcmp.lt.s32.totalorder %v8105_v3, 2  ;;  %v350_v39 = vshll.u32 %v15471_v4, %v347_v2  ;;  %v353_v40 = vshll.u32 %v15465_v6, %v347_v2 }
  0x9a   :  { %v581_v29 = vsel %vm573_vm2, %v8123_v21, %v8125_v22  ;;  %v582_v30 = vsel %vm576_vm4, %v569_v26, 920167782  ;;  %v585_v31 = vsel %vm573_vm2, %v8125_v22, %v8127_v23  ;;  %v354_v41 = vshrl.u32 %v15467_v10, %v8129_v24 }
  0x9b   :  { %v586_v32 = vsel %vm576_vm4, %v572_v27, 1326507024  ;;  %v583_v34 = vsel %vm575_vm3, %v8127_v23, %v582_v30  ;;  %v352_v48 = vor.u32 %v351_v37, %v350_v39  ;;  %v356_v50 = vshll.u32 %v15467_v10, %v347_v2 }
  0x9c   :  { %v587_v35 = vsel %vm575_vm3, %v569_v26, %v586_v32  ;;  %v584_v42 = vsel %vm574_vm5, %v581_v29, %v583_v34  ;;  %v355_v49 = vor.u32 %v354_v41, %v353_v40  ;;  %v357_v51 = vshrl.u32 %v15469_v13, %v8129_v24 }
  0x9d   :  { %v588_v45 = vsel %vm574_vm5, %v585_v31, %v587_v35  ;;  %v359_v52 = vshll.u32 %v15469_v13, %v347_v2  ;;  %v360_v53 = vshrl.u32 %v15475_v16, %v8129_v24  ;;  %v363_v54 = vshrl.u32 %v15473_v19, %v8129_v24 }
  0x9e   :  { %v8174_v56 = vmul.u32.u64.low %v8163_v46, %v588_v45  ;;  %v8175_v59 = vmul.u32.u64.high %v8163_v46, %v588_v45, %v8174_v56  ;;  %v358_v61 = vor.u32 %v357_v51, %v356_v50  ;;  %v362_v62 = vshll.u32 %v15475_v16, %v347_v2  ;;  %v104_v51 = vpop.permute.xlu0 %103 }
  0x9f   :  { %v8185_v5 = vmul.u32.u64.low %v8163_v46, %v584_v42  ;;  %v8186_v7 = vmul.u32.u64.high %v8163_v46, %v584_v42, %v8185_v5  ;;  %v361_v8 = vor.u32 %v360_v53, %v359_v52  ;;  %vm365_vm6 = vcmp.lt.s32.totalorder %v346_v47, 1 }
  0xa0   :  { %v364_v9 = vor.u32 %v363_v54, %v362_v62  ;;  %vm368_vm7 = vcmp.lt.s32.totalorder %v346_v47, 4  ;;  %v373_v2 = vsel %vm365_vm6, %v352_v48, %v355_v49  ;;  %vm367_vm8 = vcmp.lt.s32.totalorder %v346_v47, 3 }
  0xa1   :  { %v374_v11 = vsel %vm368_vm7, %v361_v8, 920167782  ;;  %v377_v12 = vsel %vm365_vm6, %v355_v49, %v358_v61  ;;  %vm366_vm9 = vcmp.lt.s32.totalorder %v346_v47, 2  ;;  %v381_v17 = vshll.u32 %v341_v28, 8 }
  0xa2   :  { %v375_v14 = vsel %vm367_vm8, %v358_v61, %v374_v11  ;;  %v378_v15 = vsel %vm368_vm7, %v364_v9, 1326507024  ;;  %vm3568_vm10 = vcmp.gt.s32.totalorder %v3567_v25, 0  ;;  %v370_v32 = vsel %vm368_vm7, %v358_v61, 2102212464 }
  0xa3   :  { %v376_v18 = vsel %vm366_vm9, %v373_v2, %v375_v14  ;;  %v379_v20 = vsel %vm367_vm8, %v361_v8, %v378_v15  ;;  %v578_v28 = vsel %vm576_vm4, %v8127_v23, 2102212464  ;;  %v349_v34 = vshrl.u32 %v15471_v4, %v8129_v24 }
  0xa4   :  { %v380_v26 = vsel %vm366_vm9, %v377_v12, %v379_v20  ;;  %v8197_v27 = vmul.u32.u64.low %v381_v17, %v376_v18  ;;  %v8198_v29 = vmul.u32.u64.high %v381_v17, %v376_v18, %v8197_v27  ;;  %v3569_v35 = vsel %vm3568_vm10, %v3567_v25, 0 }
  0xa5   :  { %v8201_v30 = vmul.u32.u64.low %v381_v17, %v380_v26  ;;  %v8202_v31 = vmul.u32.u64.high %v381_v17, %v380_v26, %v8201_v30  ;;  %v557_v37 = vshrl.u32 %v15471_v4, %v8099_v0  ;;  %v369_v38 = vsel %vm365_vm6, %v349_v34, %v352_v48 }
  0xa6   :  { %v371_v39 = vsel %vm367_vm8, %v355_v49, %v370_v32  ;;  %v579_v41 = vsel %vm575_vm3, %v8125_v22, %v578_v28  ;;  %v391_v23 = vadd.s32 1, %v8198_v29  ;;  %v3571_v42 = vand.u32 31, %v3569_v35 }
  0xa7   :  { %v577_v40 = vsel %vm573_vm2, %v557_v37, %v8123_v21  ;;  %v599_v24 = vadd.s32 1, %v8186_v7  ;;  %vm390_vm11 = vc.u32 %v8202_v31, %v8197_v27  ;;  %vm598_vm12 = vc.u32 %v8175_v59, %v8185_v5 }
  0xa8   :  { %v372_v0 = vsel %vm366_vm9, %v369_v38, %v371_v39  ;;  %v580_v21 = vsel %vm574_vm5, %v577_v40, %v579_v41  ;;  %v392_v45 = vsel %vm390_vm11, %v391_v23, %v8198_v29  ;;  %v3572_v48 = vsub.s32 32, %v3571_v42 }
  0xa9   :  { %v600_v22 = vsel %vm598_vm12, %v599_v24, %v8186_v7  ;;  %v388_v49 = vmul.u32 %v381_v17, %v372_v0  ;;  %v596_v50 = vmul.u32 %v8163_v46, %v580_v21  ;;  %v263_v47 = vmul.f32 %v8056_v33, %v104_v51 }
  0xaa   :  { %v3584_v54 = vshrl.u32 %v15475_v16, %v3572_v48  ;;  %v3587_v55 = vshrl.u32 %v15473_v19, %v3572_v48  ;;  %v3557_v3 = vand.u32 2147483647, %v8095_v60  ;;  %v3570_v56 = vshrl.u32 %v3569_v35, 5 }
  0xab   :  { %v393_v52 = vadd.s32 %v392_v45, %v388_v49  ;;  %v601_v53 = vadd.s32 %v600_v22, %v596_v50  ;;  %v3575_v61 = vshrl.u32 %v15465_v6, %v3572_v48  ;;  %v3583_v62 = vshll.u32 %v15469_v13, %v3571_v42 }
  0xac   :  { %v3578_v1 = vshrl.u32 %v15467_v10, %v3572_v48  ;;  %v3581_v46 = vshrl.u32 %v15469_v13, %v3572_v48  ;;  %v3586_v7 = vshll.u32 %v15475_v16, %v3571_v42  ;;  %v3574_v9 = vshll.u32 %v15471_v4, %v3571_v42 }
  0xad   :  { %v394_v63 = vadd.s32 536870912, %v393_v52  ;;  %v602_v8 = vadd.s32 536870912, %v601_v53  ;;  %v3585_v2 = vor.u32 %v3584_v54, %v3583_v62  ;;  %v3577_v11 = vshll.u32 %v15465_v6, %v3571_v42 }
  0xae   :  { %v3580_v12 = vshll.u32 %v15467_v10, %v3571_v42  ;;  %v3588_v14 = vor.u32 %v3587_v55, %v3586_v7  ;;  %v3564_v15 = vand.u32 8388607, %v3557_v3  ;;  %v3576_v17 = vor.u32 %v3575_v61, %v3574_v9  ;;  %v119_v61 = vpop.permute.xlu1 %118 }
  0xaf   :  { %v8247_v18 = vadd.f32 %v8067_v36, %v263_v47  ;;  %v8249_v20 = vshrl.u32 %v394_v63, 30  ;;  %v3579_v25 = vor.u32 %v3578_v1, %v3577_v11  ;;  %vm3592_vm13 = vcmp.lt.s32.totalorder %v3570_v56, 4 }
  0xb0   :  { %v3582_v26 = vor.u32 %v3581_v46, %v3580_v12  ;;  %v8251_v29 = vshrl.u32 %v602_v8, 30  ;;  %v3598_v30 = vsel %vm3592_vm13, %v3585_v2, 920167782  ;;  %v3602_v32 = vsel %vm3592_vm13, %v3588_v14, 1326507024 }
  0xb1   :  { %15906 = vst [vmem:[#allocation4_spill] sm:$0xff] %v8247_v18  ;;  %vm3589_vm14 = vcmp.lt.s32.totalorder %v3570_v56, 1  ;;  %vm3591_vm15 = vcmp.lt.s32.totalorder %v3570_v56, 3  ;;  %v440_v28 = vand.u32 2139095040, %v8247_v18  ;;  %v396_v34 = vshll.u32 %v8249_v20, 30 }
  0xb2   :  { %v3565_v35 = vor.u32 8388608, %v3564_v15  ;;  %v3597_v37 = vsel %vm3589_vm14, %v3576_v17, %v3579_v25  ;;  %v3599_v38 = vsel %vm3591_vm15, %v3582_v26, %v3598_v30  ;;  %v604_v39 = vshll.u32 %v8251_v29, 30  ;;  %v3682_v30 = vld [vmem:[%s15453_s3 + $0xa8] sm:$0xff] }
  0xb3   :  { %v3601_v40 = vsel %vm3589_vm14, %v3579_v25, %v3582_v26  ;;  %v3603_v41 = vsel %vm3591_vm15, %v3585_v2, %v3602_v32  ;;  %vm3590_vm0 = vcmp.lt.s32.totalorder %v3570_v56, 2  ;;  %v441_v42 = vshrl.u32 %v440_v28, 23  ;;  %v3681_v56 = vld [vmem:[%s15453_s3 + $0xa0] sm:$0xff]  ;;  %4271 = vperm.xlu1 %7519, %v3682_v30  }
  0xb4   :  { %v3600_v23 = vsel %vm3590_vm0, %v3597_v37, %v3599_v38  ;;  %v8263_v24 = vsub.s32 %v393_v52, %v396_v34  ;;  %v3604_v0 = vsel %vm3590_vm0, %v3601_v40, %v3603_v41  ;;  %v3605_v21 = vshll.u32 %v3565_v35, 8  ;;  %v114_v37 = vpop.permute.xlu0 %113  ;;  %4266 = vperm.xlu0 %7518, %v3681_v56  }
  0xb5   :  { %v8266_v45 = vsub.s32 %v601_v53, %v604_v39  ;;  %v7114_v54 = vadd.s32 4294967169, %v441_v42  ;;  %v3594_v52 = vsel %vm3592_vm13, %v3582_v26, 2102212464  ;;  %v3573_v62 = vshrl.u32 %v15471_v4, %v3572_v48 }
  0xb6   :  { %v8268_v22 = vmul.u32.u64.low %v3605_v21, %v3600_v23  ;;  %v8269_v49 = vmul.u32.u64.high %v3605_v21, %v3600_v23, %v8268_v22  ;;  %v8272_v50 = vmul.u32.u64.low %v3605_v21, %v3604_v0  ;;  %v8273_v51 = vmul.u32.u64.high %v3605_v21, %v3604_v0, %v8272_v50 }
  0xb7   :  { %v399_v55 = vsub.s32 0, %v8263_v24  ;;  %v607_v47 = vsub.s32 0, %v8266_v45  ;;  %v447_v63 = vadd.s32 1, %v7114_v54  ;;  %v3593_v46 = vsel %vm3589_vm14, %v3573_v62, %v3576_v17 }
  0xb8   :  { %v3595_v7 = vsel %vm3591_vm15, %v3579_v25, %v3594_v52  ;;  %v266_v8 = vmul.f32 %v8056_v33, %v119_v61  ;;  %v3615_v9 = vadd.s32 1, %v8269_v49  ;;  %vm3614_vm1 = vc.u32 %v8273_v51, %v8268_v22 }
  0xb9   :  { %v7111_v53 = vmin.u32 %v399_v55, %v8263_v24  ;;  %v7119_v1 = vmin.u32 %v607_v47, %v8266_v45  ;;  %vm448_vm2 = vcmp.gt.s32.totalorder %v447_v63, 0  ;;  %v3596_v48 = vsel %vm3590_vm0, %v3593_v46, %v3595_v7 }
  0xba   :  { %v8289_v12 = vadd.f32 %v8067_v36, %v266_v8  ;;  %v3616_v14 = vsel %vm3614_vm1, %v3615_v9, %v8269_v49  ;;  %v449_v15 = vsel %vm448_vm2, %v447_v63, 0  ;;  %v3612_v17 = vmul.u32 %v3605_v21, %v3596_v48 }
  0xbb   :  { %v401_v2 = vclz %v7111_v53  ;;  %v609_v11 = vclz %v7119_v1  ;;  %v15462_v26 = vand.u32 2147483647, %v8247_v18  ;;  %v451_v34 = vand.u32 31, %v449_v15 }
  0xbc   :  { %v3617_v28 = vadd.s32 %v3616_v14, %v3612_v17  ;;  %v752_v35 = vand.u32 2139095040, %v8289_v12  ;;  %v265_v40 = vmul.f32 %v8056_v33, %v114_v37  ;;  %v15461_v63 = vand.u32 2147483647, %v8289_v12 }
  0xbd   :  { %v7112_v25 = vadd.s32 4294967294, %v401_v2  ;;  %v7120_v32 = vadd.s32 4294967294, %v609_v11  ;;  %v444_v39 = vand.u32 8388607, %v15462_v26  ;;  %v8303_v23 = vsub.s32 32, %v451_v34 }
  0xbe   :  { %v753_v38 = vshrl.u32 %v752_v35, 23  ;;  %v3618_v41 = vadd.s32 536870912, %v3617_v28  ;;  %v8316_v52 = vadd.f32 %v8067_v36, %v265_v40  ;;  %v463_v46 = vshll.u32 %v15469_v13, %v451_v34 }
  0xbf   :  { %vm7113_vm3 = vcmp.lt.s32.totalorder %v7112_v25, 0  ;;  %vm7121_vm4 = vcmp.lt.s32.totalorder %v7120_v32, 0  ;;  %v445_v49 = vor.u32 8388608, %v444_v39  ;;  %v464_v55 = vshrl.u32 %v15475_v16, %v8303_v23 }
  0xc0   :  { %v7126_v42 = vadd.s32 4294967169, %v753_v38  ;;  %v8305_v0 = vsel %vm7113_vm3, 0, %v7112_v25  ;;  %v8307_v21 = vsel %vm7121_vm4, 0, %v7120_v32  ;;  %v8309_v54 = vshrl.u32 %v3618_v41, 30  ;;  %15907 = vst [vmem:[#allocation5_spill] sm:$0xff] %v8316_v52 }
  0xc1   :  { %v467_v47 = vshrl.u32 %v15473_v19, %v8303_v23  ;;  %v409_v61 = vsub.s32 4294967266, %v8305_v0  ;;  %v455_v62 = vshrl.u32 %v15465_v6, %v8303_v23  ;;  %v458_v53 = vshrl.u32 %v15467_v10, %v8303_v23 }
  0xc2   :  { %v759_v50 = vadd.s32 1, %v7126_v42  ;;  %v461_v1 = vshrl.u32 %v15469_v13, %v8303_v23  ;;  %v466_v7 = vshll.u32 %v15475_v16, %v451_v34  ;;  %v8328_v8 = vshrl.u32 %v449_v15, 5 }
  0xc3   :  { %v454_v9 = vshll.u32 %v15471_v4, %v451_v34  ;;  %v457_v2 = vshll.u32 %v15465_v6, %v451_v34  ;;  %v3620_v11 = vshll.u32 %v8309_v54, 30  ;;  %v460_v14 = vshll.u32 %v15467_v10, %v451_v34 }
  0xc4   :  { %vm760_vm5 = vcmp.gt.s32.totalorder %v759_v50, 0  ;;  %v465_v17 = vor.u32 %v464_v55, %v463_v46  ;;  %v468_v25 = vor.u32 %v467_v47, %v466_v7  ;;  %v405_v30 = vsub.s32 32, %v8305_v0 }
  0xc5   :  { %v761_v48 = vsel %vm760_vm5, %v759_v50, 0  ;;  %v8335_v56 = vadd.s32 127, %v409_v61  ;;  %v8337_v32 = vshll.u32 %v445_v49, 8  ;;  %v8339_v15 = vor.u32 %v455_v62, %v454_v9 }
  0xc6   :  { %v763_v35 = vand.u32 31, %v761_v48  ;;  %v8341_v37 = vor.u32 %v458_v53, %v457_v2  ;;  %v8343_v38 = vor.u32 %v461_v1, %v460_v14  ;;  %v648_v39 = vand.u32 2139095040, %v8316_v52 }
  0xc7   :  { %vm469_vm6 = vcmp.lt.s32.totalorder %v8328_v8, 1  ;;  %vm470_vm7 = vcmp.lt.s32.totalorder %v8328_v8, 2  ;;  %vm472_vm8 = vcmp.lt.s32.totalorder %v8328_v8, 4  ;;  %v8351_v40 = vsub.s32 %v3617_v28, %v3620_v11 }
  0xc8   :  { %v8349_v34 = vsub.s32 32, %v763_v35  ;;  %v478_v41 = vsel %vm472_vm8, %v465_v17, 920167782  ;;  %v482_v42 = vsel %vm472_vm8, %v468_v25, 1326507024  ;;  %v766_v50 = vshll.u32 %v15471_v4, %v763_v35 }
  0xc9   :  { %v756_v49 = vand.u32 8388607, %v15461_v63  ;;  %v769_v47 = vshll.u32 %v15465_v6, %v763_v35  ;;  %v8365_v61 = vshrl.u32 %v761_v48, 5  ;;  %v772_v62 = vshll.u32 %v15467_v10, %v763_v35 }
  0xca   :  { %v767_v55 = vshrl.u32 %v15465_v6, %v8349_v34  ;;  %v770_v28 = vshrl.u32 %v15467_v10, %v8349_v34  ;;  %v773_v53 = vshrl.u32 %v15469_v13, %v8349_v34  ;;  %v649_v1 = vshrl.u32 %v648_v39, 23 }
  0xcb   :  { %v775_v9 = vshll.u32 %v15469_v13, %v763_v35  ;;  %v776_v2 = vshrl.u32 %v15475_v16, %v8349_v34  ;;  %v3623_v11 = vsub.s32 0, %v8351_v40  ;;  %vm471_vm9 = vcmp.lt.s32.totalorder %v8328_v8, 3 }
  0xcc   :  { %v8370_v46 = vor.u32 %v767_v55, %v766_v50  ;;  %v8372_v7 = vor.u32 %v770_v28, %v769_v47  ;;  %v477_v48 = vsel %vm469_vm6, %v8339_v15, %v8341_v37  ;;  %v774_v14 = vor.u32 %v773_v53, %v772_v62 }
  0xcd   :  { %v479_v25 = vsel %vm471_vm9, %v8343_v38, %v478_v41  ;;  %v777_v39 = vor.u32 %v776_v2, %v775_v9  ;;  %v778_v50 = vshll.u32 %v15475_v16, %v763_v35  ;;  %v779_v55 = vshrl.u32 %v15473_v19, %v8349_v34 }
  0xce   :  { %v481_v47 = vsel %vm469_vm6, %v8341_v37, %v8343_v38  ;;  %v483_v28 = vsel %vm471_vm9, %v465_v17, %v482_v42  ;;  %vm781_vm10 = vcmp.lt.s32.totalorder %v8365_v61, 1  ;;  %v7122_v62 = vadd.s32 4294967169, %v649_v1 }
  0xcf   :  { %v757_v53 = vor.u32 8388608, %v756_v49  ;;  %v780_v63 = vor.u32 %v779_v55, %v778_v50  ;;  %vm784_vm11 = vcmp.lt.s32.totalorder %v8365_v61, 4  ;;  %v789_v35 = vsel %vm781_vm10, %v8370_v46, %v8372_v7 }
  0xd0   :  { %v480_v41 = vsel %vm470_vm7, %v477_v48, %v479_v25  ;;  %vm783_vm12 = vcmp.lt.s32.totalorder %v8365_v61, 3  ;;  %v790_v17 = vsel %vm784_vm11, %v777_v39, 920167782  ;;  %v793_v42 = vsel %vm781_vm10, %v8372_v7, %v774_v14 }
  0xd1   :  { %v484_v49 = vsel %vm470_vm7, %v481_v47, %v483_v28  ;;  %vm782_vm13 = vcmp.lt.s32.totalorder %v8365_v61, 2  ;;  %v791_v1 = vsel %vm783_vm12, %v774_v14, %v790_v17  ;;  %v794_v9 = vsel %vm784_vm11, %v780_v63, 1326507024 }
  0xd2   :  { %v7235_v2 = vmin.u32 %v3623_v11, %v8351_v40  ;;  %v792_v48 = vsel %vm782_vm13, %v789_v35, %v791_v1  ;;  %v795_v25 = vsel %vm783_vm12, %v777_v39, %v794_v9  ;;  %v655_v50 = vadd.s32 1, %v7122_v62 }
  0xd3   :  { %v8422_v55 = vmul.u32.u64.low %v8337_v32, %v480_v41  ;;  %v8423_v47 = vmul.u32.u64.high %v8337_v32, %v480_v41, %v8422_v55  ;;  %v796_v28 = vsel %vm782_vm13, %v793_v42, %v795_v25  ;;  %v8428_v17 = vshll.u32 %v757_v53, 8 }
  0xd4   :  { %v617_v63 = vsub.s32 4294967266, %v8307_v21  ;;  %v8432_v11 = vmul.u32.u64.low %v8337_v32, %v484_v49  ;;  %v8433_v26 = vmul.u32.u64.high %v8337_v32, %v484_v49, %v8432_v11  ;;  %vm543_vm14 = vcmp.lt.s32.totalorder %v8078_v43, 0 }
  0xd5   :  { %v389_v39 = vadd.s32 %v8197_v27, %v8202_v31  ;;  %v411_v62 = vshll.u32 %v8335_v56, 23  ;;  %v8440_v35 = vmul.u32.u64.low %v8428_v17, %v792_v48  ;;  %v8441_v41 = vmul.u32.u64.high %v8428_v17, %v792_v48, %v8440_v35 }
  0xd6   :  { %vm335_vm15 = vcmp.lt.s32.totalorder %v8081_v44, 0  ;;  %v8446_v53 = vmul.u32.u64.low %v8428_v17, %v796_v28  ;;  %v8447_v42 = vmul.u32.u64.high %v8428_v17, %v796_v28, %v8446_v53  ;;  %vm656_vm0 = vcmp.gt.s32.totalorder %v655_v50, 0 }
  0xd7   :  { %v613_v49 = vsub.s32 32, %v8307_v21  ;;  %v407_v1 = vshrl.u32 %v389_v39, %v405_v30  ;;  %v3625_v27 = vclz %v7235_v2  ;;  %v474_v31 = vsel %vm472_vm8, %v8343_v38, 2102212464 }
  0xd8   :  { %v597_v56 = vadd.s32 %v8185_v5, %v8175_v59  ;;  %v618_v9 = vadd.s32 127, %v617_v63  ;;  %v627_v48 = vsub.s32 4, %v8251_v29  ;;  %v453_v25 = vshrl.u32 %v15471_v4, %v8303_v23 }
  0xd9   :  { %v406_v28 = vshll.u32 %v8263_v24, %v8305_v0  ;;  %v412_v11 = vor.u32 4788187, %v411_v62  ;;  %v786_v30 = vsel %vm784_vm11, %v774_v14, 2102212464  ;;  %v657_v2 = vsel %vm656_vm0, %v655_v50, 0 }
  0xda   :  { %v419_v39 = vsub.s32 4, %v8249_v20  ;;  %v473_v59 = vsel %vm469_vm6, %v453_v25, %v8339_v15  ;;  %v475_v5 = vsel %vm471_vm9, %v8341_v37, %v474_v31  ;;  %v765_v23 = vshrl.u32 %v15471_v4, %v8349_v34 }
  0xdb   :  { %v615_v38 = vshrl.u32 %v597_v56, %v613_v49  ;;  %v408_v24 = vor.u32 %v407_v1, %v406_v28  ;;  %v7236_v0 = vadd.s32 4294967294, %v3625_v27  ;;  %v495_v63 = vadd.s32 1, %v8423_v47  ;;  %v129_v49 = vpop.permute.xlu1 %128 }
  0xdc   :  { %vm494_vm1 = vc.u32 %v8433_v26, %v8422_v55  ;;  %v785_v14 = vsel %vm781_vm10, %v765_v23, %v8370_v46  ;;  %v787_v15 = vsel %vm783_vm12, %v8372_v7, %v786_v30  ;;  %v659_v37 = vand.u32 31, %v657_v2 }
  0xdd   :  { %v619_v50 = vshll.u32 %v618_v9, 23  ;;  %v413_v62 = vand.u32 2147483647, %v412_v11  ;;  %v476_v34 = vsel %vm470_vm7, %v473_v59, %v475_v5  ;;  %v807_v53 = vadd.s32 1, %v8441_v41  ;;  %v3713_v59 = vld [vmem:[%s15454_s4 + $0xa0] sm:$0xff] }
  0xde   :  { %v614_v1 = vshll.u32 %v8266_v45, %v8307_v21  ;;  %v8490_v46 = vsel %vm543_vm14, %v627_v48, %v8251_v29  ;;  %v8495_v7 = vsel %vm335_vm15, %v419_v39, %v8249_v20  ;;  %vm806_vm2 = vc.u32 %v8447_v42, %v8440_v35  ;;  %4490 = vperm.xlu0 %7518, %v3713_v59  }
  0xdf   :  { %v415_v8 = vcvt.s32.f32 %v408_v24  ;;  %vm7237_vm3 = vcmp.lt.s32.totalorder %v7236_v0, 0  ;;  %v496_v27 = vsel %vm494_vm1, %v495_v63, %v8423_v47  ;;  %v788_v45 = vsel %vm782_vm13, %v785_v14, %v787_v15 }
  0xe0   :  { %v616_v21 = vor.u32 %v615_v38, %v614_v1  ;;  %v492_v31 = vmul.u32 %v8337_v32, %v476_v34  ;;  %v8503_v29 = vsub.s32 32, %v659_v37  ;;  %v268_v56 = vmul.f32 %v8056_v33, %v129_v49 }
  0xe1   :  { %vm8508_vm4 = vcmp.le.f32.partialorder %v541_v57, 0.7853982  ;;  %v620_v9 = vor.u32 4788187, %v619_v50  ;;  %v416_v48 = vmul.f32 %v415_v8, %v413_v62  ;;  %v808_v47 = vsel %vm806_vm2, %v807_v53, %v8441_v41 }
  0xe2   :  { %vm8515_vm5 = vcmp.le.f32.partialorder %v333_v58, 0.7853982  ;;  %v8519_v32 = vsel %vm7237_vm3, 0, %v7236_v0  ;;  %v8521_v25 = vadd.s32 %v496_v27, %v492_v31  ;;  %v804_v28 = vmul.u32 %v8428_v17, %v788_v45  ;;  %v3714_v17 = vld [vmem:[%s15454_s4 + $0xa8] sm:$0xff] }
  0xe3   :  { %v623_v11 = vcvt.s32.f32 %v616_v21  ;;  %v672_v58 = vshrl.u32 %v15475_v16, %v8503_v29  ;;  %v8535_v39 = vadd.f32 %v8067_v36, %v268_v56  ;;  %v621_v5 = vand.u32 2147483647, %v620_v9  ;;  %4495 = vperm.xlu1 %7519, %v3714_v17  }
  0xe4   :  { %v8530_v30 = vadd.s32 %v808_v47, %v804_v28  ;;  %v417_v23 = vxor.u32 2147483648, %v416_v48  ;;  %v3633_v38 = vsub.s32 4294967266, %v8519_v32  ;;  %v675_v24 = vshrl.u32 %v15473_v19, %v8503_v29 }
  0xe5   :  { %15912 = vst [vmem:[#allocation6_spill] sm:$0xff] %v8535_v39  ;;  %v498_v0 = vadd.s32 536870912, %v8521_v25  ;;  %v15464_v63 = vand.u32 2147483647, %v8316_v52  ;;  %v663_v14 = vshrl.u32 %v15465_v6, %v8503_v29  ;;  %v671_v15 = vshll.u32 %v15469_v13, %v659_v37 }
  0xe6   :  { %v8551_v50 = vshrl.u32 %v657_v2, 5  ;;  %v666_v62 = vshrl.u32 %v15467_v10, %v8503_v29  ;;  %v669_v34 = vshrl.u32 %v15469_v13, %v8503_v29  ;;  %v674_v53 = vshll.u32 %v15475_v16, %v659_v37 }
  0xe7   :  { %v810_v49 = vadd.s32 536870912, %v8530_v30  ;;  %v662_v1 = vshll.u32 %v15471_v4, %v659_v37  ;;  %v673_v8 = vor.u32 %v672_v58, %v671_v15  ;;  %v960_v27 = vand.u32 2139095040, %v8535_v39 }
  0xe8   :  { %v3634_v45 = vadd.s32 127, %v3633_v38  ;;  %v665_v21 = vshll.u32 %v15465_v6, %v659_v37  ;;  %v668_v2 = vshll.u32 %v15467_v10, %v659_v37  ;;  %v676_v31 = vor.u32 %v675_v24, %v674_v53  ;;  %v124_v24 = vpop.permute.xlu0 %123 }
  0xe9   :  { %v8563_v56 = vmul.f32 %v623_v11, %v621_v5  ;;  %v8565_v9 = vshrl.u32 %v498_v0, 30  ;;  %v652_v47 = vand.u32 8388607, %v15464_v63  ;;  %v8569_v28 = vor.u32 %v663_v14, %v662_v1 }
  0xea   :  { %v8571_v17 = vor.u32 %v666_v62, %v665_v21  ;;  %v670_v58 = vor.u32 %v669_v34, %v668_v2  ;;  %vm680_vm6 = vcmp.lt.s32.totalorder %v8551_v50, 4  ;;  %v961_v59 = vshrl.u32 %v960_v27, 23 }
  0xeb   :  { %v418_v38 = vsel %vm335_vm15, %v417_v23, %v416_v48  ;;  %v3613_v37 = vadd.s32 %v8268_v22, %v8273_v51  ;;  %v8578_v11 = vshrl.u32 %v810_v49, 30  ;;  %v686_v5 = vsel %vm680_vm6, %v673_v8, 920167782 }
  0xec   :  { %v3629_v0 = vsub.s32 32, %v8519_v32  ;;  %v3635_v14 = vshll.u32 %v3634_v45, 23  ;;  %v690_v15 = vsel %vm680_vm6, %v676_v31, 1326507024  ;;  %v7134_v62 = vadd.s32 4294967169, %v961_v59 }
  0xed   :  { %v500_v34 = vshll.u32 %v8565_v9, 30  ;;  %v653_v53 = vor.u32 8388608, %v652_v47  ;;  %vm677_vm7 = vcmp.lt.s32.totalorder %v8551_v50, 1  ;;  %vm679_vm8 = vcmp.lt.s32.totalorder %v8551_v50, 3 }
  0xee   :  { %v685_v51 = vsel %vm677_vm7, %v8569_v28, %v8571_v17  ;;  %v687_v48 = vsel %vm679_vm8, %v670_v58, %v686_v5  ;;  %v267_v23 = vmul.f32 %v8056_v33, %v124_v24  ;;  %v812_v49 = vshll.u32 %v8578_v11, 30 }
  0xef   :  { %v689_v1 = vsel %vm677_vm7, %v8571_v17, %v670_v58  ;;  %v691_v27 = vsel %vm679_vm8, %v673_v8, %v690_v15  ;;  %v967_v45 = vadd.s32 1, %v7134_v62  ;;  %v421_v21 = vsel %vm8515_vm5, %v8081_v44, %v418_v38 }
  0xf0   :  { %v3631_v2 = vshrl.u32 %v3613_v37, %v3629_v0  ;;  %v8605_v31 = vor.u32 4788187, %v3635_v14  ;;  %vm678_vm9 = vcmp.lt.s32.totalorder %v8551_v50, 2  ;;  %v8609_v33 = vsub.s32 %v8521_v25, %v500_v34 }
  0xf1   :  { %v688_v47 = vsel %vm678_vm9, %v685_v51, %v687_v48  ;;  %v8613_v59 = vshll.u32 %v653_v53, 8  ;;  %vm968_vm10 = vcmp.gt.s32.totalorder %v967_v45, 0  ;;  %v692_v8 = vsel %vm678_vm9, %v689_v1, %v691_v27 }
  0xf2   :  { %v15463_v5 = vand.u32 2147483647, %v8535_v39  ;;  %v969_v38 = vsel %vm968_vm10, %v967_v45, 0  ;;  %v8619_v37 = vadd.f32 %v8067_v36, %v267_v23  ;;  %7576 = vcosq.f32 %v421_v21 }
  0xf3   :  { %v3630_v25 = vshll.u32 %v8351_v40, %v8519_v32  ;;  %v8624_v24 = vsub.s32 %v8530_v30, %v812_v49  ;;  %v971_v0 = vand.u32 31, %v969_v38  ;;  %7578 = vsinq.f32 %v421_v21 }
  0xf4   :  { %15913 = vst [vmem:[#allocation7_spill] sm:$0xff] %v8619_v37  ;;  %v3643_v14 = vsub.s32 4, %v8309_v54  ;;  %v8628_v15 = vmul.u32.u64.low %v8613_v59, %v688_v47  ;;  %v8629_v62 = vmul.u32.u64.high %v8613_v59, %v688_v47, %v8628_v15  ;;  %v503_v32 = vsub.s32 0, %v8609_v33 }
  0xf5   :  { %v8632_v34 = vor.u32 %v3631_v2, %v3630_v25  ;;  %v8635_v36 = vmul.u32.u64.low %v8613_v59, %v692_v8  ;;  %v8636_v53 = vmul.u32.u64.high %v8613_v59, %v692_v8, %v8635_v36  ;;  %v972_v51 = vsub.s32 32, %v971_v0 }
  0xf6   :  { %v964_v30 = vand.u32 8388607, %v15463_v5  ;;  %v856_v48 = vand.u32 2139095040, %v8619_v37  ;;  %v815_v23 = vsub.s32 0, %v8624_v24  ;;  %v661_v49 = vshrl.u32 %v15471_v4, %v8503_v29 }
  0xf7   :  { %v682_v1 = vsel %vm680_vm6, %v670_v58, 2102212464  ;;  %v975_v27 = vshrl.u32 %v15465_v6, %v972_v51  ;;  %v974_v45 = vshll.u32 %v15471_v4, %v971_v0  ;;  %v977_v21 = vshll.u32 %v15465_v6, %v971_v0 }
  0xf8   :  { %v978_v2 = vshrl.u32 %v15467_v10, %v972_v51  ;;  %v981_v47 = vshrl.u32 %v15469_v13, %v972_v51  ;;  %v970_v8 = vshrl.u32 %v969_v38, 5  ;;  %v980_v25 = vshll.u32 %v15467_v10, %v971_v0 }
  0xf9   :  { %v983_v36 = vshll.u32 %v15469_v13, %v971_v0  ;;  %v984_v29 = vshrl.u32 %v15475_v16, %v972_v51  ;;  %v965_v5 = vor.u32 8388608, %v964_v30  ;;  %v976_v63 = vor.u32 %v975_v27, %v974_v45 }
  0xfa   :  { %v979_v58 = vor.u32 %v978_v2, %v977_v21  ;;  %v857_v57 = vshrl.u32 %v856_v48, 23  ;;  %vm3559_vm11 = vcmp.lt.s32.totalorder %v8095_v60, 0  ;;  %v982_v22 = vor.u32 %v981_v47, %v980_v25 }
  0xfb   :  { %v985_v41 = vor.u32 %v984_v29, %v983_v36  ;;  %v986_v6 = vshll.u32 %v15475_v16, %v971_v0  ;;  %v987_v40 = vshrl.u32 %v15473_v19, %v972_v51  ;;  %v7115_v38 = vmin.u32 %v503_v32, %v8609_v33 }
  0xfc   :  { %v7127_v10 = vmin.u32 %v815_v23, %v8624_v24  ;;  %v681_v13 = vsel %vm677_vm7, %v661_v49, %v8569_v28  ;;  %v683_v30 = vsel %vm679_vm8, %v8571_v17, %v682_v1  ;;  %v8667_v48 = vpop.eup %7576  ;;  %vm702_vm12 = vc.u32 %v8636_v53, %v8628_v15 }
  0xfd   :  { %v703_v0 = vadd.s32 1, %v8629_v62  ;;  %v988_v27 = vor.u32 %v987_v40, %v986_v6  ;;  %vm989_vm13 = vcmp.lt.s32.totalorder %v970_v8, 1  ;;  %v8672_v32 = vpop.eup %7578  ;;  %vm992_vm15 = vcmp.lt.s32.totalorder %v970_v8, 4 }
  0xfe   :  { %v997_v23 = vsel %vm989_vm13, %v976_v63, %v979_v58  ;;  %v1005_v45 = vshll.u32 %v965_v5, 8  ;;  %v7130_v28 = vadd.s32 4294967169, %v857_v57  ;;  %vm8677_vm0 = vcmp.le.f32.partialorder %v3557_v3, 0.7853982 }
  0xff   :  { %v973_v49 = vshrl.u32 %v15471_v4, %v972_v51  ;;  %vm991_vm1 = vcmp.lt.s32.totalorder %v970_v8, 3  ;;  %v994_v1 = vsel %vm992_vm15, %v982_v22, 2102212464  ;;  %v998_v21 = vsel %vm992_vm15, %v985_v41, 920167782 }
 0x100   :  { %vm990_vm2 = vcmp.lt.s32.totalorder %v970_v8, 2  ;;  %v999_v6 = vsel %vm991_vm1, %v982_v22, %v998_v21  ;;  %v1001_v40 = vsel %vm989_vm13, %v979_v58, %v982_v22  ;;  %v1002_v2 = vsel %vm992_vm15, %v988_v27, 1326507024 }
 0x101   :  { %v684_v5 = vsel %vm678_vm9, %v681_v13, %v683_v30  ;;  %v993_v57 = vsel %vm989_vm13, %v973_v49, %v976_v63  ;;  %v1000_v3 = vsel %vm990_vm2, %v997_v23, %v999_v6  ;;  %v1003_v47 = vsel %vm991_vm1, %v985_v41, %v1002_v2  ;;  %v139_v30 = vpop.permute.xlu1 %138 }
 0x102   :  { %v995_v25 = vsel %vm991_vm1, %v979_v58, %v994_v1  ;;  %v1004_v36 = vsel %vm990_vm2, %v1001_v40, %v1003_v47  ;;  %v8688_v51 = vmul.u32.u64.low %v1005_v45, %v1000_v3  ;;  %v8689_v29 = vmul.u32.u64.high %v1005_v45, %v1000_v3, %v8688_v51 }
 0x103   :  { %v3639_v21 = vcvt.s32.f32 %v8632_v34  ;;  %v817_v4 = vclz %v7127_v10  ;;  %v704_v13 = vsel %vm702_vm12, %v703_v0, %v8629_v62  ;;  %v863_v50 = vadd.s32 1, %v7130_v28 }
 0x104   :  { %15916 = vst [vmem:[#allocation8_spill] sm:$0xff] %v8688_v51  ;;  %v3644_v41 = vsel %vm3559_vm11, %v3643_v14, %v8309_v54  ;;  %v700_v63 = vmul.u32 %v8613_v59, %v684_v5  ;;  %v8703_v22 = vmul.u32.u64.low %v1005_v45, %v1004_v36  ;;  %v8704_v58 = vmul.u32.u64.high %v1005_v45, %v1004_v36, %v8703_v22 }
 0x105   :  { %v15918_v10 = vand.u32 2147483647, %v8605_v31  ;;  %v505_v27 = vclz %v7115_v38  ;;  %v996_v23 = vsel %vm990_vm2, %v993_v57, %v995_v25  ;;  %vm864_vm3 = vcmp.gt.s32.totalorder %v863_v50, 0 }
 0x106   :  { %15917 = vst [vmem:[#allocation9_spill] sm:$0xff] %v8704_v58  ;;  %v15919_v62 = vsel %vm8515_vm5, 0, %v8495_v7  ;;  %v8713_v28 = vadd.s32 %v704_v13, %v700_v63  ;;  %v1015_v54 = vadd.s32 1, %v8689_v29  ;;  %v865_v59 = vsel %vm864_vm3, %v863_v50, 0  ;;  %v8728_v7 = vld [vmem:[%s15455_s1] ss:$0 sm:$0xff] }
 0x107   :  { %v3640_v34 = vmul.f32 %v3639_v21, %v15918_v10  ;;  %v426_v0 = vadd.s32 3, %v15919_v62  ;;  %v15920_v14 = vxor.u32 2147483648, %v8563_v56  ;;  %v15921_v8 = vsel %vm8508_vm4, 0, %v8490_v46 }
 0x108   :  { %v634_v38 = vadd.s32 3, %v15921_v8  ;;  %v7128_v61 = vadd.s32 4294967294, %v817_v4  ;;  %v270_v49 = vmul.f32 %v8728_v7, %v139_v30  ;;  %v3646_v1 = vsel %vm8677_vm0, 0, %v3644_v41 }
 0x109   :  { %v626_v31 = vsel %vm543_vm14, %v15920_v14, %v8563_v56  ;;  %v1012_v6 = vmul.u32 %v1005_v45, %v996_v23  ;;  %vm1014_vm14 = vc.u32 %v8704_v58, %v8688_v51  ;;  %v867_v56 = vand.u32 31, %v865_v59  ;;  %v8747_v45 = vld [vmem:[%s15456_s2] ss:$0 sm:$0xff] }
 0x10a   :  { %v3641_v40 = vxor.u32 2147483648, %v3640_v34  ;;  %v7116_v2 = vadd.s32 4294967294, %v505_v27  ;;  %v1016_v46 = vsel %vm1014_vm14, %v1015_v54, %v8689_v29  ;;  %v629_v4 = vsel %vm8508_vm4, %v8078_v43, %v626_v31 }
 0x10b   :  { %v8739_v5 = vand.u32 3, %v426_v0  ;;  %v706_v57 = vadd.s32 536870912, %v8713_v28  ;;  %v8742_v3 = vadd.s32 %v1016_v46, %v1012_v6  ;;  %v3650_v47 = vadd.s32 3, %v3646_v1 }
 0x10c   :  { %vm7129_vm5 = vcmp.lt.s32.totalorder %v7128_v61, 0  ;;  %v8750_v25 = vadd.f32 %v8747_v45, %v270_v49  ;;  %v8752_v36 = vand.u32 3, %v634_v38  ;;  %v433_v20 = vxor.u32 2147483648, %v8667_v48 }
 0x10d   :  { %v8755_v29 = vsub.s32 32, %v867_v56  ;;  %7580 = vcosq.f32 %v629_v4  ;;  %v3642_v21 = vsel %vm3559_vm11, %v3641_v40, %v3640_v34  ;;  %vm7117_vm4 = vcmp.lt.s32.totalorder %v7116_v2, 0 }
 0x10e   :  { %15922 = vst [vmem:[#allocation10_spill] sm:$0xff] %v8750_v25  ;;  %15923 = vst [vmem:[#allocation11_spill] sm:$0xff] %v8752_v36  ;;  %v1018_v13 = vadd.s32 536870912, %v8742_v3  ;;  %7582 = vsinq.f32 %v629_v4  ;;  %vm432_vm6 = vcmp.eq.s32.totalorder %v8739_v5, 2  ;;  %v8761_v50 = vsel %vm7129_vm5, 0, %v7128_v61 }
 0x10f   :  { %v8763_v41 = vshrl.u32 %v706_v57, 30  ;;  %vm429_vm7 = vcmp.eq.s32.totalorder %v8739_v5, 0  ;;  %v430_v63 = vxor.u32 2147483648, %v8672_v32  ;;  %v8767_v22 = vand.u32 3, %v3650_v47 }
 0x110   :  { %v8771_v30 = vadd.s32 %v8422_v55, %v8433_v26  ;;  %v1168_v10 = vand.u32 2139095040, %v8750_v25  ;;  %v8775_v34 = vsel %vm432_vm6, %v433_v20, %v8672_v32  ;;  %v3645_v27 = vsel %vm8677_vm0, %v8095_v60, %v3642_v21 }
 0x111   :  { %v8780_v23 = vsel %vm7117_vm4, 0, %v7116_v2  ;;  %v880_v62 = vshrl.u32 %v15475_v16, %v8755_v29  ;;  %v825_v0 = vsub.s32 4294967266, %v8761_v50  ;;  %v8785_v54 = vshrl.u32 %v1018_v13, 30  ;;  %v3684_v2 = vld [vmem:[%s15453_s3 + $0xb8] sm:$0xff] }
 0x112   :  { %v15482_v26 = vand.u32 2147483647, %v8619_v37  ;;  %v883_v55 = vshrl.u32 %v15473_v19, %v8755_v29  ;;  %v708_v32 = vshll.u32 %v8763_v41, 30  ;;  %v8791_v14 = vshrl.u32 %v865_v59, 5  ;;  %v3683_v59 = vld [vmem:[%s15453_s3 + $0xb0] sm:$0xff]  ;;  %4281 = vperm.xlu1 %7519, %v3684_v2  }
 0x113   :  { %15924 = vst [vmem:[#allocation12_spill] sm:$0xff] %v8785_v54  ;;  %v15925_v17 = vmov 2475754826   ;;  %v15926_v8 = vmov 2102212464   ;;  %v882_v6 = vshll.u32 %v15475_v16, %v867_v56  ;;  %v1169_v40 = vshrl.u32 %v1168_v10, 23  ;;  %4276 = vperm.xlu0 %7518, %v3683_v59  }
 0x114   :  { %v871_v31 = vshrl.u32 %v15925_v17, %v8755_v29  ;;  %v879_v38 = vshll.u32 %v15926_v8, %v867_v56  ;;  %v15927_v61 = vmov 2131351028   ;;  %v877_v1 = vshrl.u32 %v15926_v8, %v8755_v29 }
 0x115   :  { %v874_v49 = vshrl.u32 %v15927_v61, %v8755_v29  ;;  %7584 = vcosq.f32 %v3645_v27  ;;  %v513_v46 = vsub.s32 4294967266, %v8780_v23  ;;  %v15928_v4 = vmov 683565275  }
 0x116   :  { %v870_v57 = vshll.u32 %v15928_v4, %v867_v56  ;;  %v881_v47 = vor.u32 %v880_v62, %v879_v38  ;;  %v1020_v20 = vshll.u32 %v8785_v54, 30  ;;  %v873_v21 = vshll.u32 %v15925_v17, %v867_v56 }
 0x117   :  { %v876_v13 = vshll.u32 %v15927_v61, %v867_v56  ;;  %v884_v10 = vor.u32 %v883_v55, %v882_v6  ;;  %v826_v19 = vadd.s32 127, %v825_v0  ;;  %v8813_v16 = vsub.s32 %v8713_v28, %v708_v32  ;;  %v8817_v39 = vpop.eup %7580 }
 0x118   :  { %v860_v43 = vand.u32 8388607, %v15482_v26  ;;  %v872_v36 = vor.u32 %v871_v31, %v870_v57  ;;  %15930 = vst [vmem:[#allocation14_spill] sm:$0xff] %v8817_v39  ;;  %v875_v62 = vor.u32 %v874_v49, %v873_v21  ;;  %vm888_vm8 = vcmp.lt.s32.totalorder %v8791_v14, 4  ;;  %v8820_v59 = vpop.eup %7582  ;;  %v134_v39 = vpop.permute.xlu0 %133 }
 0x119   :  { %15929 = vst [vmem:[#allocation13_spill] sm:$0xff] %v8813_v16  ;;  %v878_v38 = vor.u32 %v877_v1, %v876_v13  ;;  %v7142_v2 = vadd.s32 4294967169, %v1169_v40  ;;  %15931 = vst [vmem:[#allocation15_spill] sm:$0xff] %v8820_v59  ;;  %v8825_v56 = vsel %vm429_vm7, %v8667_v48, %v430_v63  ;;  %7586 = vsinq.f32 %v3645_v27 }
 0x11a   :  { %v894_v0 = vsel %vm888_vm8, %v881_v47, 920167782  ;;  %v8830_v55 = vadd.s32 127, %v513_v46  ;;  %v821_v32 = vsub.s32 32, %v8761_v50  ;;  %v8834_v31 = vsub.s32 %v8742_v3, %v1020_v20 }
 0x11b   :  { %v898_v49 = vsel %vm888_vm8, %v884_v10, 1326507024  ;;  %v827_v1 = vshll.u32 %v826_v19, 23  ;;  %vm885_vm9 = vcmp.lt.s32.totalorder %v8791_v14, 1  ;;  %vm887_vm10 = vcmp.lt.s32.totalorder %v8791_v14, 3 }
 0x11c   :  { %15932 = vst [vmem:[#allocation16_spill] sm:$0xff] %v8834_v31  ;;  %v1175_v48 = vadd.s32 1, %v7142_v2  ;;  %v711_v63 = vsub.s32 0, %v8813_v16  ;;  %v861_v27 = vor.u32 8388608, %v860_v43  ;;  %v893_v6 = vsel %vm885_vm9, %v872_v36, %v875_v62 }
 0x11d   :  { %v895_v40 = vsel %vm887_vm10, %v878_v38, %v894_v0  ;;  %v897_v3 = vsel %vm885_vm9, %v875_v62, %v878_v38  ;;  %v899_v19 = vsel %vm887_vm10, %v881_v47, %v898_v49  ;;  %v15483_v46 = vand.u32 2147483647, %v8750_v25 }
 0x11e   :  { %vm1176_vm11 = vcmp.gt.s32.totalorder %v1175_v48, 0  ;;  %v805_v57 = vadd.s32 %v8440_v35, %v8447_v42  ;;  %v1023_v43 = vsub.s32 0, %v8834_v31  ;;  %vm886_vm12 = vcmp.lt.s32.totalorder %v8791_v14, 2 }
 0x11f   :  { %v1177_v20 = vsel %vm1176_vm11, %v1175_v48, 0  ;;  %v8854_v21 = vpop.eup %7584  ;;  %v822_v10 = vshll.u32 %v8624_v24, %v8761_v50  ;;  %v869_v47 = vshrl.u32 %v15928_v4, %v8755_v29  ;;  %v896_v2 = vsel %vm886_vm12, %v893_v6, %v895_v40 }
 0x120   :  { %v823_v0 = vshrl.u32 %v805_v57, %v821_v32  ;;  %v900_v35 = vsel %vm886_vm12, %v897_v3, %v899_v19  ;;  %v8865_v42 = vshll.u32 %v861_v27, 8  ;;  %v1179_v49 = vand.u32 31, %v1177_v20 }
 0x121   :  { %v8867_v48 = vor.u32 4788187, %v827_v1  ;;  %v8870_v26 = vmin.u32 %v711_v63, %v8813_v16  ;;  %v889_v24 = vsel %vm885_vm9, %v869_v47, %v872_v36  ;;  %v1172_v29 = vand.u32 8388607, %v15483_v46 }
 0x122   :  { %v7135_v50 = vmin.u32 %v1023_v43, %v8834_v31  ;;  %v8878_v32 = vmul.u32.u64.low %v8865_v42, %v896_v2  ;;  %v8879_v6 = vmul.u32.u64.high %v8865_v42, %v896_v2, %v8878_v32  ;;  %v1180_v27 = vsub.s32 32, %v1179_v49 }
 0x123   :  { %v8882_v40 = vpop.eup %7586  ;;  %v890_v1 = vsel %vm888_vm8, %v878_v38, 2102212464  ;;  %v8887_v63 = vmul.u32.u64.low %v8865_v42, %v900_v35  ;;  %v8888_v3 = vmul.u32.u64.high %v8865_v42, %v900_v35, %v8887_v63  ;;  %v1178_v36 = vshrl.u32 %v1177_v20, 5 }
 0x124   :  { %v1182_v19 = vshll.u32 %v15928_v4, %v1179_v49  ;;  %v1183_v57 = vshrl.u32 %v15925_v17, %v1180_v27  ;;  %v1185_v43 = vshll.u32 %v15925_v17, %v1179_v49  ;;  %v1186_v47 = vshrl.u32 %v15927_v61, %v1180_v27 }
 0x125   :  { %v1188_v2 = vshll.u32 %v15927_v61, %v1179_v49  ;;  %v1189_v46 = vshrl.u32 %v15926_v8, %v1180_v27  ;;  %v1191_v13 = vshll.u32 %v15926_v8, %v1179_v49  ;;  %v15933_v38 = vmov 920167782  }
 0x126   :  { %v1192_v28 = vshrl.u32 %v15933_v38, %v1180_v27  ;;  %v1025_v35 = vclz %v7135_v50  ;;  %v891_v20 = vsel %vm887_vm10, %v875_v62, %v890_v1  ;;  %v1184_v63 = vor.u32 %v1183_v57, %v1182_v19 }
 0x127   :  { %v1187_v59 = vor.u32 %v1186_v47, %v1185_v43  ;;  %v1190_v25 = vor.u32 %v1189_v46, %v1188_v2  ;;  %v1194_v54 = vshll.u32 %v15933_v38, %v1179_v49  ;;  %v15934_v17 = vmov 1326507024  }
 0x128   :  { %v1193_v37 = vor.u32 %v1192_v28, %v1191_v13  ;;  %v1195_v31 = vshrl.u32 %v15934_v17, %v1180_v27  ;;  %v824_v61 = vor.u32 %v823_v0, %v822_v10  ;;  %v829_v16 = vand.u32 2147483647, %v8867_v48 }
 0x129   :  { %v713_v8 = vclz %v8870_v26  ;;  %v269_v51 = vmul.f32 %v8728_v7, %v134_v39  ;;  %v892_v50 = vsel %vm886_vm12, %v889_v24, %v891_v20  ;;  %v1173_v58 = vor.u32 8388608, %v1172_v29 }
 0x12a   :  { %v1196_v62 = vor.u32 %v1195_v31, %v1194_v54  ;;  %vm1197_vm13 = vcmp.lt.s32.totalorder %v1178_v36, 1  ;;  %v7136_v1 = vadd.s32 4294967294, %v1025_v35  ;;  %v911_v28 = vadd.s32 1, %v8879_v6 }
 0x12b   :  { %vm1200_vm15 = vcmp.lt.s32.totalorder %v1178_v36, 4  ;;  %v1205_v46 = vsel %vm1197_vm13, %v1184_v63, %v1187_v59  ;;  %vm439_vm0 = vcmp.lt.s32.totalorder %v8247_v18, 0  ;;  %vm910_vm1 = vc.u32 %v8888_v3, %v8878_v32 }
 0x12c   :  { %vm1199_vm2 = vcmp.lt.s32.totalorder %v1178_v36, 3  ;;  %v1202_v26 = vsel %vm1200_vm15, %v1190_v25, 2102212464  ;;  %v1206_v39 = vsel %vm1200_vm15, %v1193_v37, 920167782  ;;  %v1181_v14 = vshrl.u32 %v15928_v4, %v1180_v27 }
 0x12d   :  { %vm1198_vm3 = vcmp.lt.s32.totalorder %v1178_v36, 2  ;;  %v1207_v13 = vsel %vm1199_vm2, %v1190_v25, %v1206_v39  ;;  %v8914_v54 = vadd.f32 %v8747_v45, %v269_v51  ;;  %v1209_v10 = vsel %vm1197_vm13, %v1187_v59, %v1190_v25  ;;  %v149_v51 = vpop.permute.xlu1 %148 }
 0x12e   :  { %v1208_v31 = vsel %vm1198_vm3, %v1205_v46, %v1207_v13  ;;  %v1210_v0 = vsel %vm1200_vm15, %v1196_v62, 1326507024  ;;  %v1213_v49 = vshll.u32 %v1173_v58, 8  ;;  %v912_v48 = vsel %vm910_vm1, %v911_v28, %v8879_v6 }
 0x12f   :  { %15935 = vst [vmem:[#allocation17_spill] sm:$0xff] %v8914_v54  ;;  %v1201_v24 = vsel %vm1197_vm13, %v1181_v14, %v1184_v63  ;;  %v1203_v29 = vsel %vm1199_vm2, %v1187_v59, %v1202_v26  ;;  %v1211_v19 = vsel %vm1199_vm2, %v1193_v37, %v1210_v0  ;;  %v908_v57 = vmul.u32 %v8865_v42, %v892_v50 }
 0x130   :  { %v1212_v27 = vsel %vm1198_vm3, %v1209_v10, %v1211_v19  ;;  %v8922_v43 = vmul.u32.u64.low %v1213_v49, %v1208_v31  ;;  %v8923_v47 = vmul.u32.u64.high %v1213_v49, %v1208_v31, %v8922_v43  ;;  %v15936_v2 = vsub.s32 32, %v8780_v23 }
 0x131   :  { %v523_v58 = vsub.s32 4, %v8565_v9  ;;  %v8930_v6 = vmul.u32.u64.low %v1213_v49, %v1212_v27  ;;  %v8931_v35 = vmul.u32.u64.high %v1213_v49, %v1212_v27, %v8930_v6  ;;  %vm428_vm14 = vcmp.lt.s32.totalorder %v8739_v5, 2 }
 0x132   :  { %v511_v25 = vshrl.u32 %v8771_v30, %v15936_v2  ;;  %v15937_v37 = vand.u32 2147483647, %v8247_v18  ;;  %v831_v42 = vcvt.s32.f32 %v824_v61  ;;  %v8940_v20 = vadd.s32 %v912_v48, %v908_v57 }
 0x133   :  { %v1204_v63 = vsel %vm1198_vm3, %v1201_v24, %v1203_v29  ;;  %v1064_v30 = vand.u32 2139095040, %v8914_v54  ;;  %vm3653_vm4 = vcmp.eq.s32.totalorder %v8767_v22, 0  ;;  %v510_v50 = vshll.u32 %v8609_v33, %v8780_v23 }
 0x134   :  { %vm8936_vm5 = vcmp.le.f32.partialorder %v15937_v37, 0.7853982  ;;  %v7124_v62 = vadd.s32 4294967294, %v713_v8  ;;  %vm7137_vm6 = vcmp.lt.s32.totalorder %v7136_v1, 0  ;;  %v272_v28 = vmul.f32 %v8728_v7, %v149_v51 }
 0x135   :  { %v15940_v46 = vshll.u32 %v8830_v55, 23  ;;  %v832_v39 = vmul.f32 %v831_v42, %v829_v16  ;;  %v1223_v61 = vadd.s32 1, %v8923_v47  ;;  %v1065_v14 = vshrl.u32 %v1064_v30, 23 }
 0x136   :  { %vm425_vm7 = vweird.f32 %v8081_v44  ;;  %v512_v36 = vor.u32 %v511_v25, %v510_v50  ;;  %v524_v13 = vsel %vm439_vm0, %v523_v58, %v8565_v9  ;;  %v1220_v31 = vmul.u32 %v1213_v49, %v1204_v63 }
 0x137   :  { %v516_v26 = vor.u32 4788187, %v15940_v46  ;;  %vm1222_vm8 = vc.u32 %v8931_v35, %v8922_v43  ;;  %vm3652_vm9 = vcmp.lt.s32.totalorder %v8767_v22, 2  ;;  %v15941_v33 = vand.u32 2147483647, %v8289_v12 }
 0x138   :  { %v8964_v23 = vsel %vm7137_vm6, 0, %v7136_v1  ;;  %v914_v8 = vadd.s32 536870912, %v8940_v20  ;;  %v1224_v55 = vsel %vm1222_vm8, %v1223_v61, %v8923_v47  ;;  %v7138_v10 = vadd.s32 4294967169, %v1065_v14 }
 0x139   :  { %vm8960_vm10 = vcmp.le.f32.partialorder %v15941_v33, 0.7853982  ;;  %v3657_v9 = vxor.u32 2147483648, %v8854_v21  ;;  %vm7125_vm11 = vcmp.lt.s32.totalorder %v7124_v62, 0  ;;  %v8969_v0 = vadd.s32 %v1224_v55, %v1220_v31 }
 0x13a   :  { %v8972_v49 = vadd.f32 %v8747_v45, %v272_v28  ;;  %v3654_v48 = vxor.u32 2147483648, %v8882_v40  ;;  %v517_v24 = vand.u32 2147483647, %v516_v26  ;;  %v833_v29 = vxor.u32 2147483648, %v832_v39 }
 0x13b   :  { %v1071_v19 = vadd.s32 1, %v7138_v10  ;;  %vm3656_vm12 = vcmp.eq.s32.totalorder %v8767_v22, 2  ;;  %v835_v1 = vsub.s32 4, %v8578_v11  ;;  %v1033_v57 = vsub.s32 4294967266, %v8964_v23 }
 0x13c   :  { %15944 = vst [vmem:[#allocation18_spill] sm:$0xff] %v8972_v49  ;;  %v1226_v27 = vadd.s32 536870912, %v8969_v0  ;;  %v519_v47 = vcvt.s32.f32 %v512_v36  ;;  %vm751_vm13 = vcmp.lt.s32.totalorder %v8289_v12, 0  ;;  %v8980_v51 = vsel %vm7125_vm11, 0, %v7124_v62 }
 0x13d   :  { %v8982_v2 = vshrl.u32 %v914_v8, 30  ;;  %v435_v25 = vsel %vm428_vm14, %v8825_v56, %v8775_v34  ;;  %vm3649_vm15 = vweird.f32 %v8095_v60  ;;  %v3658_v58 = vsel %vm3656_vm12, %v3657_v9, %v8882_v40  ;;  %v144_v60 = vpop.permute.xlu0 %143 }
 0x13e   :  { %v526_v6 = vsel %vm8936_vm5, 0, %v524_v13  ;;  %v1376_v37 = vand.u32 2139095040, %v8972_v49  ;;  %v3655_v42 = vsel %vm3653_vm4, %v8854_v21, %v3654_v48  ;;  %v520_v63 = vmul.f32 %v519_v47, %v517_v24  ;;  %v15950_v24 = vld [vmem:[#allocation9_spill] sm:$0xff] }
 0x13f   :  { %v834_v30 = vsel %vm751_vm13, %v833_v29, %v832_v39  ;;  %vm1072_vm1 = vcmp.gt.s32.totalorder %v1071_v19, 0  ;;  %v836_v50 = vsel %vm751_vm13, %v835_v1, %v8578_v11  ;;  %v721_v5 = vsub.s32 4294967266, %v8980_v51  ;;  %v15951_v29 = vld [vmem:[#allocation8_spill] sm:$0xff] }
 0x140   :  { %v1034_v34 = vadd.s32 127, %v1033_v57  ;;  %v8998_v56 = vshrl.u32 %v1226_v27, 30  ;;  %v9002_v40 = vsel %vm425_vm7, nan, %v435_v25  ;;  %v530_v62 = vadd.s32 3, %v526_v6  ;;  %v3716_v57 = vld [vmem:[%s15454_s4 + $0xb8] sm:$0xff]  ;;  %v3715_v27 = vld [vmem:[%s15454_s4 + $0xb0] sm:$0xff] }
 0x141   :  { %15945 = vst [vmem:[#allocation19_spill] sm:$0xff] %v9002_v40  ;;  %vm647_vm2 = vcmp.lt.s32.totalorder %v8316_v52, 0  ;;  %v916_v28 = vshll.u32 %v8982_v2, 30  ;;  %v3659_v21 = vsel %vm3652_vm9, %v3655_v42, %v3658_v58  ;;  %v837_v11 = vsel %vm8960_vm10, %v8289_v12, %v834_v30  ;;  %4505 = vperm.xlu1 %7519, %v3716_v57   ;;  %4500 = vperm.xlu0 %7518, %v3715_v27   ;;  %v15953_v42 = vld [vmem:[#allocation13_spill] sm:$0xff] }
 0x142   :  { %v15946_v46 = vand.u32 2147483647, %v8316_v52  ;;  %v1073_v44 = vsel %vm1072_vm1, %v1071_v19, 0  ;;  %v1377_v39 = vshrl.u32 %v1376_v37, 23  ;;  %v521_v61 = vxor.u32 2147483648, %v520_v63 }
 0x143   :  { %v838_v14 = vsel %vm8960_vm10, 0, %v836_v50  ;;  %v717_v36 = vsub.s32 32, %v8980_v51  ;;  %v731_v22 = vsub.s32 4, %v8763_v41  ;;  %v722_v13 = vadd.s32 127, %v721_v5 }
 0x144   :  { %vm9013_vm3 = vcmp.le.f32.partialorder %v15946_v46, 0.7853982  ;;  %v1029_v31 = vsub.s32 32, %v8964_v23  ;;  %v1035_v33 = vshll.u32 %v1034_v34, 23  ;;  %v1228_v8 = vshll.u32 %v8998_v56, 30 }
 0x145   :  { %7588 = vcosq.f32 %v837_v11  ;;  %v701_v55 = vadd.s32 %v8628_v15, %v8636_v53  ;;  %v9026_v10 = vsub.s32 %v8940_v20, %v916_v28  ;;  %v1075_v9 = vand.u32 31, %v1073_v44 }
 0x146   :  { %v9028_v16 = vand.u32 3, %v530_v62  ;;  %v842_v48 = vadd.s32 3, %v838_v14  ;;  %v1013_v19 = vadd.s32 %v15951_v29, %v15950_v24  ;;  %v7150_v1 = vadd.s32 4294967169, %v1377_v39 }
 0x147   :  { %v9040_v15 = vsel %vm3649_vm15, nan, %v3659_v21  ;;  %v522_v53 = vsel %vm439_vm0, %v521_v61, %v520_v63  ;;  %v719_v20 = vshrl.u32 %v701_v55, %v717_v36  ;;  %v9047_v47 = vsel %vm647_vm2, %v731_v22, %v8763_v41 }
 0x148   :  { %15949 = vst [vmem:[#allocation20_spill] sm:$0xff] %v9028_v16  ;;  %15952 = vst [vmem:[#allocation9_spill] sm:$0xff] %v9040_v15  ;;  %v723_v25 = vshll.u32 %v722_v13, 23  ;;  %v1031_v58 = vshrl.u32 %v1013_v19, %v1029_v31  ;;  %v1036_v6 = vor.u32 4788187, %v1035_v33  ;;  %v9050_v37 = vsub.s32 %v8969_v0, %v1228_v8  ;;  %v15954_v0 = vld [vmem:[#allocation16_spill] sm:$0xff] }
 0x149   :  { %v718_v30 = vshll.u32 %v15953_v42, %v8980_v51  ;;  %v919_v63 = vsub.s32 0, %v9026_v10  ;;  %v15499_v50 = vand.u32 2147483647, %v8914_v54  ;;  %v9056_v5 = vsub.s32 32, %v1075_v9 }
 0x14a   :  { %v9061_v41 = vsel %vm8936_vm5, %v8247_v18, %v522_v53  ;;  %v9063_v34 = vand.u32 3, %v842_v48  ;;  %v1030_v62 = vshll.u32 %v15954_v0, %v8964_v23  ;;  %v1383_v28 = vadd.s32 1, %v7150_v1 }
 0x14b   :  { %7590 = vsinq.f32 %v837_v11  ;;  %v9067_v21 = vor.u32 %v719_v20, %v718_v30  ;;  %v9073_v46 = vmul.f32 %v8728_v7, %v144_v60  ;;  %v9075_v39 = vor.u32 4788187, %v723_v25 }
 0x14c   :  { %v1032_v59 = vor.u32 %v1031_v58, %v1030_v62  ;;  %v1037_v61 = vand.u32 2147483647, %v1036_v6  ;;  %v1231_v14 = vsub.s32 0, %v9050_v37  ;;  %v7131_v36 = vmin.u32 %v919_v63, %v9026_v10  ;;  %v15959_v62 = vld [vmem:[#allocation6_spill] sm:$0xff] }
 0x14d   :  { %v9081_v23 = vand.u32 8388607, %v15499_v50  ;;  %v15955_v11 = vmov 2475754826   ;;  %v15956_v13 = vmov 2131351028   ;;  %v1088_v55 = vshrl.u32 %v15933_v38, %v9056_v5 }
 0x14e   :  { %v1079_v22 = vshrl.u32 %v15955_v11, %v9056_v5  ;;  %v1082_v31 = vshrl.u32 %v15956_v13, %v9056_v5  ;;  %v15957_v33 = vmov 2102212464   ;;  %v1091_v48 = vshrl.u32 %v15934_v17, %v9056_v5 }
 0x14f   :  { %v1085_v8 = vshrl.u32 %v15957_v33, %v9056_v5  ;;  %vm1384_vm0 = vcmp.gt.s32.totalorder %v1383_v28, 0  ;;  %v9093_v24 = vpop.eup %7588  ;;  %v9095_v29 = vshrl.u32 %v1073_v44, 5  ;;  %v1078_v19 = vshll.u32 %v15928_v4, %v1075_v9 }
 0x150   :  { %v1081_v1 = vshll.u32 %v15955_v11, %v1075_v9  ;;  %v7143_v27 = vmin.u32 %v1231_v14, %v9050_v37  ;;  %v1084_v53 = vshll.u32 %v15956_v13, %v1075_v9  ;;  %v1087_v20 = vshll.u32 %v15957_v33, %v1075_v9 }
 0x151   :  { %v1090_v25 = vshll.u32 %v15933_v38, %v1075_v9  ;;  %v1039_v58 = vcvt.s32.f32 %v1032_v59  ;;  %v9104_v6 = vor.u32 %v1079_v22, %v1078_v19  ;;  %v1385_v44 = vsel %vm1384_vm0, %v1383_v28, 0 }
 0x152   :  { %v9106_v60 = vor.u32 %v1082_v31, %v1081_v1  ;;  %v9109_v30 = vor.u32 %v1085_v8, %v1084_v53  ;;  %v1089_v63 = vor.u32 %v1088_v55, %v1087_v20  ;;  %v921_v50 = vclz %v7131_v36 }
 0x153   :  { %v1092_v0 = vor.u32 %v1091_v48, %v1090_v25  ;;  %v9112_v14 = vmul.f32 %v1039_v58, %v1037_v61  ;;  %v1387_v51 = vand.u32 31, %v1385_v44  ;;  %v1233_v57 = vclz %v7143_v27 }
 0x154   :  { %v1069_v9 = vor.u32 8388608, %v9081_v23  ;;  %vm1093_vm14 = vcmp.lt.s32.totalorder %v9095_v29, 1  ;;  %v15958_v59 = vand.u32 2147483647, %v8972_v49  ;;  %vm1095_vm5 = vcmp.lt.s32.totalorder %v9095_v29, 3 }
 0x155   :  { %v9118_v22 = vpop.eup %7590  ;;  %vm1096_vm4 = vcmp.lt.s32.totalorder %v9095_v29, 4  ;;  %v1101_v61 = vsel %vm1093_vm14, %v9104_v6, %v9106_v60  ;;  %v9126_v36 = vsub.s32 32, %v1387_v51  ;;  %v1105_v31 = vsel %vm1093_vm14, %v9106_v60, %v9109_v30 }
 0x156   :  { %v1380_v28 = vand.u32 8388607, %v15958_v59  ;;  %v1102_v23 = vsel %vm1096_vm4, %v1089_v63, 920167782  ;;  %v1106_v8 = vsel %vm1096_vm4, %v1092_v0, 1326507024  ;;  %v1390_v48 = vshll.u32 %v15928_v4, %v1387_v51 }
 0x157   :  { %v9136_v55 = vshrl.u32 %v1385_v44, 5  ;;  %v1391_v19 = vshrl.u32 %v15955_v11, %v9126_v36  ;;  %v1393_v1 = vshll.u32 %v15955_v11, %v1387_v51  ;;  %v1394_v27 = vshrl.u32 %v15956_v13, %v9126_v36 }
 0x158   :  { %v1396_v53 = vshll.u32 %v15956_v13, %v1387_v51  ;;  %v1397_v20 = vshrl.u32 %v15957_v33, %v9126_v36  ;;  %v1399_v25 = vshll.u32 %v15957_v33, %v1387_v51  ;;  %v1400_v58 = vshrl.u32 %v15933_v38, %v9126_v36 }
 0x159   :  { %v1103_v44 = vsel %vm1095_vm5, %v9109_v30, %v1102_v23  ;;  %v1107_v0 = vsel %vm1095_vm5, %v1089_v63, %v1106_v8  ;;  %v1402_v59 = vshll.u32 %v15933_v38, %v1387_v51  ;;  %v1403_v42 = vshrl.u32 %v15934_v17, %v9126_v36 }
 0x15a   :  { %vm959_vm6 = vcmp.lt.s32.totalorder %v15959_v62, 0  ;;  %v9159_v15 = vor.u32 %v1391_v19, %v1390_v48  ;;  %v9161_v40 = vor.u32 %v1394_v27, %v1393_v1  ;;  %v1398_v18 = vor.u32 %v1397_v20, %v1396_v53 }
 0x15b   :  { %v1401_v16 = vor.u32 %v1400_v58, %v1399_v25  ;;  %v1041_v49 = vxor.u32 2147483648, %v9112_v14  ;;  %v7132_v54 = vadd.s32 4294967294, %v921_v50  ;;  %v7144_v23 = vadd.s32 4294967294, %v1233_v57 }
 0x15c   :  { %vm1094_vm7 = vcmp.lt.s32.totalorder %v9095_v29, 2  ;;  %v9167_v63 = vshll.u32 %v1069_v9, 8  ;;  %v1404_v8 = vor.u32 %v1403_v42, %v1402_v59  ;;  %vm1408_vm8 = vcmp.lt.s32.totalorder %v9136_v55, 4 }
 0x15d   :  { %v1104_v51 = vsel %vm1094_vm7, %v1101_v61, %v1103_v44  ;;  %v1108_v48 = vsel %vm1094_vm7, %v1105_v31, %v1107_v0  ;;  %vm1405_vm9 = vcmp.lt.s32.totalorder %v9136_v55, 1  ;;  %vm1407_vm10 = vcmp.lt.s32.totalorder %v9136_v55, 3 }
 0x15e   :  { %v1414_v50 = vsel %vm1408_vm8, %v1401_v16, 920167782  ;;  %vm845_vm11 = vcmp.eq.s32.totalorder %v9063_v34, 0  ;;  %vm848_vm12 = vcmp.eq.s32.totalorder %v9063_v34, 2  ;;  %v15960_v57 = vand.u32 2147483647, %v15959_v62 }
 0x15f   :  { %v1381_v9 = vor.u32 8388608, %v1380_v28  ;;  %v1413_v61 = vsel %vm1405_vm9, %v9159_v15, %v9161_v40  ;;  %v1415_v31 = vsel %vm1407_vm10, %v1398_v18, %v1414_v50  ;;  %v9192_v19 = vadd.f32 %v8747_v45, %v9073_v46 }
 0x160   :  { %vm9180_vm13 = vcmp.le.f32.partialorder %v15960_v57, 0.7853982  ;;  %vm7145_vm15 = vcmp.lt.s32.totalorder %v7144_v23, 0  ;;  %v9195_v1 = vmul.u32.u64.low %v9167_v63, %v1104_v51  ;;  %v9196_v27 = vmul.u32.u64.high %v9167_v63, %v1104_v51, %v9195_v1 }
 0x161   :  { %15963 = vst [vmem:[#allocation8_spill] sm:$0xff] %v9192_v19  ;;  %v1417_v28 = vsel %vm1405_vm9, %v9161_v40, %v1398_v18  ;;  %v9203_v53 = vmul.u32.u64.low %v9167_v63, %v1108_v48  ;;  %v9204_v20 = vmul.u32.u64.high %v9167_v63, %v1108_v48, %v9203_v53  ;;  %vm1406_vm1 = vcmp.lt.s32.totalorder %v9136_v55, 2 }
 0x162   :  { %v1418_v46 = vsel %vm1408_vm8, %v1404_v8, 1326507024  ;;  %v846_v25 = vxor.u32 2147483648, %v9118_v22  ;;  %v727_v58 = vcvt.s32.f32 %v9067_v21  ;;  %v1416_v44 = vsel %vm1406_vm1, %v1413_v61, %v1415_v31 }
 0x163   :  { %v1419_v0 = vsel %vm1407_vm10, %v1401_v16, %v1418_v46  ;;  %vm7133_vm0 = vcmp.lt.s32.totalorder %v7132_v54, 0  ;;  %v9217_v51 = vshll.u32 %v1381_v9, 8  ;;  %v1272_v48 = vand.u32 2139095040, %v9192_v19 }
 0x164   :  { %v1420_v59 = vsel %vm1406_vm1, %v1417_v28, %v1419_v0  ;;  %v15964_v8 = vand.u32 2147483647, %v9075_v39  ;;  %v1042_v21 = vsel %vm959_vm6, %v1041_v49, %v9112_v14  ;;  %v9226_v57 = vsel %vm7145_vm15, 0, %v7144_v23  ;;  %v15965_v28 = vld [vmem:[#allocation12_spill] sm:$0xff] }
 0x165   :  { %v1098_v16 = vsel %vm1096_vm4, %v9109_v30, 2102212464  ;;  %v1077_v9 = vshrl.u32 %v15928_v4, %v9056_v5  ;;  %v9234_v61 = vmul.u32.u64.low %v9217_v51, %v1416_v44  ;;  %v9235_v31 = vmul.u32.u64.high %v9217_v51, %v1416_v44, %v9234_v61  ;;  %v15966_v30 = vld [vmem:[#allocation7_spill] sm:$0xff] }
 0x166   :  { %v728_v50 = vmul.f32 %v727_v58, %v15964_v8  ;;  %v1273_v39 = vshrl.u32 %v1272_v48, 23  ;;  %v1043_v53 = vsub.s32 4, %v15965_v28  ;;  %v9239_v46 = vsel %vm7133_vm0, 0, %v7132_v54 }
 0x167   :  { %v9242_v49 = vmul.u32.u64.low %v9217_v51, %v1420_v59  ;;  %v9243_v14 = vmul.u32.u64.high %v9217_v51, %v1420_v59, %v9242_v49  ;;  %vm844_vm15 = vcmp.lt.s32.totalorder %v9063_v34, 2  ;;  %vm855_vm4 = vcmp.lt.s32.totalorder %v15966_v30, 0 }
 0x168   :  { %v1241_v5 = vsub.s32 4294967266, %v9226_v57  ;;  %v1097_v23 = vsel %vm1093_vm14, %v1077_v9, %v9104_v6  ;;  %v1099_v58 = vsel %vm1095_vm5, %v9106_v60, %v1098_v16  ;;  %v7146_v54 = vadd.s32 4294967169, %v1273_v39  ;;  %v159_v9 = vpop.permute.xlu1 %158 }
 0x169   :  { %v847_v44 = vsel %vm845_vm11, %v9093_v24, %v846_v25  ;;  %v15967_v0 = vxor.u32 2147483648, %v9093_v24  ;;  %v1045_v48 = vsel %vm9180_vm13, %v15959_v62, %v1042_v21  ;;  %v1119_v6 = vadd.s32 1, %v9196_v27 }
 0x16a   :  { %v729_v8 = vxor.u32 2147483648, %v728_v50  ;;  %vm1118_vm14 = vc.u32 %v9204_v20, %v9195_v1  ;;  %v1410_v60 = vsel %vm1408_vm8, %v1398_v18, 2102212464  ;;  %v1279_v25 = vadd.s32 1, %v7146_v54 }
 0x16b   :  { %v850_v59 = vsel %vm848_vm12, %v15967_v0, %v9118_v22  ;;  %v1044_v24 = vsel %vm959_vm6, %v1043_v53, %v15965_v28  ;;  %v929_v22 = vsub.s32 4294967266, %v9239_v46  ;;  %v1100_v16 = vsel %vm1094_vm7, %v1097_v23, %v1099_v58 }
 0x16c   :  { %v1389_v21 = vshrl.u32 %v15928_v4, %v9126_v36  ;;  %vm841_vm5 = vweird.f32 %v8289_v12  ;;  %7592 = vcosq.f32 %v1045_v48  ;;  %v939_v39 = vsub.s32 4, %v8982_v2 }
 0x16d   :  { %v1242_v18 = vadd.s32 127, %v1241_v5  ;;  %vm1280_vm8 = vcmp.gt.s32.totalorder %v1279_v25, 0  ;;  %v1120_v49 = vsel %vm1118_vm14, %v1119_v6, %v9196_v27  ;;  %v1411_v29 = vsel %vm1407_vm10, %v9161_v40, %v1410_v60 }
 0x16e   :  { %v1409_v28 = vsel %vm1405_vm9, %v1389_v21, %v9159_v15  ;;  %v1281_v53 = vsel %vm1280_vm8, %v1279_v25, 0  ;;  %7594 = vsinq.f32 %v1045_v48  ;;  %v1116_v36 = vmul.u32 %v9167_v63, %v1100_v16 }
 0x16f   :  { %v1431_v23 = vadd.s32 1, %v9235_v31  ;;  %v274_v58 = vmul.f32 %v8728_v7, %v159_v9  ;;  %v1046_v5 = vsel %vm9180_vm13, 0, %v1044_v24  ;;  %v930_v27 = vadd.s32 127, %v929_v22 }
 0x170   :  { %vm1430_vm6 = vc.u32 %v9243_v14, %v9234_v61  ;;  %v9294_v15 = vand.u32 31, %v1281_v53  ;;  %v15968_v40 = vsel %vm9013_vm3, 0, %v9047_v47  ;;  %v1237_v63 = vsub.s32 32, %v9226_v57 }
 0x171   :  { %v738_v54 = vadd.s32 3, %v15968_v40  ;;  %v9301_v0 = vadd.s32 %v1120_v49, %v1116_v36  ;;  %v1412_v7 = vsel %vm1406_vm1, %v1409_v28, %v1411_v29  ;;  %v851_v42 = vsel %vm844_vm15, %v847_v44, %v850_v59 }
 0x172   :  { %v730_v48 = vsel %vm647_vm2, %v729_v8, %v728_v50  ;;  %v940_v6 = vsel %vm855_vm4, %v939_v39, %v8982_v2  ;;  %v1243_v60 = vshll.u32 %v1242_v18, 23  ;;  %v1050_v47 = vadd.s32 3, %v1046_v5 }
 0x173   :  { %v1221_v25 = vadd.s32 %v8922_v43, %v8931_v35  ;;  %v1432_v24 = vsel %vm1430_vm6, %v1431_v23, %v9235_v31  ;;  %v9316_v55 = vadd.f32 %v8747_v45, %v274_v58  ;;  %v15970_v34 = vand.u32 2147483647, %v15966_v30 }
 0x174   :  { %v931_v50 = vshll.u32 %v930_v27, 23  ;;  %v1428_v59 = vmul.u32 %v9217_v51, %v1412_v7  ;;  %v9326_v2 = vsub.s32 32, %v9294_v15  ;;  %v9328_v8 = vand.u32 3, %v738_v54 }
 0x175   :  { %15969 = vst [vmem:[#allocation13_spill] sm:$0xff] %v9316_v55  ;;  %vm9320_vm7 = vcmp.le.f32.partialorder %v15970_v34, 0.7853982  ;;  %v1239_v35 = vshrl.u32 %v1221_v25, %v1237_v63  ;;  %v1122_v45 = vadd.s32 536870912, %v9301_v0  ;;  %v9335_v31 = vsel %vm841_vm5, nan, %v851_v42 }
 0x176   :  { %15973 = vst [vmem:[#allocation16_spill] sm:$0xff] %v9328_v8  ;;  %v942_v43 = vsel %vm9320_vm7, 0, %v940_v6  ;;  %15974 = vst [vmem:[#allocation6_spill] sm:$0xff] %v9335_v31  ;;  %v9340_v22 = vsel %vm9013_vm3, %v8316_v52, %v730_v48  ;;  %v1244_v51 = vor.u32 4788187, %v1243_v60  ;;  %v9342_v16 = vadd.s32 %v1432_v24, %v1428_v59  ;;  %v9344_v21 = vpop.eup %7592 }
 0x177   :  { %v9346_v9 = vand.u32 3, %v1050_v47  ;;  %v909_v39 = vadd.s32 %v8878_v32, %v8888_v3  ;;  %v1238_v12 = vshll.u32 %v9050_v37, %v9226_v57  ;;  %v1584_v18 = vand.u32 2139095040, %v9316_v55  ;;  %v3686_v37 = vld [vmem:[%s15453_s3 + $0xc8] sm:$0xff]  ;;  %v3685_v57 = vld [vmem:[%s15453_s3 + $0xc0] sm:$0xff] }
 0x178   :  { %v925_v49 = vsub.s32 32, %v9239_v46  ;;  %v9354_v26 = vor.u32 4788187, %v931_v50  ;;  %v9356_v28 = vadd.s32 3, %v942_v43  ;;  %v1296_v29 = vshrl.u32 %v15933_v38, %v9326_v2  ;;  %v7595_v36 = vpop.eup %7594  ;;  %4291 = vperm.xlu1 %7519, %v3686_v37   ;;  %4286 = vperm.xlu0 %7518, %v3685_v57   ;;  %v7520_v6 = vld [vmem:[%s15457_s5 + $0x4] ss:$8 sps:$4 sm:$0xff]  }
 0x179   :  { %v1240_v23 = vor.u32 %v1239_v35, %v1238_v12  ;;  %v9360_v58 = vshrl.u32 %v1122_v45, 30  ;;  %v15510_v32 = vand.u32 2147483647, %v9192_v19  ;;  %v1299_v3 = vshrl.u32 %v15934_v17, %v9326_v2  ;;  %4820 = vmatprep.subr.bf16.mxu1 %v7520_v6 }
 0x17a   :  { %v1057_v5 = vxor.u32 2147483648, %v9344_v21  ;;  %v1245_v27 = vand.u32 2147483647, %v1244_v51  ;;  %v1434_v40 = vadd.s32 536870912, %v9342_v16  ;;  %v1295_v54 = vshll.u32 %v15957_v33, %v9294_v15 }
 0x17b   :  { %vm1056_vm2 = vcmp.eq.s32.totalorder %v9346_v9, 2  ;;  %v926_v63 = vshll.u32 %v9026_v10, %v9239_v46  ;;  %v9378_v7 = vshrl.u32 %v1281_v53, 5  ;;  %v1298_v42 = vshll.u32 %v15933_v38, %v9294_v15 }
 0x17c   :  { %v1585_v48 = vshrl.u32 %v1584_v18, 23  ;;  %vm1053_vm3 = vcmp.eq.s32.totalorder %v9346_v9, 0  ;;  %v1054_v60 = vxor.u32 2147483648, %v7595_v36  ;;  %v927_v47 = vshrl.u32 %v909_v39, %v925_v49  ;;  %v15975_v18 = vld [vmem:[#allocation10_spill] sm:$0xff] }
 0x17d   :  { %v933_v25 = vand.u32 2147483647, %v9354_v26  ;;  %v1297_v24 = vor.u32 %v1296_v29, %v1295_v54  ;;  %v1247_v34 = vcvt.s32.f32 %v1240_v23  ;;  %v1124_v10 = vshll.u32 %v9360_v58, 30 }
 0x17e   :  { %v1276_v46 = vand.u32 8388607, %v15510_v32  ;;  %v1300_v53 = vor.u32 %v1299_v3, %v1298_v42  ;;  %v9390_v50 = vshrl.u32 %v1434_v40, 30  ;;  %v1287_v59 = vshrl.u32 %v15955_v11, %v9326_v2 }
 0x17f   :  { %v1290_v43 = vshrl.u32 %v15956_v13, %v9326_v2  ;;  %v15509_v35 = vand.u32 2147483647, %v9316_v55  ;;  %v1248_v45 = vmul.f32 %v1247_v34, %v1245_v27  ;;  %v1293_v51 = vshrl.u32 %v15957_v33, %v9326_v2 }
 0x180   :  { %vm1304_vm9 = vcmp.lt.s32.totalorder %v9378_v7, 4  ;;  %v7158_v39 = vadd.s32 4294967169, %v1585_v48  ;;  %v928_v12 = vor.u32 %v927_v47, %v926_v63  ;;  %vm1167_vm10 = vcmp.lt.s32.totalorder %v15975_v18, 0 }
 0x181   :  { %v1286_v49 = vshll.u32 %v15928_v4, %v9294_v15  ;;  %v1289_v26 = vshll.u32 %v15955_v11, %v9294_v15  ;;  %v1310_v29 = vsel %vm1304_vm9, %v1297_v24, 920167782  ;;  %7596 = vcosq.f32 %v9061_v41 }
 0x182   :  { %v9409_v23 = vsub.s32 %v9301_v0, %v1124_v10  ;;  %v1292_v3 = vshll.u32 %v15956_v13, %v9294_v15  ;;  %v1314_v37 = vsel %vm1304_vm9, %v1300_v53, 1326507024  ;;  %7598 = vsinq.f32 %v9061_v41 }
 0x183   :  { %v1436_v57 = vshll.u32 %v9390_v50, 30  ;;  %v9417_v27 = vor.u32 %v1287_v59, %v1286_v49  ;;  %v9419_v40 = vor.u32 %v1290_v43, %v1289_v26  ;;  %7600 = vcosq.f32 %v9340_v22 }
 0x184   :  { %v1249_v54 = vxor.u32 2147483648, %v1248_v45  ;;  %v9422_v63 = vor.u32 %v1293_v51, %v1292_v3  ;;  %v1591_v0 = vadd.s32 1, %v7158_v39  ;;  %7602 = vsinq.f32 %v9340_v22 }
 0x185   :  { %v9427_v15 = vsel %vm1056_vm2, %v1057_v5, %v7595_v36  ;;  %v935_v42 = vcvt.s32.f32 %v928_v12  ;;  %v1277_v41 = vor.u32 8388608, %v1276_v46  ;;  %v9432_v48 = vsel %vm1053_vm3, %v9344_v21, %v1054_v60 }
 0x186   :  { %v15976_v6 = vand.u32 2147483647, %v15975_v18  ;;  %v1127_v34 = vsub.s32 0, %v9409_v23  ;;  %vm1301_vm12 = vcmp.lt.s32.totalorder %v9378_v7, 1  ;;  %vm1592_vm13 = vcmp.gt.s32.totalorder %v1591_v0, 0 }
 0x187   :  { %v9443_v22 = vsub.s32 %v9342_v16, %v1436_v57  ;;  %vm1303_vm1 = vcmp.lt.s32.totalorder %v9378_v7, 3  ;;  %v1309_v21 = vsel %vm1301_vm12, %v9417_v27, %v9419_v40  ;;  %v1593_v36 = vsel %vm1592_vm13, %v1591_v0, 0 }
 0x188   :  { %vm9436_vm11 = vcmp.le.f32.partialorder %v15976_v6, 0.7853982  ;;  %v1311_v5 = vsel %vm1303_vm1, %v9422_v63, %v1310_v29  ;;  %v1313_v60 = vsel %vm1301_vm12, %v9419_v40, %v9422_v63  ;;  %v1315_v16 = vsel %vm1303_vm1, %v1297_v24, %v1314_v37 }
 0x189   :  { %v1595_v10 = vand.u32 31, %v1593_v36  ;;  %v9459_v46 = vmul.f32 %v935_v42, %v933_v25  ;;  %v1251_v53 = vsub.s32 4, %v8998_v56  ;;  %v9462_v59 = vshll.u32 %v1277_v41, 8 }
 0x18a   :  { %v1588_v43 = vand.u32 8388607, %v15509_v35  ;;  %v1250_v51 = vsel %vm1167_vm10, %v1249_v54, %v1248_v45  ;;  %v7139_v39 = vmin.u32 %v1127_v34, %v9409_v23  ;;  %vm1302_vm0 = vcmp.lt.s32.totalorder %v9378_v7, 2  ;;  %v154_v34 = vpop.permute.xlu0 %153 }
 0x18b   :  { %v1596_v12 = vsub.s32 32, %v1595_v10  ;;  %v1439_v24 = vsub.s32 0, %v9443_v22  ;;  %v9473_v25 = vsel %vm1302_vm0, %v1309_v21, %v1311_v5  ;;  %v9477_v49 = vsel %vm1302_vm0, %v1313_v60, %v1315_v16  ;;  %v9480_v29 = vpop.eup %7596 }
 0x18c   :  { %v1598_v26 = vshll.u32 %v15928_v4, %v1595_v10  ;;  %15979 = vst [vmem:[#allocation12_spill] sm:$0xff] %v9480_v29  ;;  %v1601_v3 = vshll.u32 %v15955_v11, %v1595_v10  ;;  %v9486_v54 = vpop.eup %7598  ;;  %v1594_v0 = vshrl.u32 %v1593_v36, 5  ;;  %v1604_v42 = vshll.u32 %v15956_v13, %v1595_v10 }
 0x18d   :  { %v1599_v45 = vshrl.u32 %v15955_v11, %v1596_v12  ;;  %v1602_v37 = vshrl.u32 %v15956_v13, %v1596_v12  ;;  %v1605_v57 = vshrl.u32 %v15957_v33, %v1596_v12  ;;  %15980 = vst [vmem:[#allocation10_spill] sm:$0xff] %v9486_v54  ;;  %v1607_v41 = vshll.u32 %v15957_v33, %v1595_v10  ;;  %v9491_v21 = vpop.eup %7600 }
 0x18e   :  { %v1608_v6 = vshrl.u32 %v15933_v38, %v1596_v12  ;;  %15981 = vst [vmem:[#allocation21_spill] sm:$0xff] %v9491_v21  ;;  %v1589_v5 = vor.u32 8388608, %v1588_v43  ;;  %v1611_v35 = vshrl.u32 %v15934_v17, %v1596_v12  ;;  %v9494_v32 = vpop.eup %7602  ;;  %v9499_v36 = vsel %vm9436_vm11, %v15975_v18, %v1250_v51 }
 0x18f   :  { %v1600_v60 = vor.u32 %v1599_v45, %v1598_v26  ;;  %v1603_v16 = vor.u32 %v1602_v37, %v1601_v3  ;;  %15982 = vst [vmem:[#allocation22_spill] sm:$0xff] %v9494_v32  ;;  %v1606_v31 = vor.u32 %v1605_v57, %v1604_v42  ;;  %v1610_v52 = vshll.u32 %v15933_v38, %v1595_v10  ;;  %v9512_v45 = vld [vmem:[%s15455_s1] ss:$0 sm:$0xff] }
 0x190   :  { %v1609_v8 = vor.u32 %v1608_v6, %v1607_v41  ;;  %v7151_v29 = vmin.u32 %v1439_v24, %v9443_v22  ;;  %v9505_v43 = vmul.u32.u64.low %v9462_v59, %v9473_v25  ;;  %v9506_v26 = vmul.u32.u64.high %v9462_v59, %v9473_v25, %v9505_v43 }
 0x191   :  { %v273_v51 = vmul.f32 %v9512_v45, %v154_v34  ;;  %v9517_v3 = vmul.u32.u64.low %v9462_v59, %v9477_v49  ;;  %v9518_v37 = vmul.u32.u64.high %v9462_v59, %v9477_v49, %v9517_v3  ;;  %v1612_v10 = vor.u32 %v1611_v35, %v1610_v52  ;;  %v9524_v34 = vld [vmem:[%s15456_s2] ss:$0 sm:$0xff] }
 0x192   :  { %vm1613_vm15 = vcmp.lt.s32.totalorder %v1594_v0, 1  ;;  %v1129_v24 = vclz %v7139_v39  ;;  %vm1616_vm14 = vcmp.lt.s32.totalorder %v1594_v0, 4  ;;  %v1629_v25 = vshll.u32 %v1589_v5, 8 }
 0x193   :  { %v1621_v57 = vsel %vm1613_vm15, %v1600_v60, %v1603_v16  ;;  %v1597_v42 = vshrl.u32 %v15928_v4, %v1596_v12  ;;  %vm1615_vm5 = vcmp.lt.s32.totalorder %v1594_v0, 3  ;;  %v1618_v41 = vsel %vm1616_vm14, %v1606_v31, 2102212464 }
 0x194   :  { %v1622_v6 = vsel %vm1616_vm14, %v1609_v8, 920167782  ;;  %vm1614_vm8 = vcmp.lt.s32.totalorder %v1594_v0, 2  ;;  %v1625_v32 = vsel %vm1613_vm15, %v1603_v16, %v1606_v31  ;;  %v9527_v52 = vadd.f32 %v9524_v34, %v273_v51  ;;  %v15985_v0 = vld [vmem:[#allocation17_spill] sm:$0xff] }
 0x195   :  { %v1623_v21 = vsel %vm1615_vm5, %v1606_v31, %v1622_v6  ;;  %v1441_v35 = vclz %v7151_v29  ;;  %v1617_v39 = vsel %vm1613_vm15, %v1597_v42, %v1600_v60  ;;  %v1626_v5 = vsel %vm1616_vm14, %v1612_v10, 1326507024 }
 0x196   :  { %15983 = vst [vmem:[#allocation23_spill] sm:$0xff] %v9527_v52  ;;  %v1624_v49 = vsel %vm1614_vm8, %v1621_v57, %v1623_v21  ;;  %v1619_v12 = vsel %vm1615_vm5, %v1603_v16, %v1618_v41  ;;  %v1627_v3 = vsel %vm1615_vm5, %v1609_v8, %v1626_v5  ;;  %v937_v31 = vxor.u32 2147483648, %v9459_v46 }
 0x197   :  { %v9530_v54 = vmul.u32.u64.low %v1629_v25, %v1624_v49  ;;  %v9531_v55 = vmul.u32.u64.high %v1629_v25, %v1624_v49, %v9530_v54  ;;  %v1252_v6 = vsel %vm1167_vm10, %v1251_v53, %v8998_v56  ;;  %7604 = vcosq.f32 %v9499_v36 }
 0x198   :  { %v1628_v29 = vsel %vm1614_vm8, %v1625_v32, %v1627_v3  ;;  %vm1049_vm6 = vweird.f32 %v15959_v62  ;;  %v7140_v21 = vadd.s32 4294967294, %v1129_v24  ;;  %v1480_v8 = vand.u32 2139095040, %v9527_v52 }
 0x199   :  { %v9541_v60 = vmul.u32.u64.low %v1629_v25, %v1628_v29  ;;  %v9542_v16 = vmul.u32.u64.high %v1629_v25, %v1628_v29, %v9541_v60  ;;  %v7152_v51 = vadd.s32 4294967294, %v1441_v35  ;;  %v1285_v10 = vshrl.u32 %v15928_v4, %v9326_v2 }
 0x19a   :  { %v1306_v56 = vsel %vm1304_vm9, %v9422_v63, 2102212464  ;;  %v1620_v53 = vsel %vm1614_vm8, %v1617_v39, %v1619_v12  ;;  %vm1052_vm2 = vcmp.lt.s32.totalorder %v9346_v9, 2  ;;  %v9553_v32 = vand.u32 3, %v9356_v28 }
 0x19b   :  { %v1639_v24 = vadd.s32 1, %v9531_v55  ;;  %v1481_v57 = vshrl.u32 %v1480_v8, 23  ;;  %v1059_v42 = vsel %vm1052_vm2, %v9432_v48, %v9427_v15  ;;  %v938_v2 = vsel %vm855_vm4, %v937_v31, %v9459_v46  ;;  %v169_v46 = vpop.permute.xlu1 %168 }
 0x19c   :  { %15984 = vst [vmem:[#allocation24_spill] sm:$0xff] %v9553_v32  ;;  %v1254_v63 = vsel %vm9436_vm11, 0, %v1252_v6  ;;  %v1305_v9 = vsel %vm1301_vm12, %v1285_v10, %v9417_v27  ;;  %v15986_v28 = vand.u32 2147483647, %v15985_v0  ;;  %v1307_v15 = vsel %vm1303_vm1, %v9419_v40, %v1306_v56 }
 0x19d   :  { %v1636_v48 = vmul.u32 %v1629_v25, %v1620_v53  ;;  %vm1638_vm4 = vc.u32 %v9542_v16, %v9530_v54  ;;  %v7154_v47 = vadd.s32 4294967169, %v1481_v57  ;;  %vm7141_vm9 = vcmp.lt.s32.totalorder %v7140_v21, 0 }
 0x19e   :  { %vm9568_vm3 = vcmp.le.f32.partialorder %v15986_v28, 0.7853982  ;;  %vm7153_vm10 = vcmp.lt.s32.totalorder %v7152_v51, 0  ;;  %v1327_v27 = vadd.s32 1, %v9506_v26  ;;  %v1640_v35 = vsel %vm1638_vm4, %v1639_v24, %v9531_v55 }
 0x19f   :  { %v1147_v39 = vsub.s32 4, %v9360_v58  ;;  %vm1326_vm11 = vc.u32 %v9518_v37, %v9505_v43  ;;  %v1641_v49 = vadd.s32 %v1640_v35, %v1636_v48  ;;  %v1487_v5 = vadd.s32 1, %v7154_v47 }
 0x1a0   :  { %v9585_v40 = vsel %vm9320_vm7, %v15966_v30, %v938_v2  ;;  %vm1063_vm12 = vcmp.lt.s32.totalorder %v15985_v0, 0  ;;  %v1308_v25 = vsel %vm1302_vm0, %v1305_v9, %v1307_v15  ;;  %v276_v12 = vmul.f32 %v9512_v45, %v169_v46  ;;  %v7523_v2 = vld [vmem:[%s15457_s5 + $0x14] ss:$8 sps:$4 sm:$0xff]  }
 0x1a1   :  { %v9591_v55 = vsel %vm7141_vm9, 0, %v7140_v21  ;;  %v9593_v3 = vsel %vm7153_vm10, 0, %v7152_v51  ;;  %v1642_v31 = vadd.s32 536870912, %v1641_v49  ;;  %vm1488_vm13 = vcmp.gt.s32.totalorder %v1487_v5, 0  ;;  %v9595_v6 = vpop.eup %7604 }
 0x1a2   :  { %v9599_v44 = vsel %vm1049_vm6, nan, %v1059_v42  ;;  %v1258_v29 = vadd.s32 3, %v1254_v63  ;;  %v1328_v60 = vsel %vm1326_vm11, %v1327_v27, %v9506_v26  ;;  %v1489_v8 = vsel %vm1488_vm13, %v1487_v5, 0 }
 0x1a3   :  { %15989 = vst [vmem:[#allocation25_spill] sm:$0xff] %v9599_v44  ;;  %v9605_v7 = vsel %vm1063_vm12, %v1147_v39, %v9360_v58  ;;  %v1324_v21 = vmul.u32 %v9462_v59, %v1308_v25  ;;  %v9608_v51 = vshrl.u32 %v1642_v31, 30  ;;  %v1491_v10 = vand.u32 31, %v1489_v8 }
 0x1a4   :  { %7606 = vcosq.f32 %v9585_v40  ;;  %v1137_v62 = vsub.s32 4294967266, %v9591_v55  ;;  %v1449_v56 = vsub.s32 4294967266, %v9593_v3  ;;  %v9614_v53 = vadd.f32 %v9524_v34, %v276_v12 }
 0x1a5   :  { %v9616_v26 = vadd.s32 %v1328_v60, %v1324_v21  ;;  %v1644_v24 = vshll.u32 %v9608_v51, 30  ;;  %v15521_v58 = vand.u32 2147483647, %v9527_v52  ;;  %v9620_v57 = vsub.s32 32, %v1491_v10 }
 0x1a6   :  { %7608 = vsinq.f32 %v9499_v36  ;;  %v9623_v59 = vand.u32 3, %v1258_v29  ;;  %v1117_v42 = vadd.s32 %v9195_v1, %v9204_v20  ;;  %v1133_v9 = vsub.s32 32, %v9591_v55  ;;  %v7522_v29 = vld [vmem:[%s15457_s5] ss:$8 sps:$4 sm:$0xff]  }
 0x1a7   :  { %v1429_v28 = vadd.s32 %v9234_v61, %v9243_v14  ;;  %v9634_v15 = vsub.s32 %v1641_v49, %v1644_v24  ;;  %v1138_v48 = vadd.s32 127, %v1137_v62  ;;  %v1450_v36 = vadd.s32 127, %v1449_v56  ;;  %v3717_v24 = vld [vmem:[%s15454_s4 + $0xc0] sm:$0xff]  ;;  %4821 = vmatpush1.bf16.msra.mxu1 %v7522_v29 }
 0x1a8   :  { %v1495_v47 = vshrl.u32 %v15955_v11, %v9620_v57  ;;  %v1498_v1 = vshrl.u32 %v15956_v13, %v9620_v57  ;;  %v1330_v20 = vadd.s32 536870912, %v9616_v26  ;;  %v1484_v46 = vand.u32 8388607, %v15521_v58  ;;  %4510 = vperm.xlu0 %7518, %v3717_v24   ;;  %4822 = vmatprep.subr.bf16.mxu1 %v7523_v2 }
 0x1a9   :  { %v1501_v27 = vshrl.u32 %v15957_v33, %v9620_v57  ;;  %v1792_v61 = vand.u32 2139095040, %v9614_v53  ;;  %v1494_v14 = vshll.u32 %v15928_v4, %v1491_v10  ;;  %v1497_v35 = vshll.u32 %v15955_v11, %v1491_v10 }
 0x1aa   :  { %v1503_v39 = vshll.u32 %v15957_v33, %v1491_v10  ;;  %v1504_v49 = vshrl.u32 %v15933_v38, %v9620_v57  ;;  %v1647_v5 = vsub.s32 0, %v9634_v15  ;;  %v9652_v25 = vshrl.u32 %v1489_v8, 5  ;;  %v3718_v8 = vld [vmem:[%s15454_s4 + $0xc8] sm:$0xff] }
 0x1ab   :  { %v1500_v12 = vshll.u32 %v15956_v13, %v1491_v10  ;;  %v1507_v31 = vshrl.u32 %v15934_v17, %v9620_v57  ;;  %v9660_v60 = vor.u32 %v1495_v47, %v1494_v14  ;;  %v9662_v21 = vor.u32 %v1498_v1, %v1497_v35  ;;  %4515 = vperm.xlu1 %7519, %v3718_v8  }
 0x1ac   :  { %v1505_v62 = vor.u32 %v1504_v49, %v1503_v39  ;;  %v1506_v56 = vshll.u32 %v15933_v38, %v1491_v10  ;;  %v1134_v58 = vshll.u32 %v9409_v23, %v9591_v55  ;;  %v1445_v63 = vsub.s32 32, %v9593_v3 }
 0x1ad   :  { %v9674_v47 = vshrl.u32 %v1330_v20, 30  ;;  %v1502_v1 = vor.u32 %v1501_v27, %v1500_v12  ;;  %v1135_v10 = vshrl.u32 %v1117_v42, %v1133_v9  ;;  %v1139_v35 = vshll.u32 %v1138_v48, 23 }
 0x1ae   :  { %v9676_v14 = vpop.eup %7606  ;;  %v1508_v39 = vor.u32 %v1507_v31, %v1506_v56  ;;  %v1793_v49 = vshrl.u32 %v1792_v61, 23  ;;  %vm1264_vm7 = vcmp.eq.s32.totalorder %v9623_v59, 2  ;;  %v7159_v23 = vmin.u32 %v1647_v5, %v9634_v15 }
 0x1af   :  { %15990 = vst [vmem:[#allocation26_spill] sm:$0xff] %v9676_v14  ;;  %v1485_v55 = vor.u32 8388608, %v1484_v46  ;;  %vm1509_vm1 = vcmp.lt.s32.totalorder %v9652_v25, 1  ;;  %vm1512_vm0 = vcmp.lt.s32.totalorder %v9652_v25, 4  ;;  %vm1261_vm15 = vcmp.eq.s32.totalorder %v9623_v59, 0 }
 0x1b0   :  { %v7609_v20 = vpop.eup %7608  ;;  %v1451_v42 = vshll.u32 %v1450_v36, 23  ;;  %vm1511_vm14 = vcmp.lt.s32.totalorder %v9652_v25, 3  ;;  %v1517_v9 = vsel %vm1509_vm1, %v9660_v60, %v9662_v21  ;;  %v1518_v48 = vsel %vm1512_vm0, %v1505_v62, 920167782 }
 0x1b1   :  { %v1447_v46 = vshrl.u32 %v1429_v28, %v1445_v63  ;;  %v1332_v27 = vshll.u32 %v9674_v47, 30  ;;  %vm1510_vm5 = vcmp.lt.s32.totalorder %v9652_v25, 2  ;;  %v1519_v61 = vsel %vm1511_vm14, %v1502_v1, %v1518_v48 }
 0x1b2   :  { %v1520_v36 = vsel %vm1510_vm5, %v1517_v9, %v1519_v61  ;;  %v1521_v5 = vsel %vm1509_vm1, %v9662_v21, %v1502_v1  ;;  %v1522_v12 = vsel %vm1512_vm0, %v1508_v39, 1326507024  ;;  %v7166_v31 = vadd.s32 4294967169, %v1793_v49 }
 0x1b3   :  { %vm1260_vm8 = vcmp.lt.s32.totalorder %v9623_v59, 2  ;;  %v1140_v2 = vor.u32 4788187, %v1139_v35  ;;  %v1649_v63 = vclz %v7159_v23  ;;  %v1523_v28 = vsel %vm1511_vm14, %v1505_v62, %v1522_v12 }
 0x1b4   :  { %v9707_v29 = vshll.u32 %v1485_v55, 8  ;;  %v1262_v56 = vxor.u32 2147483648, %v7609_v20  ;;  %v1446_v8 = vshll.u32 %v9443_v22, %v9593_v3  ;;  %v1452_v24 = vor.u32 4788187, %v1451_v42  ;;  %v164_v22 = vpop.permute.xlu0 %163 }
 0x1b5   :  { %v1524_v9 = vsel %vm1510_vm5, %v1521_v5, %v1523_v28  ;;  %v1136_v48 = vor.u32 %v1135_v10, %v1134_v58  ;;  %v9714_v39 = vsub.s32 %v9616_v26, %v1332_v27  ;;  %v1799_v61 = vadd.s32 1, %v7166_v31 }
 0x1b6   :  { %v9717_v35 = vmul.u32.u64.low %v9707_v29, %v1520_v36  ;;  %v9718_v49 = vmul.u32.u64.high %v9707_v29, %v1520_v36, %v9717_v35  ;;  %v1448_v62 = vor.u32 %v1447_v46, %v1446_v8  ;;  %7610 = vsinq.f32 %v9585_v40 }
 0x1b7   :  { %v9722_v23 = vmul.u32.u64.low %v9707_v29, %v1524_v9  ;;  %v9723_v55 = vmul.u32.u64.high %v9707_v29, %v1524_v9, %v9722_v23  ;;  %v1141_v3 = vand.u32 2147483647, %v1140_v2  ;;  %v15991_v26 = vsel %vm9568_vm3, 0, %v9605_v7  ;;  %v15993_v2 = vld [vmem:[#allocation18_spill] sm:$0xff] }
 0x1b8   :  { %v9730_v58 = vadd.s32 3, %v15991_v26  ;;  %v7160_v10 = vadd.s32 4294967294, %v1649_v63  ;;  %v15992_v42 = vxor.u32 2147483648, %v9595_v6  ;;  %v1453_v27 = vand.u32 2147483647, %v1452_v24 }
 0x1b9   :  { %v1514_v36 = vsel %vm1512_vm0, %v1502_v1, 2102212464  ;;  %vm1800_vm6 = vcmp.gt.s32.totalorder %v1799_v61, 0  ;;  %v1263_v40 = vsel %vm1261_vm15, %v9595_v6, %v1262_v56  ;;  %v1335_v5 = vsub.s32 0, %v9714_v39 }
 0x1ba   :  { %v1266_v46 = vsel %vm1264_vm7, %v15992_v42, %v7609_v20  ;;  %v1493_v7 = vshrl.u32 %v15928_v4, %v9620_v57  ;;  %v275_v12 = vmul.f32 %v9512_v45, %v164_v22  ;;  %v1143_v31 = vcvt.s32.f32 %v1136_v48 }
 0x1bb   :  { %vm1375_vm2 = vcmp.lt.s32.totalorder %v15993_v2, 0  ;;  %v1455_v20 = vcvt.s32.f32 %v1448_v62  ;;  %v15522_v63 = vand.u32 2147483647, %v9614_v53  ;;  %v1801_v28 = vsel %vm1800_vm6, %v1799_v61, 0 }
 0x1bc   :  { %vm7161_vm4 = vcmp.lt.s32.totalorder %v7160_v10, 0  ;;  %v1513_v1 = vsel %vm1509_vm1, %v1493_v7, %v9660_v60  ;;  %v1515_v6 = vsel %vm1511_vm14, %v9662_v21, %v1514_v36  ;;  %v1803_v56 = vand.u32 31, %v1801_v28 }
 0x1bd   :  { %v9755_v57 = vsel %vm1260_vm8, %v1263_v40, %v1266_v46  ;;  %v1144_v8 = vmul.f32 %v1143_v31, %v1141_v3  ;;  %v9757_v24 = vmul.f32 %v1455_v20, %v1453_v27  ;;  %v1459_v9 = vsub.s32 4, %v9390_v50 }
 0x1be   :  { %v9761_v48 = vmin.u32 %v1335_v5, %v9714_v39  ;;  %v1535_v62 = vadd.s32 1, %v9718_v49  ;;  %v1804_v60 = vsub.s32 32, %v1803_v56  ;;  %v9765_v23 = vadd.f32 %v9524_v34, %v275_v12 }
 0x1bf   :  { %v9767_v21 = vsel %vm7161_vm4, 0, %v7160_v10  ;;  %v1516_v59 = vsel %vm1510_vm5, %v1513_v1, %v1515_v6  ;;  %vm1534_vm9 = vc.u32 %v9723_v55, %v9717_v35  ;;  %v1796_v61 = vand.u32 8388607, %v15522_v63 }
 0x1c0   :  { %15994 = vst [vmem:[#allocation18_spill] sm:$0xff] %v9765_v23  ;;  %v1806_v22 = vshll.u32 %v15928_v4, %v1803_v56  ;;  %v1807_v3 = vshrl.u32 %v15955_v11, %v1804_v60  ;;  %v1809_v26 = vshll.u32 %v15955_v11, %v1803_v56  ;;  %v1815_v42 = vshll.u32 %v15957_v33, %v1803_v56  ;;  %v9783_v36 = vpop.eup %7610 }
 0x1c1   :  { %v1810_v10 = vshrl.u32 %v15956_v13, %v1804_v60  ;;  %v1813_v46 = vshrl.u32 %v15957_v33, %v1804_v60  ;;  %v1816_v25 = vshrl.u32 %v15933_v38, %v1804_v60  ;;  %v1819_v27 = vshrl.u32 %v15934_v17, %v1804_v60  ;;  %15995 = vst [vmem:[#allocation27_spill] sm:$0xff] %v9783_v36 }
 0x1c2   :  { %v1536_v40 = vsel %vm1534_vm9, %v1535_v62, %v9718_v49  ;;  %v1802_v5 = vshrl.u32 %v1801_v28, 5  ;;  %v1812_v7 = vshll.u32 %v15956_v13, %v1803_v56  ;;  %v1688_v12 = vand.u32 2139095040, %v9765_v23 }
 0x1c3   :  { %v1808_v31 = vor.u32 %v1807_v3, %v1806_v22  ;;  %v1811_v20 = vor.u32 %v1810_v10, %v1809_v26  ;;  %v1817_v1 = vor.u32 %v1816_v25, %v1815_v42  ;;  %v1818_v6 = vshll.u32 %v15933_v38, %v1803_v56 }
 0x1c4   :  { %vm1257_vm10 = vweird.f32 %v15975_v18  ;;  %v15996_v63 = vand.u32 2147483647, %v15993_v2  ;;  %v1460_v49 = vsel %vm1375_vm2, %v1459_v9, %v9390_v50  ;;  %v1532_v28 = vmul.u32 %v9707_v29, %v1516_v59 }
 0x1c5   :  { %v1797_v62 = vor.u32 8388608, %v1796_v61  ;;  %v1814_v22 = vor.u32 %v1813_v46, %v1812_v7  ;;  %v1145_v3 = vxor.u32 2147483648, %v1144_v8  ;;  %v1457_v26 = vxor.u32 2147483648, %v9757_v24 }
 0x1c6   :  { %vm9792_vm11 = vcmp.le.f32.partialorder %v15996_v63, 0.7853982  ;;  %v1337_v56 = vclz %v9761_v48  ;;  %v1820_v42 = vor.u32 %v1819_v27, %v1818_v6  ;;  %v1657_v10 = vsub.s32 4294967266, %v9767_v21 }
 0x1c7   :  { %v9803_v63 = vadd.s32 %v1536_v40, %v1532_v28  ;;  %vm1821_vm13 = vcmp.lt.s32.totalorder %v1802_v5, 1  ;;  %vm1824_vm7 = vcmp.lt.s32.totalorder %v1802_v5, 4  ;;  %vm1823_vm1 = vcmp.lt.s32.totalorder %v1802_v5, 3 }
 0x1c8   :  { %v1829_v25 = vsel %vm1821_vm13, %v1808_v31, %v1811_v20  ;;  %v1830_v50 = vsel %vm1824_vm7, %v1817_v1, 920167782  ;;  %v1689_v9 = vshrl.u32 %v1688_v12, 23  ;;  %vm1822_vm0 = vcmp.lt.s32.totalorder %v1802_v5, 2 }
 0x1c9   :  { %v1826_v29 = vsel %vm1824_vm7, %v1814_v22, 2102212464  ;;  %v1831_v59 = vsel %vm1823_vm1, %v1814_v22, %v1830_v50  ;;  %v1837_v61 = vshll.u32 %v1797_v62, 8  ;;  %v1805_v46 = vshrl.u32 %v15928_v4, %v1804_v60 }
 0x1ca   :  { %v1832_v48 = vsel %vm1822_vm0, %v1829_v25, %v1831_v59  ;;  %v1833_v27 = vsel %vm1821_vm13, %v1811_v20, %v1814_v22  ;;  %v1834_v40 = vsel %vm1824_vm7, %v1820_v42, 1326507024  ;;  %v1538_v7 = vadd.s32 536870912, %v9803_v63 }
 0x1cb   :  { %v1835_v6 = vsel %vm1823_vm1, %v1817_v1, %v1834_v40  ;;  %v9812_v28 = vmul.u32.u64.low %v1837_v61, %v1832_v48  ;;  %v9813_v14 = vmul.u32.u64.high %v1837_v61, %v1832_v48, %v9812_v28  ;;  %v1825_v12 = vsel %vm1821_vm13, %v1805_v46, %v1808_v31 }
 0x1cc   :  { %v1827_v50 = vsel %vm1823_vm1, %v1811_v20, %v1826_v29  ;;  %v1836_v62 = vsel %vm1822_vm0, %v1833_v27, %v1835_v6  ;;  %v7162_v60 = vadd.s32 4294967169, %v1689_v9  ;;  %v1146_v25 = vsel %vm1063_vm12, %v1145_v3, %v1144_v8 }
 0x1cd   :  { %v9822_v22 = vand.u32 3, %v9730_v58  ;;  %vm1271_vm15 = vcmp.lt.s32.totalorder %v9192_v19, 0  ;;  %v9825_v1 = vmul.u32.u64.low %v1837_v61, %v1836_v62  ;;  %v9826_v42 = vmul.u32.u64.high %v1837_v61, %v1836_v62, %v9825_v1  ;;  %v179_v58 = vpop.permute.xlu1 %178 }
 0x1ce   :  { %v9831_v31 = vsel %vm1257_vm10, nan, %v9755_v57  ;;  %v1458_v20 = vsel %vm1375_vm2, %v1457_v26, %v9757_v24  ;;  %v1462_v8 = vsel %vm9792_vm11, 0, %v1460_v49  ;;  %v1695_v3 = vadd.s32 1, %v7162_v60 }
 0x1cf   :  { %15999 = vst [vmem:[#allocation28_spill] sm:$0xff] %v9822_v22  ;;  %16000 = vst [vmem:[#allocation29_spill] sm:$0xff] %v9831_v31  ;;  %v1653_v9 = vsub.s32 32, %v9767_v21  ;;  %v9839_v29 = vshrl.u32 %v1538_v7, 30  ;;  %v1828_v59 = vsel %vm1822_vm0, %v1825_v12, %v1827_v50  ;;  %v1847_v46 = vadd.s32 1, %v9813_v14 }
 0x1d0   :  { %v9846_v18 = vsel %vm9568_vm3, %v15985_v0, %v1146_v25  ;;  %v7148_v57 = vadd.s32 4294967294, %v1337_v56  ;;  %v1658_v24 = vadd.s32 127, %v1657_v10  ;;  %vm1696_vm12 = vcmp.gt.s32.totalorder %v1695_v3, 0 }
 0x1d1   :  { %v1461_v49 = vsel %vm9792_vm11, %v15993_v2, %v1458_v20  ;;  %v9851_v26 = vadd.s32 3, %v1462_v8  ;;  %v1637_v5 = vadd.s32 %v9530_v54, %v9542_v16  ;;  %v278_v48 = vmul.f32 %v9512_v45, %v179_v58 }
 0x1d2   :  { %v1355_v27 = vsub.s32 4, %v9674_v47  ;;  %v1844_v40 = vmul.u32 %v1837_v61, %v1828_v59  ;;  %vm1846_vm3 = vc.u32 %v9826_v42, %v9812_v28  ;;  %v1697_v41 = vsel %vm1696_vm12, %v1695_v3, 0  ;;  %v7525_v59 = vld [vmem:[%s15457_s5 + $0x10] ss:$8 sps:$4 sm:$0xff]  }
 0x1d3   :  { %7612 = vcosq.f32 %v9846_v18  ;;  %v1655_v56 = vshrl.u32 %v1637_v5, %v1653_v9  ;;  %v1540_v30 = vshll.u32 %v9839_v29, 30  ;;  %v1848_v10 = vsel %vm1846_vm3, %v1847_v46, %v9813_v14  ;;  %v3688_v5 = vld [vmem:[%s15453_s3 + $0xd8] sm:$0xff]  ;;  %4823 = vmatpush1.bf16.msra.mxu1 %v7525_v59 }
 0x1d4   :  { %vm7149_vm14 = vcmp.lt.s32.totalorder %v7148_v57, 0  ;;  %v1659_v7 = vshll.u32 %v1658_v24, 23  ;;  %v1849_v6 = vadd.s32 %v1848_v10, %v1844_v40  ;;  %v1699_v54 = vand.u32 31, %v1697_v41  ;;  %4301 = vperm.xlu1 %7519, %v3688_v5  }
 0x1d5   :  { %7614 = vcosq.f32 %v1461_v49  ;;  %v9864_v16 = vadd.s32 %v9505_v43, %v9518_v37  ;;  %v1654_v61 = vshll.u32 %v9634_v15, %v9767_v21  ;;  %v9869_v12 = vadd.f32 %v9524_v34, %v278_v48  ;;  %v3687_v48 = vld [vmem:[%s15453_s3 + $0xd0] sm:$0xff] }
 0x1d6   :  { %7616 = vsinq.f32 %v1461_v49  ;;  %v9874_v14 = vsel %vm1271_vm15, %v1355_v27, %v9674_v47  ;;  %v1850_v50 = vadd.s32 536870912, %v1849_v6  ;;  %v9876_v62 = vsub.s32 32, %v1699_v54  ;;  %4296 = vperm.xlu0 %7518, %v3687_v48  }
 0x1d7   :  { %16001 = vst [vmem:[#allocation30_spill] sm:$0xff] %v9869_v12  ;;  %v9878_v60 = vsel %vm7149_vm14, 0, %v7148_v57  ;;  %v1656_v25 = vor.u32 %v1655_v56, %v1654_v61  ;;  %v9881_v43 = vsub.s32 %v9803_v63, %v1540_v30  ;;  %v15530_v37 = vand.u32 2147483647, %v9765_v23 }
 0x1d8   :  { %v16002_v15 = vand.u32 2147483647, %v9192_v19  ;;  %v1660_v1 = vor.u32 4788187, %v1659_v7  ;;  %v9890_v47 = vshrl.u32 %v1850_v50, 30  ;;  %v1703_v20 = vshrl.u32 %v15955_v11, %v9876_v62 }
 0x1d9   :  { %v1706_v8 = vshrl.u32 %v15956_v13, %v9876_v62  ;;  %v1709_v63 = vshrl.u32 %v15957_v33, %v9876_v62  ;;  %v1711_v3 = vshll.u32 %v15957_v33, %v1699_v54  ;;  %v1712_v58 = vshrl.u32 %v15933_v38, %v9876_v62  ;;  %v7526_v50 = vld [vmem:[%s15457_s5 + $0x24] ss:$8 sps:$4 sm:$0xff]  }
 0x1da   :  { %vm9886_vm5 = vcmp.le.f32.partialorder %v16002_v15, 0.7853982  ;;  %v2000_v9 = vand.u32 2139095040, %v9869_v12  ;;  %v1852_v46 = vshll.u32 %v9890_v47, 30  ;;  %v9906_v57 = vshrl.u32 %v1697_v41, 5  ;;  %4824 = vmatprep.subr.bf16.mxu1 %v7526_v50 }
 0x1db   :  { %v1702_v24 = vshll.u32 %v15928_v4, %v1699_v54  ;;  %v1705_v49 = vshll.u32 %v15955_v11, %v1699_v54  ;;  %v1543_v27 = vsub.s32 0, %v9881_v43  ;;  %v1708_v40 = vshll.u32 %v15956_v13, %v1699_v54 }
 0x1dc   :  { %v1713_v56 = vor.u32 %v1712_v58, %v1711_v3  ;;  %v1715_v41 = vshrl.u32 %v15934_v17, %v9876_v62  ;;  %v1345_v30 = vsub.s32 4294967266, %v9878_v60  ;;  %v1692_v10 = vand.u32 8388607, %v15530_v37 }
 0x1dd   :  { %v1704_v7 = vor.u32 %v1703_v20, %v1702_v24  ;;  %v1707_v61 = vor.u32 %v1706_v8, %v1705_v49  ;;  %v9926_v15 = vpop.eup %7612  ;;  %v1661_v3 = vand.u32 2147483647, %v1660_v1  ;;  %v1710_v58 = vor.u32 %v1709_v63, %v1708_v40 }
 0x1de   :  { %16005 = vst [vmem:[#allocation31_spill] sm:$0xff] %v9926_v15  ;;  %v1714_v0 = vshll.u32 %v15933_v38, %v1699_v54  ;;  %v2001_v59 = vshrl.u32 %v2000_v9, 23  ;;  %v1341_v22 = vsub.s32 32, %v9878_v60  ;;  %v1663_v31 = vcvt.s32.f32 %v1656_v25 }
 0x1df   :  { %v9930_v36 = vsub.s32 %v1849_v6, %v1852_v46  ;;  %vm1720_vm8 = vcmp.lt.s32.totalorder %v9906_v57, 4  ;;  %v9933_v20 = vpop.eup %7614  ;;  %v7155_v8 = vmin.u32 %v1543_v27, %v9881_v43  ;;  %vm1717_vm6 = vcmp.lt.s32.totalorder %v9906_v57, 1  ;;  %v16006_v46 = vld [vmem:[#allocation13_spill] sm:$0xff] }
 0x1e0   :  { %v1716_v24 = vor.u32 %v1715_v41, %v1714_v0  ;;  %v1726_v1 = vsel %vm1720_vm8, %v1713_v56, 920167782  ;;  %v9939_v54 = vpop.eup %7616  ;;  %v1346_v63 = vadd.s32 127, %v1345_v30  ;;  %v1693_v9 = vor.u32 8388608, %v1692_v10 }
 0x1e1   :  { %vm1719_vm2 = vcmp.lt.s32.totalorder %v9906_v57, 3  ;;  %v1725_v6 = vsel %vm1717_vm6, %v1704_v7, %v1707_v61  ;;  %v1358_v25 = vsel %vm9886_vm5, 0, %v9874_v14  ;;  %vm1583_vm4 = vcmp.lt.s32.totalorder %v16006_v46, 0 }
 0x1e2   :  { %v1664_v0 = vmul.f32 %v1663_v31, %v1661_v3  ;;  %v1727_v49 = vsel %vm1719_vm2, %v1710_v58, %v1726_v1  ;;  %v7174_v5 = vadd.s32 4294967169, %v2001_v59  ;;  %v1342_v48 = vshll.u32 %v9714_v39, %v9878_v60 }
 0x1e3   :  { %v1855_v27 = vsub.s32 0, %v9930_v36  ;;  %vm1718_vm9 = vcmp.lt.s32.totalorder %v9906_v57, 2  ;;  %v1729_v40 = vsel %vm1717_vm6, %v1707_v61, %v1710_v58  ;;  %v1343_v41 = vshrl.u32 %v9864_v16, %v1341_v22 }
 0x1e4   :  { %v1545_v14 = vclz %v7155_v8  ;;  %v1728_v31 = vsel %vm1718_vm9, %v1725_v6, %v1727_v49  ;;  %v1730_v30 = vsel %vm1720_vm8, %v1716_v24, 1326507024  ;;  %v1347_v10 = vshll.u32 %v1346_v63, 23 }
 0x1e5   :  { %v16007_v50 = vand.u32 2147483647, %v16006_v46  ;;  %v1667_v60 = vsub.s32 4, %v9608_v51  ;;  %v1731_v3 = vsel %vm1719_vm2, %v1713_v56, %v1730_v30  ;;  %v9970_v22 = vshll.u32 %v1693_v9, 8 }
 0x1e6   :  { %v1665_v16 = vxor.u32 2147483648, %v1664_v0  ;;  %v1722_v59 = vsel %vm1720_vm8, %v1710_v58, 2102212464  ;;  %v1732_v8 = vsel %vm1718_vm9, %v1729_v40, %v1731_v3  ;;  %v2007_v24 = vadd.s32 1, %v7174_v5 }
 0x1e7   :  { %vm9963_vm10 = vcmp.le.f32.partialorder %v16007_v50, 0.7853982  ;;  %v7167_v1 = vmin.u32 %v1855_v27, %v9930_v36  ;;  %v1701_v63 = vshrl.u32 %v15928_v4, %v9876_v62  ;;  %v7156_v56 = vadd.s32 4294967294, %v1545_v14  ;;  %v174_v62 = vpop.permute.xlu0 %173 }
 0x1e8   :  { %v9980_v6 = vmul.u32.u64.low %v9970_v22, %v1728_v31  ;;  %v9981_v49 = vmul.u32.u64.high %v9970_v22, %v1728_v31, %v9980_v6  ;;  %v9985_v9 = vmul.u32.u64.low %v9970_v22, %v1732_v8  ;;  %v9986_v30 = vmul.u32.u64.high %v9970_v22, %v1732_v8, %v9985_v9 }
 0x1e9   :  { %vm2008_vm11 = vcmp.gt.s32.totalorder %v2007_v24, 0  ;;  %v1344_v58 = vor.u32 %v1343_v41, %v1342_v48  ;;  %v1348_v50 = vor.u32 4788187, %v1347_v10  ;;  %v1721_v5 = vsel %vm1717_vm6, %v1701_v63, %v1704_v7 }
 0x1ea   :  { %v1723_v27 = vsel %vm1719_vm2, %v1707_v61, %v1722_v59  ;;  %7618 = vsinq.f32 %v9846_v18  ;;  %v9994_v40 = vand.u32 3, %v9851_v26  ;;  %v15529_v14 = vand.u32 2147483647, %v9869_v12 }
 0x1eb   :  { %v2009_v31 = vsel %vm2008_vm11, %v2007_v24, 0  ;;  %v9997_v3 = vadd.s32 3, %v1358_v25  ;;  %v1666_v48 = vsel %vm1583_vm4, %v1665_v16, %v1664_v0  ;;  %v10004_v7 = vsel %vm1583_vm4, %v1667_v60, %v9608_v51 }
 0x1ec   :  { %v1857_v61 = vclz %v7167_v1  ;;  %vm7157_vm13 = vcmp.lt.s32.totalorder %v7156_v56, 0  ;;  %v1724_v18 = vsel %vm1718_vm9, %v1721_v5, %v1723_v27  ;;  %v2011_v26 = vand.u32 31, %v2009_v31 }
 0x1ed   :  { %v277_v41 = vmul.f32 %v9512_v45, %v174_v62  ;;  %v1349_v59 = vand.u32 2147483647, %v1348_v50  ;;  %v1351_v8 = vcvt.s32.f32 %v1344_v58  ;;  %v1669_v0 = vsel %vm9963_vm10, %v16006_v46, %v1666_v48 }
 0x1ee   :  { %v2004_v57 = vand.u32 8388607, %v15529_v14  ;;  %v2012_v60 = vsub.s32 32, %v2011_v26  ;;  %v10019_v16 = vsel %vm7157_vm13, 0, %v7156_v56  ;;  %v7168_v24 = vadd.s32 4294967294, %v1857_v61  ;;  %v189_v14 = vpop.permute.xlu1 %188 }
 0x1ef   :  { %v1740_v1 = vmul.u32 %v9970_v22, %v1724_v18  ;;  %v1743_v63 = vadd.s32 1, %v9981_v49  ;;  %vm1742_vm7 = vc.u32 %v9986_v30, %v9980_v6  ;;  %v10028_v50 = vadd.f32 %v9524_v34, %v277_v41 }
 0x1f0   :  { %v2015_v9 = vshrl.u32 %v15955_v11, %v2012_v60  ;;  %v2018_v58 = vshrl.u32 %v15956_v13, %v2012_v60  ;;  %v2014_v5 = vshll.u32 %v15928_v4, %v2011_v26  ;;  %v2017_v56 = vshll.u32 %v15955_v11, %v2011_v26 }
 0x1f1   :  { %16010 = vst [vmem:[#allocation13_spill] sm:$0xff] %v10028_v50  ;;  %v2021_v27 = vshrl.u32 %v15957_v33, %v2012_v60  ;;  %v2024_v22 = vshrl.u32 %v15933_v38, %v2012_v60  ;;  %v2005_v62 = vor.u32 8388608, %v2004_v57  ;;  %v2010_v48 = vshrl.u32 %v2009_v31, 5 }
 0x1f2   :  { %v2023_v61 = vshll.u32 %v15957_v33, %v2011_v26  ;;  %v2027_v18 = vshrl.u32 %v15934_v17, %v2012_v60  ;;  %v1744_v37 = vsel %vm1742_vm7, %v1743_v63, %v9981_v49  ;;  %v2016_v51 = vor.u32 %v2015_v9, %v2014_v5 }
 0x1f3   :  { %v2019_v41 = vor.u32 %v2018_v58, %v2017_v56  ;;  %v2020_v10 = vshll.u32 %v15956_v13, %v2011_v26  ;;  %vm7169_vm1 = vcmp.lt.s32.totalorder %v7168_v24, 0  ;;  %v2026_v32 = vshll.u32 %v15933_v38, %v2011_v26 }
 0x1f4   :  { %v10038_v25 = vpop.eup %7618  ;;  %v2025_v15 = vor.u32 %v2024_v22, %v2023_v61  ;;  %v1896_v57 = vand.u32 2139095040, %v10028_v50  ;;  %vm1472_vm0 = vcmp.eq.s32.totalorder %v9994_v40, 2  ;;  %v1352_v31 = vmul.f32 %v1351_v8, %v1349_v59 }
 0x1f5   :  { %16011 = vst [vmem:[#allocation32_spill] sm:$0xff] %v10038_v25  ;;  %7620 = vcosq.f32 %v1669_v0  ;;  %v2022_v44 = vor.u32 %v2021_v27, %v2020_v10  ;;  %v280_v12 = vmul.f32 %v9512_v45, %v189_v14  ;;  %v10044_v49 = vadd.s32 %v1744_v37, %v1740_v1 }
 0x1f6   :  { %7622 = vsinq.f32 %v1669_v0  ;;  %v2028_v63 = vor.u32 %v2027_v18, %v2026_v32  ;;  %vm2029_vm12 = vcmp.lt.s32.totalorder %v2010_v48, 1  ;;  %vm1469_vm3 = vcmp.eq.s32.totalorder %v9994_v40, 0 }
 0x1f7   :  { %v1553_v9 = vsub.s32 4294967266, %v10019_v16  ;;  %v10048_v58 = vsel %vm7169_vm1, 0, %v7168_v24  ;;  %vm2032_vm14 = vcmp.lt.s32.totalorder %v2010_v48, 4  ;;  %v2037_v26 = vsel %vm2029_vm12, %v2016_v51, %v2019_v41 }
 0x1f8   :  { %vm2031_vm8 = vcmp.lt.s32.totalorder %v2010_v48, 3  ;;  %v2038_v59 = vsel %vm2032_vm14, %v2025_v15, 920167782  ;;  %v2045_v8 = vshll.u32 %v2005_v62, 8  ;;  %v1897_v10 = vshrl.u32 %v1896_v57, 23 }
 0x1f9   :  { %vm2030_vm6 = vcmp.lt.s32.totalorder %v2010_v48, 2  ;;  %v2034_v45 = vsel %vm2032_vm14, %v2022_v44, 2102212464  ;;  %v2039_v37 = vsel %vm2031_vm8, %v2022_v44, %v2038_v59  ;;  %v2041_v32 = vsel %vm2029_vm12, %v2019_v41, %v2022_v44 }
 0x1fa   :  { %v1746_v14 = vadd.s32 536870912, %v10044_v49  ;;  %v2013_v0 = vshrl.u32 %v15928_v4, %v2012_v60  ;;  %v2040_v24 = vsel %vm2030_vm6, %v2037_v26, %v2039_v37  ;;  %v2042_v1 = vsel %vm2032_vm14, %v2028_v63, 1326507024 }
 0x1fb   :  { %v1865_v5 = vsub.s32 4294967266, %v10048_v58  ;;  %v2043_v56 = vsel %vm2031_vm8, %v2025_v15, %v2042_v1  ;;  %v10058_v27 = vmul.u32.u64.low %v2045_v8, %v2040_v24  ;;  %v10059_v22 = vmul.u32.u64.high %v2045_v8, %v2040_v24, %v10058_v27 }
 0x1fc   :  { %vm1468_vm2 = vcmp.lt.s32.totalorder %v9994_v40, 2  ;;  %vm1479_vm4 = vcmp.lt.s32.totalorder %v9527_v52, 0  ;;  %v2033_v44 = vsel %vm2029_vm12, %v2013_v0, %v2016_v51  ;;  %v2035_v62 = vsel %vm2031_vm8, %v2019_v41, %v2034_v45 }
 0x1fd   :  { %v2044_v60 = vsel %vm2030_vm6, %v2041_v32, %v2043_v56  ;;  %v7170_v61 = vadd.s32 4294967169, %v1897_v10  ;;  %v1353_v18 = vxor.u32 2147483648, %v1352_v31  ;;  %v1549_v57 = vsub.s32 32, %v10019_v16 }
 0x1fe   :  { %v10068_v63 = vmul.u32.u64.low %v2045_v8, %v2044_v60  ;;  %v10069_v15 = vmul.u32.u64.high %v2045_v8, %v2044_v60, %v10068_v63  ;;  %v16012_v26 = vxor.u32 2147483648, %v9933_v20  ;;  %v1533_v51 = vadd.s32 %v9717_v35, %v9723_v55 }
 0x1ff   :  { %v10078_v37 = vshrl.u32 %v1746_v14, 30  ;;  %v1903_v41 = vadd.s32 1, %v7170_v61  ;;  %v10080_v45 = vpop.eup %7620  ;;  %vm1465_vm9 = vweird.f32 %v15993_v2  ;;  %v1554_v10 = vadd.s32 127, %v1553_v9 }
 0x200   :  { %v1474_v59 = vsel %vm1472_vm0, %v16012_v26, %v9939_v54  ;;  %v1866_v32 = vadd.s32 127, %v1865_v5  ;;  %v2036_v0 = vsel %vm2030_vm6, %v2033_v44, %v2035_v62  ;;  %v2055_v24 = vadd.s32 1, %v10059_v22  ;;  %v10085_v1 = vpop.eup %7622 }
 0x201   :  { %v16013_v56 = vxor.u32 2147483648, %v9939_v54  ;;  %v16014_v55 = vsel %vm9963_vm10, 0, %v10004_v7  ;;  %v16015_v9 = vand.u32 2147483647, %v9527_v52  ;;  %vm1904_vm13 = vcmp.gt.s32.totalorder %v1903_v41, 0 }
 0x202   :  { %v1674_v14 = vadd.s32 3, %v16014_v55  ;;  %v10103_v5 = vadd.f32 %v9524_v34, %v280_v12  ;;  %v1354_v54 = vsel %vm1271_vm15, %v1353_v18, %v1352_v31  ;;  %v1551_v44 = vshrl.u32 %v1533_v51, %v1549_v57 }
 0x203   :  { %v1471_v35 = vsel %vm1469_vm3, %v9933_v20, %v16013_v56  ;;  %vm10098_vm11 = vcmp.le.f32.partialorder %v16015_v9, 0.7853982  ;;  %v1563_v20 = vsub.s32 4, %v9839_v29  ;;  %v1861_v39 = vsub.s32 32, %v10048_v58  ;;  %v7528_v56 = vld [vmem:[%s15457_s5 + $0x20] ss:$8 sps:$4 sm:$0xff]  }
 0x204   :  { %16018 = vst [vmem:[#allocation33_spill] sm:$0xff] %v10103_v5  ;;  %v1748_v7 = vshll.u32 %v10078_v37, 30  ;;  %v2052_v62 = vmul.u32 %v2045_v8, %v2036_v0  ;;  %vm2054_vm10 = vc.u32 %v10069_v15, %v10058_v27  ;;  %v1905_v60 = vsel %vm1904_vm13, %v1903_v41, 0  ;;  %v3719_v9 = vld [vmem:[%s15454_s4 + $0xd0] sm:$0xff]  ;;  %4825 = vmatpush1.bf16.msra.mxu1 %v7528_v56 }
 0x205   :  { %v1550_v61 = vshll.u32 %v9881_v43, %v10019_v16  ;;  %v1555_v34 = vshll.u32 %v1554_v10, 23  ;;  %v1867_v12 = vshll.u32 %v1866_v32, 23  ;;  %v2056_v63 = vsel %vm2054_vm10, %v2055_v24, %v10059_v22  ;;  %4520 = vperm.xlu0 %7518, %v3719_v9  }
 0x206   :  { %v1845_v31 = vadd.s32 %v9812_v28, %v9826_v42  ;;  %v2057_v18 = vadd.s32 %v2056_v63, %v2052_v62  ;;  %v1907_v57 = vand.u32 31, %v1905_v60  ;;  %v2208_v26 = vand.u32 2139095040, %v10103_v5 }
 0x207   :  { %v1475_v8 = vsel %vm1468_vm2, %v1471_v35, %v1474_v59  ;;  %v10123_v51 = vsel %vm9886_vm5, %v9192_v19, %v1354_v54  ;;  %v10125_v43 = vand.u32 3, %v1674_v14  ;;  %v10130_v16 = vsel %vm1479_vm4, %v1563_v20, %v9839_v29  ;;  %v3720_v14 = vld [vmem:[%s15454_s4 + $0xd8] sm:$0xff] }
 0x208   :  { %v10132_v28 = vor.u32 %v1551_v44, %v1550_v61  ;;  %v1863_v42 = vshrl.u32 %v1845_v31, %v1861_v39  ;;  %v10135_v22 = vsub.s32 %v10044_v49, %v1748_v7  ;;  %v2058_v40 = vadd.s32 536870912, %v2057_v18  ;;  %4525 = vperm.xlu1 %7519, %v3720_v14  }
 0x209   :  { %v10138_v59 = vand.u32 3, %v9997_v3  ;;  %v10140_v21 = vor.u32 4788187, %v1555_v34  ;;  %v1868_v41 = vor.u32 4788187, %v1867_v12  ;;  %v10142_v10 = vsub.s32 32, %v1907_v57 }
 0x20a   :  { %v10146_v32 = vsel %vm1465_vm9, nan, %v1475_v8  ;;  %v1862_v29 = vshll.u32 %v9930_v36, %v10048_v58  ;;  %v10150_v0 = vshrl.u32 %v2058_v40, 30  ;;  %v2209_v49 = vshrl.u32 %v2208_v26, 23  ;;  %v7529_v12 = vld [vmem:[%s15457_s5 + $0x34] ss:$8 sps:$4 sm:$0xff]  }
 0x20b   :  { %16019 = vst [vmem:[#allocation34_spill] sm:$0xff] %v10138_v59  ;;  %16020 = vst [vmem:[#allocation35_spill] sm:$0xff] %v10146_v32  ;;  %7624 = vcosq.f32 %v10123_v51  ;;  %v1678_v3 = vxor.u32 2147483648, %v10085_v1  ;;  %vm1680_vm15 = vcmp.eq.s32.totalorder %v10125_v43, 2  ;;  %v1681_v24 = vxor.u32 2147483648, %v10080_v45  ;;  %4826 = vmatprep.subr.bf16.mxu1 %v7529_v12 }
 0x20c   :  { %v1566_v2 = vsel %vm10098_vm11, 0, %v10130_v16  ;;  %vm1677_vm5 = vcmp.eq.s32.totalorder %v10125_v43, 0  ;;  %v1559_v36 = vcvt.s32.f32 %v10132_v28  ;;  %v1864_v58 = vor.u32 %v1863_v42, %v1862_v29 }
 0x20d   :  { %v1751_v35 = vsub.s32 0, %v10135_v22  ;;  %v2060_v55 = vshll.u32 %v10150_v0, 30  ;;  %v1557_v54 = vand.u32 2147483647, %v10140_v21  ;;  %v1869_v44 = vand.u32 2147483647, %v1868_v41 }
 0x20e   :  { %v15537_v20 = vand.u32 2147483647, %v10028_v50  ;;  %v1920_v39 = vshrl.u32 %v15933_v38, %v10142_v10  ;;  %v10178_v62 = vshrl.u32 %v1905_v60, 5  ;;  %v1919_v61 = vshll.u32 %v15957_v33, %v1907_v57 }
 0x20f   :  { %v10176_v7 = vsub.s32 %v2057_v18, %v2060_v55  ;;  %v7182_v34 = vadd.s32 4294967169, %v2209_v49  ;;  %v1911_v63 = vshrl.u32 %v15955_v11, %v10142_v10  ;;  %v1914_v31 = vshrl.u32 %v15956_v13, %v10142_v10 }
 0x210   :  { %v1917_v18 = vshrl.u32 %v15957_v33, %v10142_v10  ;;  %v1923_v60 = vshrl.u32 %v15934_v17, %v10142_v10  ;;  %vm1791_vm7 = vcmp.lt.s32.totalorder %v9614_v53, 0  ;;  %v1871_v26 = vcvt.s32.f32 %v1864_v58 }
 0x211   :  { %v7163_v8 = vmin.u32 %v1751_v35, %v10135_v22  ;;  %v1921_v16 = vor.u32 %v1920_v39, %v1919_v61  ;;  %v1922_v28 = vshll.u32 %v15933_v38, %v1907_v57  ;;  %v2063_v42 = vsub.s32 0, %v10176_v7 }
 0x212   :  { %v1910_v40 = vshll.u32 %v15928_v4, %v1907_v57  ;;  %v1913_v21 = vshll.u32 %v15955_v11, %v1907_v57  ;;  %v1916_v41 = vshll.u32 %v15956_v13, %v1907_v57  ;;  %vm1676_vm1 = vcmp.lt.s32.totalorder %v10125_v43, 2 }
 0x213   :  { %v1872_v29 = vmul.f32 %v1871_v26, %v1869_v44  ;;  %v1900_v49 = vand.u32 8388607, %v15537_v20  ;;  %v1924_v56 = vor.u32 %v1923_v60, %v1922_v28  ;;  %v2215_v58 = vadd.s32 1, %v7182_v34 }
 0x214   :  { %v16021_v35 = vand.u32 2147483647, %v9614_v53  ;;  %v10208_v14 = vor.u32 %v1911_v63, %v1910_v40  ;;  %v10210_v9 = vor.u32 %v1914_v31, %v1913_v21  ;;  %v1918_v39 = vor.u32 %v1917_v18, %v1916_v41 }
 0x215   :  { %vm1928_vm12 = vcmp.lt.s32.totalorder %v10178_v62, 4  ;;  %v1682_v57 = vsel %vm1680_vm15, %v1681_v24, %v10085_v1  ;;  %v1570_v44 = vadd.s32 3, %v1566_v2  ;;  %v1753_v61 = vclz %v7163_v8  ;;  %v10218_v12 = vpop.eup %7624 }
 0x216   :  { %vm10204_vm0 = vcmp.le.f32.partialorder %v16021_v35, 0.7853982  ;;  %v1934_v34 = vsel %vm1928_vm12, %v1921_v16, 920167782  ;;  %16024 = vst [vmem:[#allocation36_spill] sm:$0xff] %v10218_v12  ;;  %v1679_v63 = vsel %vm1677_vm5, %v10080_v45, %v1678_v3  ;;  %v10223_v31 = vmul.f32 %v1559_v36, %v1557_v54 }
 0x217   :  { %v1875_v18 = vsub.s32 4, %v9890_v47  ;;  %v7175_v60 = vmin.u32 %v2063_v42, %v10176_v7  ;;  %v1873_v26 = vxor.u32 2147483648, %v1872_v29  ;;  %vm1925_vm3 = vcmp.lt.s32.totalorder %v10178_v62, 1 }
 0x218   :  { %vm1927_vm14 = vcmp.lt.s32.totalorder %v10178_v62, 3  ;;  %v1938_v1 = vsel %vm1928_vm12, %v1924_v56, 1326507024  ;;  %v1901_v24 = vor.u32 8388608, %v1900_v49  ;;  %v1933_v45 = vsel %vm1925_vm3, %v10208_v14, %v10210_v9 }
 0x219   :  { %v1935_v3 = vsel %vm1927_vm14, %v1918_v39, %v1934_v34  ;;  %vm2216_vm8 = vcmp.gt.s32.totalorder %v2215_v58, 0  ;;  %v7164_v2 = vadd.s32 4294967294, %v1753_v61  ;;  %v1937_v36 = vsel %vm1925_vm3, %v10210_v9, %v1918_v39 }
 0x21a   :  { %v1939_v54 = vsel %vm1927_vm14, %v1921_v16, %v1938_v1  ;;  %v2217_v8 = vsel %vm2216_vm8, %v2215_v58, 0  ;;  %v10245_v28 = vsel %vm1791_vm7, %v1875_v18, %v9890_v47  ;;  %v2065_v42 = vclz %v7175_v60 }
 0x21b   :  { %vm1926_vm6 = vcmp.lt.s32.totalorder %v10178_v62, 2  ;;  %v15536_v40 = vand.u32 2147483647, %v10103_v5  ;;  %7626 = vsinq.f32 %v10123_v51  ;;  %v10250_v21 = vand.u32 3, %v1570_v44 }
 0x21c   :  { %v1936_v41 = vsel %vm1926_vm6, %v1933_v45, %v1935_v3  ;;  %v2219_v49 = vand.u32 31, %v2217_v8  ;;  %v10256_v16 = vsel %vm1676_vm1, %v1679_v63, %v1682_v57  ;;  %v1940_v56 = vsel %vm1926_vm6, %v1937_v36, %v1939_v54 }
 0x21d   :  { %16025 = vst [vmem:[#allocation37_spill] sm:$0xff] %v10250_v21  ;;  %v10261_v58 = vshll.u32 %v1901_v24, 8  ;;  %v1874_v51 = vsel %vm1791_vm7, %v1873_v26, %v1872_v29  ;;  %v1878_v35 = vsel %vm10204_vm0, 0, %v10245_v28  ;;  %vm7165_vm2 = vcmp.lt.s32.totalorder %v7164_v2, 0  ;;  %v184_v28 = vpop.permute.xlu0 %183 }
 0x21e   :  { %v10268_v44 = vsub.s32 32, %v2219_v49  ;;  %v7176_v43 = vadd.s32 4294967294, %v2065_v42  ;;  %v2212_v34 = vand.u32 8388607, %v15536_v40  ;;  %v10281_v29 = vshrl.u32 %v2217_v8, 5 }
 0x21f   :  { %v10271_v57 = vmul.u32.u64.low %v10261_v58, %v1936_v41  ;;  %v10272_v61 = vmul.u32.u64.high %v10261_v58, %v1936_v41, %v10271_v57  ;;  %v10278_v63 = vmul.u32.u64.low %v10261_v58, %v1940_v56  ;;  %v10279_v18 = vmul.u32.u64.high %v10261_v58, %v1940_v56, %v10278_v63 }
 0x220   :  { %v2222_v60 = vshll.u32 %v15928_v4, %v2219_v49  ;;  %v2223_v26 = vshrl.u32 %v15955_v11, %v10268_v44  ;;  %v2225_v1 = vshll.u32 %v15955_v11, %v2219_v49  ;;  %v2226_v24 = vshrl.u32 %v15956_v13, %v10268_v44 }
 0x221   :  { %v2229_v45 = vshrl.u32 %v15957_v33, %v10268_v44  ;;  %v1909_v3 = vshrl.u32 %v15928_v4, %v10142_v10  ;;  %v2228_v36 = vshll.u32 %v15956_v13, %v2219_v49  ;;  %v2231_v54 = vshll.u32 %v15957_v33, %v2219_v49 }
 0x222   :  { %v2232_v8 = vshrl.u32 %v15933_v38, %v10268_v44  ;;  %vm7177_vm9 = vcmp.lt.s32.totalorder %v7176_v43, 0  ;;  %v1930_v42 = vsel %vm1928_vm12, %v1918_v39, 2102212464  ;;  %v2224_v41 = vor.u32 %v2223_v26, %v2222_v60  ;;  %v10309_v39 = vld [vmem:[%s15455_s1] ss:$0 sm:$0xff] }
 0x223   :  { %v2227_v56 = vor.u32 %v2226_v24, %v2225_v1  ;;  %v2230_v63 = vor.u32 %v2229_v45, %v2228_v36  ;;  %v2234_v20 = vshll.u32 %v15933_v38, %v2219_v49  ;;  %v2235_v10 = vshrl.u32 %v15934_v17, %v10268_v44 }
 0x224   :  { %v2233_v40 = vor.u32 %v2232_v8, %v2231_v54  ;;  %v1929_v47 = vsel %vm1925_vm3, %v1909_v3, %v10208_v14  ;;  %v2213_v32 = vor.u32 8388608, %v2212_v34  ;;  %vm2240_vm13 = vcmp.lt.s32.totalorder %v10281_v29, 4  ;;  %v10353_v8 = vld [vmem:[%s15456_s2] ss:$0 sm:$0xff] }
 0x225   :  { %v279_v60 = vmul.f32 %v10309_v39, %v184_v28  ;;  %v10312_v26 = vpop.eup %7626  ;;  %vm1673_vm10 = vweird.f32 %v16006_v46  ;;  %v10316_v49 = vsel %vm7177_vm9, 0, %v7176_v43  ;;  %v1931_v14 = vsel %vm1927_vm14, %v10210_v9, %v1930_v42 }
 0x226   :  { %16026 = vst [vmem:[#allocation38_spill] sm:$0xff] %v10312_v26  ;;  %v2236_v34 = vor.u32 %v2235_v10, %v2234_v20  ;;  %v2246_v1 = vsel %vm2240_vm13, %v2233_v40, 920167782  ;;  %v1877_v24 = vsel %vm10204_vm0, %v9614_v53, %v1874_v51  ;;  %v10327_v45 = vsel %vm7165_vm2, 0, %v7164_v2 }
 0x227   :  { %vm2237_vm15 = vcmp.lt.s32.totalorder %v10281_v29, 1  ;;  %vm2239_vm5 = vcmp.lt.s32.totalorder %v10281_v29, 3  ;;  %v1951_v43 = vadd.s32 1, %v10272_v61  ;;  %v2073_v55 = vsub.s32 4294967266, %v10316_v49 }
 0x228   :  { %v2245_v9 = vsel %vm2237_vm15, %v2224_v41, %v2227_v56  ;;  %v2247_v20 = vsel %vm2239_vm5, %v2230_v63, %v2246_v1  ;;  %v2249_v3 = vsel %vm2237_vm15, %v2227_v56, %v2230_v63  ;;  %v1932_v2 = vsel %vm1926_vm6, %v1929_v47, %v1931_v14  ;;  %v199_v1 = vpop.permute.xlu1 %198 }
 0x229   :  { %vm1950_vm7 = vc.u32 %v10279_v18, %v10271_v57  ;;  %v2250_v51 = vsel %vm2240_vm13, %v2236_v34, 1326507024  ;;  %vm2238_vm1 = vcmp.lt.s32.totalorder %v10281_v29, 2  ;;  %v10348_v54 = vshll.u32 %v2213_v32, 8 }
 0x22a   :  { %v2251_v36 = vsel %vm2239_vm5, %v2233_v40, %v2250_v51  ;;  %v10356_v62 = vadd.f32 %v10353_v8, %v279_v60  ;;  %7628 = vcosq.f32 %v1877_v24  ;;  %v1882_v47 = vadd.s32 3, %v1878_v35 }
 0x22b   :  { %vm1687_vm0 = vcmp.lt.s32.totalorder %v9765_v23, 0  ;;  %v2248_v28 = vsel %vm2238_vm1, %v2245_v9, %v2247_v20  ;;  %v2252_v40 = vsel %vm2238_vm1, %v2249_v3, %v2251_v36  ;;  %7630 = vsinq.f32 %v1877_v24 }
 0x22c   :  { %16027 = vst [vmem:[#allocation39_spill] sm:$0xff] %v10356_v62  ;;  %v1952_v32 = vsel %vm1950_vm7, %v1951_v43, %v10272_v61  ;;  %v10365_v42 = vmul.u32.u64.low %v10348_v54, %v2252_v40  ;;  %v10366_v10 = vmul.u32.u64.high %v10348_v54, %v2252_v40, %v10365_v42  ;;  %v1761_v60 = vsub.s32 4294967266, %v10327_v45 }
 0x22d   :  { %v2074_v14 = vadd.s32 127, %v2073_v55  ;;  %v1948_v35 = vmul.u32 %v10261_v58, %v1932_v2  ;;  %v2242_v34 = vsel %vm2240_vm13, %v2230_v63, 2102212464  ;;  %v16028_v9 = vand.u32 2147483647, %v9765_v23 }
 0x22e   :  { %v2221_v61 = vshrl.u32 %v15928_v4, %v10268_v44  ;;  %v10381_v24 = vmul.u32.u64.low %v10348_v54, %v2248_v28  ;;  %v10382_v43 = vmul.u32.u64.high %v10348_v54, %v2248_v28, %v10381_v24  ;;  %v2104_v58 = vand.u32 2139095040, %v10356_v62 }
 0x22f   :  { %vm10374_vm12 = vcmp.le.f32.partialorder %v16028_v9, 0.7853982  ;;  %v10389_v63 = vsel %vm1673_vm10, nan, %v10256_v16  ;;  %v16032_v3 = vxor.u32 2147483648, %v10223_v31  ;;  %v1771_v44 = vsub.s32 4, %v10078_v37 }
 0x230   :  { %16031 = vst [vmem:[#allocation40_spill] sm:$0xff] %v10389_v63  ;;  %v10397_v2 = vadd.s32 %v1952_v32, %v1948_v35  ;;  %v2241_v51 = vsel %vm2237_vm15, %v2221_v61, %v2224_v41  ;;  %v2243_v36 = vsel %vm2239_vm5, %v2227_v56, %v2242_v34  ;;  %v2105_v28 = vshrl.u32 %v2104_v58, 23 }
 0x231   :  { %v1562_v55 = vsel %vm1479_vm4, %v16032_v3, %v10223_v31  ;;  %v282_v46 = vmul.f32 %v10309_v39, %v199_v1  ;;  %v10404_v16 = vand.u32 3, %v1882_v47  ;;  %v1757_v40 = vsub.s32 32, %v10327_v45 }
 0x232   :  { %v1762_v42 = vadd.s32 127, %v1761_v60  ;;  %v2069_v31 = vsub.s32 32, %v10316_v49  ;;  %v2075_v9 = vshll.u32 %v2074_v14, 23  ;;  %vm2262_vm4 = vc.u32 %v10366_v10, %v10381_v24 }
 0x233   :  { %v2263_v32 = vadd.s32 1, %v10382_v43  ;;  %v7178_v41 = vadd.s32 4294967169, %v2105_v28  ;;  %v1741_v56 = vadd.s32 %v9980_v6, %v9986_v30  ;;  %v2053_v35 = vadd.s32 %v10058_v27, %v10069_v15  ;;  %v16034_v15 = vld [vmem:[#allocation30_spill] sm:$0xff] }
 0x234   :  { %v1954_v47 = vadd.s32 536870912, %v10397_v2  ;;  %v2244_v60 = vsel %vm2238_vm1, %v2241_v51, %v2243_v36  ;;  %v1565_v14 = vsel %vm10098_vm11, %v9527_v52, %v1562_v55  ;;  %v1772_v34 = vsel %vm1687_vm0, %v1771_v44, %v10078_v37  ;;  %v7629_v6 = vpop.eup %7628 }
 0x235   :  { %v2111_v1 = vadd.s32 1, %v7178_v41  ;;  %v10425_v61 = vadd.f32 %v10353_v8, %v282_v46  ;;  %v1759_v30 = vshrl.u32 %v1741_v56, %v1757_v40  ;;  %v1763_v27 = vshll.u32 %v1762_v42, 23  ;;  %v7631_v29 = vpop.eup %7630  ;;  %v7532_v56 = vld [vmem:[%s15457_s5 + $0x44] ss:$8 sps:$4 sm:$0xff]  }
 0x236   :  { %vm1999_vm3 = vcmp.lt.s32.totalorder %v16034_v15, 0  ;;  %v2071_v58 = vshrl.u32 %v2053_v35, %v2069_v31  ;;  %v2264_v48 = vsel %vm2262_vm4, %v2263_v32, %v10382_v43  ;;  %vm1885_vm11 = vcmp.eq.s32.totalorder %v10404_v16, 0  ;;  %v7531_v43 = vld [vmem:[%s15457_s5 + $0x30] ss:$8 sps:$4 sm:$0xff]  }
 0x237   :  { %16033 = vst [vmem:[#allocation41_spill] sm:$0xff] %v10425_v61  ;;  %v2076_v3 = vor.u32 4788187, %v2075_v9  ;;  %v2260_v37 = vmul.u32 %v10348_v54, %v2244_v60  ;;  %vm2112_vm14 = vcmp.gt.s32.totalorder %v2111_v1, 0  ;;  %v1758_v55 = vshll.u32 %v10135_v22, %v10327_v45  ;;  %v3690_v22 = vld [vmem:[%s15453_s3 + $0xe8] sm:$0xff]  ;;  %4827 = vmatpush1.bf16.msra.mxu1 %v7531_v43 }
 0x238   :  { %v1774_v44 = vsel %vm10374_vm12, 0, %v1772_v34  ;;  %v2070_v51 = vshll.u32 %v10176_v7, %v10316_v49  ;;  %v10440_v36 = vshrl.u32 %v1954_v47, 30  ;;  %v1889_v28 = vxor.u32 2147483648, %v7629_v6  ;;  %v3689_v7 = vld [vmem:[%s15453_s3 + $0xe0] sm:$0xff]  ;;  %4311 = vperm.xlu1 %7519, %v3690_v22   ;;  %4828 = vmatprep.subr.bf16.mxu1 %v7532_v56  ;;  %v3691_v56 = vld [vmem:[%s15453_s3 + $0xf0] sm:$0xff] }
 0x239   :  { %v10445_v46 = vadd.s32 %v2264_v48, %v2260_v37  ;;  %v2113_v54 = vsel %vm2112_vm14, %v2111_v1, 0  ;;  %v2416_v40 = vand.u32 2139095040, %v10425_v61  ;;  %v1886_v49 = vxor.u32 2147483648, %v7631_v29  ;;  %4306 = vperm.xlu0 %7518, %v3689_v7   ;;  %v7534_v1 = vld [vmem:[%s15457_s5 + $0x40] ss:$8 sps:$4 sm:$0xff]  }
 0x23a   :  { %v10454_v45 = vor.u32 %v1759_v30, %v1758_v55  ;;  %v1764_v42 = vor.u32 4788187, %v1763_v27  ;;  %v2072_v31 = vor.u32 %v2071_v58, %v2070_v51  ;;  %7632 = vcosq.f32 %v1565_v14  ;;  %v3722_v48 = vld [vmem:[%s15454_s4 + $0xe8] sm:$0xff] }
 0x23b   :  { %vm1884_vm8 = vcmp.lt.s32.totalorder %v10404_v16, 2  ;;  %v2077_v9 = vand.u32 2147483647, %v2076_v3  ;;  %v2083_v32 = vsub.s32 4, %v10150_v0  ;;  %v2115_v41 = vand.u32 31, %v2113_v54  ;;  %v3721_v3 = vld [vmem:[%s15454_s4 + $0xe0] sm:$0xff]  ;;  %4829 = vmatpush1.bf16.msra.mxu1 %v7534_v1 }
 0x23c   :  { %7634 = vsinq.f32 %v1565_v14  ;;  %vm1888_vm6 = vcmp.eq.s32.totalorder %v10404_v16, 2  ;;  %v16035_v35 = vand.u32 2147483647, %v16034_v15  ;;  %v1956_v60 = vshll.u32 %v10440_v36, 30  ;;  %4535 = vperm.xlu1 %7519, %v3722_v48  }
 0x23d   :  { %v15539_v34 = vand.u32 2147483647, %v10356_v62  ;;  %v10473_v30 = vadd.s32 3, %v1774_v44  ;;  %v2266_v14 = vadd.s32 536870912, %v10445_v46  ;;  %v10476_v27 = vsub.s32 32, %v2115_v41  ;;  %4530 = vperm.xlu0 %7518, %v3721_v3  }
 0x23e   :  { %vm10464_vm2 = vcmp.le.f32.partialorder %v16035_v35, 0.7853982  ;;  %v2417_v58 = vshrl.u32 %v2416_v40, 23  ;;  %v1887_v37 = vsel %vm1885_vm11, %v7629_v6, %v1886_v49  ;;  %v1890_v55 = vsel %vm1888_vm6, %v1889_v28, %v7631_v29  ;;  %v7535_v6 = vld [vmem:[%s15457_s5 + $0x54] ss:$8 sps:$4 sm:$0xff]  }
 0x23f   :  { %v1767_v44 = vcvt.s32.f32 %v10454_v45  ;;  %v2079_v51 = vcvt.s32.f32 %v2072_v31  ;;  %v1765_v43 = vand.u32 2147483647, %v1764_v42  ;;  %v2084_v40 = vsel %vm1999_vm3, %v2083_v32, %v10150_v0  ;;  %v7537_v45 = vld [vmem:[%s15457_s5 + $0x50] ss:$8 sps:$4 sm:$0xff]   ;;  %4830 = vmatprep.subr.bf16.mxu1 %v7535_v6 }
 0x240   :  { %v2119_v22 = vshrl.u32 %v15955_v11, %v10476_v27  ;;  %v2122_v7 = vshrl.u32 %v15956_v13, %v10476_v27  ;;  %v10498_v28 = vsub.s32 %v10397_v2, %v1956_v60  ;;  %v2108_v49 = vand.u32 8388607, %v15539_v34  ;;  %v3692_v2 = vld [vmem:[%s15453_s3 + $0xf8] sm:$0xff]  ;;  %4831 = vmatpush1.bf16.msra.mxu1 %v7537_v45 }
 0x241   :  { %v2080_v29 = vmul.f32 %v2079_v51, %v2077_v9  ;;  %v2125_v0 = vshrl.u32 %v15957_v33, %v10476_v27  ;;  %v10507_v42 = vshrl.u32 %v2266_v14, 30  ;;  %v2118_v31 = vshll.u32 %v15928_v4, %v2115_v41  ;;  %4321 = vperm.xlu1 %7519, %v3692_v2   ;;  %4316 = vperm.xlu0 %7518, %v3691_v56  }
 0x242   :  { %v2121_v32 = vshll.u32 %v15955_v11, %v2115_v41  ;;  %v7190_v9 = vadd.s32 4294967169, %v2417_v58  ;;  %v10517_v35 = vshrl.u32 %v2113_v54, 5  ;;  %v2124_v60 = vshll.u32 %v15956_v13, %v2115_v41  ;;  %v7538_v54 = vld [vmem:[%s15457_s5 + $0x64] ss:$8 sps:$4 sm:$0xff]  }
 0x243   :  { %v2127_v1 = vshll.u32 %v15957_v33, %v2115_v41  ;;  %v2128_v14 = vshrl.u32 %v15933_v38, %v10476_v27  ;;  %v2120_v58 = vor.u32 %v2119_v22, %v2118_v31  ;;  %v2130_v3 = vshll.u32 %v15933_v38, %v2115_v41  ;;  %4832 = vmatprep.subr.bf16.mxu1 %v7538_v54 }
 0x244   :  { %v2123_v48 = vor.u32 %v2122_v7, %v2121_v32  ;;  %v2131_v51 = vshrl.u32 %v15934_v17, %v10476_v27  ;;  %v1891_v6 = vsel %vm1884_vm8, %v1887_v37, %v1890_v55  ;;  %v1768_v34 = vmul.f32 %v1767_v44, %v1765_v43  ;;  %v10531_v45 = vpop.eup %7632 }
 0x245   :  { %v2126_v63 = vor.u32 %v2125_v0, %v2124_v60  ;;  %v2129_v21 = vor.u32 %v2128_v14, %v2127_v1  ;;  %16038 = vst [vmem:[#allocation30_spill] sm:$0xff] %v10531_v45  ;;  %v2086_v22 = vsel %vm10464_vm2, 0, %v2084_v40  ;;  %v1959_v41 = vsub.s32 0, %v10498_v28 }
 0x246   :  { %v2109_v7 = vor.u32 8388608, %v2108_v49  ;;  %v2132_v31 = vor.u32 %v2131_v51, %v2130_v3  ;;  %v10536_v32 = vpop.eup %7634  ;;  %vm1881_vm9 = vweird.f32 %v9614_v53  ;;  %v2081_v2 = vxor.u32 2147483648, %v2080_v29 }
 0x247   :  { %16039 = vst [vmem:[#allocation42_spill] sm:$0xff] %v10536_v32  ;;  %v2268_v16 = vshll.u32 %v10507_v42, 30  ;;  %vm2133_vm13 = vcmp.lt.s32.totalorder %v10517_v35, 1  ;;  %vm2136_vm10 = vcmp.lt.s32.totalorder %v10517_v35, 4  ;;  %vm2135_vm15 = vcmp.lt.s32.totalorder %v10517_v35, 3 }
 0x248   :  { %v2141_v37 = vsel %vm2133_vm13, %v2120_v58, %v2123_v48  ;;  %v2142_v55 = vsel %vm2136_vm10, %v2129_v21, 920167782  ;;  %v2423_v44 = vadd.s32 1, %v7190_v9  ;;  %v1769_v43 = vxor.u32 2147483648, %v1768_v34 }
 0x249   :  { %vm2134_vm5 = vcmp.lt.s32.totalorder %v10517_v35, 2  ;;  %v2143_v40 = vsel %vm2135_vm15, %v2126_v63, %v2142_v55  ;;  %v2145_v49 = vsel %vm2133_vm13, %v2123_v48, %v2126_v63  ;;  %v7171_v0 = vmin.u32 %v1959_v41, %v10498_v28 }
 0x24a   :  { %v2144_v56 = vsel %vm2134_vm5, %v2141_v37, %v2143_v40  ;;  %v2146_v60 = vsel %vm2136_vm10, %v2132_v31, 1326507024  ;;  %v10557_v1 = vshll.u32 %v2109_v7, 8  ;;  %v2082_v9 = vsel %vm1999_vm3, %v2081_v2, %v2080_v29  ;;  %v194_v40 = vpop.permute.xlu0 %193 }
 0x24b   :  { %v2090_v14 = vadd.s32 3, %v2086_v22  ;;  %v10562_v3 = vsub.s32 %v10445_v46, %v2268_v16  ;;  %v2147_v51 = vsel %vm2135_vm15, %v2129_v21, %v2146_v60  ;;  %vm2424_vm7 = vcmp.gt.s32.totalorder %v2423_v44, 0 }
 0x24c   :  { %v2148_v54 = vsel %vm2134_vm5, %v2145_v49, %v2147_v51  ;;  %v10569_v41 = vmul.u32.u64.low %v10557_v1, %v2144_v56  ;;  %v10570_v37 = vmul.u32.u64.high %v10557_v1, %v2144_v56, %v10569_v41  ;;  %v1770_v7 = vsel %vm1687_vm0, %v1769_v43, %v1768_v34 }
 0x24d   :  { %v2138_v29 = vsel %vm2136_vm10, %v2126_v63, 2102212464  ;;  %v10578_v46 = vmul.u32.u64.low %v10557_v1, %v2148_v54  ;;  %v10579_v22 = vmul.u32.u64.high %v10557_v1, %v2148_v54, %v10578_v46  ;;  %v2085_v21 = vsel %vm10464_vm2, %v16034_v15, %v2082_v9 }
 0x24e   :  { %v1961_v31 = vclz %v7171_v0  ;;  %v2117_v2 = vshrl.u32 %v15928_v4, %v10476_v27  ;;  %v2425_v16 = vsel %vm2424_vm7, %v2423_v44, 0  ;;  %v10587_v55 = vand.u32 3, %v10473_v30 }
 0x24f   :  { %vm1895_vm1 = vcmp.lt.s32.totalorder %v10028_v50, 0  ;;  %v2271_v63 = vsub.s32 0, %v10562_v3  ;;  %v15542_v34 = vand.u32 2147483647, %v10425_v61  ;;  %v2427_v43 = vand.u32 31, %v2425_v16 }
 0x250   :  { %16040 = vst [vmem:[#allocation43_spill] sm:$0xff] %v10587_v55  ;;  %v10594_v47 = vsel %vm1881_vm9, nan, %v1891_v6  ;;  %v10599_v27 = vsel %vm10374_vm12, %v9765_v23, %v1770_v7  ;;  %v2137_v30 = vsel %vm2133_vm13, %v2117_v2, %v2120_v58  ;;  %v2139_v44 = vsel %vm2135_vm15, %v2123_v48, %v2138_v29  ;;  %v209_v55 = vpop.permute.xlu1 %208 }
 0x251   :  { %16041 = vst [vmem:[#allocation44_spill] sm:$0xff] %v10594_v47  ;;  %7636 = vcosq.f32 %v2085_v21  ;;  %v10605_v49 = vand.u32 3, %v2090_v14  ;;  %v1979_v0 = vsub.s32 4, %v10440_v36  ;;  %v2159_v53 = vadd.s32 1, %v10570_v37 }
 0x252   :  { %v7172_v6 = vadd.s32 4294967294, %v1961_v31  ;;  %vm2158_vm0 = vc.u32 %v10579_v22, %v10569_v41  ;;  %v2428_v20 = vsub.s32 32, %v2427_v43  ;;  %v281_v56 = vmul.f32 %v10309_v39, %v194_v40 }
 0x253   :  { %v7183_v60 = vmin.u32 %v2271_v63, %v10562_v3  ;;  %v2140_v58 = vsel %vm2134_vm5, %v2137_v30, %v2139_v44  ;;  %v2420_v48 = vand.u32 8388607, %v15542_v34  ;;  %v2430_v9 = vshll.u32 %v15928_v4, %v2427_v43 }
 0x254   :  { %v2431_v14 = vshrl.u32 %v15955_v11, %v2428_v20  ;;  %v2433_v51 = vshll.u32 %v15955_v11, %v2427_v43  ;;  %v2434_v54 = vshrl.u32 %v15956_v13, %v2428_v20  ;;  %v2437_v7 = vshrl.u32 %v15957_v33, %v2428_v20 }
 0x255   :  { %v2160_v29 = vsel %vm2158_vm0, %v2159_v53, %v10570_v37  ;;  %v2426_v46 = vshrl.u32 %v2425_v16, 5  ;;  %v2439_v31 = vshll.u32 %v15957_v33, %v2427_v43  ;;  %v2440_v35 = vshrl.u32 %v15933_v38, %v2428_v20 }
 0x256   :  { %v2432_v2 = vor.u32 %v2431_v14, %v2430_v9  ;;  %v2435_v63 = vor.u32 %v2434_v54, %v2433_v51  ;;  %v2436_v40 = vshll.u32 %v15956_v13, %v2427_v43  ;;  %v2443_v30 = vshrl.u32 %v15934_v17, %v2428_v20 }
 0x257   :  { %v16042_v44 = vand.u32 2147483647, %v10028_v50  ;;  %v2273_v47 = vclz %v7183_v60  ;;  %v2156_v37 = vmul.u32 %v10557_v1, %v2140_v58  ;;  %v2441_v16 = vor.u32 %v2440_v35, %v2439_v31 }
 0x258   :  { %v10635_v53 = vadd.f32 %v10353_v8, %v281_v56  ;;  %v1980_v9 = vsel %vm1895_vm1, %v1979_v0, %v10440_v36  ;;  %v2421_v14 = vor.u32 8388608, %v2420_v48  ;;  %v2438_v51 = vor.u32 %v2437_v7, %v2436_v40 }
 0x259   :  { %vm10629_vm12 = vcmp.le.f32.partialorder %v16042_v44, 0.7853982  ;;  %v2442_v54 = vshll.u32 %v15933_v38, %v2427_v43  ;;  %7638 = vsinq.f32 %v2085_v21  ;;  %v10641_v44 = vadd.s32 %v2160_v29, %v2156_v37 }
 0x25a   :  { %16045 = vst [vmem:[#allocation45_spill] sm:$0xff] %v10635_v53  ;;  %vm2445_vm4 = vcmp.lt.s32.totalorder %v2426_v46, 1  ;;  %vm2448_vm3 = vcmp.lt.s32.totalorder %v2426_v46, 4  ;;  %v284_v58 = vmul.f32 %v10309_v39, %v209_v55  ;;  %vm7173_vm11 = vcmp.lt.s32.totalorder %v7172_v6, 0 }
 0x25b   :  { %v2444_v60 = vor.u32 %v2443_v30, %v2442_v54  ;;  %v2453_v1 = vsel %vm2445_vm4, %v2432_v2, %v2435_v63  ;;  %v2454_v56 = vsel %vm2448_vm3, %v2441_v16, 920167782  ;;  %v10646_v31 = vpop.eup %7636  ;;  %v7184_v36 = vadd.s32 4294967294, %v2273_v47 }
 0x25c   :  { %vm2447_vm14 = vcmp.lt.s32.totalorder %v2426_v46, 3  ;;  %v2312_v0 = vand.u32 2139095040, %v10635_v53  ;;  %vm2446_vm8 = vcmp.lt.s32.totalorder %v2426_v46, 2  ;;  %v2450_v21 = vsel %vm2448_vm3, %v2438_v51, 2102212464 }
 0x25d   :  { %v2455_v43 = vsel %vm2447_vm14, %v2438_v51, %v2454_v56  ;;  %v2461_v48 = vshll.u32 %v2421_v14, 8  ;;  %v2162_v7 = vadd.s32 536870912, %v10641_v44  ;;  %v2429_v29 = vshrl.u32 %v15928_v4, %v2428_v20 }
 0x25e   :  { %v2456_v35 = vsel %vm2446_vm8, %v2453_v1, %v2455_v43  ;;  %v2457_v55 = vsel %vm2445_vm4, %v2435_v63, %v2438_v51  ;;  %v1964_v40 = vsel %vm7173_vm11, 0, %v7172_v6  ;;  %v2458_v30 = vsel %vm2448_vm3, %v2444_v60, 1326507024 }
 0x25f   :  { %v10655_v47 = vmul.u32.u64.low %v2461_v48, %v2456_v35  ;;  %v10656_v37 = vmul.u32.u64.high %v2461_v48, %v2456_v35, %v10655_v47  ;;  %v2449_v54 = vsel %vm2445_vm4, %v2429_v29, %v2432_v2  ;;  %v2451_v23 = vsel %vm2447_vm14, %v2435_v63, %v2450_v21 }
 0x260   :  { %v2459_v56 = vsel %vm2447_vm14, %v2441_v16, %v2458_v30  ;;  %v2313_v14 = vshrl.u32 %v2312_v0, 23  ;;  %7640 = vcosq.f32 %v10599_v27  ;;  %v1982_v20 = vsel %vm10629_vm12, 0, %v1980_v9 }
 0x261   :  { %vm7185_vm6 = vcmp.lt.s32.totalorder %v7184_v36, 0  ;;  %v2460_v51 = vsel %vm2446_vm8, %v2457_v55, %v2459_v56  ;;  %v10664_v6 = vshrl.u32 %v2162_v7, 30  ;;  %v1965_v35 = vsub.s32 32, %v1964_v40 }
 0x262   :  { %v10666_v60 = vmul.u32.u64.low %v2461_v48, %v2460_v51  ;;  %v10667_v1 = vmul.u32.u64.high %v2461_v48, %v2460_v51, %v10666_v60  ;;  %v7186_v43 = vadd.s32 4294967169, %v2313_v14  ;;  %v2452_v2 = vsel %vm2446_vm8, %v2449_v54, %v2451_v23 }
 0x263   :  { %v2471_v63 = vadd.s32 1, %v10656_v37  ;;  %v10672_v16 = vadd.f32 %v10353_v8, %v284_v58  ;;  %v7639_v0 = vpop.eup %7638  ;;  %7642 = vsinq.f32 %v10599_v27  ;;  %vm2093_vm2 = vcmp.eq.s32.totalorder %v10605_v49, 0  ;;  %v7540_v60 = vld [vmem:[%s15457_s5 + $0x60] ss:$8 sps:$4 sm:$0xff]  }
 0x264   :  { %v1969_v9 = vsub.s32 4294967266, %v1964_v40  ;;  %v2319_v21 = vadd.s32 1, %v7186_v43  ;;  %v2097_v7 = vxor.u32 2147483648, %v10646_v31  ;;  %v1949_v29 = vadd.s32 %v10271_v57, %v10279_v18  ;;  %4833 = vmatpush1.bf16.msra.mxu1 %v7540_v60 }
 0x265   :  { %16046 = vst [vmem:[#allocation46_spill] sm:$0xff] %v10672_v16  ;;  %v1986_v55 = vadd.s32 3, %v1982_v20  ;;  %v10680_v23 = vsel %vm7185_vm6, 0, %v7184_v36  ;;  %v2164_v46 = vshll.u32 %v10664_v6, 30  ;;  %v2468_v58 = vmul.u32 %v2461_v48, %v2452_v2 }
 0x266   :  { %vm2470_vm9 = vc.u32 %v10667_v1, %v10655_v47  ;;  %vm2320_vm13 = vcmp.gt.s32.totalorder %v2319_v21, 0  ;;  %v1967_v27 = vshrl.u32 %v1949_v29, %v1965_v35  ;;  %v2624_v56 = vand.u32 2139095040, %v10672_v16 }
 0x267   :  { %v2472_v30 = vsel %vm2470_vm9, %v2471_v63, %v10656_v37  ;;  %v2321_v54 = vsel %vm2320_vm13, %v2319_v21, 0  ;;  %v2094_v14 = vxor.u32 2147483648, %v7639_v0  ;;  %vm2096_vm10 = vcmp.eq.s32.totalorder %v10605_v49, 2 }
 0x268   :  { %v1970_v57 = vadd.s32 127, %v1969_v9  ;;  %v2473_v18 = vadd.s32 %v2472_v30, %v2468_v58  ;;  %v1966_v36 = vshll.u32 %v10498_v28, %v1964_v40  ;;  %v10689_v20 = vand.u32 3, %v1986_v55  ;;  %v3724_v28 = vld [vmem:[%s15454_s4 + $0xf8] sm:$0xff]  ;;  %v3723_v40 = vld [vmem:[%s15454_s4 + $0xf0] sm:$0xff] }
 0x269   :  { %v2281_v48 = vsub.s32 4294967266, %v10680_v23  ;;  %v2323_v51 = vand.u32 31, %v2321_v54  ;;  %v2261_v37 = vadd.s32 %v10381_v24, %v10366_v10  ;;  %v10698_v43 = vsub.s32 %v10641_v44, %v2164_v46  ;;  %4545 = vperm.xlu1 %7519, %v3724_v28   ;;  %v7541_v44 = vld [vmem:[%s15457_s5 + $0x84] ss:$8 sps:$4 sm:$0xff]   ;;  %4540 = vperm.xlu0 %7518, %v3723_v40  }
 0x26a   :  { %16047 = vst [vmem:[#allocation47_spill] sm:$0xff] %v10689_v20  ;;  %v2474_v35 = vadd.s32 536870912, %v2473_v18  ;;  %v15552_v2 = vand.u32 2147483647, %v10635_v53  ;;  %v10707_v63 = vpop.eup %7640  ;;  %v10709_v9 = vsel %vm2096_vm10, %v2097_v7, %v7639_v0  ;;  %v10711_v21 = vor.u32 %v1967_v27, %v1966_v36  ;;  %v7542_v7 = vld [vmem:[%s15457_s5 + $0x74] ss:$8 sps:$4 sm:$0xff]   ;;  %7303 = vmatprep.subr.bf16.mxu0 %v7541_v44 }
 0x26b   :  { %16048 = vst [vmem:[#allocation48_spill] sm:$0xff] %v10707_v63  ;;  %v2324_v10 = vsub.s32 32, %v2323_v51  ;;  %v2625_v24 = vshrl.u32 %v2624_v56, 23  ;;  %v10719_v29 = vsel %vm2093_vm2, %v10646_v31, %v2094_v14  ;;  %v1971_v55 = vshll.u32 %v1970_v57, 23  ;;  %7304 = vmatpush3.bf16.msra.mxu0 %v7541_v44  ;;  %4834 = vmatprep.subr.bf16.mxu1 %v7542_v7 }
 0x26c   :  { %v2277_v46 = vsub.s32 32, %v10680_v23  ;;  %v10722_v0 = vshrl.u32 %v2474_v35, 30  ;;  %v10727_v58 = vadd.s32 127, %v2281_v48  ;;  %v2167_v14 = vsub.s32 0, %v10698_v43 }
 0x26d   :  { %v2327_v27 = vshrl.u32 %v15955_v11, %v2324_v10  ;;  %v2330_v30 = vshrl.u32 %v15956_v13, %v2324_v10  ;;  %v2333_v56 = vshrl.u32 %v15957_v33, %v2324_v10  ;;  %v10732_v31 = vpop.eup %7642  ;;  %v2316_v57 = vand.u32 8388607, %v15552_v2 }
 0x26e   :  { %16049 = vst [vmem:[#allocation49_spill] sm:$0xff] %v10732_v31  ;;  %v2326_v36 = vshll.u32 %v15928_v4, %v2323_v51  ;;  %v2329_v60 = vshll.u32 %v15955_v11, %v2323_v51  ;;  %v2332_v48 = vshll.u32 %v15956_v13, %v2323_v51  ;;  %v2335_v35 = vshll.u32 %v15957_v33, %v2323_v51 }
 0x26f   :  { %v2336_v28 = vshrl.u32 %v15933_v38, %v2324_v10  ;;  %v7198_v40 = vadd.s32 4294967169, %v2625_v24  ;;  %v2476_v20 = vshll.u32 %v10722_v0, 30  ;;  %v2322_v63 = vshrl.u32 %v2321_v54, 5 }
 0x270   :  { %v2328_v31 = vor.u32 %v2327_v27, %v2326_v36  ;;  %v2331_v45 = vor.u32 %v2330_v30, %v2329_v60  ;;  %v2334_v32 = vor.u32 %v2333_v56, %v2332_v48  ;;  %v2338_v52 = vshll.u32 %v15933_v38, %v2323_v51 }
 0x271   :  { %v2337_v2 = vor.u32 %v2336_v28, %v2335_v35  ;;  %v2339_v59 = vshrl.u32 %v15934_v17, %v2324_v10  ;;  %v1972_v44 = vor.u32 4788187, %v1971_v55  ;;  %v2278_v7 = vshll.u32 %v10562_v3, %v10680_v23 }
 0x272   :  { %v2279_v19 = vshrl.u32 %v2261_v37, %v2277_v46  ;;  %v2283_v12 = vshll.u32 %v10727_v58, 23  ;;  %v7179_v24 = vmin.u32 %v2167_v14, %v10698_v43  ;;  %v2317_v26 = vor.u32 8388608, %v2316_v57  ;;  %v204_v57 = vpop.permute.xlu0 %203 }
 0x273   :  { %v2340_v25 = vor.u32 %v2339_v59, %v2338_v52  ;;  %v15562_v54 = vand.u32 2147483647, %v10672_v16  ;;  %vm2092_vm15 = vcmp.lt.s32.totalorder %v10605_v49, 2  ;;  %v10751_v27 = vsub.s32 %v2473_v18, %v2476_v20 }
 0x274   :  { %vm2341_vm5 = vcmp.lt.s32.totalorder %v2322_v63, 1  ;;  %vm2344_vm7 = vcmp.lt.s32.totalorder %v2322_v63, 4  ;;  %v2631_v51 = vadd.s32 1, %v7198_v40  ;;  %vm2343_vm0 = vcmp.lt.s32.totalorder %v2322_v63, 3 }
 0x275   :  { %v2346_v55 = vsel %vm2344_vm7, %v2334_v32, 2102212464  ;;  %v2349_v30 = vsel %vm2341_vm5, %v2328_v31, %v2331_v45  ;;  %v2350_v3 = vsel %vm2344_vm7, %v2337_v2, 920167782  ;;  %v2325_v23 = vshrl.u32 %v15928_v4, %v2324_v10 }
 0x276   :  { %vm2342_vm4 = vcmp.lt.s32.totalorder %v2322_v63, 2  ;;  %v2351_v37 = vsel %vm2343_vm0, %v2334_v32, %v2350_v3  ;;  %v2353_v46 = vsel %vm2341_vm5, %v2331_v45, %v2334_v32  ;;  %v2169_v58 = vclz %v7179_v24 }
 0x277   :  { %v2352_v52 = vsel %vm2342_vm4, %v2349_v30, %v2351_v37  ;;  %v2354_v59 = vsel %vm2344_vm7, %v2340_v25, 1326507024  ;;  %v2357_v56 = vshll.u32 %v2317_v26, 8  ;;  %v2345_v14 = vsel %vm2341_vm5, %v2325_v23, %v2328_v31 }
 0x278   :  { %v2347_v18 = vsel %vm2343_vm0, %v2331_v45, %v2346_v55  ;;  %v2355_v20 = vsel %vm2343_vm0, %v2337_v2, %v2354_v59  ;;  %vm2632_vm3 = vcmp.gt.s32.totalorder %v2631_v51, 0  ;;  %v2479_v36 = vsub.s32 0, %v10751_v27 }
 0x279   :  { %v2356_v60 = vsel %vm2342_vm4, %v2353_v46, %v2355_v20  ;;  %v10757_v48 = vmul.u32.u64.low %v2357_v56, %v2352_v52  ;;  %v10758_v35 = vmul.u32.u64.high %v2357_v56, %v2352_v52, %v10757_v48  ;;  %v1973_v10 = vand.u32 2147483647, %v1972_v44 }
 0x27a   :  { %v10761_v32 = vmul.u32.u64.low %v2357_v56, %v2356_v60  ;;  %v10762_v28 = vmul.u32.u64.high %v2357_v56, %v2356_v60, %v10761_v32  ;;  %v2633_v40 = vsel %vm2632_vm3, %v2631_v51, 0  ;;  %vm2207_vm11 = vcmp.lt.s32.totalorder %v10103_v5, 0 }
 0x27b   :  { %v2280_v25 = vor.u32 %v2279_v19, %v2278_v7  ;;  %v2348_v26 = vsel %vm2342_vm4, %v2345_v14, %v2347_v18  ;;  %v2635_v45 = vand.u32 31, %v2633_v40  ;;  %v283_v2 = vmul.f32 %v10309_v39, %v204_v57 }
 0x27c   :  { %v1975_v31 = vcvt.s32.f32 %v10711_v21  ;;  %v2284_v24 = vor.u32 4788187, %v2283_v12  ;;  %v7180_v55 = vadd.s32 4294967294, %v2169_v58  ;;  %v2628_v30 = vand.u32 8388607, %v15562_v54 }
 0x27d   :  { %v10774_v44 = vsel %vm2092_vm15, %v10719_v29, %v10709_v9  ;;  %v7191_v19 = vmin.u32 %v2479_v36, %v10751_v27  ;;  %v2367_v63 = vadd.s32 1, %v10758_v35  ;;  %v2636_v7 = vsub.s32 32, %v2635_v45 }
 0x27e   :  { %v10778_v51 = vmul.f32 %v1975_v31, %v1973_v10  ;;  %v2291_v21 = vsub.s32 4, %v10507_v42  ;;  %v2364_v12 = vmul.u32 %v2357_v56, %v2348_v26  ;;  %vm2366_vm14 = vc.u32 %v10762_v28, %v10757_v48 }
 0x27f   :  { %v2287_v3 = vcvt.s32.f32 %v2280_v25  ;;  %v2368_v23 = vsel %vm2366_vm14, %v2367_v63, %v10758_v35  ;;  %v2639_v49 = vshrl.u32 %v15955_v11, %v2636_v7  ;;  %v2642_v9 = vshrl.u32 %v15956_v13, %v2636_v7 }
 0x280   :  { %v2285_v29 = vand.u32 2147483647, %v2284_v24  ;;  %vm7181_vm8 = vcmp.lt.s32.totalorder %v7180_v55, 0  ;;  %v10786_v37 = vadd.s32 %v2368_v23, %v2364_v12  ;;  %v2629_v46 = vor.u32 8388608, %v2628_v30 }
 0x281   :  { %v2481_v58 = vclz %v7191_v19  ;;  %v2638_v52 = vshll.u32 %v15928_v4, %v2635_v45  ;;  %v2641_v59 = vshll.u32 %v15955_v11, %v2635_v45  ;;  %v2645_v56 = vshrl.u32 %v15957_v33, %v2636_v7 }
 0x282   :  { %v2634_v14 = vshrl.u32 %v2633_v40, 5  ;;  %v2644_v18 = vshll.u32 %v15956_v13, %v2635_v45  ;;  %v2647_v20 = vshll.u32 %v15957_v33, %v2635_v45  ;;  %v2648_v57 = vshrl.u32 %v15933_v38, %v2636_v7 }
 0x283   :  { %v16050_v36 = vand.u32 2147483647, %v10103_v5  ;;  %v2640_v35 = vor.u32 %v2639_v49, %v2638_v52  ;;  %v2643_v10 = vor.u32 %v2642_v9, %v2641_v59  ;;  %v2650_v32 = vshll.u32 %v15933_v38, %v2635_v45  ;;  %v219_v9 = vpop.permute.xlu1 %218 }
 0x284   :  { %v2651_v25 = vshrl.u32 %v15934_v17, %v2636_v7  ;;  %v2292_v40 = vsel %vm2207_vm11, %v2291_v21, %v10507_v42  ;;  %v2370_v26 = vadd.s32 536870912, %v10786_v37  ;;  %v2646_v31 = vor.u32 %v2645_v56, %v2644_v18 }
 0x285   :  { %vm10796_vm6 = vcmp.le.f32.partialorder %v16050_v36, 0.7853982  ;;  %v2649_v24 = vor.u32 %v2648_v57, %v2647_v20  ;;  %v1977_v30 = vxor.u32 2147483648, %v10778_v51  ;;  %v2288_v19 = vmul.f32 %v2287_v3, %v2285_v29 }
 0x286   :  { %v2187_v63 = vsub.s32 4, %v10664_v6  ;;  %v2652_v12 = vor.u32 %v2651_v25, %v2650_v32  ;;  %vm2089_vm2 = vweird.f32 %v16034_v15  ;;  %vm2103_vm9 = vcmp.lt.s32.totalorder %v10356_v62, 0 }
 0x287   :  { %v10811_v45 = vsel %vm7181_vm8, 0, %v7180_v55  ;;  %vm2653_vm13 = vcmp.lt.s32.totalorder %v2634_v14, 1  ;;  %vm2656_vm10 = vcmp.lt.s32.totalorder %v2634_v14, 4  ;;  %v10814_v42 = vadd.f32 %v10353_v8, %v283_v2 }
 0x288   :  { %v7192_v21 = vadd.s32 4294967294, %v2481_v58  ;;  %v2661_v23 = vsel %vm2653_vm13, %v2640_v35, %v2643_v10  ;;  %v2662_v49 = vsel %vm2656_vm10, %v2649_v24, 920167782  ;;  %v2669_v3 = vshll.u32 %v2629_v46, 8 }
 0x289   :  { %16053 = vst [vmem:[#allocation50_spill] sm:$0xff] %v10814_v42  ;;  %v10817_v29 = vshrl.u32 %v2370_v26, 30  ;;  %v2637_v52 = vshrl.u32 %v15928_v4, %v2636_v7  ;;  %vm2655_vm15 = vcmp.lt.s32.totalorder %v2634_v14, 3  ;;  %v2658_v59 = vsel %vm2656_vm10, %v2646_v31, 2102212464 }
 0x28a   :  { %v16054_v55 = vand.u32 2147483647, %v10356_v62  ;;  %vm2654_vm7 = vcmp.lt.s32.totalorder %v2634_v14, 2  ;;  %v2663_v2 = vsel %vm2655_vm15, %v2646_v31, %v2662_v49  ;;  %v2665_v58 = vsel %vm2653_vm13, %v2643_v10, %v2646_v31 }
 0x28b   :  { %v2666_v18 = vsel %vm2656_vm10, %v2652_v12, 1326507024  ;;  %v2177_v46 = vsub.s32 4294967266, %v10811_v45  ;;  %v2657_v20 = vsel %vm2653_vm13, %v2637_v52, %v2640_v35  ;;  %v2664_v57 = vsel %vm2654_vm7, %v2661_v23, %v2663_v2 }
 0x28c   :  { %vm10822_vm5 = vcmp.le.f32.partialorder %v16054_v55, 0.7853982  ;;  %v286_v7 = vmul.f32 %v10309_v39, %v219_v9  ;;  %v2659_v36 = vsel %vm2655_vm15, %v2643_v10, %v2658_v59  ;;  %v2667_v32 = vsel %vm2655_vm15, %v2649_v24, %v2666_v18 }
 0x28d   :  { %v10831_v25 = vmul.u32.u64.low %v2669_v3, %v2664_v57  ;;  %v10832_v26 = vmul.u32.u64.high %v2669_v3, %v2664_v57, %v10831_v25  ;;  %v2289_v55 = vxor.u32 2147483648, %v2288_v19  ;;  %v2294_v49 = vsel %vm10796_vm6, 0, %v2292_v40 }
 0x28e   :  { %v2372_v31 = vshll.u32 %v10817_v29, 30  ;;  %v2668_v12 = vsel %vm2654_vm7, %v2665_v58, %v2667_v32  ;;  %v1978_v35 = vsel %vm1895_vm1, %v1977_v30, %v10778_v51  ;;  %vm7193_vm0 = vcmp.lt.s32.totalorder %v7192_v21, 0 }
 0x28f   :  { %v10842_v39 = vmul.u32.u64.low %v2669_v3, %v2668_v12  ;;  %v10843_v10 = vmul.u32.u64.high %v2669_v3, %v2668_v12, %v10842_v39  ;;  %v2178_v24 = vadd.s32 127, %v2177_v46  ;;  %v2660_v23 = vsel %vm2654_vm7, %v2657_v20, %v2659_v36 }
 0x290   :  { %v2520_v9 = vand.u32 2139095040, %v10814_v42  ;;  %v10848_v52 = vadd.f32 %v10353_v8, %v286_v7  ;;  %v10853_v40 = vsel %vm2089_vm2, nan, %v10774_v44  ;;  %v2298_v59 = vadd.s32 3, %v2294_v49  ;;  %v7545_v39 = vld [vmem:[%s15457_s5 + $0x94] ss:$8 sps:$4 sm:$0xff]  }
 0x291   :  { %16058 = vst [vmem:[#allocation52_spill] sm:$0xff] %v10853_v40  ;;  %v2188_v51 = vsel %vm2103_vm9, %v2187_v63, %v10664_v6  ;;  %vm2415_vm1 = vcmp.lt.s32.totalorder %v10425_v61, 0  ;;  %v2679_v14 = vadd.s32 1, %v10832_v26  ;;  %v2290_v30 = vsel %vm2207_vm11, %v2289_v55, %v2288_v19  ;;  %7305 = vmatprep.subr.bf16.mxu0 %v7545_v39 }
 0x292   :  { %16057 = vst [vmem:[#allocation51_spill] sm:$0xff] %v10848_v52  ;;  %v10862_v2 = vsel %vm7193_vm0, 0, %v7192_v21  ;;  %v10865_v8 = vsub.s32 %v10786_v37, %v2372_v31  ;;  %v2521_v15 = vshrl.u32 %v2520_v9, 23  ;;  %v1981_v44 = vsel %vm10629_vm12, %v10028_v50, %v1978_v35  ;;  %v214_v35 = vpop.permute.xlu0 %213  ;;  %7306 = vmatpush3.bf16.msra.mxu0 %v7545_v39 }
 0x293   :  { %v2676_v58 = vmul.u32 %v2669_v3, %v2660_v23  ;;  %vm2678_vm4 = vc.u32 %v10843_v10, %v10831_v25  ;;  %v2832_v6 = vand.u32 2139095040, %v10848_v52  ;;  %v2179_v63 = vshll.u32 %v2178_v24, 23 }
 0x294   :  { %v2190_v19 = vsel %vm10822_vm5, 0, %v2188_v51  ;;  %v16059_v21 = vand.u32 2147483647, %v10425_v61  ;;  %v2680_v18 = vsel %vm2678_vm4, %v2679_v14, %v10832_v26  ;;  %v7194_v34 = vadd.s32 4294967169, %v2521_v15  ;;  %v7544_v26 = vld [vmem:[%s15457_s5 + $0x70] ss:$8 sps:$4 sm:$0xff]  }
 0x295   :  { %v2293_v3 = vsel %vm10796_vm6, %v10103_v5, %v2290_v30  ;;  %v10885_v46 = vand.u32 3, %v2298_v59  ;;  %v2489_v20 = vsub.s32 4294967266, %v10862_v2  ;;  %v10888_v57 = vadd.s32 %v2680_v18, %v2676_v58  ;;  %4835 = vmatpush1.bf16.msra.mxu1 %v7544_v26  ;;  %v7548_v30 = vld [vmem:[%s15457_s5 + $0x80] ss:$8 sps:$4 sm:$0xff]  }
 0x296   :  { %vm10877_vm3 = vcmp.le.f32.partialorder %v16059_v21, 0.7853982  ;;  %7644 = vcosq.f32 %v1981_v44  ;;  %v2499_v7 = vsub.s32 4, %v10722_v0  ;;  %v2375_v36 = vsub.s32 0, %v10865_v8 }
 0x297   :  { %16062 = vst [vmem:[#allocation53_spill] sm:$0xff] %v10885_v46  ;;  %v2527_v32 = vadd.s32 1, %v7194_v34  ;;  %7646 = vsinq.f32 %v1981_v44  ;;  %v2157_v60 = vadd.s32 %v10569_v41, %v10579_v22  ;;  %v2194_v55 = vadd.s32 3, %v2190_v19  ;;  %v7546_v41 = vld [vmem:[%s15457_s5 + $0x84] ss:$8 sps:$4 sm:$0xff]  }
 0x298   :  { %v2833_v49 = vshrl.u32 %v2832_v6, 23  ;;  %7648 = vcosq.f32 %v2293_v3  ;;  %v2173_v31 = vsub.s32 32, %v10811_v45  ;;  %v10898_v12 = vor.u32 4788187, %v2179_v63  ;;  %4836 = vmatprep.subr.bf16.mxu1 %v7546_v41 }
 0x299   :  { %vm2528_vm12 = vcmp.gt.s32.totalorder %v2527_v32, 0  ;;  %7650 = vsinq.f32 %v2293_v3  ;;  %v2490_v24 = vadd.s32 127, %v2489_v20  ;;  %v2682_v23 = vadd.s32 536870912, %v10888_v57  ;;  %4837 = vmatpush1.bf16.msra.mxu1 %v7548_v30 }
 0x29a   :  { %v2529_v9 = vsel %vm2528_vm12, %v2527_v32, 0  ;;  %v10910_v22 = vsel %vm2415_vm1, %v2499_v7, %v10722_v0  ;;  %v7187_v59 = vmin.u32 %v2375_v36, %v10865_v8  ;;  %v15561_v51 = vand.u32 2147483647, %v10814_v42  ;;  %v10924_v0 = vld [vmem:[%s15455_s1] ss:$0 sm:$0xff] }
 0x29b   :  { %v2531_v14 = vand.u32 31, %v2529_v9  ;;  %v10917_v15 = vand.u32 3, %v2194_v55  ;;  %v2469_v44 = vadd.s32 %v10655_v47, %v10667_v1  ;;  %v7206_v58 = vadd.s32 4294967169, %v2833_v49  ;;  %v7549_v47 = vld [vmem:[%s15457_s5 + $0xa4] ss:$8 sps:$4 sm:$0xff]  }
 0x29c   :  { %v10927_v6 = vmul.f32 %v10924_v0, %v214_v35  ;;  %v2174_v63 = vshll.u32 %v10698_v43, %v10811_v45  ;;  %v2175_v19 = vshrl.u32 %v2157_v60, %v2173_v31  ;;  %v2485_v1 = vsub.s32 32, %v10862_v2  ;;  %v7550_v43 = vld [vmem:[%s15457_s5 + $0x94] ss:$8 sps:$4 sm:$0xff]   ;;  %7307 = vmatprep.subr.bf16.mxu0 %v7549_v47 }
 0x29d   :  { %16063 = vst [vmem:[#allocation54_spill] sm:$0xff] %v10917_v15  ;;  %v2532_v18 = vsub.s32 32, %v2531_v14  ;;  %v2491_v34 = vshll.u32 %v2490_v24, 23  ;;  %v10939_v20 = vshrl.u32 %v2682_v23, 30  ;;  %v2377_v45 = vclz %v7187_v59  ;;  %7308 = vmatpush3.bf16.msra.mxu0 %v7549_v47  ;;  %4838 = vmatprep.subr.bf16.mxu1 %v7550_v43 }
 0x29e   :  { %v2524_v7 = vand.u32 8388607, %v15561_v51  ;;  %v2534_v36 = vshll.u32 %v15928_v4, %v2531_v14  ;;  %v2537_v26 = vshll.u32 %v15955_v11, %v2531_v14  ;;  %v2839_v49 = vadd.s32 1, %v7206_v58 }
 0x29f   :  { %v2535_v32 = vshrl.u32 %v15955_v11, %v2532_v18  ;;  %v2538_v60 = vshrl.u32 %v15956_v13, %v2532_v18  ;;  %v2541_v55 = vshrl.u32 %v15957_v33, %v2532_v18  ;;  %v2530_v35 = vshrl.u32 %v2529_v9, 5 }
 0x2a0   :  { %v10951_v31 = vpop.eup %7644  ;;  %v2540_v39 = vshll.u32 %v15956_v13, %v2531_v14  ;;  %v2543_v24 = vshll.u32 %v15957_v33, %v2531_v14  ;;  %v2544_v23 = vshrl.u32 %v15933_v38, %v2532_v18  ;;  %v2487_v59 = vshrl.u32 %v2469_v44, %v2485_v1 }
 0x2a1   :  { %16064 = vst [vmem:[#allocation55_spill] sm:$0xff] %v10951_v31  ;;  %v10956_v41 = vpop.eup %7646  ;;  %v2684_v30 = vshll.u32 %v10939_v20, 30  ;;  %v2536_v51 = vor.u32 %v2535_v32, %v2534_v36  ;;  %v2539_v54 = vor.u32 %v2538_v60, %v2537_v26  ;;  %v2546_v43 = vshll.u32 %v15933_v38, %v2531_v14  ;;  %v7552_v14 = vld [vmem:[%s15457_s5 + $0x90] ss:$8 sps:$4 sm:$0xff]   ;;  %v7553_v26 = vld [vmem:[%s15457_s5 + $0xb4] ss:$8 sps:$4 sm:$0xff]  }
 0x2a2   :  { %16065 = vst [vmem:[#allocation56_spill] sm:$0xff] %v10956_v41  ;;  %v10959_v3 = vpop.eup %7648  ;;  %v2542_v58 = vor.u32 %v2541_v55, %v2540_v39  ;;  %v2545_v47 = vor.u32 %v2544_v23, %v2543_v24  ;;  %v2547_v9 = vshrl.u32 %v15934_v17, %v2532_v18  ;;  %v2486_v5 = vshll.u32 %v10751_v27, %v10862_v2 }
 0x2a3   :  { %16066 = vst [vmem:[#allocation57_spill] sm:$0xff] %v10959_v3  ;;  %v10963_v21 = vpop.eup %7650  ;;  %v10967_v46 = vor.u32 4788187, %v2491_v34  ;;  %v7188_v44 = vadd.s32 4294967294, %v2377_v45  ;;  %v2525_v1 = vor.u32 8388608, %v2524_v7  ;;  %vm2549_vm11 = vcmp.lt.s32.totalorder %v2530_v35, 1  ;;  %4839 = vmatpush1.bf16.msra.mxu1 %v7552_v14  ;;  %7309 = vmatprep.subr.bf16.mxu0 %v7553_v26 }
 0x2a4   :  { %16067 = vst [vmem:[#allocation58_spill] sm:$0xff] %v10963_v21  ;;  %v2548_v40 = vor.u32 %v2547_v9, %v2546_v43  ;;  %v15566_v36 = vand.u32 2147483647, %v10848_v52  ;;  %vm2840_vm14 = vcmp.gt.s32.totalorder %v2839_v49, 0  ;;  %v10974_v32 = vsub.s32 %v10888_v57, %v2684_v30  ;;  %7310 = vmatpush3.bf16.msra.mxu0 %v7553_v26 }
 0x2a5   :  { %vm2551_vm8 = vcmp.lt.s32.totalorder %v2530_v35, 3  ;;  %vm2552_vm6 = vcmp.lt.s32.totalorder %v2530_v35, 4  ;;  %v2557_v27 = vsel %vm2549_vm11, %v2536_v51, %v2539_v54  ;;  %v2176_v2 = vor.u32 %v2175_v19, %v2174_v63  ;;  %v7554_v63 = vld [vmem:[%s15457_s5 + $0xa4] ss:$8 sps:$4 sm:$0xff]  }
 0x2a6   :  { %v10977_v34 = vor.u32 %v2487_v59, %v2486_v5  ;;  %v2554_v45 = vsel %vm2552_vm6, %v2542_v58, 2102212464  ;;  %v2558_v7 = vsel %vm2552_vm6, %v2545_v47, 920167782  ;;  %v2533_v60 = vshrl.u32 %v15928_v4, %v2532_v18  ;;  %4840 = vmatprep.subr.bf16.mxu1 %v7554_v63 }
 0x2a7   :  { %vm2550_vm2 = vcmp.lt.s32.totalorder %v2530_v35, 2  ;;  %v2559_v57 = vsel %vm2551_vm8, %v2542_v58, %v2558_v7  ;;  %v2561_v55 = vsel %vm2549_vm11, %v2539_v54, %v2542_v58  ;;  %vm7189_vm13 = vcmp.lt.s32.totalorder %v7188_v44, 0  ;;  %v7557_v35 = vld [vmem:[%s15457_s5 + $0xc4] ss:$8 sps:$4 sm:$0xff]  }
 0x2a8   :  { %v2560_v5 = vsel %vm2550_vm2, %v2557_v27, %v2559_v57  ;;  %v2562_v19 = vsel %vm2552_vm6, %v2548_v40, 1326507024  ;;  %v2565_v39 = vshll.u32 %v2525_v1, 8  ;;  %v2687_v24 = vsub.s32 0, %v10974_v32  ;;  %7311 = vmatprep.subr.bf16.mxu0 %v7557_v35 }
 0x2a9   :  { %v2553_v23 = vsel %vm2549_vm11, %v2533_v60, %v2536_v51  ;;  %v2555_v18 = vsel %vm2551_vm8, %v2539_v54, %v2554_v45  ;;  %v2563_v59 = vsel %vm2551_vm8, %v2545_v47, %v2562_v19  ;;  %v2841_v40 = vsel %vm2840_vm14, %v2839_v49, 0  ;;  %v7556_v54 = vld [vmem:[%s15457_s5 + $0xa0] ss:$8 sps:$4 sm:$0xff]   ;;  %7312 = vmatpush3.bf16.msra.mxu0 %v7557_v35  ;;  %v7562_v35 = vld [vmem:[%s15457_s5 + $0xc4] ss:$8 sps:$4 sm:$0xff]  }
 0x2aa   :  { %v2564_v30 = vsel %vm2550_vm2, %v2561_v55, %v2563_v59  ;;  %v10994_v58 = vmul.u32.u64.low %v2565_v39, %v2560_v5  ;;  %v10995_v43 = vmul.u32.u64.high %v2565_v39, %v2560_v5, %v10994_v58  ;;  %v2183_v9 = vcvt.s32.f32 %v2176_v2  ;;  %4841 = vmatpush1.bf16.msra.mxu1 %v7556_v54  ;;  %v7561_v54 = vld [vmem:[%s15457_s5 + $0xd4] ss:$8 sps:$4 sm:$0xff]  }
 0x2ab   :  { %v10999_v1 = vmul.u32.u64.low %v2565_v39, %v2564_v30  ;;  %v11000_v14 = vmul.u32.u64.high %v2565_v39, %v2564_v30, %v10999_v1  ;;  %v11004_v51 = vand.u32 8388607, %v15566_v36  ;;  %v11010_v47 = vsel %vm7189_vm13, 0, %v7188_v44  ;;  %7313 = vmatprep.subr.bf16.mxu0 %v7561_v54 }
 0x2ac   :  { %v2556_v27 = vsel %vm2550_vm2, %v2553_v23, %v2555_v18  ;;  %v2843_v45 = vand.u32 31, %v2841_v40  ;;  %v16068_v49 = vand.u32 2147483647, %v10898_v12  ;;  %v2493_v26 = vand.u32 2147483647, %v10967_v46 }
 0x2ad   :  { %v2495_v60 = vcvt.s32.f32 %v10977_v34  ;;  %v16069_v57 = vsel %vm10877_vm3, 0, %v10910_v22  ;;  %v7199_v44 = vmin.u32 %v2687_v24, %v10974_v32  ;;  %v2575_v12 = vadd.s32 1, %v10995_v43  ;;  %v11033_v46 = vld [vmem:[%s15456_s2] ss:$0 sm:$0xff]  ;;  %v7558_v34 = vld [vmem:[%s15457_s5 + $0xb4] ss:$8 sps:$4 sm:$0xff]   ;;  %7314 = vmatpush3.bf16.msra.mxu0 %v7561_v54 }
 0x2ae   :  { %v11015_v2 = vmul.f32 %v2183_v9, %v16068_v49  ;;  %v11023_v55 = vadd.s32 3, %v16069_v57  ;;  %v2844_v63 = vsub.s32 32, %v2843_v45  ;;  %v11037_v22 = vadd.f32 %v11033_v46, %v10927_v6  ;;  %v7560_v23 = vld [vmem:[%s15457_s5 + $0xb0] ss:$8 sps:$4 sm:$0xff]   ;;  %4842 = vmatprep.subr.bf16.mxu1 %v7558_v34 }
 0x2af   :  { %v2385_v5 = vsub.s32 4294967266, %v11010_v47  ;;  %v2572_v19 = vmul.u32 %v2565_v39, %v2556_v27  ;;  %vm2574_vm10 = vc.u32 %v11000_v14, %v10994_v58  ;;  %v2837_v24 = vor.u32 8388608, %v11004_v51  ;;  %4843 = vmatpush1.bf16.msra.mxu1 %v7560_v23 }
 0x2b0   :  { %16070 = vst [vmem:[#allocation59_spill] sm:$0xff] %v11037_v22  ;;  %v2576_v6 = vsel %vm2574_vm10, %v2575_v12, %v10995_v43  ;;  %v2846_v18 = vshll.u32 %v15928_v4, %v2843_v45  ;;  %v2847_v59 = vshrl.u32 %v15955_v11, %v2844_v63  ;;  %v2850_v30 = vshrl.u32 %v15956_v13, %v2844_v63 }
 0x2b1   :  { %v2577_v39 = vadd.s32 %v2576_v6, %v2572_v19  ;;  %v2849_v9 = vshll.u32 %v15955_v11, %v2843_v45  ;;  %v2852_v1 = vshll.u32 %v15956_v13, %v2843_v45  ;;  %v2853_v51 = vshrl.u32 %v15957_v33, %v2844_v63  ;;  %4844 = vmatprep.subr.bf16.mxu1 %v7562_v35 }
 0x2b2   :  { %v2689_v43 = vclz %v7199_v44  ;;  %v2842_v27 = vshrl.u32 %v2841_v40, 5  ;;  %v2855_v49 = vshll.u32 %v15957_v33, %v2843_v45  ;;  %v2856_v57 = vshrl.u32 %v15933_v38, %v2844_v63 }
 0x2b3   :  { %v2578_v12 = vadd.s32 536870912, %v2577_v39  ;;  %v2848_v19 = vor.u32 %v2847_v59, %v2846_v18  ;;  %v2851_v6 = vor.u32 %v2850_v30, %v2849_v9  ;;  %v2854_v36 = vor.u32 %v2853_v51, %v2852_v1 }
 0x2b4   :  { %v2185_v34 = vxor.u32 2147483648, %v11015_v2  ;;  %v2857_v7 = vor.u32 %v2856_v57, %v2855_v49  ;;  %v2858_v44 = vshll.u32 %v15933_v38, %v2843_v45  ;;  %v2859_v40 = vshrl.u32 %v15934_v17, %v2844_v63 }
 0x2b5   :  { %v11067_v3 = vmul.f32 %v2495_v60, %v2493_v26  ;;  %v2365_v23 = vadd.s32 %v10757_v48, %v10762_v28  ;;  %v2381_v21 = vsub.s32 32, %v11010_v47  ;;  %v2395_v18 = vsub.s32 4, %v10817_v29 }
 0x2b6   :  { %vm2311_vm15 = vcmp.lt.s32.totalorder %v10635_v53, 0  ;;  %v7200_v59 = vadd.s32 4294967294, %v2689_v43  ;;  %v11074_v30 = vshrl.u32 %v2578_v12, 30  ;;  %v2860_v9 = vor.u32 %v2859_v40, %v2858_v44 }
 0x2b7   :  { %vm2861_vm7 = vcmp.lt.s32.totalorder %v2842_v27, 1  ;;  %v2386_v45 = vadd.s32 127, %v2385_v5  ;;  %vm2864_vm0 = vcmp.lt.s32.totalorder %v2842_v27, 4  ;;  %v2877_v26 = vshll.u32 %v2837_v24, 8 }
 0x2b8   :  { %v2869_v1 = vsel %vm2861_vm7, %v2848_v19, %v2851_v6  ;;  %vm2863_vm4 = vcmp.lt.s32.totalorder %v2842_v27, 3  ;;  %v2866_v60 = vsel %vm2864_vm0, %v2854_v36, 2102212464  ;;  %v2870_v51 = vsel %vm2864_vm0, %v2857_v7, 920167782 }
 0x2b9   :  { %v2728_v48 = vand.u32 2139095040, %v11037_v22  ;;  %v16071_v28 = vand.u32 2147483647, %v10635_v53  ;;  %v2845_v43 = vshrl.u32 %v15928_v4, %v2844_v63  ;;  %vm2862_vm11 = vcmp.lt.s32.totalorder %v2842_v27, 2 }
 0x2ba   :  { %v2871_v5 = vsel %vm2863_vm4, %v2854_v36, %v2870_v51  ;;  %v2873_v49 = vsel %vm2861_vm7, %v2851_v6, %v2854_v36  ;;  %vm7201_vm14 = vcmp.lt.s32.totalorder %v7200_v59, 0  ;;  %v2580_v24 = vshll.u32 %v11074_v30, 30 }
 0x2bb   :  { %vm11080_vm12 = vcmp.le.f32.partialorder %v16071_v28, 0.7853982  ;;  %v2872_v57 = vsel %vm2862_vm11, %v2869_v1, %v2871_v5  ;;  %v2874_v35 = vsel %vm2864_vm0, %v2860_v9, 1326507024  ;;  %v2387_v12 = vshll.u32 %v2386_v45, 23  ;;  %v11131_v5 = vpop.permute.xlu1 %4171 }
 0x2bc   :  { %v2865_v44 = vsel %vm2861_vm7, %v2845_v43, %v2848_v19  ;;  %v2867_v40 = vsel %vm2863_vm4, %v2851_v6, %v2866_v60  ;;  %v2875_v28 = vsel %vm2863_vm4, %v2857_v7, %v2874_v35  ;;  %v2729_v36 = vshrl.u32 %v2728_v48, 23  ;;  %16075 = vst [vmem:[#allocation61_spill] sm:$0xff] %v11131_v5 }
 0x2bd   :  { %v2876_v63 = vsel %vm2862_vm11, %v2873_v49, %v2875_v28  ;;  %v11093_v15 = vmul.u32.u64.low %v2877_v26, %v2872_v57  ;;  %v11094_v50 = vmul.u32.u64.high %v2877_v26, %v2872_v57, %v11093_v15  ;;  %v2383_v51 = vshrl.u32 %v2365_v23, %v2381_v21 }
 0x2be   :  { %v11097_v31 = vsel %vm7201_vm14, 0, %v7200_v59  ;;  %v11099_v41 = vmul.u32.u64.low %v2877_v26, %v2876_v63  ;;  %v11100_v1 = vmul.u32.u64.high %v2877_v26, %v2876_v63, %v11099_v41  ;;  %v2186_v19 = vsel %vm2103_vm9, %v2185_v34, %v11015_v2 }
 0x2bf   :  { %v11105_v6 = vsub.s32 %v2577_v39, %v2580_v24  ;;  %v2868_v7 = vsel %vm2862_vm11, %v2865_v44, %v2867_v40  ;;  %v7202_v9 = vadd.s32 4294967169, %v2729_v36  ;;  %v11109_v45 = vand.u32 3, %v11023_v55 }
 0x2c0   :  { %v2382_v21 = vshll.u32 %v10865_v8, %v11010_v47  ;;  %v2388_v23 = vor.u32 4788187, %v2387_v12  ;;  %v2396_v41 = vsel %vm2311_vm15, %v2395_v18, %v10817_v29  ;;  %v2497_v59 = vxor.u32 2147483648, %v11067_v3 }
 0x2c1   :  { %16074 = vst [vmem:[#allocation60_spill] sm:$0xff] %v11109_v45  ;;  %v2697_v2 = vsub.s32 4294967266, %v11097_v31  ;;  %v2887_v39 = vadd.s32 1, %v11094_v50  ;;  %v2735_v27 = vadd.s32 1, %v7202_v9  ;;  %v11122_v55 = vsel %vm10822_vm5, %v10356_v62, %v2186_v19  ;;  %v11326_v45 = vld [vmem:[%s15457_s5 + $0x4] ss:$8 sps:$4 sm:$0xff]  }
 0x2c2   :  { %v2384_v34 = vor.u32 %v2383_v51, %v2382_v21  ;;  %v2884_v60 = vmul.u32 %v2877_v26, %v2868_v7  ;;  %vm2886_vm9 = vc.u32 %v11100_v1, %v11093_v15  ;;  %v2398_v29 = vsel %vm11080_vm12, 0, %v2396_v41  ;;  %v11154_v21 = vpop.permute.xlu0 %4166 }
 0x2c3   :  { %v2583_v8 = vsub.s32 0, %v11105_v6  ;;  %v2888_v47 = vsel %vm2886_vm9, %v2887_v39, %v11094_v50  ;;  %vm2736_vm8 = vcmp.gt.s32.totalorder %v2735_v27, 0  ;;  %v2389_v18 = vand.u32 2147483647, %v2388_v23  ;;  %16076 = vst [vmem:[#allocation62_spill] sm:$0xff] %v11154_v21 }
 0x2c4   :  { %v2693_v48 = vsub.s32 32, %v11097_v31  ;;  %v2889_v43 = vadd.s32 %v2888_v47, %v2884_v60  ;;  %v2737_v56 = vsel %vm2736_vm8, %v2735_v27, 0  ;;  %7652 = vcosq.f32 %v11122_v55 }
 0x2c5   :  { %v2498_v26 = vsel %vm2415_vm1, %v2497_v59, %v11067_v3  ;;  %vm2623_vm5 = vcmp.lt.s32.totalorder %v10672_v16, 0  ;;  %v2698_v49 = vadd.s32 127, %v2697_v2  ;;  %v2739_v24 = vand.u32 31, %v2737_v56 }
 0x2c6   :  { %v2391_v57 = vcvt.s32.f32 %v2384_v34  ;;  %v2677_v50 = vadd.s32 %v10831_v25, %v10843_v10  ;;  %v2890_v35 = vadd.s32 536870912, %v2889_v43  ;;  %v15573_v12 = vand.u32 2147483647, %v11037_v22 }
 0x2c7   :  { %v11141_v44 = vadd.s32 3, %v2398_v29  ;;  %v2707_v40 = vsub.s32 4, %v10939_v20  ;;  %v7195_v28 = vmin.u32 %v2583_v8, %v11105_v6  ;;  %v2740_v63 = vsub.s32 32, %v2739_v24 }
 0x2c8   :  { %v11145_v36 = vmul.f32 %v2391_v57, %v2389_v18  ;;  %v2694_v3 = vshll.u32 %v10974_v32, %v11097_v31  ;;  %v2695_v51 = vshrl.u32 %v2677_v50, %v2693_v48  ;;  %v11149_v19 = vshrl.u32 %v2890_v35, 30  ;;  %v11161_v32 = vpop.permute.xlu1 %4395 }
 0x2c9   :  { %v2699_v7 = vshll.u32 %v2698_v49, 23  ;;  %v2743_v25 = vshrl.u32 %v15955_v11, %v2740_v63  ;;  %v2746_v10 = vshrl.u32 %v15956_v13, %v2740_v63  ;;  %v2749_v9 = vshrl.u32 %v15957_v33, %v2740_v63  ;;  %16077 = vst [vmem:[#allocation63_spill] sm:$0xff] %v11161_v32 }
 0x2ca   :  { %v2892_v23 = vshll.u32 %v11149_v19, 30  ;;  %v2732_v41 = vand.u32 8388607, %v15573_v12  ;;  %v2742_v59 = vshll.u32 %v15928_v4, %v2739_v24  ;;  %v2745_v31 = vshll.u32 %v15955_v11, %v2739_v24 }
 0x2cb   :  { %v2585_v2 = vclz %v7195_v28  ;;  %v2748_v39 = vshll.u32 %v15956_v13, %v2739_v24  ;;  %v2751_v27 = vshll.u32 %v15957_v33, %v2739_v24  ;;  %v2752_v34 = vshrl.u32 %v15933_v38, %v2740_v63 }
 0x2cc   :  { %v11166_v60 = vsub.s32 %v2889_v43, %v2892_v23  ;;  %v2738_v29 = vshrl.u32 %v2737_v56, 5  ;;  %v2744_v8 = vor.u32 %v2743_v25, %v2742_v59  ;;  %v2747_v47 = vor.u32 %v2746_v10, %v2745_v31  ;;  %v11188_v23 = vpop.permute.xlu0 %4390 }
 0x2cd   :  { %v2750_v18 = vor.u32 %v2749_v9, %v2748_v39  ;;  %v2753_v48 = vor.u32 %v2752_v34, %v2751_v27  ;;  %v2754_v49 = vshll.u32 %v15933_v38, %v2739_v24  ;;  %v2755_v57 = vshrl.u32 %v15934_v17, %v2740_v63  ;;  %16082 = vst [vmem:[#allocation65_spill] sm:$0xff] %v11188_v23 }
 0x2ce   :  { %v2501_v50 = vsel %vm10877_vm3, %v10425_v61, %v2498_v26  ;;  %v2393_v35 = vxor.u32 2147483648, %v11145_v36  ;;  %v11177_v43 = vsel %vm2623_vm5, %v2707_v40, %v10939_v20  ;;  %v2895_v56 = vsub.s32 0, %v11166_v60  ;;  %v11180_v28 = vpop.eup %7652  ;;  %v229_v20 = vpop.permute.xlu1 %228 }
 0x2cf   :  { %16078 = vst [vmem:[#allocation64_spill] sm:$0xff] %v11180_v28  ;;  %v16079_v25 = vand.u32 2147483647, %v10672_v16  ;;  %v2696_v10 = vor.u32 %v2695_v51, %v2694_v3  ;;  %v2700_v37 = vor.u32 4788187, %v2699_v7  ;;  %v2733_v26 = vor.u32 8388608, %v2732_v41 }
 0x2d0   :  { %v2756_v9 = vor.u32 %v2755_v57, %v2754_v49  ;;  %v7196_v59 = vadd.s32 4294967294, %v2585_v2  ;;  %vm2757_vm3 = vcmp.lt.s32.totalorder %v2738_v29, 1  ;;  %vm2759_vm6 = vcmp.lt.s32.totalorder %v2738_v29, 3 }
 0x2d1   :  { %vm11184_vm1 = vcmp.le.f32.partialorder %v16079_v25, 0.7853982  ;;  %vm2760_vm2 = vcmp.lt.s32.totalorder %v2738_v29, 4  ;;  %v7207_v40 = vmin.u32 %v2895_v56, %v11166_v60  ;;  %v2765_v39 = vsel %vm2757_vm3, %v2744_v8, %v2747_v47 }
 0x2d2   :  { %v2762_v31 = vsel %vm2760_vm2, %v2750_v18, 2102212464  ;;  %v2766_v27 = vsel %vm2760_vm2, %v2753_v48, 920167782  ;;  %v2741_v34 = vshrl.u32 %v15928_v4, %v2740_v63  ;;  %vm2758_vm13 = vcmp.lt.s32.totalorder %v2738_v29, 2 }
 0x2d3   :  { %v2767_v3 = vsel %vm2759_vm6, %v2750_v18, %v2766_v27  ;;  %v2769_v51 = vsel %vm2757_vm3, %v2747_v47, %v2750_v18  ;;  %v2770_v41 = vsel %vm2760_vm2, %v2756_v9, 1326507024  ;;  %v2773_v2 = vshll.u32 %v2733_v26, 8  ;;  %v224_v18 = vpop.permute.xlu0 %223 }
 0x2d4   :  { %v2768_v7 = vsel %vm2758_vm13, %v2765_v39, %v2767_v3  ;;  %v288_v49 = vmul.f32 %v10924_v0, %v229_v20  ;;  %vm7197_vm10 = vcmp.lt.s32.totalorder %v7196_v59, 0  ;;  %v2761_v57 = vsel %vm2757_vm3, %v2741_v34, %v2744_v8 }
 0x2d5   :  { %v2763_v56 = vsel %vm2759_vm6, %v2747_v47, %v2762_v31  ;;  %v2771_v25 = vsel %vm2759_vm6, %v2753_v48, %v2770_v41  ;;  %v2897_v12 = vclz %v7207_v40  ;;  %7654 = vsinq.f32 %v11122_v55  ;;  %v7564_v31 = vld [vmem:[%s15457_s5 + $0xc0] ss:$8 sps:$4 sm:$0xff]  }
 0x2d6   :  { %v2772_v63 = vsel %vm2758_vm13, %v2769_v51, %v2771_v25  ;;  %v11201_v61 = vmul.u32.u64.low %v2773_v2, %v2768_v7  ;;  %v11202_v27 = vmul.u32.u64.high %v2773_v2, %v2768_v7, %v11201_v61  ;;  %v2394_v26 = vsel %vm2311_vm15, %v2393_v35, %v11145_v36  ;;  %4845 = vmatpush1.bf16.msra.mxu1 %v7564_v31 }
 0x2d7   :  { %v11209_v9 = vmul.u32.u64.low %v2773_v2, %v2772_v63  ;;  %v11210_v8 = vmul.u32.u64.high %v2773_v2, %v2772_v63, %v11209_v9  ;;  %v2701_v47 = vand.u32 2147483647, %v2700_v37  ;;  %v2588_v20 = vsel %vm7197_vm10, 0, %v7196_v59 }
 0x2d8   :  { %v2764_v48 = vsel %vm2758_vm13, %v2761_v57, %v2763_v56  ;;  %v11214_v40 = vadd.f32 %v11033_v46, %v288_v49  ;;  %7656 = vcosq.f32 %v2501_v50  ;;  %v11220_v55 = vand.u32 3, %v11141_v44  ;;  %v7565_v44 = vld [vmem:[%s15457_s5 + $0xe4] ss:$8 sps:$4 sm:$0xff]  }
 0x2d9   :  { %v2710_v36 = vsel %vm11184_vm1, 0, %v11177_v43  ;;  %v287_v35 = vmul.f32 %v10924_v0, %v224_v18  ;;  %v2397_v29 = vsel %vm11080_vm12, %v10635_v53, %v2394_v26  ;;  %v2703_v37 = vcvt.s32.f32 %v2696_v10  ;;  %v7566_v0 = vld [vmem:[%s15457_s5 + $0xd4] ss:$8 sps:$4 sm:$0xff]   ;;  %7315 = vmatprep.subr.bf16.mxu0 %v7565_v44  ;;  %v16087_v57 = vld [vmem:[#allocation20_spill] sm:$0xff] }
 0x2da   :  { %16083 = vst [vmem:[#allocation66_spill] sm:$0xff] %v11214_v40  ;;  %16084 = vst [vmem:[#allocation67_spill] sm:$0xff] %v11220_v55  ;;  %v7208_v59 = vadd.s32 4294967294, %v2897_v12  ;;  %v2783_v39 = vadd.s32 1, %v11202_v27  ;;  %v2589_v34 = vsub.s32 32, %v2588_v20  ;;  %v2593_v3 = vsub.s32 4294967266, %v2588_v20  ;;  %7316 = vmatpush3.bf16.msra.mxu0 %v7565_v44  ;;  %4846 = vmatprep.subr.bf16.mxu1 %v7566_v0 }
 0x2db   :  { %v2780_v51 = vmul.u32 %v2773_v2, %v2764_v48  ;;  %vm2782_vm15 = vc.u32 %v11210_v8, %v11201_v61  ;;  %7658 = vsinq.f32 %v2501_v50  ;;  %v2704_v54 = vmul.f32 %v2703_v37, %v2701_v47  ;;  %v16089_v26 = vld [vmem:[#allocation12_spill] sm:$0xff] }
 0x2dc   :  { %v2784_v12 = vsel %vm2782_vm15, %v2783_v39, %v11202_v27  ;;  %v3040_v43 = vand.u32 2139095040, %v11214_v40  ;;  %vm2519_vm7 = vcmp.lt.s32.totalorder %v10814_v42, 0  ;;  %v2573_v10 = vadd.s32 %v10994_v58, %v11000_v14  ;;  %v16088_v58 = vld [vmem:[#allocation10_spill] sm:$0xff] }
 0x2dd   :  { %v2785_v7 = vadd.s32 %v2784_v12, %v2780_v51  ;;  %v16085_v41 = vlaneseq  ;;  %v11247_v49 = vadd.f32 %v11033_v46, %v287_v35  ;;  %7660 = vcosq.f32 %v2397_v29 }
 0x2de   :  { %v11249_v50 = vadd.s32 3, %v2710_v36  ;;  %vm7209_vm0 = vcmp.lt.s32.totalorder %v7208_v59, 0  ;;  %vm532_vm4 = vcmp.lt.s32.totalorder %v16087_v57, 2  ;;  %v3041_v56 = vshrl.u32 %v3040_v43, 23 }
 0x2df   :  { %v11244_v2 = vshrl.u32 %v16085_v41, 7  ;;  %16086 = vst [vmem:[#allocation68_spill] sm:$0xff] %v11247_v49  ;;  %v2591_v25 = vshrl.u32 %v2573_v10, %v2589_v34  ;;  %v2594_v63 = vadd.s32 127, %v2593_v3  ;;  %v2786_v27 = vadd.s32 536870912, %v2785_v7  ;;  %v11255_v31 = vpop.eup %7654 }
 0x2e0   :  { %v534_v14 = vxor.u32 2147483648, %v16088_v58  ;;  %v2705_v18 = vxor.u32 2147483648, %v2704_v54  ;;  %v537_v9 = vxor.u32 2147483648, %v16089_v26  ;;  %v15575_v47 = vand.u32 2147483647, %v11214_v40  ;;  %16090 = vst [vmem:[#allocation20_spill] sm:$0xff] %v11255_v31 }
 0x2e1   :  { %v7214_v48 = vadd.s32 4294967169, %v3041_v56  ;;  %v2590_v36 = vshll.u32 %v11105_v6, %v2588_v20  ;;  %v11258_v35 = vsel %vm7209_vm0, 0, %v7208_v59  ;;  %v11260_v37 = vshrl.u32 %v2786_v27, 30 }
 0x2e2   :  { %v2936_v39 = vand.u32 2139095040, %v11247_v49  ;;  %v2603_v44 = vsub.s32 4, %v11074_v30  ;;  %vm533_vm12 = vcmp.eq.s32.totalorder %v16087_v57, 0  ;;  %vm536_vm11 = vcmp.eq.s32.totalorder %v16087_v57, 2  ;;  %v11266_v3 = vpop.eup %7656 }
 0x2e3   :  { %v3047_v34 = vadd.s32 1, %v7214_v48  ;;  %16091 = vst [vmem:[#allocation10_spill] sm:$0xff] %v11266_v3  ;;  %v11268_v51 = vor.u32 %v2591_v25, %v2590_v36  ;;  %v2595_v0 = vshll.u32 %v2594_v63, 23  ;;  %v2788_v6 = vshll.u32 %v11260_v37, 30  ;;  %v7569_v36 = vld [vmem:[%s15457_s5 + $0xf4] ss:$8 sps:$4 sm:$0xff]  }
 0x2e4   :  { %v535_v20 = vsel %vm533_vm12, %v16089_v26, %v534_v14  ;;  %v2905_v59 = vsub.s32 4294967266, %v11258_v35  ;;  %v538_v12 = vsel %vm536_vm11, %v537_v9, %v16088_v58  ;;  %v3044_v43 = vand.u32 8388607, %v15575_v47  ;;  %7317 = vmatprep.subr.bf16.mxu0 %v7569_v36 }
 0x2e5   :  { %vm3048_vm14 = vcmp.gt.s32.totalorder %v3047_v34, 0  ;;  %7662 = vsinq.f32 %v2397_v29  ;;  %v11276_v10 = vsub.s32 %v2785_v7, %v2788_v6  ;;  %v2937_v56 = vshrl.u32 %v2936_v39, 23  ;;  %v11278_v25 = vpop.eup %7658  ;;  %v7568_v29 = vld [vmem:[%s15457_s5 + $0xd0] ss:$8 sps:$4 sm:$0xff]   ;;  %7318 = vmatpush3.bf16.msra.mxu0 %v7569_v36 }
 0x2e6   :  { %v3049_v41 = vsel %vm3048_vm14, %v3047_v34, 0  ;;  %16092 = vst [vmem:[#allocation12_spill] sm:$0xff] %v11278_v25  ;;  %v11282_v63 = vsel %vm2623_vm5, %v2705_v18, %v2704_v54  ;;  %v11287_v27 = vsel %vm2519_vm7, %v2603_v44, %v11074_v30  ;;  %v2885_v58 = vadd.s32 %v11093_v15, %v11100_v1  ;;  %4847 = vmatpush1.bf16.msra.mxu1 %v7568_v29 }
 0x2e7   :  { %v3051_v14 = vand.u32 31, %v3049_v41  ;;  %v11294_v7 = vor.u32 4788187, %v2595_v0  ;;  %v2791_v54 = vsub.s32 0, %v11276_v10  ;;  %v11300_v18 = vsel %vm532_vm4, %v535_v20, %v538_v12  ;;  %v11302_v30 = vpop.eup %7660  ;;  %5429 = vmatprep.subr.bf16.mxu0 %v11326_v45 }
 0x2e8   :  { %16093 = vst [vmem:[#allocation69_spill] sm:$0xff] %v11302_v30  ;;  %v2901_v9 = vsub.s32 32, %v11258_v35  ;;  %v11305_v15 = vadd.s32 127, %v2905_v59  ;;  %v3045_v1 = vor.u32 8388608, %v3044_v43  ;;  %v11311_v44 = vshrl.u32 %v3049_v41, 5  ;;  %v16094_v30 = vld [vmem:[#allocation4_spill] sm:$0xff] }
 0x2e9   :  { %v3052_v48 = vsub.s32 32, %v3051_v14  ;;  %v7203_v39 = vmin.u32 %v2791_v54, %v11276_v10  ;;  %v3054_v57 = vshll.u32 %v15928_v4, %v3051_v14  ;;  %v7210_v34 = vadd.s32 4294967169, %v2937_v56 }
 0x2ea   :  { %v3057_v6 = vshll.u32 %v15955_v11, %v3051_v14  ;;  %v3060_v59 = vshll.u32 %v15956_v13, %v3051_v14  ;;  %v3063_v29 = vshll.u32 %v15957_v33, %v3051_v14  ;;  %v3066_v56 = vshll.u32 %v15933_v38, %v3051_v14 }
 0x2eb   :  { %v3055_v0 = vshrl.u32 %v15955_v11, %v3052_v48  ;;  %v3058_v20 = vshrl.u32 %v15956_v13, %v3052_v48  ;;  %v2793_v12 = vclz %v7203_v39  ;;  %v3061_v43 = vshrl.u32 %v15957_v33, %v3052_v48 }
 0x2ec   :  { %v3064_v41 = vshrl.u32 %v15933_v38, %v3052_v48  ;;  %v3067_v26 = vshrl.u32 %v15934_v17, %v3052_v48  ;;  %v2597_v39 = vand.u32 2147483647, %v11294_v7  ;;  %vm529_vm9 = vweird.f32 %v16094_v30 }
 0x2ed   :  { %v3056_v54 = vor.u32 %v3055_v0, %v3054_v57  ;;  %v3059_v47 = vor.u32 %v3058_v20, %v3057_v6  ;;  %v7204_v3 = vadd.s32 4294967294, %v2793_v12  ;;  %v3062_v53 = vor.u32 %v3061_v43, %v3060_v59 }
 0x2ee   :  { %v3065_v25 = vor.u32 %v3064_v41, %v3063_v29  ;;  %v16095_v36 = vand.u32 2147483647, %v10814_v42  ;;  %v2903_v57 = vshrl.u32 %v2885_v58, %v2901_v9  ;;  %v2907_v0 = vshll.u32 %v11305_v15, 23 }
 0x2ef   :  { %v3068_v6 = vor.u32 %v3067_v26, %v3066_v56  ;;  %v2943_v20 = vadd.s32 1, %v7210_v34  ;;  %v11338_v55 = vpop.eup %7662  ;;  %vm7205_vm5 = vcmp.lt.s32.totalorder %v7204_v3, 0  ;;  %vm3069_vm3 = vcmp.lt.s32.totalorder %v11311_v44, 1 }
 0x2f0   :  { %vm11333_vm8 = vcmp.le.f32.partialorder %v16095_v36, 0.7853982  ;;  %16098 = vst [vmem:[#allocation4_spill] sm:$0xff] %v11338_v55  ;;  %vm3072_vm6 = vcmp.lt.s32.totalorder %v11311_v44, 4  ;;  %v3077_v12 = vsel %vm3069_vm3, %v3056_v54, %v3059_v47  ;;  %v3085_v29 = vshll.u32 %v3045_v1, 8 }
 0x2f1   :  { %v3074_v59 = vsel %vm3072_vm6, %v3062_v53, 2102212464  ;;  %v3078_v43 = vsel %vm3072_vm6, %v3065_v25, 920167782  ;;  %v3053_v41 = vshrl.u32 %v15928_v4, %v3052_v48  ;;  %vm3070_vm2 = vcmp.lt.s32.totalorder %v11311_v44, 2 }
 0x2f2   :  { %vm3071_vm13 = vcmp.lt.s32.totalorder %v11311_v44, 3  ;;  %v3081_v58 = vsel %vm3069_vm3, %v3059_v47, %v3062_v53  ;;  %v11346_v26 = vsel %vm7205_vm5, 0, %v7204_v3  ;;  %v3082_v15 = vsel %vm3072_vm6, %v3068_v6, 1326507024  ;;  %v7570_v1 = vld [vmem:[%s15457_s5 + $0xe4] ss:$8 sps:$4 sm:$0xff]  }
 0x2f3   :  { %v3079_v9 = vsel %vm3071_vm13, %v3062_v53, %v3078_v43  ;;  %vm2944_vm10 = vcmp.gt.s32.totalorder %v2943_v20, 0  ;;  %v3073_v34 = vsel %vm3069_vm3, %v3053_v41, %v3056_v54  ;;  %v3075_v56 = vsel %vm3071_vm13, %v3059_v47, %v3074_v59  ;;  %v7572_v47 = vld [vmem:[%s15457_s5 + $0xe0] ss:$8 sps:$4 sm:$0xff]   ;;  %4848 = vmatprep.subr.bf16.mxu1 %v7570_v1 }
 0x2f4   :  { %v3080_v36 = vsel %vm3070_vm2, %v3077_v12, %v3079_v9  ;;  %v3083_v7 = vsel %vm3071_vm13, %v3065_v25, %v3082_v15  ;;  %v2945_v53 = vsel %vm2944_vm10, %v2943_v20, 0  ;;  %vm2831_vm15 = vcmp.lt.s32.totalorder %v10848_v52, 0  ;;  %4849 = vmatpush1.bf16.msra.mxu1 %v7572_v47 }
 0x2f5   :  { %v3084_v48 = vsel %vm3070_vm2, %v3081_v58, %v3083_v7  ;;  %v11355_v55 = vmul.u32.u64.low %v3085_v29, %v3080_v36  ;;  %v11356_v62 = vmul.u32.u64.high %v3085_v29, %v3080_v36, %v11355_v55  ;;  %v2801_v3 = vsub.s32 4294967266, %v11346_v26 }
 0x2f6   :  { %v11364_v25 = vmul.u32.u64.low %v3085_v29, %v3084_v48  ;;  %v11365_v54 = vmul.u32.u64.high %v3085_v29, %v3084_v48, %v11364_v25  ;;  %v16099_v6 = vand.u32 2147483647, %v11247_v49  ;;  %v11373_v20 = vsel %vm11184_vm1, %v10672_v16, %v11282_v63 }
 0x2f7   :  { %v2902_v7 = vshll.u32 %v11166_v60, %v11258_v35  ;;  %v3076_v12 = vsel %vm3070_vm2, %v3073_v34, %v3075_v56  ;;  %v2947_v43 = vand.u32 31, %v2945_v53  ;;  %v16100_v41 = vcvt.s32.f32 %v11268_v51  ;;  %v7573_v60 = vld [vmem:[%s15457_s5 + $0xf4] ss:$8 sps:$4 sm:$0xff]  }
 0x2f8   :  { %v2940_v59 = vand.u32 8388607, %v16099_v6  ;;  %v2915_v24 = vsub.s32 4, %v11149_v19  ;;  %v11390_v63 = vsel %vm529_vm9, nan, %v11300_v18  ;;  %v11397_v51 = vor.u32 4788187, %v2907_v0  ;;  %4850 = vmatprep.subr.bf16.mxu1 %v7573_v60 }
 0x2f9   :  { %v11381_v58 = vmul.f32 %v16100_v41, %v2597_v39  ;;  %16101 = vst [vmem:[#allocation70_spill] sm:$0xff] %v11390_v63  ;;  %v11395_v35 = vor.u32 %v2903_v57, %v2902_v7  ;;  %v3095_v44 = vadd.s32 1, %v11356_v62  ;;  %v2948_v39 = vsub.s32 32, %v2947_v43 }
 0x2fa   :  { %v2802_v15 = vadd.s32 127, %v2801_v3  ;;  %v3092_v34 = vmul.u32 %v3085_v29, %v3076_v12  ;;  %vm3094_vm1 = vc.u32 %v11365_v54, %v11355_v55  ;;  %v2941_v56 = vor.u32 8388608, %v2940_v59  ;;  %v11408_v29 = vpop.permute.xlu1 %4181 }
 0x2fb   :  { %v3096_v18 = vsel %vm3094_vm1, %v3095_v44, %v11356_v62  ;;  %v2950_v30 = vshll.u32 %v15928_v4, %v2947_v43  ;;  %v2951_v36 = vshrl.u32 %v15955_v11, %v2948_v39  ;;  %v2954_v57 = vshrl.u32 %v15956_v13, %v2948_v39  ;;  %16102 = vst [vmem:[#allocation71_spill] sm:$0xff] %v11408_v29 }
 0x2fc   :  { %v3097_v0 = vadd.s32 %v3096_v18, %v3092_v34  ;;  %v2946_v1 = vshrl.u32 %v2945_v53, 5  ;;  %v2953_v48 = vshll.u32 %v15955_v11, %v2947_v43  ;;  %v2957_v47 = vshrl.u32 %v15957_v33, %v2948_v39 }
 0x2fd   :  { %v2952_v3 = vor.u32 %v2951_v36, %v2950_v30  ;;  %v2956_v25 = vshll.u32 %v15956_v13, %v2947_v43  ;;  %v2959_v6 = vshll.u32 %v15957_v33, %v2947_v43  ;;  %v2960_v62 = vshrl.u32 %v15933_v38, %v2948_v39 }
 0x2fe   :  { %v3098_v59 = vadd.s32 536870912, %v3097_v0  ;;  %v2955_v7 = vor.u32 %v2954_v57, %v2953_v48  ;;  %v2962_v12 = vshll.u32 %v15933_v38, %v2947_v43  ;;  %v2963_v41 = vshrl.u32 %v15934_v17, %v2948_v39 }
 0x2ff   :  { %v2601_v53 = vxor.u32 2147483648, %v11381_v58  ;;  %v16103_v60 = vand.u32 2147483647, %v10848_v52  ;;  %v2916_v34 = vsel %vm2831_vm15, %v2915_v24, %v11149_v19  ;;  %v2958_v18 = vor.u32 %v2957_v47, %v2956_v25 }
 0x300   :  { %v2961_v30 = vor.u32 %v2960_v62, %v2959_v6  ;;  %v2909_v36 = vand.u32 2147483647, %v11397_v51  ;;  %v2911_v43 = vcvt.s32.f32 %v11395_v35  ;;  %v2781_v57 = vadd.s32 %v11201_v61, %v11210_v8  ;;  %v11435_v51 = vpop.permute.xlu1 %4405 }
 0x301   :  { %vm11418_vm0 = vcmp.le.f32.partialorder %v16103_v60, 0.7853982  ;;  %v2964_v48 = vor.u32 %v2963_v41, %v2962_v12  ;;  %v2797_v9 = vsub.s32 32, %v11346_v26  ;;  %v11430_v60 = vshrl.u32 %v3098_v59, 30  ;;  %16106 = vst [vmem:[#allocation72_spill] sm:$0xff] %v11435_v51 }
 0x302   :  { %vm2965_vm4 = vcmp.lt.s32.totalorder %v2946_v1, 1  ;;  %v2981_v16 = vshll.u32 %v2941_v56, 8  ;;  %v2798_v28 = vshll.u32 %v11276_v10, %v11346_v26  ;;  %v2803_v19 = vshll.u32 %v2802_v15, 23 }
 0x303   :  { %vm2968_vm12 = vcmp.lt.s32.totalorder %v2946_v1, 4  ;;  %v2973_v24 = vsel %vm2965_vm4, %v2952_v3, %v2955_v7  ;;  %vm2967_vm11 = vcmp.lt.s32.totalorder %v2946_v1, 3  ;;  %v2977_v61 = vsel %vm2965_vm4, %v2955_v7, %v2958_v18 }
 0x304   :  { %v2970_v35 = vsel %vm2968_vm12, %v2958_v18, 2102212464  ;;  %v2974_v47 = vsel %vm2968_vm12, %v2961_v30, 920167782  ;;  %v2949_v8 = vshrl.u32 %v15928_v4, %v2948_v39  ;;  %vm2966_vm14 = vcmp.lt.s32.totalorder %v2946_v1, 2 }
 0x305   :  { %v2975_v25 = vsel %vm2967_vm11, %v2958_v18, %v2974_v47  ;;  %v2978_v6 = vsel %vm2968_vm12, %v2964_v48, 1326507024  ;;  %v2799_v56 = vshrl.u32 %v2781_v57, %v2797_v9  ;;  %v3100_v62 = vshll.u32 %v11430_v60, 30 }
 0x306   :  { %v2976_v10 = vsel %vm2966_vm14, %v2973_v24, %v2975_v25  ;;  %v2979_v26 = vsel %vm2967_vm11, %v2961_v30, %v2978_v6  ;;  %v2804_v15 = vor.u32 4788187, %v2803_v19  ;;  %v2969_v59 = vsel %vm2965_vm4, %v2949_v8, %v2952_v3 }
 0x307   :  { %v2971_v12 = vsel %vm2967_vm11, %v2955_v7, %v2970_v35  ;;  %v2980_v41 = vsel %vm2966_vm14, %v2977_v61, %v2979_v26  ;;  %v11446_v5 = vmul.u32.u64.low %v2981_v16, %v2976_v10  ;;  %v11447_v39 = vmul.u32.u64.high %v2981_v16, %v2976_v10, %v11446_v5  ;;  %v239_v7 = vpop.permute.xlu1 %238  ;;  %v16114_v10 = vld [vmem:[#allocation22_spill] sm:$0xff] }
 0x308   :  { %v11443_v31 = vmul.u32.u64.low %v2981_v16, %v2980_v41  ;;  %v11444_v23 = vmul.u32.u64.high %v2981_v16, %v2980_v41, %v11443_v31  ;;  %v2602_v9 = vsel %vm2519_vm7, %v2601_v53, %v11381_v58  ;;  %v2918_v18 = vsel %vm11418_vm0, 0, %v2916_v34  ;;  %v16109_v34 = vld [vmem:[#allocation19_spill] sm:$0xff] }
 0x309   :  { %vm4099_vm9 = vcmp.lt.s32.totalorder %v11244_v2, 1  ;;  %v15590_v3 = vrot.slane %v11390_v63, 7  ;;  %v2912_v30 = vmul.f32 %v2911_v43, %v2909_v36  ;;  %v2800_v57 = vor.u32 %v2799_v56, %v2798_v28  ;;  %v11470_v36 = vpop.permute.xlu0 %4176 }
 0x30a   :  { %v11457_v48 = vsub.s32 %v3097_v0, %v3100_v62  ;;  %v2972_v31 = vsel %vm2966_vm14, %v2969_v59, %v2971_v12  ;;  %7664 = vcosq.f32 %v11373_v20  ;;  %v11462_v19 = vand.u32 3, %v11249_v50  ;;  %16110 = vst [vmem:[#allocation74_spill] sm:$0xff] %v11470_v36  ;;  %v11478_v50 = vld [vmem:[%s15455_s1] ss:$0 sm:$0xff] }
 0x30b   :  { %v16108_v58 = vsel %vm11333_vm8, 0, %v11287_v27  ;;  %vm2727_vm7 = vcmp.lt.s32.totalorder %v11037_v22, 0  ;;  %v15589_v24 = vrot.slane %v16109_v34, 7  ;;  %v2805_v28 = vand.u32 2147483647, %v2804_v15  ;;  %v16115_v15 = vld [vmem:[#allocation21_spill] sm:$0xff] }
 0x30c   :  { %16107 = vst [vmem:[#allocation73_spill] sm:$0xff] %v11462_v19  ;;  %v2610_v53 = vadd.s32 3, %v16108_v58  ;;  %vm2990_vm5 = vc.u32 %v11444_v23, %v11446_v5  ;;  %v2991_v0 = vadd.s32 1, %v11447_v39  ;;  %v290_v27 = vmul.f32 %v11478_v50, %v239_v7 }
 0x30d   :  { %v2605_v1 = vsel %vm11333_vm8, %v10814_v42, %v2602_v9  ;;  %v2922_v43 = vadd.s32 3, %v2918_v18  ;;  %v4130_v35 = vsel %vm4099_vm9, %v15589_v24, %v15590_v3  ;;  %v2988_v47 = vmul.u32 %v2981_v16, %v2972_v31  ;;  %v16116_v16 = vld [vmem:[#allocation5_spill] sm:$0xff] }
 0x30e   :  { %v2913_v61 = vxor.u32 2147483648, %v2912_v30  ;;  %v16111_v8 = vand.u32 2147483647, %v11037_v22  ;;  %v2807_v6 = vcvt.s32.f32 %v2800_v57  ;;  %v3103_v14 = vsub.s32 0, %v11457_v48  ;;  %v11511_v57 = vpop.permute.xlu0 %4400 }
 0x30f   :  { %v2992_v56 = vsel %vm2990_vm5, %v2991_v0, %v11447_v39  ;;  %7666 = vsinq.f32 %v11373_v20  ;;  %v742_v26 = vxor.u32 2147483648, %v16114_v10  ;;  %v745_v59 = vxor.u32 2147483648, %v16115_v15  ;;  %16119 = vst [vmem:[#allocation5_spill] sm:$0xff] %v11511_v57 }
 0x310   :  { %vm11492_vm3 = vcmp.le.f32.partialorder %v16111_v8, 0.7853982  ;;  %v2993_v62 = vadd.s32 %v2992_v56, %v2988_v47  ;;  %vm737_vm8 = vweird.f32 %v16116_v16  ;;  %v11502_v12 = vand.u32 3, %v2610_v53  ;;  %v16120_v53 = vld [vmem:[#allocation16_spill] sm:$0xff]  ;;  %v16131_v16 = vld [vmem:[#allocation11_spill] sm:$0xff] }
 0x311   :  { %v2808_v41 = vmul.f32 %v2807_v6, %v2805_v28  ;;  %v2811_v9 = vsub.s32 4, %v11260_v37  ;;  %v11506_v18 = vadd.f32 %v11033_v46, %v290_v27  ;;  %7668 = vcosq.f32 %v2605_v1 }
 0x312   :  { %16117 = vst [vmem:[#allocation22_spill] sm:$0xff] %v11502_v12  ;;  %v11508_v7 = vand.u32 3, %v2922_v43  ;;  %v4357_v20 = vsub.f32 %v11390_v63, %v4130_v35  ;;  %v2994_v39 = vadd.s32 536870912, %v2993_v62  ;;  %v2914_v31 = vsel %vm2831_vm15, %v2913_v61, %v2912_v30 }
 0x313   :  { %v7215_v58 = vmin.u32 %v3103_v14, %v11457_v48  ;;  %vm741_vm6 = vcmp.eq.s32.totalorder %v16120_v53, 0  ;;  %vm744_vm2 = vcmp.eq.s32.totalorder %v16120_v53, 2  ;;  %7670 = vsinq.f32 %v2605_v1 }
 0x314   :  { %16118 = vst [vmem:[#allocation21_spill] sm:$0xff] %v11508_v7  ;;  %v11518_v28 = vshrl.u32 %v2994_v39, 30  ;;  %v743_v0 = vsel %vm741_vm6, %v16115_v15, %v742_v26  ;;  %v746_v27 = vsel %vm744_vm2, %v745_v59, %v16114_v10  ;;  %v2809_v43 = vxor.u32 2147483648, %v2808_v41  ;;  %v11527_v61 = vpop.eup %7664  ;;  %v16125_v59 = vld [vmem:[#allocation6_spill] sm:$0xff] }
 0x315   :  { %v2812_v35 = vsel %vm2727_vm7, %v2811_v9, %v11260_v37  ;;  %v3123_v30 = vsub.s32 4, %v11430_v60  ;;  %v3248_v47 = vand.u32 2139095040, %v11506_v18  ;;  %16121 = vst [vmem:[#allocation16_spill] sm:$0xff] %v11527_v61  ;;  %v2917_v1 = vsel %vm11418_vm0, %v10848_v52, %v2914_v31 }
 0x316   :  { %v11533_v8 = vmul.f32 %v11161_v32, %v4357_v20  ;;  %v2996_v6 = vshll.u32 %v11518_v28, 30  ;;  %vm740_vm13 = vcmp.lt.s32.totalorder %v16120_v53, 2  ;;  %vm3039_vm10 = vcmp.lt.s32.totalorder %v11214_v40, 0  ;;  %v234_v20 = vpop.permute.xlu0 %233  ;;  %v7575_v53 = vld [vmem:[%s15457_s5 + $0xf0] ss:$8 sps:$4 sm:$0xff]  }
 0x317   :  { %v3105_v37 = vclz %v7215_v58  ;;  %v747_v14 = vsel %vm740_vm13, %v743_v0, %v746_v27  ;;  %v3249_v56 = vshrl.u32 %v3248_v47, 23  ;;  %v2814_v10 = vsel %vm11492_vm3, 0, %v2812_v35  ;;  %4851 = vmatpush1.bf16.msra.mxu1 %v7575_v53 }
 0x318   :  { %v16122_v26 = vand.u32 2147483647, %v11214_v40  ;;  %v11546_v15 = vsub.s32 %v2993_v62, %v2996_v6  ;;  %7672 = vcosq.f32 %v2917_v1  ;;  %v2810_v39 = vsel %vm2727_vm7, %v2809_v43, %v2808_v41  ;;  %v16128_v41 = vld [vmem:[#allocation15_spill] sm:$0xff]  ;;  %6038 = vmatprep.subr.bf16.mxu1 %v11326_v45 }
 0x319   :  { %v3124_v31 = vsel %vm3039_vm10, %v3123_v30, %v11430_v60  ;;  %vm4034_vm1 = vcmp.lt.s32.totalorder %v11244_v2, 7  ;;  %v7222_v58 = vadd.s32 4294967169, %v3249_v56  ;;  %v11558_v62 = vpop.eup %7666  ;;  %v11563_v27 = vsel %vm737_vm8, nan, %v747_v14  ;;  %v16129_v30 = vld [vmem:[#allocation14_spill] sm:$0xff]  ;;  %v16132_v14 = vld [vmem:[#allocation3_spill] sm:$0xff] }
 0x31a   :  { %vm11542_vm15 = vcmp.le.f32.partialorder %v16122_v26, 0.7853982  ;;  %16126 = vst [vmem:[#allocation75_spill] sm:$0xff] %v11558_v62  ;;  %v2999_v0 = vsub.s32 0, %v11546_v15  ;;  %16127 = vst [vmem:[#allocation76_spill] sm:$0xff] %v11563_v27  ;;  %v638_v43 = vxor.u32 2147483648, %v16128_v41  ;;  %v289_v56 = vmul.f32 %v11478_v50, %v234_v20 }
 0x31b   :  { %v15591_v35 = vand.u32 2147483647, %v11506_v18  ;;  %v7216_v60 = vadd.s32 4294967294, %v3105_v37  ;;  %v641_v47 = vxor.u32 2147483648, %v16129_v30  ;;  %v3255_v6 = vadd.s32 1, %v7222_v58  ;;  %v11569_v26 = vpop.eup %7668 }
 0x31c   :  { %16130 = vst [vmem:[#allocation15_spill] sm:$0xff] %v11569_v26  ;;  %7674 = vsinq.f32 %v2917_v1  ;;  %v2818_v24 = vadd.s32 3, %v2814_v10  ;;  %v7211_v3 = vmin.u32 %v2999_v0, %v11546_v15  ;;  %vm637_vm0 = vcmp.eq.s32.totalorder %v16131_v16, 0 }
 0x31d   :  { %vm633_vm4 = vweird.f32 %v16132_v14  ;;  %v2813_v37 = vsel %vm11492_vm3, %v11037_v22, %v2810_v39  ;;  %v3126_v20 = vsel %vm11542_vm15, 0, %v3124_v31  ;;  %vm640_vm12 = vcmp.eq.s32.totalorder %v16131_v16, 2  ;;  %v11581_v1 = vpop.eup %7670 }
 0x31e   :  { %vm3256_vm11 = vcmp.gt.s32.totalorder %v3255_v6, 0  ;;  %16133 = vst [vmem:[#allocation14_spill] sm:$0xff] %v11581_v1  ;;  %v15594_v10 = vrot.slane %v11563_v27, 1  ;;  %v639_v58 = vsel %vm637_vm0, %v16129_v30, %v638_v43  ;;  %v3252_v45 = vand.u32 8388607, %v15591_v35 }
 0x31f   :  { %v3257_v53 = vsel %vm3256_vm11, %v3255_v6, 0  ;;  %vm7217_vm14 = vcmp.lt.s32.totalorder %v7216_v60, 0  ;;  %v642_v25 = vsel %vm640_vm12, %v641_v47, %v16128_v41  ;;  %v11589_v0 = vadd.f32 %v11033_v46, %v289_v56 }
 0x320   :  { %v3259_v39 = vand.u32 31, %v3257_v53  ;;  %7676 = vcosq.f32 %v2813_v37  ;;  %v11591_v31 = vand.u32 3, %v2818_v24  ;;  %v3001_v9 = vclz %v7211_v3 }
 0x321   :  { %16134 = vst [vmem:[#allocation11_spill] sm:$0xff] %v11589_v0  ;;  %vm636_vm7 = vcmp.lt.s32.totalorder %v16131_v16, 2  ;;  %7678 = vsinq.f32 %v2813_v37  ;;  %v3093_v43 = vadd.s32 %v11355_v55, %v11365_v54  ;;  %v3130_v30 = vadd.s32 3, %v3126_v20 }
 0x322   :  { %16135 = vst [vmem:[#allocation3_spill] sm:$0xff] %v11591_v31  ;;  %v3260_v35 = vsub.s32 32, %v3259_v39  ;;  %v11596_v6 = vsel %vm7217_vm14, 0, %v7216_v60  ;;  %v16136_v41 = vrot.slane %v16125_v59, 1  ;;  %v643_v24 = vsel %vm636_vm7, %v639_v58, %v642_v25  ;;  %v11606_v47 = vpop.eup %7672 }
 0x323   :  { %v3253_v3 = vor.u32 8388608, %v3252_v45  ;;  %16137 = vst [vmem:[#allocation77_spill] sm:$0xff] %v11606_v47  ;;  %v3258_v56 = vshrl.u32 %v3257_v53, 5  ;;  %v3262_v16 = vshll.u32 %v15928_v4, %v3259_v39  ;;  %v3144_v54 = vand.u32 2139095040, %v11589_v0 }
 0x324   :  { %v11604_v46 = vsel %vm4034_vm1, %v15594_v10, %v16136_v41  ;;  %v3263_v55 = vshrl.u32 %v15955_v11, %v3260_v35  ;;  %v7212_v60 = vadd.s32 4294967294, %v3001_v9  ;;  %v3265_v37 = vshll.u32 %v15955_v11, %v3259_v39 }
 0x325   :  { %v3266_v20 = vshrl.u32 %v15956_v13, %v3260_v35  ;;  %v3268_v32 = vshll.u32 %v15956_v13, %v3259_v39  ;;  %v3269_v58 = vshrl.u32 %v15957_v33, %v3260_v35  ;;  %v3271_v45 = vshll.u32 %v15957_v33, %v3259_v39 }
 0x326   :  { %v3264_v41 = vor.u32 %v3263_v55, %v3262_v16  ;;  %v3272_v53 = vshrl.u32 %v15933_v38, %v3260_v35  ;;  %v11617_v25 = vpop.eup %7674  ;;  %v11621_v10 = vsel %vm633_vm4, nan, %v643_v24  ;;  %v3274_v52 = vshll.u32 %v15933_v38, %v3259_v39 }
 0x327   :  { %16138 = vst [vmem:[#allocation78_spill] sm:$0xff] %v11617_v25  ;;  %16139 = vst [vmem:[#allocation79_spill] sm:$0xff] %v11621_v10  ;;  %v3267_v9 = vor.u32 %v3266_v20, %v3265_v37  ;;  %v3275_v47 = vshrl.u32 %v15934_v17, %v3260_v35  ;;  %v3109_v7 = vsub.s32 32, %v11596_v6  ;;  %v3270_v16 = vor.u32 %v3269_v58, %v3268_v32 }
 0x328   :  { %v3273_v55 = vor.u32 %v3272_v53, %v3271_v45  ;;  %v3145_v22 = vshrl.u32 %v3144_v54, 23  ;;  %v3113_v31 = vsub.s32 4294967266, %v11596_v6  ;;  %vm3277_vm5 = vcmp.lt.s32.totalorder %v3258_v56, 1 }
 0x329   :  { %v3276_v19 = vor.u32 %v3275_v47, %v3274_v52  ;;  %v3293_v61 = vshll.u32 %v3253_v3, 8  ;;  %vm7213_vm3 = vcmp.lt.s32.totalorder %v7212_v60, 0  ;;  %v3261_v14 = vshrl.u32 %v15928_v4, %v3260_v35 }
 0x32a   :  { %vm3280_vm8 = vcmp.lt.s32.totalorder %v3258_v56, 4  ;;  %v3285_v24 = vsel %vm3277_vm5, %v3264_v41, %v3267_v9  ;;  %v11629_v37 = vpop.eup %7676  ;;  %vm3279_vm6 = vcmp.lt.s32.totalorder %v3258_v56, 3  ;;  %v3289_v32 = vsel %vm3277_vm5, %v3267_v9, %v3270_v16 }
 0x32b   :  { %16140 = vst [vmem:[#allocation80_spill] sm:$0xff] %v11629_v37  ;;  %v3282_v39 = vsel %vm3280_vm8, %v3270_v16, 2102212464  ;;  %v3286_v20 = vsel %vm3280_vm8, %v3273_v55, 920167782  ;;  %v11632_v58 = vpop.eup %7678  ;;  %vm3278_vm2 = vcmp.lt.s32.totalorder %v3258_v56, 2  ;;  %v3281_v3 = vsel %vm3277_vm5, %v3261_v14, %v3264_v41 }
 0x32c   :  { %16141 = vst [vmem:[#allocation81_spill] sm:$0xff] %v11632_v58  ;;  %v3287_v54 = vsel %vm3279_vm6, %v3270_v16, %v3286_v20  ;;  %v3290_v52 = vsel %vm3280_vm8, %v3276_v19, 1326507024  ;;  %v7218_v47 = vadd.s32 4294967169, %v3145_v22  ;;  %v3283_v45 = vsel %vm3279_vm6, %v3267_v9, %v3282_v39 }
 0x32d   :  { %v3288_v35 = vsel %vm3278_vm2, %v3285_v24, %v3287_v54  ;;  %v3291_v53 = vsel %vm3279_vm6, %v3273_v55, %v3290_v52  ;;  %v15608_v42 = vand.u32 2147483647, %v11589_v0  ;;  %v11642_v26 = vand.u32 3, %v3130_v30  ;;  %v11670_v54 = vpop.permute.xlu1 %4191 }
 0x32e   :  { %v3292_v25 = vsel %vm3278_vm2, %v3289_v32, %v3291_v53  ;;  %v11637_v37 = vmul.u32.u64.low %v3293_v61, %v3288_v35  ;;  %v11638_v62 = vmul.u32.u64.high %v3293_v61, %v3288_v35, %v11637_v37  ;;  %v11645_v16 = vsel %vm7213_vm3, 0, %v7212_v60  ;;  %16144 = vst [vmem:[#allocation84_spill] sm:$0xff] %v11670_v54 }
 0x32f   :  { %16142 = vst [vmem:[#allocation82_spill] sm:$0xff] %v11642_v26  ;;  %v11647_v22 = vmul.u32.u64.low %v3293_v61, %v3292_v25  ;;  %v11648_v19 = vmul.u32.u64.high %v3293_v61, %v3292_v25, %v11647_v22  ;;  %v4135_v41 = vsub.f32 %v11604_v46, %v11563_v27  ;;  %v3284_v55 = vsel %vm3278_vm2, %v3281_v3, %v3283_v45 }
 0x330   :  { %v3151_v14 = vadd.s32 1, %v7218_v47  ;;  %v3111_v24 = vshrl.u32 %v3093_v43, %v3109_v7  ;;  %v3114_v39 = vadd.s32 127, %v3113_v31  ;;  %v2989_v30 = vadd.s32 %v11446_v5, %v11444_v23 }
 0x331   :  { %v15607_v20 = vrot.slane %v11621_v10, 1  ;;  %v3009_v60 = vsub.s32 4294967266, %v11645_v16  ;;  %v3303_v25 = vadd.s32 1, %v11638_v62  ;;  %v3148_v32 = vand.u32 8388607, %v15608_v42  ;;  %v11699_v23 = vpop.permute.xlu1 %4415 }
 0x332   :  { %vm3152_vm13 = vcmp.gt.s32.totalorder %v3151_v14, 0  ;;  %v3110_v46 = vshll.u32 %v11457_v48, %v11596_v6  ;;  %v3300_v56 = vmul.u32 %v3293_v61, %v3284_v55  ;;  %vm3302_vm0 = vc.u32 %v11648_v19, %v11637_v37  ;;  %16147 = vst [vmem:[#allocation86_spill] sm:$0xff] %v11699_v23 }
 0x333   :  { %v3153_v7 = vsel %vm3152_vm13, %v3151_v14, 0  ;;  %v11666_v5 = vmul.f32 %v11408_v29, %v4135_v41  ;;  %v3304_v31 = vsel %vm3302_vm0, %v3303_v25, %v11638_v62  ;;  %v3115_v47 = vshll.u32 %v3114_v39, 23  ;;  %v11687_v14 = vpop.permute.xlu0 %4186 }
 0x334   :  { %v3155_v43 = vand.u32 31, %v3153_v7  ;;  %v11672_v52 = vor.u32 %v3111_v24, %v3110_v46  ;;  %v16145_v48 = vrot.slane %v11563_v27, 1  ;;  %v3305_v6 = vadd.s32 %v3304_v31, %v3300_v56  ;;  %16146 = vst [vmem:[#allocation85_spill] sm:$0xff] %v11687_v14 }
 0x335   :  { %16143 = vst [vmem:[#allocation83_spill] sm:$0xff] %v11666_v5  ;;  %v3005_v3 = vsub.s32 32, %v11645_v16  ;;  %v3010_v45 = vadd.s32 127, %v3009_v60  ;;  %v3149_v35 = vor.u32 8388608, %v3148_v32  ;;  %v11683_v22 = vshrl.u32 %v3153_v7, 5 }
 0x336   :  { %v11680_v61 = vsel %vm4034_vm1, %v15607_v20, %v16145_v48  ;;  %v3156_v62 = vsub.s32 32, %v3155_v43  ;;  %v3306_v53 = vadd.s32 536870912, %v3305_v6  ;;  %v3158_v41 = vshll.u32 %v15928_v4, %v3155_v43 }
 0x337   :  { %v3161_v55 = vshll.u32 %v15955_v11, %v3155_v43  ;;  %v3164_v25 = vshll.u32 %v15956_v13, %v3155_v43  ;;  %v3167_v32 = vshll.u32 %v15957_v33, %v3155_v43  ;;  %v3170_v42 = vshll.u32 %v15933_v38, %v3155_v43 }
 0x338   :  { %v3159_v24 = vshrl.u32 %v15955_v11, %v3156_v62  ;;  %v3162_v39 = vshrl.u32 %v15956_v13, %v3156_v62  ;;  %v3165_v46 = vshrl.u32 %v15957_v33, %v3156_v62  ;;  %v11693_v60 = vshrl.u32 %v3306_v53, 30 }
 0x339   :  { %v3168_v56 = vshrl.u32 %v15933_v38, %v3156_v62  ;;  %v3171_v7 = vshrl.u32 %v15934_v17, %v3156_v62  ;;  %v3019_v9 = vsub.s32 4, %v11518_v28  ;;  %vm3173_vm4 = vcmp.lt.s32.totalorder %v11683_v22, 1 }
 0x33a   :  { %v3160_v31 = vor.u32 %v3159_v24, %v3158_v41  ;;  %v3163_v48 = vor.u32 %v3162_v39, %v3161_v55  ;;  %v3166_v20 = vor.u32 %v3165_v46, %v3164_v25  ;;  %v3308_v29 = vshll.u32 %v11693_v60, 30  ;;  %v11713_v39 = vpop.permute.xlu0 %4410 }
 0x33b   :  { %v3169_v26 = vor.u32 %v3168_v56, %v3167_v32  ;;  %v3116_v53 = vor.u32 4788187, %v3115_v47  ;;  %v3172_v58 = vor.u32 %v3171_v7, %v3170_v42  ;;  %vm3176_vm12 = vcmp.lt.s32.totalorder %v11683_v22, 4  ;;  %16148 = vst [vmem:[#allocation87_spill] sm:$0xff] %v11713_v39 }
 0x33c   :  { %v3181_v41 = vsel %vm3173_vm4, %v3160_v31, %v3163_v48  ;;  %vm2935_vm11 = vcmp.lt.s32.totalorder %v11247_v49, 0  ;;  %v3007_v55 = vshrl.u32 %v2989_v30, %v3005_v3  ;;  %v11708_v43 = vsub.s32 %v3305_v6, %v3308_v29 }
 0x33d   :  { %vm3175_vm14 = vcmp.lt.s32.totalorder %v11683_v22, 3  ;;  %v3182_v24 = vsel %vm3176_vm12, %v3169_v26, 920167782  ;;  %v3011_v25 = vshll.u32 %v3010_v45, 23  ;;  %vm3174_vm7 = vcmp.lt.s32.totalorder %v11683_v22, 2 }
 0x33e   :  { %v3183_v42 = vsel %vm3175_vm14, %v3166_v20, %v3182_v24  ;;  %v3189_v47 = vshll.u32 %v3149_v35, 8  ;;  %v3311_v46 = vsub.s32 0, %v11708_v43  ;;  %v3178_v29 = vsel %vm3176_vm12, %v3166_v20, 2102212464  ;;  %v249_v24 = vpop.permute.xlu1 %248 }
 0x33f   :  { %v3184_v30 = vsel %vm3174_vm7, %v3181_v41, %v3183_v42  ;;  %v3185_v6 = vsel %vm3173_vm4, %v3163_v48, %v3166_v20  ;;  %v16149_v3 = vand.u32 2147483647, %v11247_v49  ;;  %v3157_v32 = vshrl.u32 %v15928_v4, %v3156_v62 }
 0x340   :  { %v3186_v35 = vsel %vm3176_vm12, %v3172_v58, 1326507024  ;;  %v11734_v56 = vmul.u32.u64.low %v3189_v47, %v3184_v30  ;;  %v11735_v7 = vmul.u32.u64.high %v3189_v47, %v3184_v30, %v11734_v56  ;;  %v3117_v41 = vand.u32 2147483647, %v3116_v53 }
 0x341   :  { %vm11727_vm5 = vcmp.le.f32.partialorder %v16149_v3, 0.7853982  ;;  %v3006_v20 = vshll.u32 %v11546_v15, %v11645_v16  ;;  %v7223_v42 = vmin.u32 %v3311_v46, %v11708_v43  ;;  %v3187_v3 = vsel %vm3175_vm14, %v3169_v26, %v3186_v35  ;;  %v244_v46 = vpop.permute.xlu0 %243 }
 0x342   :  { %v3012_v12 = vor.u32 4788187, %v3011_v25  ;;  %v3177_v62 = vsel %vm3173_vm4, %v3157_v32, %v3160_v31  ;;  %v3179_v58 = vsel %vm3175_vm14, %v3163_v48, %v3178_v29  ;;  %v3188_v30 = vsel %vm3174_vm7, %v3185_v6, %v3187_v3 }
 0x343   :  { %v16152_v53 = vrot.slane %v11563_v27, 7  ;;  %v16153_v1 = vrot.slane %v11621_v10, 7  ;;  %v16155_v26 = vrot.slane %v11390_v63, 7  ;;  %v3313_v25 = vclz %v7223_v42 }
 0x344   :  { %v292_v48 = vmul.f32 %v11478_v50, %v249_v24  ;;  %v3119_v29 = vcvt.s32.f32 %v11672_v52  ;;  %v3008_v6 = vor.u32 %v3007_v55, %v3006_v20  ;;  %v3199_v5 = vadd.s32 1, %v11735_v7 }
 0x345   :  { %v4128_v15 = vsel %vm4099_vm9, %v16153_v1, %v16152_v53  ;;  %v16154_v16 = vmov %v16153_v1  ;;  %v11763_v32 = vmul.u32.u64.low %v3189_v47, %v3188_v30  ;;  %v11764_v35 = vmul.u32.u64.high %v3189_v47, %v3188_v30, %v11763_v32 }
 0x346   :  { %v4129_v31 = vsel %vm4099_vm9, %v16155_v26, %v16154_v16  ;;  %v4134_v1 = vsub.f32 %v11680_v61, %v11621_v10  ;;  %v7224_v3 = vadd.s32 4294967294, %v3313_v25  ;;  %v3180_v53 = vsel %vm3174_vm7, %v3177_v62, %v3179_v58  ;;  %v7714_v61 = vld [vmem:[%s15456_s2] ss:$0 sm:$0xff] }
 0x347   :  { %v3120_v16 = vmul.f32 %v3119_v29, %v3117_v41  ;;  %v3013_v42 = vand.u32 2147483647, %v3012_v12  ;;  %v3020_v24 = vsel %vm2935_vm11, %v3019_v9, %v11518_v28  ;;  %v291_v52 = vmul.f32 %v11478_v50, %v244_v46 }
 0x348   :  { %v4359_v55 = vsub.f32 %v11563_v27, %v4128_v15  ;;  %v4358_v20 = vsub.f32 %v11621_v10, %v4129_v31  ;;  %vm7225_vm3 = vcmp.lt.s32.totalorder %v7224_v3, 0  ;;  %v11780_v22 = vadd.f32 %v7714_v61, %v292_v48 }
 0x349   :  { %v3015_v62 = vcvt.s32.f32 %v3008_v6  ;;  %v3316_v41 = vsel %vm7225_vm3, 0, %v7224_v3  ;;  %v3196_v12 = vmul.u32 %v3189_v47, %v3180_v53  ;;  %vm3198_vm8 = vc.u32 %v11764_v35, %v11734_v56  ;;  %v16159_v53 = vld [vmem:[#allocation25_spill] sm:$0xff] }
 0x34a   :  { %16156 = vst [vmem:[#allocation88_spill] sm:$0xff] %v11780_v22  ;;  %v3022_v50 = vsel %vm11727_vm5, 0, %v3020_v24  ;;  %v3317_v28 = vsub.s32 32, %v3316_v41  ;;  %v3321_v9 = vsub.s32 4294967266, %v3316_v41  ;;  %v3200_v58 = vsel %vm3198_vm8, %v3199_v5, %v11735_v7 }
 0x34b   :  { %v3121_v30 = vxor.u32 2147483648, %v3120_v16  ;;  %v3016_v15 = vmul.f32 %v3015_v62, %v3013_v42  ;;  %v3201_v26 = vadd.s32 %v3200_v58, %v3196_v12  ;;  %v11787_v31 = vadd.f32 %v7714_v61, %v291_v52 }
 0x34c   :  { %v11790_v25 = vmul.f32 %v11470_v36, %v4134_v1  ;;  %v3301_v47 = vadd.s32 %v11637_v37, %v11648_v19  ;;  %v3322_v48 = vadd.s32 127, %v3321_v9  ;;  %v3456_v46 = vand.u32 2139095040, %v11780_v22 }
 0x34d   :  { %v3026_v29 = vadd.s32 3, %v3022_v50  ;;  %v11796_v6 = vmul.f32 %v11435_v51, %v4359_v55  ;;  %v11799_v5 = vmul.f32 %v11511_v57, %v4358_v20  ;;  %v3202_v7 = vadd.s32 536870912, %v3201_v26 }
 0x34e   :  { %v3319_v32 = vshrl.u32 %v3301_v47, %v3317_v28  ;;  %v3323_v3 = vshll.u32 %v3322_v48, 23  ;;  %v3457_v1 = vshrl.u32 %v3456_v46, 23  ;;  %v3122_v24 = vsel %vm3039_vm10, %v3121_v30, %v3120_v16  ;;  %v16161_v28 = vld [vmem:[#allocation24_spill] sm:$0xff]  ;;  %v16162_v30 = vld [vmem:[#allocation27_spill] sm:$0xff]  ;;  %v16163_v46 = vld [vmem:[#allocation26_spill] sm:$0xff] }
 0x34f   :  { %16157 = vst [vmem:[#allocation89_spill] sm:$0xff] %v11796_v6  ;;  %16158 = vst [vmem:[#allocation90_spill] sm:$0xff] %v11799_v5  ;;  %v3017_v37 = vxor.u32 2147483648, %v3016_v15  ;;  %vm3247_vm6 = vcmp.lt.s32.totalorder %v11506_v18, 0  ;;  %v11805_v19 = vshrl.u32 %v3202_v7, 30  ;;  %v3352_v52 = vand.u32 2139095040, %v11787_v31 }
 0x350   :  { %v3318_v55 = vshll.u32 %v11708_v43, %v3316_v41  ;;  %v3324_v20 = vor.u32 4788187, %v3323_v3  ;;  %v15615_v61 = vand.u32 2147483647, %v11780_v22  ;;  %v7230_v62 = vadd.s32 4294967169, %v3457_v1 }
 0x351   :  { %v11810_v12 = vand.u32 3, %v3026_v29  ;;  %v3204_v50 = vshll.u32 %v11805_v19, 30  ;;  %vm949_vm2 = vcmp.eq.s32.totalorder %v16161_v28, 0  ;;  %v3353_v16 = vshrl.u32 %v3352_v52, 23 }
 0x352   :  { %v11817_v9 = vsel %vm11542_vm15, %v11214_v40, %v3122_v24  ;;  %v3320_v58 = vor.u32 %v3319_v32, %v3318_v55  ;;  %v950_v47 = vxor.u32 2147483648, %v16162_v30  ;;  %v3463_v43 = vadd.s32 1, %v7230_v62 }
 0x353   :  { %16160 = vst [vmem:[#allocation91_spill] sm:$0xff] %v11810_v12  ;;  %v3018_v41 = vsel %vm2935_vm11, %v3017_v37, %v3016_v15  ;;  %v11822_v48 = vsub.s32 %v3201_v26, %v3204_v50  ;;  %v953_v29 = vxor.u32 2147483648, %v16163_v46  ;;  %v15618_v7 = vrot.slane %v16125_v59, 7 }
 0x354   :  { %v3325_v3 = vand.u32 2147483647, %v3324_v20  ;;  %v3331_v1 = vsub.s32 4, %v11693_v60  ;;  %vm948_vm10 = vcmp.lt.s32.totalorder %v16161_v28, 2  ;;  %v3460_v44 = vand.u32 8388607, %v15615_v61 }
 0x355   :  { %vm3464_vm15 = vcmp.gt.s32.totalorder %v3463_v43, 0  ;;  %v16164_v32 = vand.u32 2147483647, %v11506_v18  ;;  %v3207_v15 = vsub.s32 0, %v11822_v48  ;;  %vm952_vm0 = vcmp.eq.s32.totalorder %v16161_v28, 2 }
 0x356   :  { %v3465_v26 = vsel %vm3464_vm15, %v3463_v43, 0  ;;  %v7226_v37 = vadd.s32 4294967169, %v3353_v16  ;;  %7680 = vcosq.f32 %v11817_v9  ;;  %v3327_v52 = vcvt.s32.f32 %v3320_v58 }
 0x357   :  { %vm11832_vm13 = vcmp.le.f32.partialorder %v16164_v32, 0.7853982  ;;  %v951_v55 = vsel %vm949_vm2, %v16163_v46, %v950_v47  ;;  %v3467_v20 = vand.u32 31, %v3465_v26  ;;  %v11845_v62 = vsel %vm11727_vm5, %v11247_v49, %v3018_v41 }
 0x358   :  { %v7219_v50 = vmin.u32 %v3207_v15, %v11822_v48  ;;  %v954_v32 = vsel %vm952_vm0, %v953_v29, %v16162_v30  ;;  %v16167_v16 = vrot.slane %v11563_v27, 7  ;;  %v3328_v43 = vmul.f32 %v3327_v52, %v3325_v3  ;;  %v16168_v29 = vld [vmem:[#allocation7_spill] sm:$0xff] }
 0x359   :  { %v3332_v47 = vsel %vm3247_vm6, %v3331_v1, %v11693_v60  ;;  %v3461_v45 = vor.u32 8388608, %v3460_v44  ;;  %v3468_v41 = vsub.s32 32, %v3467_v20  ;;  %v3466_v61 = vshrl.u32 %v3465_v26, 5 }
 0x35a   :  { %v11855_v58 = vsel %vm4099_vm9, %v16167_v16, %v15618_v7  ;;  %v3209_v46 = vclz %v7219_v50  ;;  %v3470_v15 = vshll.u32 %v15928_v4, %v3467_v20  ;;  %v3359_v30 = vadd.s32 1, %v7226_v37 }
 0x35b   :  { %vm945_vm4 = vweird.f32 %v16168_v29  ;;  %v3471_v42 = vshrl.u32 %v15955_v11, %v3468_v41  ;;  %v3473_v57 = vshll.u32 %v15955_v11, %v3467_v20  ;;  %v3474_v16 = vshrl.u32 %v15956_v13, %v3468_v41 }
 0x35c   :  { %v3476_v3 = vshll.u32 %v15956_v13, %v3467_v20  ;;  %v7220_v52 = vadd.s32 4294967294, %v3209_v46  ;;  %v3477_v60 = vshrl.u32 %v15957_v33, %v3468_v41  ;;  %v3479_v1 = vshll.u32 %v15957_v33, %v3467_v20 }
 0x35d   :  { %v3480_v44 = vshrl.u32 %v15933_v38, %v3468_v41  ;;  %v3472_v26 = vor.u32 %v3471_v42, %v3470_v15  ;;  %v3475_v50 = vor.u32 %v3474_v16, %v3473_v57  ;;  %v3482_v37 = vshll.u32 %v15933_v38, %v3467_v20 }
 0x35e   :  { %v3483_v7 = vshrl.u32 %v15934_v17, %v3468_v41  ;;  %v3329_v51 = vxor.u32 2147483648, %v3328_v43  ;;  %v955_v36 = vsel %vm948_vm10, %v951_v55, %v954_v32  ;;  %v3478_v40 = vor.u32 %v3477_v60, %v3476_v3 }
 0x35f   :  { %v3481_v49 = vor.u32 %v3480_v44, %v3479_v1  ;;  %v3334_v46 = vsel %vm11832_vm13, 0, %v3332_v47  ;;  %v3501_v6 = vshll.u32 %v3461_v45, 8  ;;  %v15626_v5 = vand.u32 2147483647, %v11787_v31 }
 0x360   :  { %v3484_v12 = vor.u32 %v3483_v7, %v3482_v37  ;;  %vm7221_vm12 = vcmp.lt.s32.totalorder %v7220_v52, 0  ;;  %vm3485_vm11 = vcmp.lt.s32.totalorder %v3466_v61, 1  ;;  %vm3488_vm14 = vcmp.lt.s32.totalorder %v3466_v61, 4  ;;  %v11876_v57 = vpop.eup %7680 }
 0x361   :  { %vm3360_vm7 = vcmp.gt.s32.totalorder %v3359_v30, 0  ;;  %16169 = vst [vmem:[#allocation24_spill] sm:$0xff] %v11876_v57  ;;  %vm3487_vm5 = vcmp.lt.s32.totalorder %v3466_v61, 3  ;;  %v3490_v42 = vsel %vm3488_vm14, %v3478_v40, 2102212464  ;;  %v3493_v28 = vsel %vm3485_vm11, %v3472_v26, %v3475_v50  ;;  %v16189_v57 = vld [vmem:[#allocation9_spill] sm:$0xff] }
 0x362   :  { %v3494_v55 = vsel %vm3488_vm14, %v3481_v49, 920167782  ;;  %v3330_v20 = vsel %vm3247_vm6, %v3329_v51, %v3328_v43  ;;  %v3469_v32 = vshrl.u32 %v15928_v4, %v3468_v41  ;;  %vm3486_vm3 = vcmp.lt.s32.totalorder %v3466_v61, 2 }
 0x363   :  { %v3495_v7 = vsel %vm3487_vm5, %v3478_v40, %v3494_v55  ;;  %v11882_v47 = vsel %vm7221_vm12, 0, %v7220_v52  ;;  %v3497_v15 = vsel %vm3485_vm11, %v3475_v50, %v3478_v40  ;;  %v3498_v16 = vsel %vm3488_vm14, %v3484_v12, 1326507024 }
 0x364   :  { %v3496_v45 = vsel %vm3486_vm3, %v3493_v28, %v3495_v7  ;;  %v11888_v3 = vsel %vm945_vm4, nan, %v955_v36  ;;  %v3489_v60 = vsel %vm3485_vm11, %v3469_v32, %v3472_v26  ;;  %v3491_v1 = vsel %vm3487_vm5, %v3475_v50, %v3490_v42 }
 0x365   :  { %16170 = vst [vmem:[#allocation27_spill] sm:$0xff] %v11888_v3  ;;  %v3499_v44 = vsel %vm3487_vm5, %v3481_v49, %v3498_v16  ;;  %v11892_v43 = vmul.u32.u64.low %v3501_v6, %v3496_v45  ;;  %v11893_v41 = vmul.u32.u64.high %v3501_v6, %v3496_v45, %v11892_v43  ;;  %v3361_v52 = vsel %vm3360_vm7, %v3359_v30, 0 }
 0x366   :  { %v3500_v51 = vsel %vm3486_vm3, %v3497_v15, %v3499_v44  ;;  %7682 = vsinq.f32 %v11817_v9  ;;  %v3333_v40 = vsel %vm11832_vm13, %v11506_v18, %v3330_v20  ;;  %v3217_v36 = vsub.s32 4294967266, %v11882_v47 }
 0x367   :  { %v3356_v12 = vand.u32 8388607, %v15626_v5  ;;  %v3492_v49 = vsel %vm3486_vm3, %v3489_v60, %v3491_v1  ;;  %v11905_v29 = vmul.u32.u64.low %v3501_v6, %v3500_v51  ;;  %v11906_v26 = vmul.u32.u64.high %v3501_v6, %v3500_v51, %v11905_v29 }
 0x368   :  { %v3363_v50 = vand.u32 31, %v3361_v52  ;;  %7684 = vcosq.f32 %v11845_v62  ;;  %v11909_v30 = vadd.s32 3, %v3334_v46  ;;  %v4005_v9 = vrot.slane %v11888_v3, 1 }
 0x369   :  { %v4360_v24 = vsub.f32 %v16125_v59, %v11855_v58  ;;  %v3197_v37 = vadd.s32 %v11734_v56, %v11764_v35  ;;  %v15627_v42 = vrot.slane %v11888_v3, 7  ;;  %v3511_v61 = vadd.s32 1, %v11893_v41  ;;  %v12035_v58 = vld [vmem:[%s15457_s5 + $0x14] ss:$8 sps:$4 sm:$0xff]  }
 0x36a   :  { %v3364_v28 = vsub.s32 32, %v3363_v50  ;;  %7686 = vcosq.f32 %v3333_v40  ;;  %v3218_v55 = vadd.s32 127, %v3217_v36  ;;  %v3508_v20 = vmul.u32 %v3501_v6, %v3492_v49 }
 0x36b   :  { %v3357_v32 = vor.u32 8388608, %v3356_v12  ;;  %vm3510_vm8 = vc.u32 %v11906_v26, %v11892_v43  ;;  %v3362_v46 = vshrl.u32 %v3361_v52, 5  ;;  %v3366_v7 = vshll.u32 %v15928_v4, %v3363_v50 }
 0x36c   :  { %v3369_v45 = vshll.u32 %v15955_v11, %v3363_v50  ;;  %v3512_v15 = vsel %vm3510_vm8, %v3511_v61, %v11893_v41  ;;  %v3367_v56 = vshrl.u32 %v15955_v11, %v3364_v28  ;;  %v3370_v35 = vshrl.u32 %v15956_v13, %v3364_v28 }
 0x36d   :  { %v3372_v16 = vshll.u32 %v15956_v13, %v3363_v50  ;;  %v3513_v60 = vadd.s32 %v3512_v15, %v3508_v20  ;;  %v3373_v6 = vshrl.u32 %v15957_v33, %v3364_v28  ;;  %v3375_v1 = vshll.u32 %v15957_v33, %v3363_v50 }
 0x36e   :  { %v3376_v44 = vshrl.u32 %v15933_v38, %v3364_v28  ;;  %7688 = vsinq.f32 %v3333_v40  ;;  %v3368_v51 = vor.u32 %v3367_v56, %v3366_v7  ;;  %v3371_v52 = vor.u32 %v3370_v35, %v3369_v45 }
 0x36f   :  { %v11929_v36 = vshll.u32 %v3357_v32, 8  ;;  %v3213_v41 = vsub.s32 32, %v11882_v47  ;;  %v3514_v12 = vadd.s32 536870912, %v3513_v60  ;;  %v3374_v11 = vor.u32 %v3373_v6, %v3372_v16 }
 0x370   :  { %v3377_v49 = vor.u32 %v3376_v44, %v3375_v1  ;;  %v11932_v29 = vpop.eup %7682  ;;  %v3214_v13 = vshll.u32 %v11822_v48, %v11882_v47  ;;  %v3219_v61 = vshll.u32 %v3218_v55, 23  ;;  %v3378_v33 = vshll.u32 %v15933_v38, %v3363_v50 }
 0x371   :  { %16171 = vst [vmem:[#allocation26_spill] sm:$0xff] %v11932_v29  ;;  %v3379_v20 = vshrl.u32 %v15934_v17, %v3364_v28  ;;  %v11938_v40 = vshrl.u32 %v3514_v12, 30  ;;  %vm3381_vm6 = vcmp.lt.s32.totalorder %v3362_v46, 1  ;;  %vm3383_vm2 = vcmp.lt.s32.totalorder %v3362_v46, 3 }
 0x372   :  { %vm3384_vm10 = vcmp.lt.s32.totalorder %v3362_v46, 4  ;;  %v11940_v32 = vpop.eup %7684  ;;  %v3389_v15 = vsel %vm3381_vm6, %v3368_v51, %v3371_v52  ;;  %v3365_v48 = vshrl.u32 %v15928_v4, %v3364_v28  ;;  %vm3382_vm15 = vcmp.lt.s32.totalorder %v3362_v46, 2 }
 0x373   :  { %16172 = vst [vmem:[#allocation7_spill] sm:$0xff] %v11940_v32  ;;  %v3380_v7 = vor.u32 %v3379_v20, %v3378_v33  ;;  %v3386_v45 = vsel %vm3384_vm10, %v3374_v11, 2102212464  ;;  %v3390_v56 = vsel %vm3384_vm10, %v3377_v49, 920167782  ;;  %v3516_v35 = vshll.u32 %v11938_v40, 30 }
 0x374   :  { %v3391_v38 = vsel %vm3383_vm2, %v3374_v11, %v3390_v56  ;;  %v11946_v17 = vpop.eup %7686  ;;  %v3215_v47 = vshrl.u32 %v3197_v37, %v3213_v41  ;;  %v3393_v55 = vsel %vm3381_vm6, %v3371_v52, %v3374_v11  ;;  %v3385_v1 = vsel %vm3381_vm6, %v3365_v48, %v3368_v51 }
 0x375   :  { %v3392_v50 = vsel %vm3382_vm15, %v3389_v15, %v3391_v38  ;;  %v3394_v16 = vsel %vm3384_vm10, %v3380_v7, 1326507024  ;;  %v11950_v6 = vsub.s32 %v3513_v60, %v3516_v35  ;;  %v3387_v44 = vsel %vm3383_vm2, %v3371_v52, %v3386_v45  ;;  %v11999_v38 = vpop.permute.xlu1 %4201  ;;  %v12204_v35 = vld [vmem:[%s15457_s5 + $0x54] ss:$8 sps:$4 sm:$0xff]  }
 0x376   :  { %v3395_v12 = vsel %vm3383_vm2, %v3377_v49, %v3394_v16  ;;  %vm3143_vm13 = vcmp.lt.s32.totalorder %v11589_v0, 0  ;;  %v3220_v4 = vor.u32 4788187, %v3219_v61  ;;  %v16173_v11 = vrot.slane %v16159_v53, 1  ;;  %16178 = vst [vmem:[#allocation92_spill] sm:$0xff] %v11999_v38 }
 0x377   :  { %v3396_v28 = vsel %vm3382_vm15, %v3393_v55, %v3395_v12  ;;  %v11958_v37 = vmul.u32.u64.low %v11929_v36, %v3392_v50  ;;  %v11959_v41 = vmul.u32.u64.high %v11929_v36, %v3392_v50, %v11958_v37  ;;  %v3519_v51 = vsub.s32 0, %v11950_v6 }
 0x378   :  { %v4060_v60 = vsel %vm4034_vm1, %v4005_v9, %v16173_v11  ;;  %v11970_v52 = vmul.u32.u64.low %v11929_v36, %v3396_v28  ;;  %v11971_v49 = vmul.u32.u64.high %v11929_v36, %v3396_v28, %v11970_v52  ;;  %v11973_v61 = vpop.eup %7688  ;;  %v3216_v33 = vor.u32 %v3215_v47, %v3214_v13 }
 0x379   :  { %v3388_v20 = vsel %vm3382_vm15, %v3385_v1, %v3387_v44  ;;  %v3743_v7 = vpack.c.bf16 %v11390_v63, %v16109_v34  ;;  %v11980_v45 = vpack.c.bf16 %v11563_v27, %v11621_v10  ;;  %7690 = vsinq.f32 %v11845_v62  ;;  %v12001_v62 = vpop.permute.xlu0 %4196 }
 0x37a   :  { %v11984_v15 = vand.u32 3, %v11909_v30  ;;  %v16174_v56 = vand.u32 2147483647, %v11589_v0  ;;  %v16177_v46 = vrot.slane %v16125_v59, 1  ;;  %v7231_v48 = vmin.u32 %v3519_v51, %v11950_v6  ;;  %16179 = vst [vmem:[#allocation93_spill] sm:$0xff] %v12001_v62 }
 0x37b   :  { %v3221_v30 = vand.u32 2147483647, %v3220_v4  ;;  %v4137_v47 = vsub.f32 %v4060_v60, %v11888_v3  ;;  %v16180_v50 = vrot.slane %v16125_v59, 7  ;;  %v3407_v16 = vadd.s32 1, %v11959_v41  ;;  %7319 = vmatprep.mubr.bf16.mxu0 %v3743_v7  ;;  %4852 = vmatprep.mubr.bf16.mxu1 %v3743_v7 }
 0x37c   :  { %vm11988_vm0 = vcmp.le.f32.partialorder %v16174_v56, 0.7853982  ;;  %v4061_v13 = vsel %vm4034_vm1, %v16177_v46, %v4005_v9  ;;  %v3227_v9 = vsub.s32 4, %v11805_v19  ;;  %v3521_v1 = vclz %v7231_v48  ;;  %7320 = vmatmul.mubr.bf16.vlgmr.msra.gmra.mrb[0].mxu0 %v11980_v45  ;;  %v16182_v46 = vld [vmem:[#allocation31_spill] sm:$0xff]  ;;  %v12047_v48 = vpop.permute.xlu1 %4425 }
 0x37d   :  { %v4126_v55 = vsel %vm4099_vm9, %v16180_v50, %v15627_v42  ;;  %v3404_v44 = vmul.u32 %v11929_v36, %v3388_v20  ;;  %vm3406_vm4 = vc.u32 %v11971_v49, %v11958_v37  ;;  %v3223_v12 = vcvt.s32.f32 %v3216_v33  ;;  %v12027_v36 = vld [vmem:[%s15457_s5] ss:$8 sps:$4 sm:$0xff]   ;;  %v12049_v50 = vpop.permute.xlu0 %4420 }
 0x37e   :  { %v4136_v4 = vsub.f32 %v4061_v13, %v16125_v59  ;;  %v12021_v28 = vmul.f32 %v11713_v39, %v4360_v24  ;;  %v3408_v11 = vsel %vm3406_vm4, %v3407_v16, %v11959_v41  ;;  %5430 = vmatpush1.bf16.msra.mxu0 %v12027_v36  ;;  %vm3341_vm12 = vcmp.eq.s32.totalorder %v11984_v15, 0  ;;  %v16181_v33 = vld [vmem:[#allocation32_spill] sm:$0xff]  ;;  %16184 = vst [vmem:[#allocation31_spill] sm:$0xff] %v12049_v50 }
 0x37f   :  { %vm3344_vm11 = vcmp.eq.s32.totalorder %v11984_v15, 2  ;;  %v7232_v60 = vadd.s32 4294967294, %v3521_v1  ;;  %v3409_v51 = vadd.s32 %v3408_v11, %v3404_v44  ;;  %5431 = vmatprep.subr.bf16.mxu0 %v12035_v58  ;;  %v3224_v24 = vmul.f32 %v3223_v12, %v3221_v30  ;;  %16183 = vst [vmem:[#allocation32_spill] sm:$0xff] %v12047_v48  ;;  %v16187_v11 = vld [vmem:[#allocation17_spill] sm:$0xff] }
 0x380   :  { %v12039_v41 = vmul.f32 %v11670_v54, %v4137_v47  ;;  %v4361_v52 = vsub.f32 %v11888_v3, %v4126_v55  ;;  %v1158_v20 = vxor.u32 2147483648, %v16181_v33  ;;  %v3228_v7 = vsel %vm3143_vm13, %v3227_v9, %v11805_v19  ;;  %v16185_v47 = vld [vmem:[#allocation29_spill] sm:$0xff]  ;;  %v16186_v55 = vld [vmem:[#allocation28_spill] sm:$0xff]  ;;  %v12113_v27 = vpop.permute.xlu1 %4211 }
 0x381   :  { %vm7233_vm14 = vcmp.lt.s32.totalorder %v7232_v60, 0  ;;  %v3410_v56 = vadd.s32 536870912, %v3409_v51  ;;  %v1161_v13 = vxor.u32 2147483648, %v16182_v46  ;;  %v12052_v30 = vmul.f32 %v11687_v14, %v4136_v4  ;;  %v12060_v19 = vld [vmem:[%s15457_s5 + $0x10] ss:$8 sps:$4 sm:$0xff]   ;;  %16191 = vst [vmem:[#allocation94_spill] sm:$0xff] %v12113_v27  ;;  %v12115_v29 = vpop.permute.xlu0 %4206 }
 0x382   :  { %vm1156_vm7 = vcmp.lt.s32.totalorder %v16186_v55, 2  ;;  %vm1157_vm5 = vcmp.eq.s32.totalorder %v16186_v55, 0  ;;  %5432 = vmatpush1.bf16.msra.mxu0 %v12060_v19  ;;  %v3342_v9 = vxor.u32 2147483648, %v11973_v61  ;;  %v3345_v1 = vxor.u32 2147483648, %v11946_v17  ;;  %v12072_v4 = vld [vmem:[%s15457_s5 + $0x24] ss:$8 sps:$4 sm:$0xff]  }
 0x383   :  { %v12065_v44 = vsel %vm7233_vm14, 0, %v7232_v60  ;;  %v12067_v12 = vshrl.u32 %v3410_v56, 30  ;;  %5433 = vmatprep.subr.bf16.mxu0 %v12072_v4  ;;  %vm1153_vm3 = vweird.f32 %v16187_v11  ;;  %v3225_v5 = vxor.u32 2147483648, %v3224_v24  ;;  %v12083_v56 = vpop.eup %7690  ;;  %16192 = vst [vmem:[#allocation95_spill] sm:$0xff] %v12115_v29 }
 0x384   :  { %v3230_v42 = vsel %vm11988_vm0, 0, %v3228_v7  ;;  %vm1160_vm8 = vcmp.eq.s32.totalorder %v16186_v55, 2  ;;  %v12081_v60 = vpack.c.bf16 %v11888_v3, %v16125_v59  ;;  %16188 = vst [vmem:[#allocation28_spill] sm:$0xff] %v12083_v56  ;;  %vm3340_vm6 = vcmp.lt.s32.totalorder %v11984_v15, 2  ;;  %v16197_v56 = vld [vmem:[#allocation36_spill] sm:$0xff] }
 0x385   :  { %v12087_v16 = vmul.f32 %v11699_v23, %v4361_v52  ;;  %v3412_v39 = vshll.u32 %v12067_v12, 30  ;;  %v1159_v14 = vsel %vm1157_vm5, %v16182_v46, %v1158_v20  ;;  %v1162_v7 = vsel %vm1160_vm8, %v1161_v13, %v16181_v33  ;;  %v12102_v52 = vld [vmem:[%s15457_s5 + $0x20] ss:$8 sps:$4 sm:$0xff]   ;;  %v12120_v23 = vld [vmem:[%s15457_s5 + $0x34] ss:$8 sps:$4 sm:$0xff]  }
 0x386   :  { %v3529_v54 = vsub.s32 4294967266, %v12065_v44  ;;  %7323 = vmatprep.mubr.bf16.mxu0 %v12081_v60  ;;  %v4001_v59 = vrot.slane %v11390_v63, 1  ;;  %5434 = vmatpush1.bf16.msra.mxu0 %v12102_v52  ;;  %v3343_v33 = vsel %vm3341_vm12, %v11946_v17, %v3342_v9  ;;  %v3346_v20 = vsel %vm3344_vm11, %v3345_v1, %v11973_v61  ;;  %16193 = vst [vmem:[#allocation96_spill] sm:$0xff] %v12120_v23  ;;  %v12154_v55 = vld [vmem:[%s15457_s5 + $0x30] ss:$8 sps:$4 sm:$0xff]  }
 0x387   :  { %v3234_v46 = vadd.s32 3, %v3230_v42  ;;  %v12111_v13 = vsub.s32 %v3409_v51, %v3412_v39  ;;  %5435 = vmatprep.subr.bf16.mxu0 %v12120_v23  ;;  %v3226_v17 = vsel %vm3143_vm13, %v3225_v5, %v3224_v24  ;;  %vm3455_vm2 = vcmp.lt.s32.totalorder %v11780_v22, 0  ;;  %v16196_v24 = vld [vmem:[#allocation38_spill] sm:$0xff]  ;;  %v12183_v23 = vpop.permute.xlu1 %4435 }
 0x388   :  { %v3509_v39 = vadd.s32 %v11892_v43, %v11906_v26  ;;  %v16194_v42 = vrot.slane %v11621_v10, 1  ;;  %v16195_v51 = vrot.slane %v16109_v34, 1  ;;  %v1163_v5 = vsel %vm1156_vm7, %v1159_v14, %v1162_v7  ;;  %v16198_v43 = vld [vmem:[#allocation8_spill] sm:$0xff]  ;;  %16201 = vst [vmem:[#allocation38_spill] sm:$0xff] %v12154_v55  ;;  %v16257_v7 = vld [vmem:[#allocation47_spill] sm:$0xff] }
 0x389   :  { %16190 = vst [vmem:[#allocation17_spill] sm:$0xff] %v12111_v13  ;;  %v3415_v1 = vsub.s32 0, %v12111_v13  ;;  %v1366_v32 = vxor.u32 2147483648, %v16196_v24  ;;  %v1369_v29 = vxor.u32 2147483648, %v16197_v56  ;;  %vm1361_vm10 = vweird.f32 %v16198_v43 }
 0x38a   :  { %v4064_v61 = vsel %vm4034_vm1, %v4001_v59, %v16194_v42  ;;  %v4065_v9 = vsel %vm4034_vm1, %v16195_v51, %v4001_v59  ;;  %vm3337_vm15 = vweird.f32 %v11506_v18  ;;  %v3530_v26 = vadd.s32 127, %v3529_v54  ;;  %5436 = vmatpush1.bf16.msra.mxu0 %v12154_v55 }
 0x38b   :  { %v16199_v42 = vrot.slane %v16109_v34, 7  ;;  %v16200_v10 = vrot.slane %v16189_v57, 7  ;;  %v4132_v51 = vsub.f32 %v4065_v9, %v16109_v34  ;;  %v4133_v14 = vsub.f32 %v4064_v61, %v11390_v63  ;;  %v16205_v61 = vld [vmem:[#allocation34_spill] sm:$0xff]  ;;  %v16207_v63 = vld [vmem:[#allocation61_spill] sm:$0xff] }
 0x38c   :  { %v16202_v54 = vand.u32 2147483647, %v11780_v22  ;;  %v3525_v57 = vsub.s32 32, %v12065_v44  ;;  %v7227_v9 = vmin.u32 %v3415_v1, %v12111_v13  ;;  %vm1365_vm4 = vcmp.eq.s32.totalorder %v16205_v61, 0  ;;  %16209 = vst [vmem:[#allocation34_spill] sm:$0xff] %v12183_v23 }
 0x38d   :  { %v4131_v59 = vsel %vm4099_vm9, %v16200_v10, %v16199_v42  ;;  %v3539_v10 = vsub.s32 4, %v11938_v40  ;;  %v12170_v42 = vld [vmem:[%s15457_s5 + $0x44] ss:$8 sps:$4 sm:$0xff]   ;;  %vm1368_vm12 = vcmp.eq.s32.totalorder %v16205_v61, 2  ;;  %v4325_v27 = vmul.f32 %v16207_v63, %v4133_v14 }
 0x38e   :  { %vm12159_vm13 = vcmp.le.f32.partialorder %v16202_v54, 0.7853982  ;;  %16206 = vst [vmem:[#allocation36_spill] sm:$0xff] %v12170_v42  ;;  %5437 = vmatprep.subr.bf16.mxu0 %v12170_v42  ;;  %v4324_v54 = vmul.f32 %v11154_v21, %v4132_v51  ;;  %v4356_v48 = vsub.f32 %v16109_v34, %v4131_v59  ;;  %v3417_v62 = vclz %v7227_v9  ;;  %v12185_v42 = vpop.permute.xlu0 %4430  ;;  %v16211_v9 = vld [vmem:[#allocation65_spill] sm:$0xff] }
 0x38f   :  { %v12179_v1 = vsel %vm1153_vm3, nan, %v1163_v5  ;;  %v1367_v13 = vsel %vm1365_vm4, %v16197_v56, %v1366_v32  ;;  %v1370_v55 = vsel %vm1368_vm12, %v1369_v29, %v16196_v24  ;;  %16210 = vst [vmem:[#allocation97_spill] sm:$0xff] %v12185_v42  ;;  %v3347_v51 = vsel %vm3340_vm6, %v3343_v33, %v3346_v20  ;;  %v12196_v32 = vld [vmem:[%s15457_s5 + $0x40] ss:$8 sps:$4 sm:$0xff]  }
 0x390   :  { %16208 = vst [vmem:[#allocation8_spill] sm:$0xff] %v12179_v1  ;;  %v3229_v59 = vsel %vm11988_vm0, %v11589_v0, %v3226_v17  ;;  %v3531_v14 = vshll.u32 %v3530_v26, 23  ;;  %v4548_v11 = vmul.f32 %v16211_v9, %v4356_v48  ;;  %5438 = vmatpush1.bf16.msra.mxu0 %v12196_v32  ;;  %v3527_v29 = vshrl.u32 %v3509_v39, %v3525_v57  ;;  %v16212_v5 = vld [vmem:[#allocation23_spill] sm:$0xff]  ;;  %v12236_v26 = vpop.permute.xlu1 %4221 }
 0x391   :  { %v7228_v56 = vadd.s32 4294967294, %v3417_v62  ;;  %vm1364_vm11 = vcmp.lt.s32.totalorder %v16205_v61, 2  ;;  %v4581_v15 = vadd.f32 %v11533_v8, %v4325_v27  ;;  %5439 = vmatprep.subr.bf16.mxu0 %v12204_v35  ;;  %v4007_v48 = vrot.slane %v12179_v1, 1  ;;  %16216 = vst [vmem:[#allocation100_spill] sm:$0xff] %v12236_v26 }
 0x392   :  { %v4073_v33 = vrot.slane %v16159_v53, 7  ;;  %v1371_v20 = vsel %vm1364_vm11, %v1367_v13, %v1370_v55  ;;  %v4580_v17 = vadd.f32 %v4548_v11, %v4324_v54  ;;  %vm1569_vm0 = vweird.f32 %v16212_v5  ;;  %v12238_v55 = vpop.permute.xlu0 %4216 }
 0x393   :  { %v12210_v57 = vand.u32 3, %v3234_v46  ;;  %v3526_v8 = vshll.u32 %v11950_v6, %v12065_v44  ;;  %v3540_v27 = vsel %vm3455_vm2, %v3539_v10, %v11938_v40  ;;  %v15653_v62 = vrot.slane %v12179_v1, 7  ;;  %v12225_v46 = vld [vmem:[%s15457_s5 + $0x50] ss:$8 sps:$4 sm:$0xff]   ;;  %16217 = vst [vmem:[#allocation101_spill] sm:$0xff] %v12238_v55 }
 0x394   :  { %v3532_v39 = vor.u32 4788187, %v3531_v14  ;;  %vm7229_vm14 = vcmp.lt.s32.totalorder %v7228_v56, 0  ;;  %v4612_v24 = vpack.c.bf16 %v4581_v15, %v4580_v17  ;;  %v12220_v13 = vpack.c.bf16 %v12179_v1, %v16159_v53  ;;  %5440 = vmatpush1.bf16.msra.mxu0 %v12225_v46  ;;  %v12243_v10 = vld [vmem:[%s15457_s5 + $0x64] ss:$8 sps:$4 sm:$0xff]   ;;  %v16221_v15 = vld [vmem:[#allocation42_spill] sm:$0xff] }
 0x395   :  { %16213 = vst [vmem:[#allocation23_spill] sm:$0xff] %v12210_v57  ;;  %v12230_v6 = vsel %vm3337_vm15, nan, %v3347_v51  ;;  %7692 = vcosq.f32 %v3229_v59  ;;  %v3528_v40 = vor.u32 %v3527_v29, %v3526_v8  ;;  %v12234_v44 = vsel %vm1361_vm10, nan, %v1371_v20  ;;  %5441 = vmatprep.subr.bf16.mxu0 %v12243_v10  ;;  %v16222_v17 = vld [vmem:[#allocation37_spill] sm:$0xff]  ;;  %v16223_v8 = vld [vmem:[#allocation30_spill] sm:$0xff] }
 0x396   :  { %16214 = vst [vmem:[#allocation98_spill] sm:$0xff] %v12230_v6  ;;  %16215 = vst [vmem:[#allocation99_spill] sm:$0xff] %v12234_v44  ;;  %7694 = vsinq.f32 %v3229_v59  ;;  %v3542_v18 = vsel %vm12159_vm13, 0, %v3540_v27  ;;  %v16218_v61 = vrot.slane %v16185_v47, 1  ;;  %v16219_v54 = vrot.slane %v11888_v3, 7  ;;  %4853 = vmatmul.mubr.bf16.vlgmr.msra.gmra.mrb[0].mxu1 %v4612_v24  ;;  %7324 = vmatmul.mubr.bf16.gmra.mrb[4].mxu0 %v12220_v13  ;;  %v12317_v3 = vpop.permute.xlu1 %4445  ;;  %v12319_v63 = vpop.permute.xlu0 %4440 }
 0x397   :  { %v12262_v59 = vsel %vm7229_vm14, 0, %v7228_v56  ;;  %v16220_v14 = vrot.slane %v16159_v53, 1  ;;  %v12274_v29 = vsel %vm4099_vm9, %v4073_v33, %v15653_v62  ;;  %4862 = vmatprep.mubr.bf16.mxu1 %v11980_v45  ;;  %v1574_v20 = vxor.u32 2147483648, %v16221_v15  ;;  %6039 = vmatpush1.bf16.msra.mxu1 %v12027_v36  ;;  %v16229_v62 = vld [vmem:[#allocation35_spill] sm:$0xff]  ;;  %16230 = vst [vmem:[#allocation37_spill] sm:$0xff] %v12317_v3  ;;  %16231 = vst [vmem:[#allocation30_spill] sm:$0xff] %v12319_v63 }
 0x398   :  { %v12252_v43 = vsel %vm4034_vm1, %v4007_v48, %v16218_v61  ;;  %v12258_v51 = vsel %vm4099_vm9, %v16219_v54, %v4073_v33  ;;  %v3533_v56 = vand.u32 2147483647, %v3532_v39  ;;  %vm1573_vm7 = vcmp.eq.s32.totalorder %v16222_v17, 0  ;;  %v12288_v33 = vld [vmem:[%s15457_s5 + $0x60] ss:$8 sps:$4 sm:$0xff]   ;;  %6040 = vmatprep.subr.bf16.mxu1 %v12035_v58  ;;  %v16224_v39 = vld [vmem:[#allocation90_spill] sm:$0xff] }
 0x399   :  { %v12268_v11 = vsel %vm4034_vm1, %v16220_v14, %v4007_v48  ;;  %v1577_v27 = vxor.u32 2147483648, %v16223_v8  ;;  %v12283_v48 = vpack.c.bf16 %v12234_v44, %v16185_v47  ;;  %5442 = vmatpush1.bf16.msra.mxu0 %v12288_v33  ;;  %v3535_v45 = vcvt.s32.f32 %v3528_v40  ;;  %v12299_v61 = vld [vmem:[%s15457_s5 + $0x74] ss:$8 sps:$4 sm:$0xff]  }
 0x39a   :  { %v1575_v36 = vsel %vm1573_vm7, %v16223_v8, %v1574_v20  ;;  %vm1576_vm5 = vcmp.eq.s32.totalorder %v16222_v17, 2  ;;  %v4582_v24 = vadd.f32 %v16224_v39, %v11790_v25  ;;  %5443 = vmatprep.subr.bf16.mxu0 %v12299_v61  ;;  %v16225_v54 = vld [vmem:[#allocation18_spill] sm:$0xff]  ;;  %vm3351_vm8 = vcmp.lt.s32.totalorder %v11787_v31, 0  ;;  %v16226_v25 = vld [vmem:[#allocation83_spill] sm:$0xff]  ;;  %v16227_v14 = vld [vmem:[#allocation89_spill] sm:$0xff]  ;;  %v12381_v0 = vpop.permute.xlu0 %4226 }
 0x39b   :  { %vm1777_vm3 = vweird.f32 %v16225_v54  ;;  %v3425_v58 = vsub.s32 4294967266, %v12262_v59  ;;  %vm1572_vm6 = vcmp.lt.s32.totalorder %v16222_v17, 2  ;;  %v1578_v40 = vsel %vm1576_vm5, %v1577_v27, %v16221_v15  ;;  %7327 = vmatprep.mubr.bf16.mxu0 %v12283_v48  ;;  %6041 = vmatpush1.bf16.msra.mxu1 %v12060_v19 }
 0x39c   :  { %v4583_v20 = vadd.f32 %v16227_v14, %v16226_v25  ;;  %v12310_v8 = vadd.s32 3, %v3542_v18  ;;  %v12314_v39 = vadd.s32 %v11958_v37, %v11971_v49  ;;  %v15662_v9 = vrot.slane %v16229_v62, 1  ;;  %v12330_v37 = vld [vmem:[%s15457_s5 + $0x70] ss:$8 sps:$4 sm:$0xff]   ;;  %6042 = vmatprep.subr.bf16.mxu1 %v12072_v4  ;;  %v12351_v4 = vld [vmem:[%s15457_s5 + $0x84] ss:$8 sps:$4 sm:$0xff]  }
 0x39d   :  { %v1579_v21 = vsel %vm1572_vm6, %v1575_v36, %v1578_v40  ;;  %v3536_v15 = vmul.f32 %v3535_v45, %v3533_v56  ;;  %v4009_v17 = vrot.slane %v12234_v44, 1  ;;  %5444 = vmatpush1.bf16.msra.mxu0 %v12330_v37  ;;  %v16233_v49 = vand.u32 2147483647, %v11787_v31  ;;  %v16237_v40 = vld [vmem:[#allocation48_spill] sm:$0xff] }
 0x39e   :  { %16228 = vst [vmem:[#allocation42_spill] sm:$0xff] %v12310_v8  ;;  %v12325_v18 = vsel %vm1569_vm0, nan, %v1579_v21  ;;  %v4613_v27 = vpack.c.bf16 %v4583_v20, %v4582_v24  ;;  %v4139_v21 = vsub.f32 %v12252_v43, %v12179_v1  ;;  %v4138_v5 = vsub.f32 %v12268_v11, %v16159_v53  ;;  %5445 = vmatprep.subr.bf16.mxu0 %v12351_v4  ;;  %v16236_v11 = vld [vmem:[#allocation49_spill] sm:$0xff]  ;;  %v12377_v8 = vpop.permute.xlu1 %4231 }
 0x39f   :  { %16232 = vst [vmem:[#allocation90_spill] sm:$0xff] %v12325_v18  ;;  %vm12336_vm10 = vcmp.le.f32.partialorder %v16233_v49, 0.7853982  ;;  %v4363_v56 = vsub.f32 %v12179_v1, %v12274_v29  ;;  %v4362_v45 = vsub.f32 %v16159_v53, %v12258_v51  ;;  %v3426_v36 = vadd.s32 127, %v3425_v58  ;;  %v12360_v25 = vpop.eup %7692  ;;  %v16239_v58 = vld [vmem:[#allocation43_spill] sm:$0xff]  ;;  %16241 = vst [vmem:[#allocation89_spill] sm:$0xff] %v12377_v8  ;;  %6043 = vmatpush1.bf16.msra.mxu1 %v12102_v52 }
 0x3a0   :  { %4863 = vmatmul.mubr.bf16.gmra.mrb[4].mxu1 %v4613_v27  ;;  %v12356_v43 = vpack.c.bf16 %v12325_v18, %v16229_v62  ;;  %v1782_v24 = vxor.u32 2147483648, %v16236_v11  ;;  %v1785_v29 = vxor.u32 2147483648, %v16237_v40  ;;  %16238 = vst [vmem:[#allocation18_spill] sm:$0xff] %v12360_v25  ;;  %v3435_v51 = vsub.s32 4, %v12067_v12  ;;  %v12367_v27 = vpop.eup %7694  ;;  %16242 = vst [vmem:[#allocation49_spill] sm:$0xff] %v12381_v0 }
 0x3a1   :  { %v4075_v14 = vrot.slane %v16185_v47, 7  ;;  %v4076_v20 = vrot.slane %v12234_v44, 7  ;;  %4872 = vmatprep.mubr.bf16.mxu1 %v12081_v60  ;;  %vm1781_vm15 = vcmp.eq.s32.totalorder %v16239_v58, 0  ;;  %16240 = vst [vmem:[#allocation83_spill] sm:$0xff] %v12367_v27  ;;  %v3537_v49 = vxor.u32 2147483648, %v3536_v15 }
 0x3a2   :  { %v4056_v53 = vsel %vm4034_vm1, %v4009_v17, %v15662_v9  ;;  %7328 = vmatmul.mubr.bf16.gmra.mrb[8].mxu0 %v12356_v43  ;;  %v1783_v34 = vsel %vm1781_vm15, %v16237_v40, %v1782_v24  ;;  %vm1784_vm4 = vcmp.eq.s32.totalorder %v16239_v58, 2  ;;  %v3421_v6 = vsub.s32 32, %v12262_v59  ;;  %v12388_v9 = vld [vmem:[%s15457_s5 + $0x80] ss:$8 sps:$4 sm:$0xff]  }
 0x3a3   :  { %vm1780_vm12 = vcmp.lt.s32.totalorder %v16239_v58, 2  ;;  %v1786_v60 = vsel %vm1784_vm4, %v1785_v29, %v16236_v11  ;;  %v4584_v25 = vadd.f32 %v12021_v28, %v12052_v30  ;;  %5446 = vmatpush1.bf16.msra.mxu0 %v12388_v9  ;;  %v3427_v24 = vshll.u32 %v3426_v36, 23  ;;  %v12399_v28 = vld [vmem:[%s15457_s5 + $0x94] ss:$8 sps:$4 sm:$0xff]  }
 0x3a4   :  { %v12393_v40 = vmul.f32 %v11999_v38, %v4139_v21  ;;  %v4554_v11 = vmul.f32 %v12049_v50, %v4362_v45  ;;  %v1787_v29 = vsel %vm1780_vm12, %v1783_v34, %v1786_v60  ;;  %5447 = vmatprep.subr.bf16.mxu0 %v12399_v28  ;;  %v12405_v30 = vsel %vm3351_vm8, %v3435_v51, %v12067_v12  ;;  %v16243_v45 = vld [vmem:[#allocation96_spill] sm:$0xff]  ;;  %v12471_v50 = vpop.permute.xlu0 %4450 }
 0x3a5   :  { %v4141_v52 = vsub.f32 %v4056_v53, %v12234_v44  ;;  %v12410_v21 = vsel %vm1777_vm3, nan, %v1787_v29  ;;  %v4585_v34 = vadd.f32 %v12087_v16, %v12039_v41  ;;  %6044 = vmatprep.subr.bf16.mxu1 %v16243_v45  ;;  %v16244_v36 = vrot.slane %v16185_v47, 1  ;;  %v16246_v51 = vld [vmem:[#allocation40_spill] sm:$0xff]  ;;  %v12442_v45 = vld [vmem:[%s15457_s5 + $0x90] ss:$8 sps:$4 sm:$0xff]   ;;  %16253 = vst [vmem:[#allocation43_spill] sm:$0xff] %v12471_v50 }
 0x3a6   :  { %v12423_v12 = vsel %vm4099_vm9, %v4075_v14, %v4076_v20  ;;  %v16245_v53 = vrot.slane %v12179_v1, 7  ;;  %v12433_v41 = vpack.c.bf16 %v12410_v21, %v16246_v51  ;;  %v3538_v16 = vsel %vm3455_vm2, %v3537_v49, %v3536_v15  ;;  %v16248_v49 = vld [vmem:[#allocation93_spill] sm:$0xff]  ;;  %v12469_v15 = vpop.permute.xlu1 %4455 }
 0x3a7   :  { %v12419_v58 = vsel %vm4034_vm1, %v16244_v36, %v4009_v17  ;;  %v3423_v17 = vshrl.u32 %v12314_v39, %v3421_v6  ;;  %v4614_v29 = vpack.c.bf16 %v4585_v34, %v4584_v25  ;;  %5448 = vmatpush1.bf16.msra.mxu0 %v12442_v45  ;;  %v12446_v36 = vor.u32 4788187, %v3427_v24  ;;  %v16249_v39 = vld [vmem:[#allocation32_spill] sm:$0xff]  ;;  %v16250_v24 = vld [vmem:[#allocation17_spill] sm:$0xff]  ;;  %16252 = vst [vmem:[#allocation48_spill] sm:$0xff] %v12469_v15 }
 0x3a8   :  { %v12429_v54 = vsel %vm4099_vm9, %v16245_v53, %v4075_v14  ;;  %v16247_v14 = vld [vmem:[#allocation38_spill] sm:$0xff]  ;;  %v4330_v6 = vmul.f32 %v16248_v49, %v4138_v5  ;;  %v4555_v53 = vmul.f32 %v16249_v39, %v4363_v56  ;;  %7331 = vmatprep.mubr.bf16.mxu0 %v12433_v41  ;;  %v12457_v25 = vld [vmem:[%s15457_s5 + $0xa4] ss:$8 sps:$4 sm:$0xff]   ;;  %v3422_v34 = vshll.u32 %v16250_v24, %v12262_v59  ;;  %v12520_v57 = vpop.permute.xlu0 %4236 }
 0x3a9   :  { %6045 = vmatpush1.bf16.msra.mxu1 %v16247_v14  ;;  %5449 = vmatprep.subr.bf16.mxu0 %v12457_v25  ;;  %v16251_v14 = vld [vmem:[#allocation94_spill] sm:$0xff]  ;;  %v4140_v5 = vsub.f32 %v12419_v58, %v16185_v47  ;;  %v4365_v56 = vsub.f32 %v12234_v44, %v12423_v12  ;;  %v12476_v39 = vsel %vm12159_vm13, %v11780_v22, %v3538_v16  ;;  %v16254_v58 = vld [vmem:[#allocation56_spill] sm:$0xff]  ;;  %vm1989_vm2 = vcmp.eq.s32.totalorder %v16257_v7, 0  ;;  %v16258_v16 = vld [vmem:[#allocation55_spill] sm:$0xff] }
 0x3aa   :  { %v12463_v60 = vmul.f32 %v16251_v14, %v4141_v52  ;;  %4873 = vmatmul.mubr.bf16.gmra.mrb[8].mxu1 %v4614_v29  ;;  %v4364_v59 = vsub.f32 %v16185_v47, %v12429_v54  ;;  %v1990_v24 = vxor.u32 2147483648, %v16254_v58  ;;  %v16255_v12 = vld [vmem:[#allocation36_spill] sm:$0xff]  ;;  %v3424_v14 = vor.u32 %v3423_v17, %v3422_v34  ;;  %v12506_v34 = vld [vmem:[%s15457_s5 + $0xb4] ss:$8 sps:$4 sm:$0xff]   ;;  %v12518_v22 = vpop.permute.xlu1 %4241  ;;  %16264 = vst [vmem:[#allocation40_spill] sm:$0xff] %v12520_v57 }
 0x3ab   :  { %4882 = vmatprep.mubr.bf16.mxu1 %v12220_v13  ;;  %6046 = vmatprep.subr.bf16.mxu1 %v16255_v12  ;;  %v16256_v29 = vrot.slane %v16229_v62, 7  ;;  %v1993_v38 = vxor.u32 2147483648, %v16258_v16  ;;  %v12495_v54 = vld [vmem:[%s15457_s5 + $0xa0] ss:$8 sps:$4 sm:$0xff]   ;;  %v3429_v13 = vand.u32 2147483647, %v12446_v36  ;;  %v4586_v1 = vadd.f32 %v4554_v11, %v4330_v6 }
 0x3ac   :  { %5450 = vmatpush1.bf16.msra.mxu0 %v12495_v54  ;;  %v4011_v17 = vrot.slane %v12325_v18, 1  ;;  %vm1992_vm13 = vcmp.eq.s32.totalorder %v16257_v7, 2  ;;  %v16259_v12 = vld [vmem:[#allocation13_spill] sm:$0xff]  ;;  %vm1988_vm0 = vcmp.lt.s32.totalorder %v16257_v7, 2  ;;  %v16260_v36 = vld [vmem:[#allocation20_spill] sm:$0xff]  ;;  %16263 = vst [vmem:[#allocation96_spill] sm:$0xff] %v12518_v22  ;;  %7696 = vcosq.f32 %v12476_v39 }
 0x3ad   :  { %v12488_v49 = vsel %vm4099_vm9, %v4076_v20, %v16256_v29  ;;  %6047 = vmatpush1.bf16.msra.mxu1 %v12196_v32  ;;  %v1991_v20 = vsel %vm1989_vm2, %v16258_v16, %v1990_v24  ;;  %5451 = vmatprep.subr.bf16.mxu0 %v12506_v34  ;;  %vm1985_vm11 = vweird.f32 %v16259_v12  ;;  %v1994_v32 = vsel %vm1992_vm13, %v1993_v38, %v16254_v58  ;;  %v16261_v16 = vld [vmem:[#allocation54_spill] sm:$0xff]  ;;  %v16262_v52 = vld [vmem:[#allocation64_spill] sm:$0xff] }
 0x3ae   :  { %6048 = vmatprep.subr.bf16.mxu1 %v12204_v35  ;;  %v2198_v29 = vxor.u32 2147483648, %v16260_v36  ;;  %v1995_v24 = vsel %vm1988_vm0, %v1991_v20, %v1994_v32  ;;  %vm2197_vm14 = vcmp.eq.s32.totalorder %v16261_v16, 0  ;;  %v2201_v44 = vxor.u32 2147483648, %v16262_v52  ;;  %v12528_v58 = vld [vmem:[%s15457_s5 + $0xb0] ss:$8 sps:$4 sm:$0xff]   ;;  %v16265_v6 = vld [vmem:[#allocation44_spill] sm:$0xff] }
 0x3af   :  { %v12516_v47 = vsel %vm1985_vm11, nan, %v1995_v24  ;;  %vm2200_vm7 = vcmp.eq.s32.totalorder %v16261_v16, 2  ;;  %v4587_v38 = vadd.f32 %v4555_v53, %v12393_v40  ;;  %v15672_v11 = vrot.slane %v12325_v18, 7  ;;  %v12542_v40 = vld [vmem:[%s15457_s5 + $0xc4] ss:$8 sps:$4 sm:$0xff]  }
 0x3b0   :  { %v2199_v35 = vsel %vm2197_vm14, %v16262_v52, %v2198_v29  ;;  %5452 = vmatpush1.bf16.msra.mxu0 %v12528_v58  ;;  %v12535_v7 = vpack.c.bf16 %v12516_v47, %v16265_v6  ;;  %vm2196_vm5 = vcmp.lt.s32.totalorder %v16261_v16, 2  ;;  %v2202_v52 = vsel %vm2200_vm7, %v2201_v44, %v16260_v36  ;;  %v16266_v53 = vld [vmem:[#allocation39_spill] sm:$0xff] }
 0x3b1   :  { %6049 = vmatpush1.bf16.msra.mxu1 %v12225_v46  ;;  %5453 = vmatprep.subr.bf16.mxu0 %v12542_v40  ;;  %v3431_v46 = vcvt.s32.f32 %v3424_v14  ;;  %vm2193_vm3 = vweird.f32 %v16266_v53  ;;  %v2203_v20 = vsel %vm2196_vm5, %v2199_v35, %v2202_v52  ;;  %v4615_v12 = vpack.c.bf16 %v4587_v38, %v4586_v1  ;;  %v16267_v32 = vld [vmem:[#allocation95_spill] sm:$0xff]  ;;  %v16270_v35 = vld [vmem:[#allocation52_spill] sm:$0xff] }
 0x3b2   :  { %6050 = vmatprep.subr.bf16.mxu1 %v12243_v10  ;;  %v12548_v29 = vmul.f32 %v16267_v32, %v4140_v5  ;;  %v16268_v24 = vrot.slane %v16246_v51, 1  ;;  %v4366_v36 = vsub.f32 %v16229_v62, %v12488_v49  ;;  %7332 = vmatmul.mubr.bf16.gmra.mrb[12].mxu0 %v12535_v7  ;;  %v12557_v16 = vsel %vm2193_vm3, nan, %v2203_v20  ;;  %v12593_v20 = vpop.permute.xlu1 %4465 }
 0x3b3   :  { %v12559_v10 = vmul.f32 %v3431_v46, %v3429_v13  ;;  %v12562_v14 = vmul.f32 %v12183_v23, %v4365_v56  ;;  %v16269_v1 = vrot.slane %v16229_v62, 1  ;;  %v12570_v38 = vpack.c.bf16 %v12557_v16, %v16270_v35  ;;  %4883 = vmatmul.mubr.bf16.gmra.mrb[12].mxu1 %v4615_v12  ;;  %v12587_v46 = vld [vmem:[%s15457_s5 + $0xc0] ss:$8 sps:$4 sm:$0xff]   ;;  %16274 = vst [vmem:[#allocation17_spill] sm:$0xff] %v12593_v20  ;;  %v12595_v12 = vpop.permute.xlu0 %4460 }
 0x3b4   :  { %v4054_v44 = vsel %vm4034_vm1, %v4011_v17, %v16268_v24  ;;  %v12574_v49 = vmul.f32 %v12185_v42, %v4364_v59  ;;  %v16272_v56 = vrot.slane %v16229_v62, 7  ;;  %4892 = vmatprep.mubr.bf16.mxu1 %v12283_v48  ;;  %5454 = vmatpush1.bf16.msra.mxu0 %v12587_v46  ;;  %16275 = vst [vmem:[#allocation56_spill] sm:$0xff] %v12595_v12  ;;  %v16276_v48 = vld [vmem:[#allocation53_spill] sm:$0xff]  ;;  %7698 = vsinq.f32 %v12476_v39 }
 0x3b5   :  { %v4055_v5 = vsel %vm4034_vm1, %v16269_v1, %v4011_v17  ;;  %16271 = vst [vmem:[#allocation38_spill] sm:$0xff] %v12570_v38  ;;  %v16273_v17 = vld [vmem:[#allocation58_spill] sm:$0xff]  ;;  %v4143_v59 = vsub.f32 %v4054_v44, %v12325_v18  ;;  %7335 = vmatprep.mubr.bf16.mxu0 %v12570_v38  ;;  %vm2301_vm6 = vcmp.eq.s32.totalorder %v16276_v48, 0  ;;  %v16277_v24 = vld [vmem:[#allocation57_spill] sm:$0xff]  ;;  %v12607_v53 = vmul.f32 %v12319_v63, %v4366_v36  ;;  %v16278_v38 = vld [vmem:[#allocation4_spill] sm:$0xff] }
 0x3b6   :  { %v4120_v13 = vsel %vm4099_vm9, %v16272_v56, %v15672_v11  ;;  %v2302_v52 = vxor.u32 2147483648, %v16273_v17  ;;  %v2305_v1 = vxor.u32 2147483648, %v16277_v24  ;;  %v12602_v56 = vld [vmem:[%s15457_s5 + $0xd4] ss:$8 sps:$4 sm:$0xff]   ;;  %v4142_v44 = vsub.f32 %v4055_v5, %v16229_v62  ;;  %6051 = vmatpush1.bf16.msra.mxu1 %v12288_v33  ;;  %v16279_v36 = vld [vmem:[#allocation67_spill] sm:$0xff]  ;;  %v16281_v5 = vld [vmem:[#allocation12_spill] sm:$0xff]  ;;  %v12647_v63 = vpop.permute.xlu1 %4251 }
 0x3b7   :  { %5455 = vmatprep.subr.bf16.mxu0 %v12602_v56  ;;  %vm2304_vm15 = vcmp.eq.s32.totalorder %v16276_v48, 2  ;;  %v3433_v42 = vxor.u32 2147483648, %v12559_v10  ;;  %v4367_v23 = vsub.f32 %v12325_v18, %v4120_v13  ;;  %v2406_v27 = vxor.u32 2147483648, %v16278_v38  ;;  %6052 = vmatprep.subr.bf16.mxu1 %v12299_v61  ;;  %v12624_v33 = vld [vmem:[%s15457_s5 + $0xd0] ss:$8 sps:$4 sm:$0xff]   ;;  %16284 = vst [vmem:[#allocation36_spill] sm:$0xff] %v12647_v63 }
 0x3b8   :  { %v2303_v11 = vsel %vm2301_vm6, %v16277_v24, %v2302_v52  ;;  %v2306_v32 = vsel %vm2304_vm15, %v2305_v1, %v16273_v17  ;;  %vm2300_vm4 = vcmp.lt.s32.totalorder %v16276_v48, 2  ;;  %vm2405_vm12 = vcmp.eq.s32.totalorder %v16279_v36, 0  ;;  %v16280_v52 = vld [vmem:[#allocation69_spill] sm:$0xff]  ;;  %5456 = vmatpush1.bf16.msra.mxu0 %v12624_v33  ;;  %v12635_v48 = vld [vmem:[%s15457_s5 + $0xe4] ss:$8 sps:$4 sm:$0xff]   ;;  %v16286_v62 = vld [vmem:[#allocation10_spill] sm:$0xff] }
 0x3b9   :  { %v2409_v24 = vxor.u32 2147483648, %v16280_v52  ;;  %v12628_v13 = vmul.f32 %v12236_v26, %v4143_v59  ;;  %v2307_v17 = vsel %vm2300_vm4, %v2303_v11, %v2306_v32  ;;  %v2407_v61 = vsel %vm2405_vm12, %v16280_v52, %v2406_v27  ;;  %5457 = vmatprep.subr.bf16.mxu0 %v12635_v48  ;;  %v16282_v27 = vld [vmem:[#allocation33_spill] sm:$0xff]  ;;  %v12649_v26 = vpop.permute.xlu0 %4246 }
 0x3ba   :  { %vm2408_vm2 = vcmp.eq.s32.totalorder %v16279_v36, 2  ;;  %v12639_v1 = vmul.f32 %v12238_v55, %v4142_v44  ;;  %vm2404_vm13 = vcmp.lt.s32.totalorder %v16279_v36, 2  ;;  %v2510_v11 = vxor.u32 2147483648, %v16281_v5  ;;  %6053 = vmatpush1.bf16.msra.mxu1 %v12330_v37  ;;  %v16283_v32 = vld [vmem:[#allocation45_spill] sm:$0xff]  ;;  %16285 = vst [vmem:[#allocation47_spill] sm:$0xff] %v12649_v26 }
 0x3bb   :  { %v2410_v59 = vsel %vm2408_vm2, %v2409_v24, %v16278_v38  ;;  %vm2297_vm11 = vweird.f32 %v16282_v27  ;;  %vm2401_vm0 = vweird.f32 %v16283_v32  ;;  %v2513_v44 = vxor.u32 2147483648, %v16286_v62  ;;  %6054 = vmatprep.subr.bf16.mxu1 %v12351_v4  ;;  %v16287_v24 = vld [vmem:[#allocation60_spill] sm:$0xff]  ;;  %v12677_v27 = vld [vmem:[%s15457_s5 + $0xf4] ss:$8 sps:$4 sm:$0xff]   ;;  %v12680_v32 = vpop.eup %7696 }
 0x3bc   :  { %v2411_v52 = vsel %vm2404_vm13, %v2407_v61, %v2410_v59  ;;  %v12653_v36 = vsel %vm2297_vm11, nan, %v2307_v17  ;;  %vm2509_vm14 = vcmp.eq.s32.totalorder %v16287_v24, 0  ;;  %vm2512_vm7 = vcmp.eq.s32.totalorder %v16287_v24, 2  ;;  %v12662_v37 = vld [vmem:[%s15457_s5 + $0xe0] ss:$8 sps:$4 sm:$0xff]   ;;  %16289 = vst [vmem:[#allocation13_spill] sm:$0xff] %v12680_v32 }
 0x3bd   :  { %v12655_v38 = vsel %vm2401_vm0, nan, %v2411_v52  ;;  %5458 = vmatpush1.bf16.msra.mxu0 %v12662_v37  ;;  %v12666_v61 = vmul.f32 %v12317_v3, %v4367_v23  ;;  %v2511_v17 = vsel %vm2509_vm14, %v16286_v62, %v2510_v11  ;;  %v2514_v59 = vsel %vm2512_vm7, %v2513_v44, %v16281_v5  ;;  %v16292_v44 = vld [vmem:[#allocation14_spill] sm:$0xff] }
 0x3be   :  { %v12670_v4 = vpack.c.bf16 %v12655_v38, %v12653_v36  ;;  %5459 = vmatprep.subr.bf16.mxu0 %v12677_v27  ;;  %v12685_v23 = vsel %vm3351_vm8, %v3433_v42, %v12559_v10  ;;  %v4013_v52 = vrot.slane %v12410_v21, 1  ;;  %v16290_v62 = vrot.slane %v16246_v51, 7  ;;  %6055 = vmatpush1.bf16.msra.mxu1 %v12388_v9  ;;  %v16293_v42 = vld [vmem:[#allocation22_spill] sm:$0xff]  ;;  %v16294_v10 = vld [vmem:[#allocation15_spill] sm:$0xff] }
 0x3bf   :  { %v16291_v5 = vrot.slane %v12325_v18, 7  ;;  %v2614_v3 = vxor.u32 2147483648, %v16292_v44  ;;  %vm2508_vm8 = vcmp.lt.s32.totalorder %v16287_v24, 2  ;;  %vm2613_vm5 = vcmp.eq.s32.totalorder %v16293_v42, 0  ;;  %6056 = vmatprep.subr.bf16.mxu1 %v12399_v28 }
 0x3c0   :  { %16288 = vst [vmem:[#allocation55_spill] sm:$0xff] %v12670_v4  ;;  %7336 = vmatmul.mubr.bf16.gmra.mrb[16].mxu0 %v12670_v4  ;;  %v2617_v32 = vxor.u32 2147483648, %v16294_v10  ;;  %v2515_v18 = vsel %vm2508_vm8, %v2511_v17, %v2514_v59  ;;  %vm2616_vm3 = vcmp.eq.s32.totalorder %v16293_v42, 2  ;;  %v4588_v9 = vadd.f32 %v12574_v49, %v12548_v29  ;;  %v12722_v29 = vpop.permute.xlu0 %4470  ;;  %v12727_v49 = vld [vmem:[%s15457_s5 + $0x4] ss:$8 sps:$4 sm:$0xff]  }
 0x3c1   :  { %v12694_v11 = vsel %vm4099_vm9, %v16291_v5, %v16290_v62  ;;  %v2615_v62 = vsel %vm2613_vm5, %v16294_v10, %v2614_v3  ;;  %v12711_v5 = vld [vmem:[%s15457_s5 + $0xf0] ss:$8 sps:$4 sm:$0xff]   ;;  %vm2612_vm6 = vcmp.lt.s32.totalorder %v16293_v42, 2  ;;  %v12718_v3 = vpop.permute.xlu1 %4475  ;;  %v4589_v17 = vadd.f32 %v12562_v14, %v12463_v60  ;;  %16296 = vst [vmem:[#allocation54_spill] sm:$0xff] %v12722_v29  ;;  %16297 = vst [vmem:[#allocation64_spill] sm:$0xff] %v12727_v49 }
 0x3c2   :  { %5460 = vmatpush1.bf16.msra.mxu0 %v12711_v5  ;;  %v2618_v28 = vsel %vm2616_vm3, %v2617_v32, %v16292_v44  ;;  %16295 = vst [vmem:[#allocation20_spill] sm:$0xff] %v12718_v3  ;;  %v16298_v59 = vrot.slane %v16265_v6, 1  ;;  %v16299_v32 = vld [vmem:[#allocation41_spill] sm:$0xff]  ;;  %v16300_v44 = vld [vmem:[#allocation50_spill] sm:$0xff]  ;;  %6057 = vmatpush1.bf16.msra.mxu1 %v12442_v45  ;;  %v16301_v60 = vrot.slane %v16246_v51, 1 }
 0x3c3   :  { %6647 = vmatprep.subr.bf16.mxu0 %v12727_v49  ;;  %vm2505_vm15 = vweird.f32 %v16299_v32  ;;  %vm2609_vm4 = vweird.f32 %v16300_v44  ;;  %v2619_v10 = vsel %vm2612_vm6, %v2615_v62, %v2618_v28  ;;  %v4616_v4 = vpack.c.bf16 %v4589_v17, %v4588_v9  ;;  %6058 = vmatprep.subr.bf16.mxu1 %v12457_v25  ;;  %v16305_v28 = vld [vmem:[#allocation75_spill] sm:$0xff]  ;;  %v16307_v25 = vld [vmem:[#allocation73_spill] sm:$0xff]  ;;  %v16310_v9 = vld [vmem:[#allocation80_spill] sm:$0xff] }
 0x3c4   :  { %v4052_v42 = vsel %vm4034_vm1, %v4013_v52, %v16298_v59  ;;  %v4053_v14 = vsel %vm4034_vm1, %v16301_v60, %v4013_v52  ;;  %v12741_v24 = vsel %vm2505_vm15, nan, %v2515_v18  ;;  %v12743_v55 = vsel %vm2609_vm4, nan, %v2619_v10  ;;  %v16306_v18 = vld [vmem:[#allocation16_spill] sm:$0xff]  ;;  %v12774_v3 = vpop.permute.xlu0 %4256 }
 0x3c5   :  { %16302 = vst [vmem:[#allocation44_spill] sm:$0xff] %v12743_v55  ;;  %v16303_v59 = vrot.slane %v12410_v21, 7  ;;  %v16304_v32 = vrot.slane %v16246_v51, 7  ;;  %v12754_v45 = vpack.c.bf16 %v12743_v55, %v12741_v24  ;;  %v2718_v52 = vxor.u32 2147483648, %v16305_v28  ;;  %4893 = vmatmul.mubr.bf16.gmra.mrb[16].mxu1 %v4616_v4  ;;  %v16309_v4 = vld [vmem:[#allocation3_spill] sm:$0xff]  ;;  %v12772_v29 = vpop.permute.xlu1 %4261  ;;  %16312 = vst [vmem:[#allocation52_spill] sm:$0xff] %v12774_v3 }
 0x3c6   :  { %v2721_v44 = vxor.u32 2147483648, %v16306_v18  ;;  %v4145_v10 = vsub.f32 %v4052_v42, %v12410_v21  ;;  %vm2717_vm12 = vcmp.eq.s32.totalorder %v16307_v25, 0  ;;  %vm2720_vm2 = vcmp.eq.s32.totalorder %v16307_v25, 2  ;;  %4902 = vmatprep.mubr.bf16.mxu1 %v12356_v43  ;;  %16311 = vst [vmem:[#allocation39_spill] sm:$0xff] %v12772_v29  ;;  %6059 = vmatpush1.bf16.msra.mxu1 %v12495_v54  ;;  %v16313_v42 = vld [vmem:[#allocation46_spill] sm:$0xff] }
 0x3c7   :  { %v4118_v62 = vsel %vm4099_vm9, %v16304_v32, %v16303_v59  ;;  %v4081_v17 = vrot.slane %v16265_v6, 7  ;;  %7339 = vmatprep.mubr.bf16.mxu0 %v12754_v45  ;;  %v2719_v60 = vsel %vm2717_vm12, %v16306_v18, %v2718_v52  ;;  %v16308_v32 = vld [vmem:[#allocation81_spill] sm:$0xff]  ;;  %vm2716_vm13 = vcmp.lt.s32.totalorder %v16307_v25, 2  ;;  %6060 = vmatprep.subr.bf16.mxu1 %v12506_v34 }
 0x3c8   :  { %v2722_v59 = vsel %vm2720_vm2, %v2721_v44, %v16305_v28  ;;  %v2822_v55 = vxor.u32 2147483648, %v16308_v32  ;;  %vm2821_vm11 = vcmp.eq.s32.totalorder %v16309_v4, 0  ;;  %v2825_v49 = vxor.u32 2147483648, %v16310_v9 }
 0x3c9   :  { %v4015_v43 = vrot.slane %v12516_v47, 1  ;;  %v2723_v52 = vsel %vm2716_vm13, %v2719_v60, %v2722_v59  ;;  %vm2824_vm0 = vcmp.eq.s32.totalorder %v16309_v4, 2  ;;  %vm2820_vm14 = vcmp.lt.s32.totalorder %v16309_v4, 2  ;;  %v16314_v60 = vld [vmem:[#allocation59_spill] sm:$0xff] }
 0x3ca   :  { %v2823_v28 = vsel %vm2821_vm11, %v16310_v9, %v2822_v55  ;;  %v2826_v18 = vsel %vm2824_vm0, %v2825_v49, %v16308_v32  ;;  %v4590_v44 = vadd.f32 %v12607_v53, %v12639_v1  ;;  %v4591_v25 = vadd.f32 %v12666_v61, %v12628_v13  ;;  %6061 = vmatpush1.bf16.msra.mxu1 %v12528_v58 }
 0x3cb   :  { %v4144_v54 = vsub.f32 %v4053_v14, %v16246_v51  ;;  %vm2713_vm7 = vweird.f32 %v16313_v42  ;;  %vm2817_vm8 = vweird.f32 %v16314_v60  ;;  %v2827_v55 = vsel %vm2820_vm14, %v2823_v28, %v2826_v18  ;;  %6062 = vmatprep.subr.bf16.mxu1 %v12542_v40  ;;  %v12830_v28 = vpop.permute.xlu1 %4485  ;;  %v12832_v40 = vpop.permute.xlu0 %4480  ;;  %v16323_v60 = vld [vmem:[#allocation78_spill] sm:$0xff] }
 0x3cc   :  { %v4369_v9 = vsub.f32 %v12410_v21, %v4118_v62  ;;  %v16315_v34 = vrot.slane %v12516_v47, 7  ;;  %v12795_v59 = vsel %vm2713_vm7, nan, %v2723_v52  ;;  %v12797_v53 = vsel %vm2817_vm8, nan, %v2827_v55  ;;  %16321 = vst [vmem:[#allocation53_spill] sm:$0xff] %v12830_v28  ;;  %16322 = vst [vmem:[#allocation57_spill] sm:$0xff] %v12832_v40 }
 0x3cd   :  { %16316 = vst [vmem:[#allocation58_spill] sm:$0xff] %v12797_v53  ;;  %v16317_v13 = vrot.slane %v16270_v35, 1  ;;  %v16318_v61 = vrot.slane %v12410_v21, 7  ;;  %v12812_v62 = vpack.c.bf16 %v12797_v53, %v12795_v59  ;;  %v4617_v32 = vpack.c.bf16 %v4591_v25, %v4590_v44 }
 0x3ce   :  { %v4116_v49 = vsel %vm4099_vm9, %v4081_v17, %v16315_v34  ;;  %v12820_v58 = vsel %vm12336_vm10, %v11787_v31, %v12685_v23  ;;  %v16319_v42 = vsub.f32 %v16246_v51, %v12694_v11  ;;  %v16320_v4 = vrot.slane %v16265_v6, 1  ;;  %6063 = vmatpush1.bf16.msra.mxu1 %v12587_v46  ;;  %v16324_v34 = vld [vmem:[#allocation21_spill] sm:$0xff] }
 0x3cf   :  { %v12804_v1 = vsel %vm4034_vm1, %v4015_v43, %v16317_v13  ;;  %v4117_v14 = vsel %vm4099_vm9, %v16318_v61, %v4081_v17  ;;  %v4337_v39 = vmul.f32 %v12377_v8, %v4145_v10  ;;  %v4336_v18 = vmul.f32 %v12381_v0, %v4144_v54  ;;  %7340 = vmatmul.mubr.bf16.gmra.mrb[20].mxu0 %v12812_v62 }
 0x3d0   :  { %v4560_v17 = vmul.f32 %v12471_v50, %v16319_v42  ;;  %v4051_v52 = vsel %vm4034_vm1, %v16320_v4, %v4015_v43  ;;  %v4371_v23 = vsub.f32 %v12516_v47, %v4116_v49  ;;  %v4017_v44 = vrot.slane %v12557_v16, 1  ;;  %4903 = vmatmul.mubr.bf16.gmra.mrb[20].mxu1 %v4617_v32  ;;  %v16325_v49 = vld [vmem:[#allocation77_spill] sm:$0xff]  ;;  %6064 = vmatprep.subr.bf16.mxu1 %v12602_v56  ;;  %v16327_v42 = vld [vmem:[#allocation28_spill] sm:$0xff] }
 0x3d1   :  { %v4561_v11 = vmul.f32 %v12469_v15, %v4369_v9  ;;  %v4147_v43 = vsub.f32 %v12804_v1, %v12516_v47  ;;  %v4370_v25 = vsub.f32 %v16265_v6, %v4117_v14  ;;  %4912 = vmatprep.mubr.bf16.mxu1 %v12433_v41  ;;  %v2926_v10 = vxor.u32 2147483648, %v16323_v60 }
 0x3d2   :  { %v4146_v54 = vsub.f32 %v4051_v52, %v16265_v6  ;;  %v4563_v55 = vmul.f32 %v12593_v20, %v4371_v23  ;;  %vm2925_vm5 = vcmp.eq.s32.totalorder %v16324_v34, 0  ;;  %v2929_v13 = vxor.u32 2147483648, %v16325_v49  ;;  %v12863_v52 = vpop.permute.xlu1 %4271  ;;  %v12865_v23 = vpop.permute.xlu0 %4266  ;;  %6065 = vmatpush1.bf16.msra.mxu1 %v12624_v33 }
 0x3d3   :  { %v4562_v9 = vmul.f32 %v12595_v12, %v4370_v25  ;;  %v4018_v1 = vrot.slane %v12653_v36, 1  ;;  %v2927_v41 = vsel %vm2925_vm5, %v16325_v49, %v2926_v10  ;;  %vm2928_vm3 = vcmp.eq.s32.totalorder %v16324_v34, 2  ;;  %16328 = vst [vmem:[#allocation4_spill] sm:$0xff] %v12863_v52  ;;  %16329 = vst [vmem:[#allocation67_spill] sm:$0xff] %v12865_v23  ;;  %v16330_v25 = vld [vmem:[#allocation91_spill] sm:$0xff]  ;;  %6066 = vmatprep.subr.bf16.mxu1 %v12635_v48 }
 0x3d4   :  { %v16326_v46 = vrot.slane %v16270_v35, 1  ;;  %v2930_v32 = vsel %vm2928_vm3, %v2929_v13, %v16323_v60  ;;  %v3030_v4 = vxor.u32 2147483648, %v16327_v42  ;;  %v4083_v56 = vrot.slane %v16270_v35, 7  ;;  %v16331_v10 = vld [vmem:[#allocation7_spill] sm:$0xff] }
 0x3d5   :  { %vm2924_vm6 = vcmp.lt.s32.totalorder %v16324_v34, 2  ;;  %vm3029_vm15 = vcmp.eq.s32.totalorder %v16330_v25, 0  ;;  %v3033_v49 = vxor.u32 2147483648, %v16331_v10  ;;  %vm3032_vm4 = vcmp.eq.s32.totalorder %v16330_v25, 2 }
 0x3d6   :  { %v4049_v61 = vsel %vm4034_vm1, %v16326_v46, %v4017_v44  ;;  %v2931_v46 = vsel %vm2924_vm6, %v2927_v41, %v2930_v32  ;;  %v3031_v14 = vsel %vm3029_vm15, %v16331_v10, %v3030_v4  ;;  %v4592_v60 = vadd.f32 %v4560_v17, %v4336_v18  ;;  %v16333_v32 = vld [vmem:[#allocation51_spill] sm:$0xff]  ;;  %v16334_v17 = vld [vmem:[#allocation68_spill] sm:$0xff]  ;;  %v12886_v18 = vpop.eup %7698  ;;  %6067 = vmatpush1.bf16.msra.mxu1 %v12662_v37 }
 0x3d7   :  { %v4048_v13 = vsel %vm4034_vm1, %v4017_v44, %v4018_v1  ;;  %vm3028_vm12 = vcmp.lt.s32.totalorder %v16330_v25, 2  ;;  %v3034_v34 = vsel %vm3032_vm4, %v3033_v49, %v16327_v42  ;;  %v4593_v12 = vadd.f32 %v4561_v11, %v4337_v39  ;;  %6068 = vmatprep.subr.bf16.mxu1 %v12677_v27 }
 0x3d8   :  { %v16332_v33 = vrot.slane %v12557_v16, 7  ;;  %vm2921_vm2 = vweird.f32 %v16333_v32  ;;  %vm3025_vm13 = vweird.f32 %v16334_v17  ;;  %v3035_v48 = vsel %vm3028_vm12, %v3031_v14, %v3034_v34 }
 0x3d9   :  { %v16335_v4 = vrot.slane %v12516_v47, 7  ;;  %v12892_v25 = vsel %vm2921_vm2, nan, %v2931_v46  ;;  %v12894_v39 = vsel %vm3025_vm13, nan, %v3035_v48  ;;  %v4618_v11 = vpack.c.bf16 %v4593_v12, %v4592_v60  ;;  %v12909_v46 = vpop.permute.xlu1 %4495  ;;  %v16341_v48 = vld [vmem:[#allocation20_spill] sm:$0xff] }
 0x3da   :  { %v4114_v41 = vsel %vm4099_vm9, %v4083_v56, %v16332_v33  ;;  %16336 = vst [vmem:[#allocation69_spill] sm:$0xff] %v12892_v25  ;;  %16337 = vst [vmem:[#allocation12_spill] sm:$0xff] %v12894_v39  ;;  %7700 = vcosq.f32 %v12820_v58  ;;  %v4339_v42 = vmul.f32 %v12518_v22, %v4147_v43  ;;  %v4338_v14 = vmul.f32 %v12520_v57, %v4146_v54  ;;  %v12911_v43 = vpop.permute.xlu0 %4490 }
 0x3db   :  { %v4115_v44 = vsel %vm4099_vm9, %v16335_v4, %v4083_v56  ;;  %v12902_v10 = vpack.c.bf16 %v12894_v39, %v12892_v25  ;;  %v4149_v56 = vsub.f32 %v4048_v13, %v12557_v16  ;;  %v4148_v49 = vsub.f32 %v4049_v61, %v16270_v35  ;;  %16338 = vst [vmem:[#allocation33_spill] sm:$0xff] %v12909_v46 }
 0x3dc   :  { %v15699_v12 = vrot.slane %v12741_v24, 1  ;;  %v4019_v37 = vrot.slane %v12655_v38, 1  ;;  %4913 = vmatmul.mubr.bf16.gmra.mrb[24].mxu1 %v4618_v11  ;;  %16339 = vst [vmem:[#allocation45_spill] sm:$0xff] %v12911_v43  ;;  %v4373_v54 = vsub.f32 %v12557_v16, %v4114_v41  ;;  %v4372_v60 = vsub.f32 %v16270_v35, %v4115_v44  ;;  %v16342_v44 = vld [vmem:[#allocation54_spill] sm:$0xff] }
 0x3dd   :  { %v4085_v34 = vrot.slane %v12653_v36, 7  ;;  %v15698_v27 = vrot.slane %v12655_v38, 7  ;;  %7343 = vmatprep.mubr.bf16.mxu0 %v12902_v10  ;;  %4922 = vmatprep.mubr.bf16.mxu1 %v12535_v7  ;;  %7702 = vsinq.f32 %v12820_v58  ;;  %v16340_v61 = vsel %vm12336_vm10, 0, %v12405_v30  ;;  %v16343_v7 = vld [vmem:[#allocation64_spill] sm:$0xff] }
 0x3de   :  { %v3442_v13 = vadd.s32 3, %v16340_v61  ;;  %v4594_v33 = vadd.f32 %v4562_v9, %v4338_v14  ;;  %v4595_v32 = vadd.f32 %v4563_v55, %v4339_v42  ;;  %6069 = vmatpush1.bf16.msra.mxu1 %v12711_v5  ;;  %v4341_v41 = vmul.f32 %v12647_v63, %v4149_v56  ;;  %v16344_v5 = vld [vmem:[#allocation26_spill] sm:$0xff]  ;;  %v16345_v55 = vld [vmem:[#allocation24_spill] sm:$0xff] }
 0x3df   :  { %v4340_v17 = vmul.f32 %v12649_v26, %v4148_v49  ;;  %v4565_v4 = vmul.f32 %v16341_v48, %v4373_v54  ;;  %v4564_v11 = vmul.f32 %v16342_v44, %v4372_v60  ;;  %7351 = vmatprep.subr.bf16.mxu1 %v16343_v7  ;;  %v4046_v19 = vsel %vm4034_vm1, %v4019_v37, %v15699_v12  ;;  %v16347_v49 = vld [vmem:[#allocation82_spill] sm:$0xff]  ;;  %v12950_v54 = vpop.permute.xlu1 %4281  ;;  %v16350_v7 = vld [vmem:[#allocation83_spill] sm:$0xff]  ;;  %v16353_v48 = vld [vmem:[#allocation44_spill] sm:$0xff] }
 0x3e0   :  { %v4047_v30 = vsel %vm4034_vm1, %v4018_v1, %v4019_v37  ;;  %v3134_v58 = vxor.u32 2147483648, %v16344_v5  ;;  %v3137_v9 = vxor.u32 2147483648, %v16345_v55  ;;  %v4112_v42 = vsel %vm4099_vm9, %v4085_v34, %v15698_v27  ;;  %16348 = vst [vmem:[#allocation10_spill] sm:$0xff] %v12950_v54  ;;  %v12952_v1 = vpop.permute.xlu0 %4276 }
 0x3e1   :  { %v16346_v14 = vrot.slane %v12557_v16, 7  ;;  %vm3133_vm10 = vcmp.eq.s32.totalorder %v16347_v49, 0  ;;  %vm3136_vm11 = vcmp.eq.s32.totalorder %v16347_v49, 2  ;;  %16349 = vst [vmem:[#allocation60_spill] sm:$0xff] %v12952_v1  ;;  %v4619_v37 = vpack.c.bf16 %v4595_v32, %v4594_v33 }
 0x3e2   :  { %v3135_v60 = vsel %vm3133_vm10, %v16345_v55, %v3134_v58  ;;  %v3138_v61 = vsel %vm3136_vm11, %v3137_v9, %v16344_v5  ;;  %v3238_v27 = vxor.u32 2147483648, %v16350_v7  ;;  %vm3132_vm0 = vcmp.lt.s32.totalorder %v16347_v49, 2  ;;  %v16354_v58 = vld [vmem:[#allocation38_spill] sm:$0xff]  ;;  %v16356_v49 = vld [vmem:[#allocation11_spill] sm:$0xff] }
 0x3e3   :  { %v4113_v56 = vsel %vm4099_vm9, %v16346_v14, %v4085_v34  ;;  %v16351_v34 = vld [vmem:[#allocation23_spill] sm:$0xff]  ;;  %v16352_v14 = vld [vmem:[#allocation18_spill] sm:$0xff]  ;;  %v4021_v26 = vrot.slane %v16353_v48, 1  ;;  %v3139_v63 = vsel %vm3132_vm0, %v3135_v60, %v3138_v61  ;;  %v4087_v5 = vrot.slane %v12741_v24, 7 }
 0x3e4   :  { %vm3237_vm14 = vcmp.eq.s32.totalorder %v16351_v34, 0  ;;  %v3241_v44 = vxor.u32 2147483648, %v16352_v14  ;;  %4923 = vmatmul.mubr.bf16.gmra.mrb[28].mxu1 %v4619_v37  ;;  %vm3240_vm7 = vcmp.eq.s32.totalorder %v16351_v34, 2  ;;  %v7701_v32 = vpop.eup %7700  ;;  %v16355_v55 = vld [vmem:[#allocation66_spill] sm:$0xff]  ;;  %vm3236_vm5 = vcmp.lt.s32.totalorder %v16351_v34, 2 }
 0x3e5   :  { %v3239_v33 = vsel %vm3237_vm14, %v16352_v14, %v3238_v27  ;;  %4932 = vmatprep.mubr.bf16.mxu1 %v16354_v58  ;;  %vm3129_vm8 = vweird.f32 %v16355_v55  ;;  %vm3233_vm3 = vweird.f32 %v16356_v49  ;;  %v4596_v37 = vadd.f32 %v4564_v11, %v4340_v17  ;;  %v16357_v61 = vld [vmem:[#allocation42_spill] sm:$0xff] }
 0x3e6   :  { %v3242_v9 = vsel %vm3240_vm7, %v3241_v44, %v16350_v7  ;;  %v4597_v60 = vadd.f32 %v4565_v4, %v4341_v41  ;;  %v3547_v27 = vand.u32 3, %v16357_v61  ;;  %v15710_v14 = vrot.slane %v16353_v48, 7  ;;  %v12978_v44 = vpop.permute.xlu1 %4505  ;;  %v12980_v7 = vpop.permute.xlu0 %4500 }
 0x3e7   :  { %v3243_v12 = vsel %vm3236_vm5, %v3239_v33, %v3242_v9  ;;  %v12972_v20 = vsel %vm3129_vm8, nan, %v3139_v63  ;;  %v7703_v58 = vpop.eup %7702  ;;  %v3443_v22 = vand.u32 3, %v3442_v13  ;;  %v4151_v55 = vsub.f32 %v4046_v19, %v12655_v38  ;;  %16360 = vst [vmem:[#allocation15_spill] sm:$0xff] %v12978_v44  ;;  %16361 = vst [vmem:[#allocation41_spill] sm:$0xff] %v12980_v7 }
 0x3e8   :  { %16358 = vst [vmem:[#allocation14_spill] sm:$0xff] %v12972_v20  ;;  %v12974_v57 = vsel %vm3233_vm3, nan, %v3243_v12  ;;  %v4150_v34 = vsub.f32 %v4047_v30, %v12653_v36  ;;  %v4375_v17 = vsub.f32 %v12655_v38, %v4112_v42  ;;  %v4374_v63 = vsub.f32 %v12653_v36, %v4113_v56 }
 0x3e9   :  { %16359 = vst [vmem:[#allocation22_spill] sm:$0xff] %v12974_v57  ;;  %v12984_v41 = vpack.c.bf16 %v12974_v57, %v12972_v20  ;;  %v16362_v12 = vrot.slane %v12795_v59, 1  ;;  %v16363_v4 = vrot.slane %v12741_v24, 1  ;;  %v4343_v19 = vmul.f32 %v12772_v29, %v4151_v55 }
 0x3ea   :  { %v4342_v30 = vmul.f32 %v12774_v3, %v4150_v34  ;;  %v16364_v33 = vrot.slane %v12655_v38, 7  ;;  %v4620_v56 = vpack.c.bf16 %v4597_v60, %v4596_v37  ;;  %v4567_v9 = vmul.f32 %v12830_v28, %v4375_v17  ;;  %v16365_v60 = vld [vmem:[#allocation55_spill] sm:$0xff] }
 0x3eb   :  { %v4044_v13 = vsel %vm4034_vm1, %v4021_v26, %v16362_v12  ;;  %v4045_v11 = vsel %vm4034_vm1, %v16363_v4, %v4021_v26  ;;  %7344 = vmatmul.mubr.bf16.gmra.mrb[24].mxu0 %v12984_v41  ;;  %v4566_v49 = vmul.f32 %v12832_v40, %v4374_v63  ;;  %v4110_v26 = vsel %vm4099_vm9, %v4087_v5, %v15710_v14  ;;  %v16370_v14 = vld [vmem:[#allocation98_spill] sm:$0xff] }
 0x3ec   :  { %v4111_v42 = vsel %vm4099_vm9, %v16364_v33, %v4087_v5  ;;  %v3446_v61 = vxor.u32 2147483648, %v7703_v58  ;;  %v4153_v55 = vsub.f32 %v4044_v13, %v16353_v48  ;;  %v4152_v34 = vsub.f32 %v4045_v11, %v12741_v24  ;;  %4933 = vmatmul.mubr.bf16.gmra.mrb[32].mxu1 %v4620_v56  ;;  %v13016_v33 = vpop.permute.xlu1 %4291  ;;  %v13018_v13 = vpop.permute.xlu0 %4286 }
 0x3ed   :  { %vm3445_vm6 = vcmp.eq.s32.totalorder %v3443_v22, 0  ;;  %v3449_v12 = vxor.u32 2147483648, %v7701_v32  ;;  %v4376_v4 = vsub.f32 %v12741_v24, %v4111_v42  ;;  %4942 = vmatprep.mubr.bf16.mxu1 %v16365_v60  ;;  %vm3448_vm15 = vcmp.eq.s32.totalorder %v3443_v22, 2  ;;  %16366 = vst [vmem:[#allocation50_spill] sm:$0xff] %v13016_v33  ;;  %16367 = vst [vmem:[#allocation75_spill] sm:$0xff] %v13018_v13 }
 0x3ee   :  { %v3447_v17 = vsel %vm3445_vm6, %v7701_v32, %v3446_v61  ;;  %v4377_v63 = vsub.f32 %v16353_v48, %v4110_v26  ;;  %v4023_v5 = vrot.slane %v12797_v53, 1  ;;  %vm3444_vm4 = vcmp.lt.s32.totalorder %v3443_v22, 2  ;;  %v16369_v32 = vld [vmem:[#allocation13_spill] sm:$0xff] }
 0x3ef   :  { %v3450_v11 = vsel %vm3448_vm15, %v3449_v12, %v7703_v58  ;;  %v4089_v56 = vrot.slane %v12795_v59, 7  ;;  %vm3441_vm12 = vweird.f32 %v11787_v31  ;;  %v3550_v37 = vxor.u32 2147483648, %v12886_v18 }
 0x3f0   :  { %v3451_v42 = vsel %vm3444_vm4, %v3447_v17, %v3450_v11  ;;  %vm3549_vm2 = vcmp.eq.s32.totalorder %v3547_v27, 0  ;;  %v3553_v26 = vxor.u32 2147483648, %v16369_v32  ;;  %v4598_v61 = vadd.f32 %v4566_v49, %v4342_v30  ;;  %v16371_v30 = vld [vmem:[#allocation88_spill] sm:$0xff]  ;;  %v13037_v28 = vpop.permute.xlu1 %4515 }
 0x3f1   :  { %v13023_v60 = vsel %vm3441_vm12, nan, %v3451_v42  ;;  %v3551_v22 = vsel %vm3549_vm2, %v16369_v32, %v3550_v37  ;;  %vm3552_vm13 = vcmp.eq.s32.totalorder %v3547_v27, 2  ;;  %v4599_v58 = vadd.f32 %v4567_v9, %v4343_v19  ;;  %16372 = vst [vmem:[#allocation73_spill] sm:$0xff] %v13037_v28  ;;  %v13039_v37 = vpop.permute.xlu0 %4510 }
 0x3f2   :  { %16368 = vst [vmem:[#allocation16_spill] sm:$0xff] %v13023_v60  ;;  %v13028_v40 = vpack.c.bf16 %v13023_v60, %v16370_v14  ;;  %v4568_v12 = vmul.f32 %v12911_v43, %v4376_v4  ;;  %v4090_v31 = vrot.slane %v12797_v53, 7  ;;  %vm3548_vm10 = vcmp.lt.s32.totalorder %v3547_v27, 2  ;;  %16373 = vst [vmem:[#allocation81_spill] sm:$0xff] %v13039_v37 }
 0x3f3   :  { %v3554_v17 = vsel %vm3552_vm13, %v3553_v26, %v12886_v18  ;;  %v4569_v11 = vmul.f32 %v12909_v46, %v4377_v63  ;;  %vm3545_vm11 = vweird.f32 %v16371_v30  ;;  %v4621_v42 = vpack.c.bf16 %v4599_v58, %v4598_v61  ;;  %v16375_v18 = vld [vmem:[#allocation9_spill] sm:$0xff] }
 0x3f4   :  { %7347 = vmatprep.mubr.bf16.mxu0 %v13028_v40  ;;  %v3555_v49 = vsel %vm3548_vm10, %v3551_v22, %v3554_v17  ;;  %v4345_v9 = vmul.f32 %v12863_v52, %v4153_v55  ;;  %v4344_v27 = vmul.f32 %v12865_v23, %v4152_v34  ;;  %v4108_v63 = vsel %vm4099_vm9, %v4089_v56, %v4090_v31  ;;  %v13072_v43 = vpop.permute.xlu1 %4301 }
 0x3f5   :  { %v13041_v19 = vsel %vm3545_vm11, nan, %v3555_v49  ;;  %4943 = vmatmul.mubr.bf16.gmra.mrb[36].mxu1 %v4621_v42  ;;  %v16376_v32 = vrot.slane %v16353_v48, 7  ;;  %v16377_v61 = vrot.slane %v12892_v25, 1  ;;  %v16378_v34 = vrot.slane %v12795_v59, 1  ;;  %16379 = vst [vmem:[#allocation80_spill] sm:$0xff] %v13072_v43 }
 0x3f6   :  { %16374 = vst [vmem:[#allocation3_spill] sm:$0xff] %v13041_v19  ;;  %v13047_v4 = vpack.c.bf16 %v16375_v18, %v13041_v19  ;;  %4952 = vmatprep.mubr.bf16.mxu1 %v12754_v45  ;;  %v4600_v58 = vadd.f32 %v4568_v12, %v4344_v27  ;;  %v4601_v17 = vadd.f32 %v4569_v11, %v4345_v9  ;;  %v4092_v45 = vrot.slane %v12894_v39, 7 }
 0x3f7   :  { %v4109_v26 = vsel %vm4099_vm9, %v16376_v32, %v4089_v56  ;;  %v4042_v55 = vsel %vm4034_vm1, %v4023_v5, %v16377_v61  ;;  %v4043_v22 = vsel %vm4034_vm1, %v16378_v34, %v4023_v5  ;;  %v4379_v30 = vsub.f32 %v12797_v53, %v4108_v63  ;;  %v13074_v5 = vpop.permute.xlu0 %4296 }
 0x3f8   :  { %7348 = vmatmul.mubr.bf16.gmra.mrb[28].mxu0 %v13047_v4  ;;  %v4378_v56 = vsub.f32 %v12795_v59, %v4109_v26  ;;  %v4155_v49 = vsub.f32 %v4042_v55, %v12797_v53  ;;  %v4154_v42 = vsub.f32 %v4043_v22, %v12795_v59  ;;  %v4025_v32 = vrot.slane %v12894_v39, 1  ;;  %16380 = vst [vmem:[#allocation46_spill] sm:$0xff] %v13074_v5 }
 0x3f9   :  { %v4091_v61 = vrot.slane %v12892_v25, 7  ;;  %v4571_v12 = vmul.f32 %v12978_v44, %v4379_v30  ;;  %v4026_v9 = vrot.slane %v12972_v20, 1  ;;  %v4622_v27 = vpack.c.bf16 %v4601_v17, %v4600_v58 }
 0x3fa   :  { %v4570_v11 = vmul.f32 %v12980_v7, %v4378_v56  ;;  %v4347_v63 = vmul.f32 %v12950_v54, %v4155_v49  ;;  %v4346_v26 = vmul.f32 %v12952_v1, %v4154_v42  ;;  %v16381_v34 = vrot.slane %v12892_v25, 1  ;;  %v13093_v42 = vpop.permute.xlu1 %4525 }
 0x3fb   :  { %v4106_v55 = vsel %vm4099_vm9, %v4091_v61, %v4092_v45  ;;  %v4107_v30 = vsel %vm4099_vm9, %v4090_v31, %v4091_v61  ;;  %v4040_v58 = vsel %vm4034_vm1, %v4025_v32, %v4026_v9  ;;  %16382 = vst [vmem:[#allocation59_spill] sm:$0xff] %v13093_v42 }
 0x3fc   :  { %v4041_v22 = vsel %vm4034_vm1, %v16381_v34, %v4025_v32  ;;  %v4602_v17 = vadd.f32 %v4570_v11, %v4346_v26  ;;  %v4603_v56 = vadd.f32 %v4571_v12, %v4347_v63  ;;  %v4381_v49 = vsub.f32 %v12894_v39, %v4106_v55 }
 0x3fd   :  { %4953 = vmatmul.mubr.bf16.gmra.mrb[40].mxu1 %v4622_v27  ;;  %v13095_v27 = vpop.permute.xlu0 %4520  ;;  %v4156_v7 = vsub.f32 %v4041_v22, %v12892_v25  ;;  %v4380_v34 = vsub.f32 %v12892_v25, %v4107_v30  ;;  %v4157_v44 = vsub.f32 %v4040_v58, %v12894_v39  ;;  %v4094_v32 = vrot.slane %v12974_v57, 7 }
 0x3fe   :  { %4962 = vmatprep.mubr.bf16.mxu1 %v12812_v62  ;;  %16383 = vst [vmem:[#allocation78_spill] sm:$0xff] %v13095_v27  ;;  %v4573_v31 = vmul.f32 %v13037_v28, %v4381_v49  ;;  %v4093_v62 = vrot.slane %v12972_v20, 7  ;;  %v4028_v12 = vrot.slane %v16370_v14, 1  ;;  %v4027_v11 = vrot.slane %v12974_v57, 1  ;;  %v13112_v58 = vpop.permute.xlu1 %4311 }
 0x3ff   :  { %v4572_v61 = vmul.f32 %v13039_v37, %v4380_v34  ;;  %v4623_v63 = vpack.c.bf16 %v4603_v56, %v4602_v17  ;;  %v4349_v26 = vmul.f32 %v13016_v33, %v4157_v44  ;;  %v4348_v55 = vmul.f32 %v13018_v13, %v4156_v7  ;;  %16384 = vst [vmem:[#allocation21_spill] sm:$0xff] %v13112_v58 }
 0x400   :  { %v4104_v22 = vsel %vm4099_vm9, %v4093_v62, %v4094_v32  ;;  %v4105_v30 = vsel %vm4099_vm9, %v4092_v45, %v4093_v62  ;;  %v4038_v17 = vsel %vm4034_vm1, %v4027_v11, %v4028_v12  ;;  %v4039_v44 = vsel %vm4034_vm1, %v4026_v9, %v4027_v11 }
 0x401   :  { %v13114_v49 = vpop.permute.xlu0 %4306  ;;  %v4604_v7 = vadd.f32 %v4572_v61, %v4348_v55  ;;  %v4605_v56 = vadd.f32 %v4573_v31, %v4349_v26  ;;  %v4383_v34 = vsub.f32 %v12974_v57, %v4104_v22  ;;  %v4159_v45 = vsub.f32 %v4038_v17, %v12974_v57 }
 0x402   :  { %16385 = vst [vmem:[#allocation77_spill] sm:$0xff] %v13114_v49  ;;  %v4158_v62 = vsub.f32 %v4039_v44, %v12972_v20  ;;  %v4095_v37 = vrot.slane %v16370_v14, 7  ;;  %v4029_v9 = vrot.slane %v13023_v60, 1  ;;  %v4030_v31 = vrot.slane %v13041_v19, 1  ;;  %v13131_v11 = vpop.permute.xlu1 %4535 }
 0x403   :  { %v4575_v28 = vmul.f32 %v13093_v42, %v4383_v34  ;;  %v4624_v61 = vpack.c.bf16 %v4605_v56, %v4604_v7  ;;  %16386 = vst [vmem:[#allocation28_spill] sm:$0xff] %v13131_v11  ;;  %v4351_v55 = vmul.f32 %v13072_v43, %v4159_v45 }
 0x404   :  { %v4350_v22 = vmul.f32 %v13074_v5, %v4158_v62  ;;  %v4103_v17 = vsel %vm4099_vm9, %v4094_v32, %v4095_v37  ;;  %v4037_v44 = vsel %vm4034_vm1, %v4028_v12, %v4029_v9  ;;  %v4036_v34 = vsel %vm4034_vm1, %v4029_v9, %v4030_v31 }
 0x405   :  { %4963 = vmatmul.mubr.bf16.gmra.mrb[44].mxu1 %v4623_v63  ;;  %v4382_v63 = vsub.f32 %v12972_v20, %v4105_v30  ;;  %v13133_v26 = vpop.permute.xlu0 %4530  ;;  %v4607_v56 = vadd.f32 %v4575_v28, %v4351_v55  ;;  %v4384_v45 = vsub.f32 %v16370_v14, %v4103_v17  ;;  %v4160_v62 = vsub.f32 %v4037_v44, %v16370_v14  ;;  %v16391_v44 = vld [vmem:[#allocation19_spill] sm:$0xff] }
 0x406   :  { %4972 = vmatprep.mubr.bf16.mxu1 %v12902_v10  ;;  %v4096_v10 = vrot.slane %v13023_v60, 7  ;;  %16387 = vst [vmem:[#allocation91_spill] sm:$0xff] %v13133_v26 }
 0x407   :  { %v4574_v13 = vmul.f32 %v13095_v27, %v4382_v63  ;;  %v13150_v27 = vpop.permute.xlu1 %4321  ;;  %v4576_v32 = vmul.f32 %v13133_v26, %v4384_v45  ;;  %v4352_v55 = vmul.f32 %v13114_v49, %v4160_v62 }
 0x408   :  { %v4102_v30 = vsel %vm4099_vm9, %v4095_v37, %v4096_v10  ;;  %16388 = vst [vmem:[#allocation7_spill] sm:$0xff] %v13150_v27 }
 0x409   :  { %v4606_v7 = vadd.f32 %v4574_v13, %v4350_v22  ;;  %v4385_v63 = vsub.f32 %v13023_v60, %v4102_v30  ;;  %v13152_v37 = vpop.permute.xlu0 %4316  ;;  %v4161_v13 = vsub.f32 %v4036_v34, %v13023_v60  ;;  %v16390_v22 = vrot.slane %v16375_v18, 7 }
 0x40a   :  { %16389 = vst [vmem:[#allocation51_spill] sm:$0xff] %v13152_v37  ;;  %v16392_v34 = vrot.slane %v16391_v44, 1 }
 0x40b   :  { %v4577_v28 = vmul.f32 %v13131_v11, %v4385_v63  ;;  %v4625_v12 = vpack.c.bf16 %v4607_v56, %v4606_v7  ;;  %v4353_v9 = vmul.f32 %v13112_v58, %v4161_v13  ;;  %v4608_v56 = vadd.f32 %v4576_v32, %v4352_v55  ;;  %v13173_v62 = vpop.permute.xlu1 %4545 }
 0x40c   :  { %16393 = vst [vmem:[#allocation68_spill] sm:$0xff] %v13173_v62 }
 0x40d   :  { %4973 = vmatmul.mubr.bf16.gmra.mrb[48].mxu1 %v4624_v61  ;;  %v4031_v61 = vrot.slane %v16375_v18, 1  ;;  %v4609_v63 = vadd.f32 %v4577_v28, %v4353_v9  ;;  %v13175_v13 = vpop.permute.xlu0 %4540 }
 0x40e   :  { %4982 = vmatprep.mubr.bf16.mxu1 %v12984_v41  ;;  %v4097_v41 = vrot.slane %v13041_v19, 7  ;;  %16394 = vst [vmem:[#allocation64_spill] sm:$0xff] %v13175_v13 }
 0x40f   :  { %v4066_v7 = vsel %vm4034_vm1, %v4031_v61, %v16392_v34  ;;  %v4035_v45 = vsel %vm4034_vm1, %v4030_v31, %v4031_v61  ;;  %v4626_v28 = vpack.c.bf16 %v4609_v63, %v4608_v56 }
 0x410   :  { %v4100_v30 = vsel %vm4099_vm9, %v4097_v41, %v16390_v22  ;;  %v4101_v17 = vsel %vm4099_vm9, %v4096_v10, %v4097_v41  ;;  %v4162_v41 = vsub.f32 %v4035_v45, %v13041_v19 }
 0x411   :  { %v4386_v10 = vsub.f32 %v13041_v19, %v4101_v17 }
 0x412   :  { %v4354_v31 = vmul.f32 %v13152_v37, %v4162_v41 }
 0x413   :  { %v4578_v32 = vmul.f32 %v13175_v13, %v4386_v10 }
 0x415   :  { %4983 = vmatmul.mubr.bf16.gmra.mrb[52].mxu1 %v4625_v12  ;;  %v4387_v12 = vsub.f32 %v16375_v18, %v4100_v30  ;;  %v4610_v61 = vadd.f32 %v4578_v32, %v4354_v31 }
 0x416   :  { %4992 = vmatprep.mubr.bf16.mxu1 %v13028_v40  ;;  %v4163_v40 = vsub.f32 %v4066_v7, %v16375_v18 }
 0x417   :  { %v4579_v22 = vmul.f32 %v13173_v62, %v4387_v12 }
 0x418   :  { %v4355_v9 = vmul.f32 %v13150_v27, %v4163_v40 }
 0x41a   :  { %v4611_v55 = vadd.f32 %v4579_v22, %v4355_v9 }
 0x41c   :  { %v4627_v30 = vpack.c.bf16 %v4611_v55, %v4610_v61 }
 0x41d   :  { %4993 = vmatmul.mubr.bf16.gmra.mrb[56].mxu1 %v4626_v28 }
 0x41e   :  { %5002 = vmatprep.mubr.bf16.mxu1 %v13047_v4 }
 0x425   :  { %5003 = vmatmul.mubr.bf16.gmra.mrb[60].mxu1 %v4627_v30 }
 0x44f   :  { %v7321_v17 = vpop.f32.mrb[0].mxu0 }
 0x450   :  { %v3841_v34 = vpop.f32.mrb[1].mxu0  ;;  %v13192_v55 = vmul.f32 2.0, %v7321_v17 }
 0x451   :  { %v7322_v7 = vpop.f32.mrb[2].mxu0  ;;  %v13186_v26 = vmul.f32 2.0, %v3841_v34  ;;  %v16399_v34 = vld [vmem:[#allocation70_spill] sm:$0xff] }
 0x452   :  { %v3844_v45 = vpop.f32.mrb[3].mxu0  ;;  %16397 = vst [vmem:[#allocation82_spill] sm:$0xff] %v13192_v55  ;;  %v13200_v27 = vmul.f32 2.0, %v7322_v7 }
 0x453   :  { %16395 = vst [vmem:[#allocation26_spill] sm:$0xff] %v13186_v26  ;;  %v13188_v40 = vmul.f32 2.0, %v3844_v45 }
 0x454   :  { %16401 = vst [vmem:[#allocation18_spill] sm:$0xff] %v13200_v27 }
 0x455   :  { %16396 = vst [vmem:[#allocation24_spill] sm:$0xff] %v13188_v40 }
 0x469   :  { %v4854_v12 = vpop.f32.mrb[0].mxu1  ;;  %v7325_v10 = vpop.f32.mrb[4].mxu0 }
 0x46a   :  { %v4856_v56 = vpop.f32.mrb[1].mxu1  ;;  %v3857_v63 = vpop.f32.mrb[5].mxu0 }
 0x46b   :  { %v5013_v41 = vsub.f32 %v13186_v26, %v4856_v56  ;;  %v4858_v28 = vpop.f32.mrb[2].mxu1  ;;  %v7326_v4 = vpop.f32.mrb[6].mxu0  ;;  %v13210_v7 = vmul.f32 2.0, %v3857_v63 }
 0x46c   :  { %v4860_v32 = vpop.f32.mrb[3].mxu1  ;;  %v3860_v22 = vpop.f32.mrb[7].mxu0  ;;  %v13222_v58 = vmul.f32 2.0, %v7326_v4 }
 0x46d   :  { %v5045_v9 = vmul.f32 %v5013_v41, %v4854_v12  ;;  %v5014_v31 = vsub.f32 %v13188_v40, %v4860_v32  ;;  %16402 = vst [vmem:[#allocation44_spill] sm:$0xff] %v13210_v7 }
 0x46e   :  { %16405 = vst [vmem:[#allocation11_spill] sm:$0xff] %v13222_v58 }
 0x46f   :  { %v5046_v61 = vmul.f32 %v5014_v31, %v4858_v28  ;;  %v13195_v30 = vadd.f32 %v5045_v9, %v16391_v44 }
 0x471   :  { %16398 = vst [vmem:[#allocation83_spill] sm:$0xff] %v13195_v30  ;;  %v13198_v13 = vadd.f32 %v5046_v61, %v16399_v34  ;;  %v13212_v34 = vmul.f32 2.0, %v3860_v22 }
 0x473   :  { %16400 = vst [vmem:[#allocation23_spill] sm:$0xff] %v13198_v13  ;;  %v4864_v45 = vpop.f32.mrb[4].mxu1  ;;  %v5413_v12 = vpack.c.bf16 %v13198_v13, %v13195_v30  ;;  %16403 = vst [vmem:[#allocation38_spill] sm:$0xff] %v13212_v34 }
 0x474   :  { %v4866_v62 = vpop.f32.mrb[5].mxu1 }
 0x475   :  { %v5015_v56 = vsub.f32 %v13192_v55, %v4866_v62  ;;  %v4868_v26 = vpop.f32.mrb[6].mxu1  ;;  %v7329_v37 = vpop.f32.mrb[8].mxu0  ;;  %5461 = vmatprep.mubr.bf16.mxu0 %v5413_v12 }
 0x476   :  { %v4870_v41 = vpop.f32.mrb[7].mxu1  ;;  %v3873_v17 = vpop.f32.mrb[9].mxu0 }
 0x477   :  { %v13205_v28 = vmul.f32 %v5015_v56, %v4864_v45  ;;  %v5016_v44 = vsub.f32 %v13200_v27, %v4870_v41  ;;  %v7330_v32 = vpop.f32.mrb[10].mxu0  ;;  %v13220_v41 = vmul.f32 2.0, %v7325_v10  ;;  %v13230_v5 = vmul.f32 2.0, %v3873_v17 }
 0x478   :  { %v3876_v9 = vpop.f32.mrb[11].mxu0  ;;  %v13244_v57 = vmul.f32 2.0, %v7330_v32 }
 0x479   :  { %v13208_v31 = vmul.f32 %v5016_v44, %v4868_v26  ;;  %16404 = vst [vmem:[#allocation66_spill] sm:$0xff] %v13220_v41  ;;  %16406 = vst [vmem:[#allocation42_spill] sm:$0xff] %v13230_v5  ;;  %v13232_v60 = vmul.f32 2.0, %v3876_v9 }
 0x47a   :  { %16409 = vst [vmem:[#allocation88_spill] sm:$0xff] %v13244_v57 }
 0x47b   :  { %16407 = vst [vmem:[#allocation55_spill] sm:$0xff] %v13232_v60 }
 0x47d   :  { %v4874_v61 = vpop.f32.mrb[8].mxu1 }
 0x47e   :  { %v4876_v62 = vpop.f32.mrb[9].mxu1 }
 0x47f   :  { %v5017_v55 = vsub.f32 %v13210_v7, %v4876_v62  ;;  %v4878_v40 = vpop.f32.mrb[10].mxu1 }
 0x480   :  { %v4880_v11 = vpop.f32.mrb[11].mxu1 }
 0x481   :  { %v13215_v49 = vmul.f32 %v5017_v55, %v4874_v61  ;;  %v5018_v45 = vsub.f32 %v13212_v34, %v4880_v11 }
 0x483   :  { %v13218_v56 = vmul.f32 %v5018_v45, %v4878_v40 }
 0x485   :  { %v7333_v12 = vpop.f32.mrb[12].mxu0 }
 0x486   :  { %v3889_v26 = vpop.f32.mrb[13].mxu0  ;;  %v4884_v63 = vpop.f32.mrb[12].mxu1 }
 0x487   :  { %v7334_v44 = vpop.f32.mrb[14].mxu0  ;;  %v4886_v27 = vpop.f32.mrb[13].mxu1 }
 0x488   :  { %v3892_v22 = vpop.f32.mrb[15].mxu0  ;;  %v5019_v62 = vsub.f32 %v13220_v41, %v4886_v27  ;;  %v4888_v7 = vpop.f32.mrb[14].mxu1 }
 0x489   :  { %v4890_v42 = vpop.f32.mrb[15].mxu1  ;;  %v13256_v14 = vmul.f32 2.0, %v3892_v22 }
 0x48a   :  { %v13225_v55 = vmul.f32 %v5019_v62, %v4884_v63  ;;  %v5020_v11 = vsub.f32 %v13222_v58, %v4890_v42  ;;  %v13240_v62 = vmul.f32 2.0, %v7329_v37 }
 0x48b   :  { %16411 = vst [vmem:[#allocation19_spill] sm:$0xff] %v13256_v14 }
 0x48c   :  { %v13228_v40 = vmul.f32 %v5020_v11, %v4888_v7  ;;  %16408 = vst [vmem:[#allocation13_spill] sm:$0xff] %v13240_v62 }
 0x493   :  { %v7337_v61 = vpop.f32.mrb[16].mxu0 }
 0x494   :  { %v3905_v10 = vpop.f32.mrb[17].mxu0 }
 0x495   :  { %v7338_v45 = vpop.f32.mrb[18].mxu0 }
 0x496   :  { %v3908_v34 = vpop.f32.mrb[19].mxu0 }
 0x498   :  { %v4894_v43 = vpop.f32.mrb[16].mxu1 }
 0x499   :  { %v4896_v4 = vpop.f32.mrb[17].mxu1 }
 0x49a   :  { %v5021_v27 = vsub.f32 %v13230_v5, %v4896_v4  ;;  %v4898_v41 = vpop.f32.mrb[18].mxu1 }
 0x49b   :  { %v4900_v19 = vpop.f32.mrb[19].mxu1 }
 0x49c   :  { %v13235_v63 = vmul.f32 %v5021_v27, %v4894_v43  ;;  %v5022_v42 = vsub.f32 %v13232_v60, %v4900_v19 }
 0x49e   :  { %v13238_v7 = vmul.f32 %v5022_v42, %v4898_v41  ;;  %v13254_v41 = vmul.f32 2.0, %v3889_v26  ;;  %v13266_v26 = vmul.f32 2.0, %v7334_v44  ;;  %v13276_v44 = vmul.f32 2.0, %v3908_v34 }
 0x4a0   :  { %16410 = vst [vmem:[#allocation9_spill] sm:$0xff] %v13254_v41  ;;  %16413 = vst [vmem:[#allocation102_spill] sm:$0xff] %v13266_v26 }
 0x4a1   :  { %16415 = vst [vmem:[#allocation104_spill] sm:$0xff] %v13276_v44 }
 0x4a2   :  { %v13242_v11 = vpop.f32.mrb[20].mxu0 }
 0x4a3   :  { %v4904_v17 = vpop.f32.mrb[20].mxu1  ;;  %v3921_v58 = vpop.f32.mrb[21].mxu0 }
 0x4a4   :  { %v4906_v33 = vpop.f32.mrb[21].mxu1  ;;  %v13246_v9 = vpop.f32.mrb[22].mxu0 }
 0x4a5   :  { %v5023_v4 = vsub.f32 %v13240_v62, %v4906_v33  ;;  %v4908_v5 = vpop.f32.mrb[22].mxu1  ;;  %v3924_v43 = vpop.f32.mrb[23].mxu0 }
 0x4a6   :  { %v4910_v27 = vpop.f32.mrb[23].mxu1 }
 0x4a7   :  { %v13249_v1 = vmul.f32 %v5023_v4, %v4904_v17  ;;  %v5024_v19 = vsub.f32 %v13244_v57, %v4910_v27  ;;  %v13264_v4 = vmul.f32 2.0, %v7333_v12 }
 0x4a9   :  { %v13252_v37 = vmul.f32 %v5024_v19, %v4908_v5  ;;  %16412 = vst [vmem:[#allocation70_spill] sm:$0xff] %v13264_v4 }
 0x4af   :  { %v4914_v42 = vpop.f32.mrb[24].mxu1 }
 0x4b0   :  { %v4916_v60 = vpop.f32.mrb[25].mxu1 }
 0x4b1   :  { %v5025_v32 = vsub.f32 %v13254_v41, %v4916_v60  ;;  %v4918_v54 = vpop.f32.mrb[26].mxu1 }
 0x4b2   :  { %v4920_v39 = vpop.f32.mrb[27].mxu1 }
 0x4b3   :  { %v13259_v33 = vmul.f32 %v5025_v32, %v4914_v42  ;;  %v5026_v62 = vsub.f32 %v13256_v14, %v4920_v39 }
 0x4b5   :  { %v13262_v17 = vmul.f32 %v5026_v62, %v4918_v54  ;;  %v13274_v54 = vmul.f32 2.0, %v3905_v10 }
 0x4b7   :  { %v4924_v5 = vpop.f32.mrb[28].mxu1  ;;  %16414 = vst [vmem:[#allocation103_spill] sm:$0xff] %v13274_v54 }
 0x4b8   :  { %v4926_v27 = vpop.f32.mrb[29].mxu1 }
 0x4b9   :  { %v5027_v19 = vsub.f32 %v13264_v4, %v4926_v27  ;;  %v4928_v22 = vpop.f32.mrb[30].mxu1 }
 0x4ba   :  { %v4930_v57 = vpop.f32.mrb[31].mxu1 }
 0x4bb   :  { %v13269_v46 = vmul.f32 %v5027_v19, %v4924_v5  ;;  %v5028_v60 = vsub.f32 %v13266_v26, %v4930_v57  ;;  %v13286_v26 = vmul.f32 2.0, %v7338_v45  ;;  %v13296_v45 = vmul.f32 2.0, %v3924_v43 }
 0x4bd   :  { %v13272_v32 = vmul.f32 %v5028_v60, %v4928_v22  ;;  %v13284_v22 = vmul.f32 2.0, %v7337_v61  ;;  %16417 = vst [vmem:[#allocation106_spill] sm:$0xff] %v13286_v26  ;;  %v13294_v61 = vmul.f32 2.0, %v3921_v58  ;;  %16419 = vst [vmem:[#allocation108_spill] sm:$0xff] %v13296_v45 }
 0x4be   :  { %v7345_v42 = vpop.f32.mrb[24].mxu0 }
 0x4bf   :  { %v3937_v39 = vpop.f32.mrb[25].mxu0  ;;  %v4934_v62 = vpop.f32.mrb[32].mxu1  ;;  %16416 = vst [vmem:[#allocation105_spill] sm:$0xff] %v13284_v22  ;;  %16418 = vst [vmem:[#allocation107_spill] sm:$0xff] %v13294_v61 }
 0x4c0   :  { %v7346_v12 = vpop.f32.mrb[26].mxu0  ;;  %v4936_v41 = vpop.f32.mrb[33].mxu1 }
 0x4c1   :  { %v3940_v14 = vpop.f32.mrb[27].mxu0  ;;  %v5029_v27 = vsub.f32 %v13274_v54, %v4936_v41  ;;  %v4938_v4 = vpop.f32.mrb[34].mxu1 }
 0x4c2   :  { %v4940_v23 = vpop.f32.mrb[35].mxu1 }
 0x4c3   :  { %v13279_v5 = vmul.f32 %v5029_v27, %v4934_v62  ;;  %v5030_v57 = vsub.f32 %v13276_v44, %v4940_v23 }
 0x4c5   :  { %v13282_v19 = vmul.f32 %v5030_v57, %v4938_v4 }
 0x4c8   :  { %v4944_v10 = vpop.f32.mrb[36].mxu1 }
 0x4c9   :  { %v4946_v60 = vpop.f32.mrb[37].mxu1 }
 0x4ca   :  { %v5031_v34 = vsub.f32 %v13284_v22, %v4946_v60  ;;  %v4948_v52 = vpop.f32.mrb[38].mxu1 }
 0x4cb   :  { %v7349_v20 = vpop.f32.mrb[28].mxu0  ;;  %v4950_v41 = vpop.f32.mrb[39].mxu1 }
 0x4cc   :  { %v3953_v53 = vpop.f32.mrb[29].mxu0  ;;  %v13289_v54 = vmul.f32 %v5031_v34, %v4944_v10  ;;  %v5032_v27 = vsub.f32 %v13286_v26, %v4950_v41  ;;  %v13305_v41 = vmul.f32 2.0, %v13242_v11 }
 0x4cd   :  { %v7350_v62 = vpop.f32.mrb[30].mxu0 }
 0x4ce   :  { %v3956_v23 = vpop.f32.mrb[31].mxu0  ;;  %v13292_v4 = vmul.f32 %v5032_v27, %v4948_v52  ;;  %16421 = vst [vmem:[#allocation110_spill] sm:$0xff] %v13305_v41  ;;  %v13308_v27 = vmul.f32 2.0, %v13246_v9 }
 0x4d0   :  { %v4954_v57 = vpop.f32.mrb[40].mxu1  ;;  %16422 = vst [vmem:[#allocation111_spill] sm:$0xff] %v13308_v27 }
 0x4d1   :  { %v4956_v44 = vpop.f32.mrb[41].mxu1 }
 0x4d2   :  { %v5033_v3 = vsub.f32 %v13294_v61, %v4956_v44  ;;  %v4958_v60 = vpop.f32.mrb[42].mxu1 }
 0x4d3   :  { %v4960_v22 = vpop.f32.mrb[43].mxu1 }
 0x4d4   :  { %v13299_v25 = vmul.f32 %v5033_v3, %v4954_v57  ;;  %v5034_v10 = vsub.f32 %v13296_v45, %v4960_v22  ;;  %v13316_v22 = vmul.f32 2.0, %v3937_v39  ;;  %v13328_v39 = vmul.f32 2.0, %v7346_v12 }
 0x4d6   :  { %v13302_v34 = vmul.f32 %v5034_v10, %v4958_v60  ;;  %16423 = vst [vmem:[#allocation112_spill] sm:$0xff] %v13316_v22  ;;  %v13318_v10 = vmul.f32 2.0, %v3940_v14  ;;  %16427 = vst [vmem:[#allocation116_spill] sm:$0xff] %v13328_v39 }
 0x4d8   :  { %16420 = vst [vmem:[#allocation109_spill] sm:$0xff] %v13302_v34  ;;  %v4964_v52 = vpop.f32.mrb[44].mxu1  ;;  %16424 = vst [vmem:[#allocation113_spill] sm:$0xff] %v13318_v10 }
 0x4d9   :  { %v4966_v58 = vpop.f32.mrb[45].mxu1 }
 0x4da   :  { %v5035_v43 = vsub.f32 %v13305_v41, %v4966_v58  ;;  %v4968_v26 = vpop.f32.mrb[46].mxu1 }
 0x4db   :  { %v4970_v44 = vpop.f32.mrb[47].mxu1 }
 0x4dc   :  { %v13311_v61 = vmul.f32 %v5035_v43, %v4964_v52  ;;  %v5036_v3 = vsub.f32 %v13308_v27, %v4970_v44  ;;  %v13326_v43 = vmul.f32 2.0, %v7345_v42  ;;  %v13338_v42 = vmul.f32 2.0, %v3956_v23 }
 0x4de   :  { %v13314_v57 = vmul.f32 %v5036_v3, %v4968_v26  ;;  %16426 = vst [vmem:[#allocation115_spill] sm:$0xff] %v13326_v43  ;;  %16430 = vst [vmem:[#allocation119_spill] sm:$0xff] %v13338_v42 }
 0x4e0   :  { %v4974_v60 = vpop.f32.mrb[48].mxu1 }
 0x4e1   :  { %v4976_v11 = vpop.f32.mrb[49].mxu1 }
 0x4e2   :  { %v5037_v45 = vsub.f32 %v13316_v22, %v4976_v11  ;;  %v4978_v9 = vpop.f32.mrb[50].mxu1 }
 0x4e3   :  { %v4980_v29 = vpop.f32.mrb[51].mxu1 }
 0x4e4   :  { %v13321_v34 = vmul.f32 %v5037_v45, %v4974_v60  ;;  %v5038_v58 = vsub.f32 %v13318_v10, %v4980_v29  ;;  %v13336_v60 = vmul.f32 2.0, %v3953_v53  ;;  %v13350_v53 = vmul.f32 2.0, %v7349_v20 }
 0x4e6   :  { %v13324_v52 = vmul.f32 %v5038_v58, %v4978_v9  ;;  %16429 = vst [vmem:[#allocation118_spill] sm:$0xff] %v13336_v60  ;;  %16434 = vst [vmem:[#allocation121_spill] sm:$0xff] %v13350_v53 }
 0x4e8   :  { %16425 = vst [vmem:[#allocation114_spill] sm:$0xff] %v13324_v52  ;;  %v4984_v26 = vpop.f32.mrb[52].mxu1 }
 0x4e9   :  { %v4986_v44 = vpop.f32.mrb[53].mxu1 }
 0x4ea   :  { %v5039_v3 = vsub.f32 %v13326_v43, %v4986_v44  ;;  %v4988_v14 = vpop.f32.mrb[54].mxu1 }
 0x4eb   :  { %v4990_v27 = vpop.f32.mrb[55].mxu1 }
 0x4ec   :  { %v13331_v41 = vmul.f32 %v5039_v3, %v4984_v26  ;;  %v5040_v11 = vsub.f32 %v13328_v39, %v4990_v27  ;;  %v16432_v26 = vld [vmem:[#allocation79_spill] sm:$0xff]  ;;  %v13353_v39 = vmul.f32 2.0, %v7350_v62  ;;  %v5173_v62 = vrot.slane %v13195_v30, 7 }
 0x4ed   :  { %v13346_v3 = vadd.f32 %v13205_v28, %v16432_v26  ;;  %v16436_v28 = vld [vmem:[#allocation6_spill] sm:$0xff]  ;;  %v15837_v26 = vrot.slane %v13195_v30, 1 }
 0x4ee   :  { %v13334_v45 = vmul.f32 %v5040_v11, %v4988_v14  ;;  %16435 = vst [vmem:[#allocation122_spill] sm:$0xff] %v13353_v39 }
 0x4ef   :  { %v5111_v23 = vrot.slane %v13346_v3, 1 }
 0x4f0   :  { %16428 = vst [vmem:[#allocation117_spill] sm:$0xff] %v13334_v45  ;;  %v4994_v29 = vpop.f32.mrb[56].mxu1  ;;  %v16442_v45 = vld [vmem:[#allocation27_spill] sm:$0xff] }
 0x4f1   :  { %v4996_v9 = vpop.f32.mrb[57].mxu1 }
 0x4f2   :  { %v5041_v58 = vsub.f32 %v13336_v60, %v4996_v9  ;;  %v4998_v12 = vpop.f32.mrb[58].mxu1  ;;  %v16438_v60 = vld [vmem:[#allocation76_spill] sm:$0xff] }
 0x4f3   :  { %v5000_v10 = vpop.f32.mrb[59].mxu1 }
 0x4f4   :  { %v13341_v22 = vmul.f32 %v5041_v58, %v4994_v29  ;;  %v5042_v44 = vsub.f32 %v13338_v42, %v5000_v10  ;;  %v5110_v58 = vrot.slane %v13198_v13, 1  ;;  %v5174_v42 = vrot.slane %v13198_v13, 7 }
 0x4f6   :  { %16431 = vst [vmem:[#allocation120_spill] sm:$0xff] %v13341_v22  ;;  %v13348_v27 = vmul.f32 %v5042_v44, %v4998_v12  ;;  %v13360_v12 = vadd.f32 %v13215_v49, %v16436_v28  ;;  %v5170_v43 = vsel %vm4034_vm1, %v5110_v58, %v5111_v23  ;;  %v5171_v49 = vsel %vm4034_vm1, %v15837_v26, %v5110_v58  ;;  %v16440_v28 = vld [vmem:[#allocation25_spill] sm:$0xff]  ;;  %v16445_v22 = vld [vmem:[#allocation63_spill] sm:$0xff] }
 0x4f7   :  { %v13391_v58 = vadd.f32 %v13225_v55, %v16440_v28  ;;  %v5175_v26 = vrot.slane %v13346_v3, 7 }
 0x4f8   :  { %16433 = vst [vmem:[#allocation79_spill] sm:$0xff] %v13348_v27  ;;  %v5004_v14 = vpop.f32.mrb[60].mxu1 }
 0x4f9   :  { %v5006_v11 = vpop.f32.mrb[61].mxu1 }
 0x4fa   :  { %v5043_v9 = vsub.f32 %v13350_v53, %v5006_v11  ;;  %v5008_v29 = vpop.f32.mrb[62].mxu1  ;;  %v13369_v11 = vadd.f32 %v13208_v31, %v16438_v60  ;;  %v5238_v31 = vsub.f32 %v5170_v43, %v13198_v13 }
 0x4fb   :  { %v5010_v10 = vpop.f32.mrb[63].mxu1 }
 0x4fc   :  { %v13362_v20 = vmul.f32 %v5043_v9, %v5004_v14  ;;  %v5044_v44 = vsub.f32 %v13353_v39, %v5010_v10  ;;  %v5235_v14 = vsel %vm4099_vm9, %v5173_v62, %v5174_v42  ;;  %v5113_v9 = vrot.slane %v13360_v12, 1  ;;  %v16441_v39 = vld [vmem:[#allocation61_spill] sm:$0xff] }
 0x4fd   :  { %v5176_v10 = vrot.slane %v13369_v11, 7 }
 0x4fe   :  { %16437 = vst [vmem:[#allocation6_spill] sm:$0xff] %v13362_v20  ;;  %v5076_v53 = vmul.f32 %v5044_v44, %v5008_v29  ;;  %v5112_v29 = vrot.slane %v13369_v11, 1  ;;  %v5270_v20 = vmul.f32 %v5238_v31, %v16441_v39 }
 0x4ff   :  { %v5233_v28 = vsel %vm4099_vm9, %v5175_v26, %v5176_v10 }
 0x500   :  { %v13374_v27 = vadd.f32 %v5076_v53, %v16375_v18  ;;  %v5237_v18 = vsub.f32 %v5171_v49, %v13195_v30  ;;  %v5302_v53 = vsub.f32 %v13198_v13, %v5235_v14  ;;  %v5168_v43 = vsel %vm4034_vm1, %v5112_v29, %v5113_v9  ;;  %v16444_v13 = vld [vmem:[#allocation65_spill] sm:$0xff] }
 0x501   :  { %v13404_v14 = vadd.f32 %v13218_v56, %v16442_v45  ;;  %v5169_v55 = vsel %vm4034_vm1, %v5111_v23, %v5112_v29  ;;  %v5240_v31 = vsub.f32 %v5168_v43, %v13369_v11  ;;  %v5115_v56 = vrot.slane %v13391_v58, 1 }
 0x502   :  { %16439 = vst [vmem:[#allocation76_spill] sm:$0xff] %v13374_v27  ;;  %v15840_v60 = vrot.slane %v13374_v27, 7  ;;  %v5334_v52 = vmul.f32 %v5302_v53, %v16445_v22  ;;  %v5239_v23 = vsub.f32 %v5169_v55, %v13346_v3  ;;  %v5304_v29 = vsub.f32 %v13369_v11, %v5233_v28  ;;  %v16447_v22 = vld [vmem:[#allocation29_spill] sm:$0xff]  ;;  %v16450_v28 = vld [vmem:[#allocation8_spill] sm:$0xff] }
 0x504   :  { %v5236_v44 = vsel %vm4099_vm9, %v15840_v60, %v5173_v62  ;;  %v16443_v62 = vld [vmem:[#allocation62_spill] sm:$0xff]  ;;  %v5366_v39 = vadd.f32 %v5334_v52, %v5270_v20  ;;  %v5414_v52 = vpack.c.bf16 %v13369_v11, %v13346_v3  ;;  %v5177_v20 = vrot.slane %v13360_v12, 7 }
 0x505   :  { %v5301_v49 = vsub.f32 %v13195_v30, %v5236_v44  ;;  %v5269_v60 = vmul.f32 %v5237_v18, %v16443_v62  ;;  %v5234_v44 = vsel %vm4099_vm9, %v5174_v42, %v5175_v26  ;;  %v5114_v30 = vrot.slane %v13404_v14, 1  ;;  %v16448_v26 = vld [vmem:[#allocation74_spill] sm:$0xff] }
 0x506   :  { %v5178_v18 = vrot.slane %v13404_v14, 7  ;;  %v5303_v43 = vsub.f32 %v13346_v3, %v5234_v44  ;;  %v13425_v42 = vadd.f32 %v13235_v63, %v16447_v22  ;;  %v7747_v44 = vld [vmem:[%s15457_s5] ss:$8 sps:$4 sm:$0xff]  }
 0x507   :  { %v5333_v27 = vmul.f32 %v5301_v49, %v16444_v13  ;;  %v16446_v13 = vld [vmem:[#allocation71_spill] sm:$0xff]  ;;  %v5167_v63 = vsel %vm4034_vm1, %v5113_v9, %v5114_v30 }
 0x508   :  { %v5272_v53 = vmul.f32 %v5240_v31, %v16446_v13  ;;  %v13436_v31 = vadd.f32 %v13228_v40, %v16450_v28  ;;  %v5231_v22 = vsel %vm4099_vm9, %v5177_v20, %v5178_v18  ;;  %v7748_v40 = vld [vmem:[%s15457_s5 + $0x14] ss:$8 sps:$4 sm:$0xff]   ;;  %v5117_v9 = vrot.slane %v13425_v42, 1 }
 0x509   :  { %v5365_v45 = vadd.f32 %v5333_v27, %v5269_v60  ;;  %v5166_v27 = vsel %vm4034_vm1, %v5114_v30, %v5115_v56  ;;  %v5271_v60 = vmul.f32 %v5239_v23, %v16448_v26  ;;  %v5232_v30 = vsel %vm4099_vm9, %v5176_v10, %v5177_v20  ;;  %v7750_v20 = vld [vmem:[%s15457_s5 + $0x24] ss:$8 sps:$4 sm:$0xff]  }
 0x50a   :  { %v5241_v28 = vsub.f32 %v5167_v63, %v13360_v12  ;;  %v5305_v10 = vsub.f32 %v13360_v12, %v5232_v30 }
 0x50b   :  { %v5397_v49 = vpack.c.bf16 %v5366_v39, %v5365_v45  ;;  %v16449_v39 = vld [vmem:[#allocation72_spill] sm:$0xff]  ;;  %v16451_v45 = vld [vmem:[#allocation5_spill] sm:$0xff] }
 0x50c   :  { %v5336_v55 = vmul.f32 %v5304_v29, %v16449_v39  ;;  %v5335_v23 = vmul.f32 %v5303_v43, %v16451_v45  ;;  %v5242_v29 = vsub.f32 %v5166_v27, %v13404_v14  ;;  %v5116_v43 = vrot.slane %v13436_v31, 1  ;;  %v7749_v27 = vld [vmem:[%s15457_s5 + $0x10] ss:$8 sps:$4 sm:$0xff]   ;;  %v7751_v39 = vld [vmem:[%s15457_s5 + $0x20] ss:$8 sps:$4 sm:$0xff]  }
 0x50d   :  { %5462 = vmatmul.mubr.bf16.vlgmr.msra.gmra.mrb[32].mxu0 %v5397_v49 }
 0x50e   :  { %5471 = vmatprep.mubr.bf16.mxu0 %v5414_v52  ;;  %6648 = vmatpush1.bf16.msra.mxu0 %v7747_v44  ;;  %v5368_v49 = vadd.f32 %v5336_v55, %v5272_v53  ;;  %v5367_v52 = vadd.f32 %v5335_v23, %v5271_v60  ;;  %v5306_v44 = vsub.f32 %v13404_v14, %v5231_v22  ;;  %v5180_v53 = vrot.slane %v13436_v31, 7  ;;  %v16453_v60 = vld [vmem:[#allocation35_spill] sm:$0xff] }
 0x50f   :  { %6649 = vmatprep.subr.bf16.mxu0 %v7748_v40  ;;  %v16452_v40 = vld [vmem:[#allocation84_spill] sm:$0xff]  ;;  %v13467_v63 = vadd.f32 %v13249_v1, %v16453_v60  ;;  %v5415_v22 = vpack.c.bf16 %v13404_v14, %v13360_v12  ;;  %v5164_v23 = vsel %vm4034_vm1, %v5116_v43, %v5117_v9  ;;  %v5165_v1 = vsel %vm4034_vm1, %v5115_v56, %v5116_v43 }
 0x510   :  { %v5398_v55 = vpack.c.bf16 %v5368_v49, %v5367_v52  ;;  %v5274_v45 = vmul.f32 %v5242_v29, %v16452_v40  ;;  %v5179_v49 = vrot.slane %v13391_v58, 7  ;;  %v16454_v29 = vld [vmem:[#allocation85_spill] sm:$0xff]  ;;  %v16455_v52 = vld [vmem:[#allocation86_spill] sm:$0xff]  ;;  %v16456_v40 = vld [vmem:[#allocation99_spill] sm:$0xff] }
 0x511   :  { %v5273_v30 = vmul.f32 %v5241_v28, %v16454_v29  ;;  %v5119_v43 = vrot.slane %v13467_v63, 1 }
 0x512   :  { %6650 = vmatpush1.bf16.msra.mxu0 %v7749_v27  ;;  %v5338_v27 = vmul.f32 %v5306_v44, %v16455_v52  ;;  %v5229_v60 = vsel %vm4099_vm9, %v5179_v49, %v5180_v53  ;;  %v5244_v44 = vsub.f32 %v5164_v23, %v13436_v31  ;;  %v5230_v56 = vsel %vm4099_vm9, %v5178_v18, %v5179_v49  ;;  %v7753_v23 = vld [vmem:[%s15457_s5 + $0x30] ss:$8 sps:$4 sm:$0xff]   ;;  %v7754_v49 = vld [vmem:[%s15457_s5 + $0x44] ss:$8 sps:$4 sm:$0xff]  }
 0x513   :  { %6651 = vmatprep.subr.bf16.mxu0 %v7750_v20  ;;  %v13478_v20 = vadd.f32 %v13238_v7, %v16456_v40  ;;  %v7752_v7 = vld [vmem:[%s15457_s5 + $0x34] ss:$8 sps:$4 sm:$0xff]   ;;  %v5307_v18 = vsub.f32 %v13391_v58, %v5230_v56  ;;  %v16460_v56 = vld [vmem:[#allocation32_spill] sm:$0xff] }
 0x514   :  { %v5370_v29 = vadd.f32 %v5338_v27, %v5274_v45 }
 0x515   :  { %5472 = vmatmul.mubr.bf16.gmra.mrb[36].mxu0 %v5398_v55  ;;  %v16457_v55 = vld [vmem:[#allocation87_spill] sm:$0xff]  ;;  %v5182_v45 = vrot.slane %v13478_v20, 7 }
 0x516   :  { %5481 = vmatprep.mubr.bf16.mxu0 %v5415_v22  ;;  %6652 = vmatpush1.bf16.msra.mxu0 %v7751_v39  ;;  %v5337_v28 = vmul.f32 %v5305_v10, %v16457_v55  ;;  %v5243_v22 = vsub.f32 %v5165_v1, %v13391_v58  ;;  %v5308_v39 = vsub.f32 %v13436_v31, %v5229_v60  ;;  %v5118_v10 = vrot.slane %v13478_v20, 1 }
 0x517   :  { %6653 = vmatprep.subr.bf16.mxu0 %v7752_v7  ;;  %v16458_v7 = vld [vmem:[#allocation92_spill] sm:$0xff]  ;;  %v5416_v1 = vpack.c.bf16 %v13436_v31, %v13391_v58 }
 0x518   :  { %v5369_v40 = vadd.f32 %v5337_v28, %v5273_v30  ;;  %v5276_v55 = vmul.f32 %v5244_v44, %v16458_v7  ;;  %v13509_v30 = vadd.f32 %v13259_v33, %v16246_v51  ;;  %v5162_v60 = vsel %vm4034_vm1, %v5118_v10, %v5119_v43  ;;  %v16459_v28 = vld [vmem:[#allocation93_spill] sm:$0xff]  ;;  %v7755_v7 = vld [vmem:[%s15457_s5 + $0x40] ss:$8 sps:$4 sm:$0xff]  }
 0x519   :  { %v5275_v44 = vmul.f32 %v5243_v22, %v16459_v28  ;;  %v5163_v51 = vsel %vm4034_vm1, %v5117_v9, %v5118_v10 }
 0x51a   :  { %6654 = vmatpush1.bf16.msra.mxu0 %v7753_v23  ;;  %v5399_v27 = vpack.c.bf16 %v5370_v29, %v5369_v40  ;;  %v5181_v29 = vrot.slane %v13425_v42, 7  ;;  %v5340_v40 = vmul.f32 %v5308_v39, %v16460_v56  ;;  %v16461_v23 = vld [vmem:[#allocation90_spill] sm:$0xff]  ;;  %v5246_v39 = vsub.f32 %v5162_v60, %v13478_v20 }
 0x51b   :  { %6655 = vmatprep.subr.bf16.mxu0 %v7754_v49  ;;  %v13520_v49 = vadd.f32 %v13252_v37, %v16461_v23  ;;  %v7756_v37 = vld [vmem:[%s15457_s5 + $0x54] ss:$8 sps:$4 sm:$0xff]   ;;  %v5121_v10 = vrot.slane %v13509_v30, 1  ;;  %v5245_v23 = vsub.f32 %v5163_v51, %v13425_v42  ;;  %v7757_v60 = vld [vmem:[%s15457_s5 + $0x50] ss:$8 sps:$4 sm:$0xff]   ;;  %v5417_v51 = vpack.c.bf16 %v13478_v20, %v13425_v42 }
 0x51c   :  { %v5227_v33 = vsel %vm4099_vm9, %v5181_v29, %v5182_v45  ;;  %v5372_v28 = vadd.f32 %v5340_v40, %v5276_v55  ;;  %v5228_v9 = vsel %vm4099_vm9, %v5180_v53, %v5181_v29  ;;  %v7758_v29 = vld [vmem:[%s15457_s5 + $0x64] ss:$8 sps:$4 sm:$0xff]  }
 0x51d   :  { %5482 = vmatmul.mubr.bf16.gmra.mrb[40].mxu0 %v5399_v27  ;;  %v16462_v27 = vld [vmem:[#allocation31_spill] sm:$0xff]  ;;  %v5184_v55 = vrot.slane %v13520_v49, 7  ;;  %v5309_v53 = vsub.f32 %v13425_v42, %v5228_v9  ;;  %v16465_v9 = vld [vmem:[#allocation34_spill] sm:$0xff] }
 0x51e   :  { %5491 = vmatprep.mubr.bf16.mxu0 %v5416_v1  ;;  %6656 = vmatpush1.bf16.msra.mxu0 %v7755_v7  ;;  %v5339_v22 = vmul.f32 %v5307_v18, %v16462_v27  ;;  %v5310_v7 = vsub.f32 %v13478_v20, %v5227_v33  ;;  %v5120_v18 = vrot.slane %v13520_v49, 1 }
 0x51f   :  { %6657 = vmatprep.subr.bf16.mxu0 %v7756_v37  ;;  %v16463_v37 = vld [vmem:[#allocation94_spill] sm:$0xff] }
 0x520   :  { %v5371_v1 = vadd.f32 %v5339_v22, %v5275_v44  ;;  %v5278_v27 = vmul.f32 %v5246_v39, %v16463_v37  ;;  %v13551_v44 = vadd.f32 %v13269_v46, %v16265_v6  ;;  %v5160_v33 = vsel %vm4034_vm1, %v5120_v18, %v5121_v10  ;;  %v16464_v22 = vld [vmem:[#allocation95_spill] sm:$0xff] }
 0x521   :  { %v5277_v39 = vmul.f32 %v5245_v23, %v16464_v22  ;;  %v5161_v6 = vsel %vm4034_vm1, %v5119_v43, %v5120_v18 }
 0x522   :  { %6658 = vmatpush1.bf16.msra.mxu0 %v7757_v60  ;;  %v5400_v40 = vpack.c.bf16 %v5372_v28, %v5371_v1  ;;  %v5183_v28 = vrot.slane %v13467_v63, 7  ;;  %v5342_v1 = vmul.f32 %v5310_v7, %v16465_v9  ;;  %v13562_v60 = vadd.f32 %v13262_v17, %v12410_v21  ;;  %v7760_v21 = vld [vmem:[%s15457_s5 + $0x74] ss:$8 sps:$4 sm:$0xff]  }
 0x523   :  { %6659 = vmatprep.subr.bf16.mxu0 %v7758_v29  ;;  %v7759_v29 = vld [vmem:[%s15457_s5 + $0x60] ss:$8 sps:$4 sm:$0xff]   ;;  %v5248_v7 = vsub.f32 %v5160_v33, %v13520_v49  ;;  %v5123_v43 = vrot.slane %v13551_v44, 1  ;;  %v7761_v33 = vld [vmem:[%s15457_s5 + $0x70] ss:$8 sps:$4 sm:$0xff]  }
 0x524   :  { %v5225_v46 = vsel %vm4099_vm9, %v5183_v28, %v5184_v55  ;;  %v5374_v22 = vadd.f32 %v5342_v1, %v5278_v27  ;;  %v5226_v17 = vsel %vm4099_vm9, %v5182_v45, %v5183_v28  ;;  %v5186_v27 = vrot.slane %v13562_v60, 7  ;;  %v7762_v28 = vld [vmem:[%s15457_s5 + $0x84] ss:$8 sps:$4 sm:$0xff]  }
 0x525   :  { %5492 = vmatmul.mubr.bf16.gmra.mrb[44].mxu0 %v5400_v40  ;;  %v16466_v40 = vld [vmem:[#allocation97_spill] sm:$0xff]  ;;  %v5311_v45 = vsub.f32 %v13467_v63, %v5226_v17 }
 0x526   :  { %5501 = vmatprep.mubr.bf16.mxu0 %v5417_v51  ;;  %6660 = vmatpush1.bf16.msra.mxu0 %v7759_v29  ;;  %v5341_v23 = vmul.f32 %v5309_v53, %v16466_v40  ;;  %v5247_v51 = vsub.f32 %v5161_v6, %v13467_v63  ;;  %v5312_v29 = vsub.f32 %v13520_v49, %v5225_v46  ;;  %v5122_v53 = vrot.slane %v13562_v60, 1  ;;  %v16469_v17 = vld [vmem:[#allocation37_spill] sm:$0xff] }
 0x527   :  { %6661 = vmatprep.subr.bf16.mxu0 %v7760_v21  ;;  %v16467_v21 = vld [vmem:[#allocation100_spill] sm:$0xff]  ;;  %v5418_v6 = vpack.c.bf16 %v13520_v49, %v13467_v63 }
 0x528   :  { %v5373_v18 = vadd.f32 %v5341_v23, %v5277_v39  ;;  %v5280_v40 = vmul.f32 %v5248_v7, %v16467_v21  ;;  %v13593_v39 = vadd.f32 %v13279_v5, %v16270_v35  ;;  %v5158_v46 = vsel %vm4034_vm1, %v5122_v53, %v5123_v43  ;;  %v16468_v23 = vld [vmem:[#allocation101_spill] sm:$0xff] }
 0x529   :  { %v5279_v7 = vmul.f32 %v5247_v51, %v16468_v23  ;;  %v5159_v35 = vsel %vm4034_vm1, %v5121_v10, %v5122_v53 }
 0x52a   :  { %6662 = vmatpush1.bf16.msra.mxu0 %v7761_v33  ;;  %v5401_v1 = vpack.c.bf16 %v5374_v22, %v5373_v18  ;;  %v5185_v22 = vrot.slane %v13509_v30, 7  ;;  %v5344_v18 = vmul.f32 %v5312_v29, %v16469_v17  ;;  %v13604_v33 = vadd.f32 %v13272_v32, %v12516_v47  ;;  %v7764_v47 = vld [vmem:[%s15457_s5 + $0x94] ss:$8 sps:$4 sm:$0xff]  }
 0x52b   :  { %6663 = vmatprep.subr.bf16.mxu0 %v7762_v28  ;;  %v7763_v28 = vld [vmem:[%s15457_s5 + $0x80] ss:$8 sps:$4 sm:$0xff]   ;;  %v5250_v29 = vsub.f32 %v5158_v46, %v13562_v60  ;;  %v5125_v10 = vrot.slane %v13593_v39, 1  ;;  %v7765_v46 = vld [vmem:[%s15457_s5 + $0x90] ss:$8 sps:$4 sm:$0xff]  }
 0x52c   :  { %v5223_v5 = vsel %vm4099_vm9, %v5185_v22, %v5186_v27  ;;  %v5376_v23 = vadd.f32 %v5344_v18, %v5280_v40  ;;  %v5224_v32 = vsel %vm4099_vm9, %v5184_v55, %v5185_v22  ;;  %v5188_v40 = vrot.slane %v13604_v33, 7  ;;  %v7766_v22 = vld [vmem:[%s15457_s5 + $0xa4] ss:$8 sps:$4 sm:$0xff]  }
 0x52d   :  { %5502 = vmatmul.mubr.bf16.gmra.mrb[48].mxu0 %v5401_v1  ;;  %v16470_v1 = vld [vmem:[#allocation30_spill] sm:$0xff]  ;;  %v5313_v55 = vsub.f32 %v13509_v30, %v5224_v32  ;;  %v13646_v32 = vadd.f32 %v13282_v19, %v12557_v16 }
 0x52e   :  { %5511 = vmatprep.mubr.bf16.mxu0 %v5418_v6  ;;  %6664 = vmatpush1.bf16.msra.mxu0 %v7763_v28  ;;  %v5343_v51 = vmul.f32 %v5311_v45, %v16470_v1  ;;  %v5249_v6 = vsub.f32 %v5159_v35, %v13509_v30  ;;  %v5314_v28 = vsub.f32 %v13562_v60, %v5223_v5  ;;  %v5124_v45 = vrot.slane %v13604_v33, 1  ;;  %v7768_v16 = vld [vmem:[%s15457_s5 + $0xb4] ss:$8 sps:$4 sm:$0xff]  }
 0x52f   :  { %6665 = vmatprep.subr.bf16.mxu0 %v7764_v47  ;;  %v5282_v47 = vmul.f32 %v5250_v29, %v12377_v8  ;;  %v5419_v35 = vpack.c.bf16 %v13562_v60, %v13509_v30  ;;  %16472 = vst [vmem:[#allocation27_spill] sm:$0xff] %v13646_v32 }
 0x530   :  { %v5375_v53 = vadd.f32 %v5343_v51, %v5279_v7  ;;  %v13635_v7 = vadd.f32 %v13289_v54, %v12653_v36  ;;  %v5156_v5 = vsel %vm4034_vm1, %v5124_v45, %v5125_v10  ;;  %v5281_v51 = vmul.f32 %v5249_v6, %v12381_v0 }
 0x531   :  { %v5346_v29 = vmul.f32 %v5314_v28, %v12469_v15  ;;  %v5157_v36 = vsel %vm4034_vm1, %v5123_v43, %v5124_v45  ;;  %v5345_v6 = vmul.f32 %v5313_v55, %v12471_v50  ;;  %v5252_v28 = vsub.f32 %v5156_v5, %v13604_v33 }
 0x532   :  { %6666 = vmatpush1.bf16.msra.mxu0 %v7765_v46  ;;  %v5402_v18 = vpack.c.bf16 %v5376_v23, %v5375_v53  ;;  %16471 = vst [vmem:[#allocation25_spill] sm:$0xff] %v13635_v7  ;;  %v5187_v23 = vrot.slane %v13551_v44, 7  ;;  %v7767_v53 = vld [vmem:[%s15457_s5 + $0xa0] ss:$8 sps:$4 sm:$0xff]   ;;  %v5127_v43 = vrot.slane %v13635_v7, 1  ;;  %v5126_v55 = vrot.slane %v13646_v32, 1 }
 0x533   :  { %6667 = vmatprep.subr.bf16.mxu0 %v7766_v22  ;;  %v5378_v46 = vadd.f32 %v5346_v29, %v5282_v47  ;;  %v5377_v45 = vadd.f32 %v5345_v6, %v5281_v51  ;;  %v5190_v47 = vrot.slane %v13646_v32, 7  ;;  %v16473_v29 = vld [vmem:[#allocation96_spill] sm:$0xff]  ;;  %v13677_v51 = vadd.f32 %v13299_v25, %v12741_v24 }
 0x534   :  { %v5221_v54 = vsel %vm4099_vm9, %v5187_v23, %v5188_v40  ;;  %v5222_v19 = vsel %vm4099_vm9, %v5186_v27, %v5187_v23  ;;  %v7770_v23 = vld [vmem:[%s15457_s5 + $0xc4] ss:$8 sps:$4 sm:$0xff]   ;;  %v5189_v6 = vrot.slane %v13593_v39, 7  ;;  %v5155_v24 = vsel %vm4034_vm1, %v5125_v10, %v5126_v55 }
 0x535   :  { %5512 = vmatmul.mubr.bf16.gmra.mrb[52].mxu0 %v5402_v18  ;;  %v5251_v18 = vsub.f32 %v5157_v36, %v13551_v44  ;;  %v5316_v22 = vsub.f32 %v13604_v33, %v5221_v54  ;;  %v5403_v5 = vpack.c.bf16 %v5378_v46, %v5377_v45  ;;  %v5315_v27 = vsub.f32 %v13551_v44, %v5222_v19  ;;  %v16475_v46 = vld [vmem:[#allocation40_spill] sm:$0xff] }
 0x536   :  { %5521 = vmatprep.mubr.bf16.mxu0 %v5419_v35  ;;  %6668 = vmatpush1.bf16.msra.mxu0 %v7767_v53  ;;  %v7769_v35 = vld [vmem:[%s15457_s5 + $0xb0] ss:$8 sps:$4 sm:$0xff]   ;;  %v5284_v53 = vmul.f32 %v5252_v28, %v16473_v29  ;;  %16474 = vst [vmem:[#allocation62_spill] sm:$0xff] %v13677_v51  ;;  %v5420_v36 = vpack.c.bf16 %v13604_v33, %v13551_v44  ;;  %v5129_v10 = vrot.slane %v13677_v51, 1 }
 0x537   :  { %6669 = vmatprep.subr.bf16.mxu0 %v7768_v16  ;;  %v5154_v54 = vsel %vm4034_vm1, %v5126_v55, %v5127_v43  ;;  %v5283_v28 = vmul.f32 %v5251_v18, %v16475_v46  ;;  %v16476_v16 = vld [vmem:[#allocation17_spill] sm:$0xff]  ;;  %v13688_v45 = vadd.f32 %v13292_v4, %v12655_v38  ;;  %v5219_v25 = vsel %vm4099_vm9, %v5189_v6, %v5190_v47 }
 0x538   :  { %v5348_v19 = vmul.f32 %v5316_v22, %v16476_v16  ;;  %v5254_v22 = vsub.f32 %v5154_v54, %v13646_v32  ;;  %v7772_v38 = vld [vmem:[%s15457_s5 + $0xd4] ss:$8 sps:$4 sm:$0xff]   ;;  %v5220_v4 = vsel %vm4099_vm9, %v5188_v40, %v5189_v6  ;;  %v7773_v54 = vld [vmem:[%s15457_s5 + $0xd0] ss:$8 sps:$4 sm:$0xff]   ;;  %v7774_v6 = vld [vmem:[%s15457_s5 + $0xe4] ss:$8 sps:$4 sm:$0xff]  }
 0x539   :  { %16477 = vst [vmem:[#allocation71_spill] sm:$0xff] %v13688_v45  ;;  %v5317_v40 = vsub.f32 %v13593_v39, %v5220_v4  ;;  %v16482_v4 = vld [vmem:[#allocation20_spill] sm:$0xff] }
 0x53a   :  { %6670 = vmatpush1.bf16.msra.mxu0 %v7769_v35  ;;  %v7771_v35 = vld [vmem:[%s15457_s5 + $0xc0] ss:$8 sps:$4 sm:$0xff]  }
 0x53b   :  { %6671 = vmatprep.subr.bf16.mxu0 %v7770_v23  ;;  %v5380_v23 = vadd.f32 %v5348_v19, %v5284_v53  ;;  %v5192_v53 = vrot.slane %v13688_v45, 7 }
 0x53d   :  { %5522 = vmatmul.mubr.bf16.gmra.mrb[56].mxu0 %v5403_v5  ;;  %v16478_v5 = vld [vmem:[#allocation56_spill] sm:$0xff] }
 0x53e   :  { %5531 = vmatprep.mubr.bf16.mxu0 %v5420_v36  ;;  %6672 = vmatpush1.bf16.msra.mxu0 %v7771_v35  ;;  %v5347_v18 = vmul.f32 %v5315_v27, %v16478_v5  ;;  %v5253_v36 = vsub.f32 %v5155_v24, %v13593_v39  ;;  %v5318_v35 = vsub.f32 %v13646_v32, %v5219_v25  ;;  %v5128_v27 = vrot.slane %v13688_v45, 1 }
 0x53f   :  { %6673 = vmatprep.subr.bf16.mxu0 %v7772_v38  ;;  %v16479_v38 = vld [vmem:[#allocation36_spill] sm:$0xff]  ;;  %v5421_v24 = vpack.c.bf16 %v13646_v32, %v13593_v39 }
 0x540   :  { %v5379_v55 = vadd.f32 %v5347_v18, %v5283_v28  ;;  %v5286_v5 = vmul.f32 %v5254_v22, %v16479_v38  ;;  %v13719_v28 = vadd.f32 %v13311_v61, %v12795_v59  ;;  %v5152_v25 = vsel %vm4034_vm1, %v5128_v27, %v5129_v10  ;;  %v7775_v38 = vld [vmem:[%s15457_s5 + $0xe0] ss:$8 sps:$4 sm:$0xff]  }
 0x541   :  { %v5191_v18 = vrot.slane %v13635_v7, 7  ;;  %v5153_v59 = vsel %vm4034_vm1, %v5127_v43, %v5128_v27 }
 0x542   :  { %6674 = vmatpush1.bf16.msra.mxu0 %v7773_v54  ;;  %v5404_v19 = vpack.c.bf16 %v5380_v23, %v5379_v55  ;;  %16480 = vst [vmem:[#allocation29_spill] sm:$0xff] %v13719_v28  ;;  %v16481_v23 = vld [vmem:[#allocation47_spill] sm:$0xff]  ;;  %v5350_v55 = vmul.f32 %v5318_v35, %v16482_v4  ;;  %v16483_v54 = vld [vmem:[#allocation109_spill] sm:$0xff]  ;;  %v5256_v35 = vsub.f32 %v5152_v25, %v13688_v45  ;;  %v5131_v27 = vrot.slane %v13719_v28, 1  ;;  %v16489_v4 = vld [vmem:[#allocation52_spill] sm:$0xff] }
 0x543   :  { %6675 = vmatprep.subr.bf16.mxu0 %v7774_v6  ;;  %v5285_v22 = vmul.f32 %v5253_v36, %v16481_v23  ;;  %v13730_v6 = vadd.f32 %v16483_v54, %v16353_v48  ;;  %v5217_v61 = vsel %vm4099_vm9, %v5191_v18, %v5192_v53  ;;  %v7776_v48 = vld [vmem:[%s15457_s5 + $0xf4] ss:$8 sps:$4 sm:$0xff]   ;;  %v5218_v43 = vsel %vm4099_vm9, %v5190_v47, %v5191_v18  ;;  %v7777_v25 = vld [vmem:[%s15457_s5 + $0xf0] ss:$8 sps:$4 sm:$0xff]  }
 0x544   :  { %v5382_v23 = vadd.f32 %v5350_v55, %v5286_v5  ;;  %v5255_v54 = vsub.f32 %v5153_v59, %v13635_v7  ;;  %v5319_v47 = vsub.f32 %v13635_v7, %v5218_v43  ;;  %v16487_v18 = vld [vmem:[#allocation69_spill] sm:$0xff]  ;;  %v5422_v59 = vpack.c.bf16 %v13688_v45, %v13635_v7 }
 0x545   :  { %5532 = vmatmul.mubr.bf16.gmra.mrb[60].mxu0 %v5404_v19  ;;  %16484 = vst [vmem:[#allocation74_spill] sm:$0xff] %v13730_v6  ;;  %v16485_v19 = vld [vmem:[#allocation54_spill] sm:$0xff]  ;;  %v5194_v5 = vrot.slane %v13730_v6, 7 }
 0x546   :  { %5541 = vmatprep.mubr.bf16.mxu0 %v5421_v24  ;;  %6676 = vmatpush1.bf16.msra.mxu0 %v7775_v38  ;;  %v5349_v36 = vmul.f32 %v5317_v40, %v16485_v19  ;;  %v5320_v38 = vsub.f32 %v13688_v45, %v5217_v61  ;;  %v5130_v40 = vrot.slane %v13730_v6, 1 }
 0x547   :  { %6677 = vmatprep.subr.bf16.mxu0 %v7776_v48  ;;  %v16486_v48 = vld [vmem:[#allocation39_spill] sm:$0xff] }
 0x548   :  { %v5381_v24 = vadd.f32 %v5349_v36, %v5285_v22  ;;  %v5288_v19 = vmul.f32 %v5256_v35, %v16486_v48  ;;  %v13758_v22 = vadd.f32 %v13321_v34, %v16487_v18  ;;  %v5150_v61 = vsel %vm4034_vm1, %v5130_v40, %v5131_v27  ;;  %v16491_v35 = vld [vmem:[#allocation58_spill] sm:$0xff]  ;;  %v16493_v48 = vld [vmem:[#allocation57_spill] sm:$0xff] }
 0x549   :  { %v5193_v36 = vrot.slane %v13677_v51, 7  ;;  %v13769_v43 = vadd.f32 %v13314_v57, %v16491_v35  ;;  %v5151_v34 = vsel %vm4034_vm1, %v5129_v10, %v5130_v40  ;;  %v5351_v45 = vmul.f32 %v5319_v47, %v16493_v48 }
 0x54a   :  { %6678 = vmatpush1.bf16.msra.mxu0 %v7777_v25  ;;  %v5405_v55 = vpack.c.bf16 %v5382_v23, %v5381_v24  ;;  %16488 = vst [vmem:[#allocation8_spill] sm:$0xff] %v13758_v22  ;;  %v5287_v25 = vmul.f32 %v5255_v54, %v16489_v4  ;;  %v16490_v23 = vld [vmem:[#allocation53_spill] sm:$0xff]  ;;  %v5257_v57 = vsub.f32 %v5151_v34, %v13677_v51  ;;  %v16494_v4 = vld [vmem:[#allocation4_spill] sm:$0xff] }
 0x54b   :  { %v5352_v24 = vmul.f32 %v5320_v38, %v16490_v23  ;;  %16492 = vst [vmem:[#allocation35_spill] sm:$0xff] %v13769_v43  ;;  %v5215_v18 = vsel %vm4099_vm9, %v5193_v36, %v5194_v5  ;;  %v5216_v54 = vsel %vm4099_vm9, %v5192_v53, %v5193_v36  ;;  %v5133_v38 = vrot.slane %v13758_v22, 1 }
 0x54c   :  { %v5383_v23 = vadd.f32 %v5351_v45, %v5287_v25  ;;  %v5132_v10 = vrot.slane %v13769_v43, 1  ;;  %v5196_v40 = vrot.slane %v13769_v43, 7  ;;  %v5423_v45 = vpack.c.bf16 %v13730_v6, %v13677_v51  ;;  %v16497_v25 = vld [vmem:[#allocation67_spill] sm:$0xff] }
 0x54d   :  { %5542 = vmatmul.mubr.bf16.gmra.mrb[64].mxu0 %v5405_v55  ;;  %v5384_v16 = vadd.f32 %v5352_v24, %v5288_v19  ;;  %v5258_v55 = vsub.f32 %v5150_v61, %v13730_v6  ;;  %v5321_v19 = vsub.f32 %v13677_v51, %v5216_v54  ;;  %v16495_v61 = vld [vmem:[#allocation14_spill] sm:$0xff]  ;;  %v5195_v36 = vrot.slane %v13719_v28, 7 }
 0x54e   :  { %5551 = vmatprep.mubr.bf16.mxu0 %v5422_v59  ;;  %v5322_v59 = vsub.f32 %v13730_v6, %v5215_v18  ;;  %v13788_v24 = vadd.f32 %v13331_v41, %v16495_v61  ;;  %v5148_v53 = vsel %vm4034_vm1, %v5132_v10, %v5133_v38  ;;  %v5289_v34 = vmul.f32 %v5257_v57, %v16497_v25  ;;  %v16499_v18 = vld [vmem:[#allocation12_spill] sm:$0xff]  ;;  %v16503_v25 = vld [vmem:[#allocation10_spill] sm:$0xff] }
 0x54f   :  { %v5406_v35 = vpack.c.bf16 %v5384_v16, %v5383_v23  ;;  %v5290_v47 = vmul.f32 %v5258_v55, %v16494_v4  ;;  %v16498_v16 = vld [vmem:[#allocation33_spill] sm:$0xff]  ;;  %v16500_v55 = vld [vmem:[#allocation114_spill] sm:$0xff]  ;;  %v5149_v41 = vsel %vm4034_vm1, %v5131_v27, %v5132_v10  ;;  %v5213_v61 = vsel %vm4099_vm9, %v5195_v36, %v5196_v40 }
 0x550   :  { %16496 = vst [vmem:[#allocation99_spill] sm:$0xff] %v13788_v24  ;;  %v5354_v23 = vmul.f32 %v5322_v59, %v16498_v16  ;;  %v13799_v54 = vadd.f32 %v16500_v55, %v16499_v18  ;;  %v16502_v4 = vld [vmem:[#allocation45_spill] sm:$0xff]  ;;  %v5214_v57 = vsel %vm4099_vm9, %v5194_v5, %v5195_v36  ;;  %v5135_v59 = vrot.slane %v13788_v24, 1 }
 0x551   :  { %v5353_v48 = vmul.f32 %v5321_v19, %v16502_v4  ;;  %v5259_v18 = vsub.f32 %v5149_v41, %v13719_v28  ;;  %v5424_v5 = vpack.c.bf16 %v13769_v43, %v13719_v28  ;;  %v5197_v36 = vrot.slane %v13758_v22, 7 }
 0x552   :  { %16501 = vst [vmem:[#allocation90_spill] sm:$0xff] %v13799_v54  ;;  %v5386_v6 = vadd.f32 %v5354_v23, %v5290_v47  ;;  %v5134_v27 = vrot.slane %v13799_v54, 1  ;;  %v5198_v10 = vrot.slane %v13799_v54, 7  ;;  %v5323_v47 = vsub.f32 %v13719_v28, %v5214_v57  ;;  %v16505_v23 = vld [vmem:[#allocation120_spill] sm:$0xff] }
 0x553   :  { %v5385_v16 = vadd.f32 %v5353_v48, %v5289_v34  ;;  %v16507_v34 = vld [vmem:[#allocation60_spill] sm:$0xff] }
 0x554   :  { %v5146_v48 = vsel %vm4034_vm1, %v5134_v27, %v5135_v59  ;;  %v5291_v41 = vmul.f32 %v5259_v18, %v16507_v34  ;;  %v5212_v18 = vsel %vm4099_vm9, %v5196_v40, %v5197_v36  ;;  %v16513_v34 = vld [vmem:[#allocation50_spill] sm:$0xff] }
 0x555   :  { %5552 = vmatmul.mubr.bf16.gmra.mrb[68].mxu0 %v5406_v35  ;;  %v5260_v35 = vsub.f32 %v5148_v53, %v13769_v43  ;;  %v5407_v55 = vpack.c.bf16 %v5386_v6, %v5385_v16  ;;  %v16504_v53 = vld [vmem:[#allocation98_spill] sm:$0xff]  ;;  %v16508_v6 = vld [vmem:[#allocation15_spill] sm:$0xff] }
 0x556   :  { %5561 = vmatprep.mubr.bf16.mxu0 %v5423_v45  ;;  %v5324_v45 = vsub.f32 %v13769_v43, %v5213_v61  ;;  %v13818_v4 = vadd.f32 %v16505_v23, %v16504_v53  ;;  %v16509_v61 = vld [vmem:[#allocation22_spill] sm:$0xff]  ;;  %v5147_v53 = vsel %vm4034_vm1, %v5133_v38, %v5134_v27  ;;  %v5211_v23 = vsel %vm4099_vm9, %v5197_v36, %v5198_v10 }
 0x557   :  { %v5292_v19 = vmul.f32 %v5260_v35, %v16503_v25  ;;  %v16510_v35 = vld [vmem:[#allocation117_spill] sm:$0xff]  ;;  %v5199_v36 = vrot.slane %v13788_v24, 7 }
 0x558   :  { %16506 = vst [vmem:[#allocation109_spill] sm:$0xff] %v13818_v4  ;;  %v5356_v16 = vmul.f32 %v5324_v45, %v16508_v6  ;;  %v13829_v57 = vadd.f32 %v16510_v35, %v16509_v61  ;;  %v16512_v25 = vld [vmem:[#allocation41_spill] sm:$0xff]  ;;  %v5137_v45 = vrot.slane %v13818_v4, 1  ;;  %v5261_v61 = vsub.f32 %v5147_v53, %v13758_v22 }
 0x559   :  { %v5355_v43 = vmul.f32 %v5323_v47, %v16512_v25 }
 0x55a   :  { %16511 = vst [vmem:[#allocation69_spill] sm:$0xff] %v13829_v57  ;;  %v5388_v28 = vadd.f32 %v5356_v16, %v5292_v19  ;;  %v5136_v38 = vrot.slane %v13829_v57, 1  ;;  %v5200_v27 = vrot.slane %v13829_v57, 7  ;;  %v5325_v19 = vsub.f32 %v13758_v22, %v5212_v18  ;;  %v16515_v16 = vld [vmem:[#allocation6_spill] sm:$0xff] }
 0x55b   :  { %v5387_v6 = vadd.f32 %v5355_v43, %v5291_v41  ;;  %v5425_v43 = vpack.c.bf16 %v13799_v54, %v13758_v22  ;;  %v16517_v41 = vld [vmem:[#allocation75_spill] sm:$0xff] }
 0x55c   :  { %v5144_v40 = vsel %vm4034_vm1, %v5136_v38, %v5137_v45  ;;  %v5293_v53 = vmul.f32 %v5261_v61, %v16517_v41  ;;  %v5210_v61 = vsel %vm4099_vm9, %v5198_v10, %v5199_v36  ;;  %v16523_v41 = vld [vmem:[#allocation80_spill] sm:$0xff]  ;;  %v5426_v10 = vpack.c.bf16 %v13829_v57, %v13788_v24 }
 0x55d   :  { %5562 = vmatmul.mubr.bf16.gmra.mrb[72].mxu0 %v5407_v55  ;;  %v5262_v55 = vsub.f32 %v5146_v48, %v13799_v54  ;;  %v5408_v35 = vpack.c.bf16 %v5388_v28, %v5387_v6  ;;  %v16514_v48 = vld [vmem:[#allocation3_spill] sm:$0xff]  ;;  %v16518_v28 = vld [vmem:[#allocation73_spill] sm:$0xff] }
 0x55e   :  { %5571 = vmatprep.mubr.bf16.mxu0 %v5424_v5  ;;  %v5326_v5 = vsub.f32 %v13799_v54, %v5211_v23  ;;  %v13848_v25 = vadd.f32 %v16515_v16, %v16514_v48  ;;  %v16519_v23 = vld [vmem:[#allocation16_spill] sm:$0xff]  ;;  %v5145_v48 = vsel %vm4034_vm1, %v5135_v59, %v5136_v38  ;;  %v5209_v16 = vsel %vm4099_vm9, %v5199_v36, %v5200_v27  ;;  %v16524_v36 = vld [vmem:[#allocation46_spill] sm:$0xff] }
 0x55f   :  { %v5294_v47 = vmul.f32 %v5262_v55, %v16513_v34  ;;  %v16520_v55 = vld [vmem:[#allocation79_spill] sm:$0xff]  ;;  %v16522_v34 = vld [vmem:[#allocation81_spill] sm:$0xff] }
 0x560   :  { %16516 = vst [vmem:[#allocation58_spill] sm:$0xff] %v13848_v25  ;;  %v5358_v6 = vmul.f32 %v5326_v5, %v16518_v28  ;;  %v13859_v18 = vadd.f32 %v16520_v55, %v16519_v23  ;;  %v5357_v54 = vmul.f32 %v5325_v19, %v16522_v34  ;;  %v5139_v5 = vrot.slane %v13848_v25, 1 }
 0x561   :  { %v5263_v23 = vsub.f32 %v5145_v48, %v13788_v24 }
 0x562   :  { %16521 = vst [vmem:[#allocation14_spill] sm:$0xff] %v13859_v18  ;;  %v5390_v22 = vadd.f32 %v5358_v6, %v5294_v47  ;;  %v5389_v28 = vadd.f32 %v5357_v54, %v5293_v53  ;;  %v5138_v59 = vrot.slane %v13859_v18, 1  ;;  %v5202_v38 = vrot.slane %v13859_v18, 7  ;;  %v16525_v6 = vld [vmem:[#allocation59_spill] sm:$0xff] }
 0x563   :  { %v5327_v47 = vsub.f32 %v13788_v24, %v5210_v61  ;;  %v5295_v53 = vmul.f32 %v5263_v23, %v16524_v36  ;;  %v16528_v36 = vld [vmem:[#allocation21_spill] sm:$0xff] }
 0x564   :  { %v5409_v55 = vpack.c.bf16 %v5390_v22, %v5389_v28  ;;  %v5142_v54 = vsel %vm4034_vm1, %v5138_v59, %v5139_v5  ;;  %v5143_v22 = vsel %vm4034_vm1, %v5137_v45, %v5138_v59  ;;  %v5203_v59 = vrot.slane %v13848_v25, 7 }
 0x565   :  { %5572 = vmatmul.mubr.bf16.gmra.mrb[76].mxu0 %v5408_v35  ;;  %v5264_v35 = vsub.f32 %v5144_v40, %v13829_v57  ;;  %v5201_v40 = vrot.slane %v13818_v4, 7  ;;  %v5266_v34 = vsub.f32 %v5142_v54, %v13859_v18 }
 0x566   :  { %5581 = vmatprep.mubr.bf16.mxu0 %v5425_v43  ;;  %v5328_v43 = vsub.f32 %v13829_v57, %v5209_v16  ;;  %v16526_v16 = vld [vmem:[#allocation78_spill] sm:$0xff] }
 0x567   :  { %v5296_v19 = vmul.f32 %v5264_v35, %v16523_v41  ;;  %v5207_v28 = vsel %vm4099_vm9, %v5201_v40, %v5202_v38  ;;  %v5359_v35 = vmul.f32 %v5327_v47, %v16526_v16  ;;  %v5208_v41 = vsel %vm4099_vm9, %v5200_v27, %v5201_v40  ;;  %v16529_v40 = vld [vmem:[#allocation83_spill] sm:$0xff] }
 0x568   :  { %v5360_v48 = vmul.f32 %v5328_v43, %v16525_v6  ;;  %v5265_v43 = vsub.f32 %v5143_v22, %v13818_v4  ;;  %v5329_v45 = vsub.f32 %v13818_v4, %v5208_v41  ;;  %v5298_v47 = vmul.f32 %v5266_v34, %v16528_v36  ;;  %v16532_v22 = vld [vmem:[#allocation77_spill] sm:$0xff]  ;;  %v16533_v34 = vld [vmem:[#allocation28_spill] sm:$0xff] }
 0x569   :  { %v5391_v23 = vadd.f32 %v5359_v35, %v5295_v53  ;;  %v16530_v54 = vrot.slane %v16529_v40, 1 }
 0x56a   :  { %v5392_v61 = vadd.f32 %v5360_v48, %v5296_v19  ;;  %v5427_v19 = vpack.c.bf16 %v13859_v18, %v13818_v4 }
 0x56c   :  { %v5410_v6 = vpack.c.bf16 %v5392_v61, %v5391_v23  ;;  %v16534_v61 = vld [vmem:[#allocation91_spill] sm:$0xff] }
 0x56d   :  { %5582 = vmatmul.mubr.bf16.gmra.mrb[80].mxu0 %v5409_v55  ;;  %v16527_v55 = vld [vmem:[#allocation76_spill] sm:$0xff]  ;;  %v5361_v23 = vmul.f32 %v5329_v45, %v16534_v61 }
 0x56e   :  { %5591 = vmatprep.mubr.bf16.mxu0 %v5426_v10  ;;  %v5140_v57 = vrot.slane %v16527_v55, 1  ;;  %v5330_v10 = vsub.f32 %v13859_v18, %v5207_v28  ;;  %v16531_v48 = vrot.slane %v16527_v55, 7  ;;  %v5297_v28 = vmul.f32 %v5265_v43, %v16532_v22  ;;  %v16535_v43 = vld [vmem:[#allocation51_spill] sm:$0xff] }
 0x570   :  { %v5141_v27 = vsel %vm4034_vm1, %v5139_v5, %v5140_v57  ;;  %v5172_v53 = vsel %vm4034_vm1, %v5140_v57, %v16530_v54  ;;  %v5205_v41 = vsel %vm4099_vm9, %v5203_v59, %v16531_v48  ;;  %v5362_v35 = vmul.f32 %v5330_v10, %v16533_v34  ;;  %v16536_v10 = vld [vmem:[#allocation7_spill] sm:$0xff]  ;;  %v16537_v34 = vld [vmem:[#allocation68_spill] sm:$0xff] }
 0x571   :  { %v5206_v5 = vsel %vm4099_vm9, %v5202_v38, %v5203_v59  ;;  %v5267_v16 = vsub.f32 %v5141_v27, %v13848_v25  ;;  %v5268_v57 = vsub.f32 %v5172_v53, %v16527_v55  ;;  %v5332_v54 = vsub.f32 %v16527_v55, %v5205_v41  ;;  %v16538_v59 = vld [vmem:[#allocation64_spill] sm:$0xff] }
 0x572   :  { %v5394_v36 = vadd.f32 %v5362_v35, %v5298_v47  ;;  %v5393_v18 = vadd.f32 %v5361_v23, %v5297_v28  ;;  %v5428_v38 = vpack.c.bf16 %v16527_v55, %v13848_v25 }
 0x573   :  { %v5299_v22 = vmul.f32 %v5267_v16, %v16535_v43  ;;  %v5364_v45 = vmul.f32 %v5332_v54, %v16537_v34 }
 0x574   :  { %v5411_v48 = vpack.c.bf16 %v5394_v36, %v5393_v18  ;;  %v16539_v18 = vld [vmem:[#allocation26_spill] sm:$0xff] }
 0x575   :  { %5592 = vmatmul.mubr.bf16.gmra.mrb[84].mxu0 %v5410_v6  ;;  %v5331_v6 = vsub.f32 %v13848_v25, %v5206_v5 }
 0x576   :  { %5601 = vmatprep.mubr.bf16.mxu0 %v5427_v19  ;;  %v5300_v19 = vmul.f32 %v5268_v57, %v16536_v10  ;;  %v16540_v57 = vld [vmem:[#allocation24_spill] sm:$0xff] }
 0x577   :  { %v5363_v47 = vmul.f32 %v5331_v6, %v16538_v59 }
 0x578   :  { %v5396_v53 = vadd.f32 %v5364_v45, %v5300_v19  ;;  %v16544_v45 = vld [vmem:[#allocation82_spill] sm:$0xff] }
 0x579   :  { %v5395_v27 = vadd.f32 %v5363_v47, %v5299_v22 }
 0x57b   :  { %v5412_v41 = vpack.c.bf16 %v5396_v53, %v5395_v27 }
 0x57d   :  { %5602 = vmatmul.mubr.bf16.gmra.mrb[88].mxu0 %v5411_v48  ;;  %v16542_v48 = vld [vmem:[#allocation23_spill] sm:$0xff] }
 0x57e   :  { %5611 = vmatprep.mubr.bf16.mxu0 %v5428_v38 }
 0x585   :  { %5612 = vmatmul.mubr.bf16.gmra.mrb[92].mxu0 %v5412_v41 }
 0x5e0   :  { %v5463_v28 = vpop.f32.mrb[32].mxu0 }
 0x5e1   :  { %v5465_v35 = vpop.f32.mrb[33].mxu0 }
 0x5e2   :  { %v5622_v36 = vsub.f32 %v16539_v18, %v5465_v35  ;;  %v5467_v16 = vpop.f32.mrb[34].mxu0 }
 0x5e3   :  { %v5469_v23 = vpop.f32.mrb[35].mxu0 }
 0x5e4   :  { %v5654_v5 = vmul.f32 %v5622_v36, %v5463_v28  ;;  %v5623_v54 = vsub.f32 %v16540_v57, %v5469_v23  ;;  %v16545_v28 = vld [vmem:[#allocation18_spill] sm:$0xff] }
 0x5e6   :  { %v5655_v34 = vmul.f32 %v5623_v54, %v5467_v16  ;;  %v13927_v10 = vadd.f32 %v5654_v5, %v16529_v40 }
 0x5e8   :  { %16541 = vst [vmem:[#allocation12_spill] sm:$0xff] %v13927_v10  ;;  %v13930_v6 = vadd.f32 %v5655_v34, %v16542_v48  ;;  %v5473_v22 = vpop.f32.mrb[36].mxu0  ;;  %v16546_v34 = vld [vmem:[#allocation44_spill] sm:$0xff] }
 0x5e9   :  { %v5475_v19 = vpop.f32.mrb[37].mxu0 }
 0x5ea   :  { %16543 = vst [vmem:[#allocation114_spill] sm:$0xff] %v13930_v6  ;;  %v5624_v38 = vsub.f32 %v16544_v45, %v5475_v19  ;;  %v5477_v47 = vpop.f32.mrb[38].mxu0  ;;  %v6022_v27 = vpack.c.bf16 %v13930_v6, %v13927_v10  ;;  %v16547_v19 = vld [vmem:[#allocation38_spill] sm:$0xff] }
 0x5eb   :  { %v5479_v53 = vpop.f32.mrb[39].mxu0 }
 0x5ec   :  { %v13935_v41 = vmul.f32 %v5624_v38, %v5473_v22  ;;  %v5625_v35 = vsub.f32 %v16545_v28, %v5479_v53  ;;  %6070 = vmatprep.mubr.bf16.mxu1 %v6022_v27  ;;  %v16548_v38 = vld [vmem:[#allocation66_spill] sm:$0xff] }
 0x5ee   :  { %v13938_v36 = vmul.f32 %v5625_v35, %v5477_v47  ;;  %v16549_v35 = vld [vmem:[#allocation11_spill] sm:$0xff] }
 0x5f0   :  { %v5483_v40 = vpop.f32.mrb[40].mxu0 }
 0x5f1   :  { %v5485_v16 = vpop.f32.mrb[41].mxu0 }
 0x5f2   :  { %v5626_v23 = vsub.f32 %v16546_v34, %v5485_v16  ;;  %v5487_v5 = vpop.f32.mrb[42].mxu0 }
 0x5f3   :  { %v5489_v54 = vpop.f32.mrb[43].mxu0 }
 0x5f4   :  { %v13941_v48 = vmul.f32 %v5626_v23, %v5483_v40  ;;  %v5627_v45 = vsub.f32 %v16547_v19, %v5489_v54  ;;  %v16550_v40 = vld [vmem:[#allocation42_spill] sm:$0xff] }
 0x5f6   :  { %v13944_v57 = vmul.f32 %v5627_v45, %v5487_v5  ;;  %v16551_v5 = vld [vmem:[#allocation55_spill] sm:$0xff] }
 0x5f8   :  { %v5493_v18 = vpop.f32.mrb[44].mxu0 }
 0x5f9   :  { %v5495_v22 = vpop.f32.mrb[45].mxu0 }
 0x5fa   :  { %v5628_v59 = vsub.f32 %v16548_v38, %v5495_v22  ;;  %v5497_v53 = vpop.f32.mrb[46].mxu0 }
 0x5fb   :  { %v5499_v27 = vpop.f32.mrb[47].mxu0 }
 0x5fc   :  { %v13947_v47 = vmul.f32 %v5628_v59, %v5493_v18  ;;  %v5629_v28 = vsub.f32 %v16549_v35, %v5499_v27  ;;  %v16552_v59 = vld [vmem:[#allocation13_spill] sm:$0xff] }
 0x5fe   :  { %v13950_v43 = vmul.f32 %v5629_v28, %v5497_v53  ;;  %v16553_v53 = vld [vmem:[#allocation88_spill] sm:$0xff] }
 0x600   :  { %v5503_v16 = vpop.f32.mrb[48].mxu0 }
 0x601   :  { %v5505_v34 = vpop.f32.mrb[49].mxu0 }
 0x602   :  { %v5630_v23 = vsub.f32 %v16550_v40, %v5505_v34  ;;  %v5507_v61 = vpop.f32.mrb[50].mxu0 }
 0x603   :  { %v5509_v54 = vpop.f32.mrb[51].mxu0 }
 0x604   :  { %v13953_v45 = vmul.f32 %v5630_v23, %v5503_v16  ;;  %v5631_v19 = vsub.f32 %v16551_v5, %v5509_v54  ;;  %v16554_v16 = vld [vmem:[#allocation9_spill] sm:$0xff] }
 0x606   :  { %v13956_v25 = vmul.f32 %v5631_v19, %v5507_v61  ;;  %v16555_v19 = vld [vmem:[#allocation19_spill] sm:$0xff] }
 0x608   :  { %v5513_v22 = vpop.f32.mrb[52].mxu0 }
 0x609   :  { %v5515_v38 = vpop.f32.mrb[53].mxu0 }
 0x60a   :  { %v5632_v18 = vsub.f32 %v16552_v59, %v5515_v38  ;;  %v5517_v4 = vpop.f32.mrb[54].mxu0 }
 0x60b   :  { %v5519_v27 = vpop.f32.mrb[55].mxu0 }
 0x60c   :  { %v13959_v28 = vmul.f32 %v5632_v18, %v5513_v22  ;;  %v5633_v35 = vsub.f32 %v16553_v53, %v5519_v27  ;;  %v16556_v22 = vld [vmem:[#allocation70_spill] sm:$0xff] }
 0x60e   :  { %v13962_v24 = vmul.f32 %v5633_v35, %v5517_v4  ;;  %v16557_v35 = vld [vmem:[#allocation102_spill] sm:$0xff] }
 0x610   :  { %v5523_v34 = vpop.f32.mrb[56].mxu0 }
 0x611   :  { %v5525_v40 = vpop.f32.mrb[57].mxu0 }
 0x612   :  { %v5634_v23 = vsub.f32 %v16554_v16, %v5525_v40  ;;  %v5527_v46 = vpop.f32.mrb[58].mxu0 }
 0x613   :  { %v5529_v54 = vpop.f32.mrb[59].mxu0 }
 0x614   :  { %v13965_v61 = vmul.f32 %v5634_v23, %v5523_v34  ;;  %v5635_v5 = vsub.f32 %v16555_v19, %v5529_v54  ;;  %v16558_v34 = vld [vmem:[#allocation103_spill] sm:$0xff] }
 0x616   :  { %v13968_v51 = vmul.f32 %v5635_v5, %v5527_v46  ;;  %v16559_v5 = vld [vmem:[#allocation104_spill] sm:$0xff] }
 0x618   :  { %v5533_v38 = vpop.f32.mrb[60].mxu0 }
 0x619   :  { %v5535_v59 = vpop.f32.mrb[61].mxu0 }
 0x61a   :  { %v5636_v18 = vsub.f32 %v16556_v22, %v5535_v59  ;;  %v5537_v29 = vpop.f32.mrb[62].mxu0 }
 0x61b   :  { %v5539_v27 = vpop.f32.mrb[63].mxu0 }
 0x61c   :  { %v13971_v4 = vmul.f32 %v5636_v18, %v5533_v38  ;;  %v5637_v53 = vsub.f32 %v16557_v35, %v5539_v27  ;;  %v16561_v38 = vld [vmem:[#allocation105_spill] sm:$0xff] }
 0x61e   :  { %v13974_v50 = vmul.f32 %v5637_v53, %v5537_v29  ;;  %v16563_v53 = vld [vmem:[#allocation106_spill] sm:$0xff] }
 0x620   :  { %v5543_v40 = vpop.f32.mrb[64].mxu0 }
 0x621   :  { %v5545_v16 = vpop.f32.mrb[65].mxu0 }
 0x622   :  { %v5638_v23 = vsub.f32 %v16558_v34, %v5545_v16  ;;  %v5547_v32 = vpop.f32.mrb[66].mxu0 }
 0x623   :  { %v5549_v54 = vpop.f32.mrb[67].mxu0 }
 0x624   :  { %v13977_v46 = vmul.f32 %v5638_v23, %v5543_v40  ;;  %v5639_v19 = vsub.f32 %v16559_v5, %v5549_v54  ;;  %v16565_v40 = vld [vmem:[#allocation107_spill] sm:$0xff] }
 0x626   :  { %v13980_v15 = vmul.f32 %v5639_v19, %v5547_v32  ;;  %v16567_v19 = vld [vmem:[#allocation108_spill] sm:$0xff] }
 0x628   :  { %16560 = vst [vmem:[#allocation98_spill] sm:$0xff] %v13980_v15  ;;  %v5553_v59 = vpop.f32.mrb[68].mxu0 }
 0x629   :  { %v5555_v22 = vpop.f32.mrb[69].mxu0 }
 0x62a   :  { %v5640_v18 = vsub.f32 %v16561_v38, %v5555_v22  ;;  %v5557_v0 = vpop.f32.mrb[70].mxu0 }
 0x62b   :  { %v5559_v27 = vpop.f32.mrb[71].mxu0 }
 0x62c   :  { %v13983_v29 = vmul.f32 %v5640_v18, %v5553_v59  ;;  %v5641_v35 = vsub.f32 %v16563_v53, %v5559_v27  ;;  %v16569_v59 = vld [vmem:[#allocation110_spill] sm:$0xff] }
 0x62e   :  { %16562 = vst [vmem:[#allocation120_spill] sm:$0xff] %v13983_v29  ;;  %v13986_v7 = vmul.f32 %v5641_v35, %v5557_v0  ;;  %v16571_v35 = vld [vmem:[#allocation111_spill] sm:$0xff] }
 0x630   :  { %16564 = vst [vmem:[#allocation22_spill] sm:$0xff] %v13986_v7  ;;  %v5563_v16 = vpop.f32.mrb[72].mxu0 }
 0x631   :  { %v5565_v34 = vpop.f32.mrb[73].mxu0 }
 0x632   :  { %v5642_v23 = vsub.f32 %v16565_v40, %v5565_v34  ;;  %v5567_v8 = vpop.f32.mrb[74].mxu0 }
 0x633   :  { %v5569_v54 = vpop.f32.mrb[75].mxu0 }
 0x634   :  { %v13989_v32 = vmul.f32 %v5642_v23, %v5563_v16  ;;  %v5643_v5 = vsub.f32 %v16567_v19, %v5569_v54  ;;  %v16573_v16 = vld [vmem:[#allocation112_spill] sm:$0xff] }
 0x636   :  { %16566 = vst [vmem:[#allocation117_spill] sm:$0xff] %v13989_v32  ;;  %v13992_v15 = vmul.f32 %v5643_v5, %v5567_v8  ;;  %v16575_v5 = vld [vmem:[#allocation113_spill] sm:$0xff] }
 0x638   :  { %16568 = vst [vmem:[#allocation3_spill] sm:$0xff] %v13992_v15  ;;  %v5573_v22 = vpop.f32.mrb[76].mxu0 }
 0x639   :  { %v5575_v38 = vpop.f32.mrb[77].mxu0 }
 0x63a   :  { %v5644_v18 = vsub.f32 %v16569_v59, %v5575_v38  ;;  %v5577_v29 = vpop.f32.mrb[78].mxu0 }
 0x63b   :  { %v5579_v27 = vpop.f32.mrb[79].mxu0 }
 0x63c   :  { %v13995_v0 = vmul.f32 %v5644_v18, %v5573_v22  ;;  %v5645_v53 = vsub.f32 %v16571_v35, %v5579_v27  ;;  %v16576_v22 = vld [vmem:[#allocation115_spill] sm:$0xff] }
 0x63e   :  { %16570 = vst [vmem:[#allocation6_spill] sm:$0xff] %v13995_v0  ;;  %v13998_v7 = vmul.f32 %v5645_v53, %v5577_v29  ;;  %v16577_v53 = vld [vmem:[#allocation116_spill] sm:$0xff] }
 0x640   :  { %16572 = vst [vmem:[#allocation16_spill] sm:$0xff] %v13998_v7  ;;  %v5583_v34 = vpop.f32.mrb[80].mxu0 }
 0x641   :  { %v5585_v40 = vpop.f32.mrb[81].mxu0 }
 0x642   :  { %v5646_v23 = vsub.f32 %v16573_v16, %v5585_v40  ;;  %v5587_v32 = vpop.f32.mrb[82].mxu0 }
 0x643   :  { %v5589_v54 = vpop.f32.mrb[83].mxu0 }
 0x644   :  { %v14001_v8 = vmul.f32 %v5646_v23, %v5583_v34  ;;  %v5647_v19 = vsub.f32 %v16575_v5, %v5589_v54  ;;  %v16578_v34 = vld [vmem:[#allocation118_spill] sm:$0xff] }
 0x646   :  { %16574 = vst [vmem:[#allocation79_spill] sm:$0xff] %v14001_v8  ;;  %v14004_v15 = vmul.f32 %v5647_v19, %v5587_v32  ;;  %v16579_v19 = vld [vmem:[#allocation119_spill] sm:$0xff] }
 0x648   :  { %v5593_v38 = vpop.f32.mrb[84].mxu0 }
 0x649   :  { %v5595_v59 = vpop.f32.mrb[85].mxu0 }
 0x64a   :  { %v5648_v18 = vsub.f32 %v16576_v22, %v5595_v59  ;;  %v5597_v0 = vpop.f32.mrb[86].mxu0  ;;  %v14018_v59 = vadd.f32 %v13935_v41, %v13346_v3  ;;  %v16583_v41 = vld [vmem:[#allocation122_spill] sm:$0xff] }
 0x64b   :  { %v5599_v27 = vpop.f32.mrb[87].mxu0 }
 0x64c   :  { %v14007_v29 = vmul.f32 %v5648_v18, %v5593_v38  ;;  %v5649_v35 = vsub.f32 %v16577_v53, %v5599_v27 }
 0x64e   :  { %v14010_v7 = vmul.f32 %v5649_v35, %v5597_v0  ;;  %v5720_v0 = vrot.slane %v14018_v59, 1  ;;  %v16581_v35 = vld [vmem:[#allocation121_spill] sm:$0xff] }
 0x650   :  { %v5603_v40 = vpop.f32.mrb[88].mxu0 }
 0x651   :  { %v5605_v16 = vpop.f32.mrb[89].mxu0 }
 0x652   :  { %v5650_v23 = vsub.f32 %v16578_v34, %v5605_v16  ;;  %v5607_v8 = vpop.f32.mrb[90].mxu0  ;;  %v5719_v16 = vrot.slane %v13930_v6, 1 }
 0x653   :  { %v5609_v54 = vpop.f32.mrb[91].mxu0 }
 0x654   :  { %v14013_v32 = vmul.f32 %v5650_v23, %v5603_v40  ;;  %v5651_v5 = vsub.f32 %v16579_v19, %v5609_v54  ;;  %v5783_v40 = vrot.slane %v13930_v6, 7  ;;  %v14028_v23 = vadd.f32 %v13941_v48, %v13360_v12 }
 0x655   :  { %v5782_v54 = vrot.slane %v13927_v10, 7  ;;  %v5779_v19 = vsel %vm4034_vm1, %v5719_v16, %v5720_v0 }
 0x656   :  { %v14020_v38 = vmul.f32 %v5651_v5, %v5607_v8  ;;  %v15868_v5 = vrot.slane %v13927_v10, 1 }
 0x657   :  { %v5844_v48 = vsel %vm4099_vm9, %v5782_v54, %v5783_v40 }
 0x658   :  { %16580 = vst [vmem:[#allocation76_spill] sm:$0xff] %v14020_v38  ;;  %v5613_v18 = vpop.f32.mrb[92].mxu0  ;;  %v5780_v12 = vsel %vm4034_vm1, %v15868_v5, %v5719_v16  ;;  %v16585_v5 = vld [vmem:[#allocation61_spill] sm:$0xff] }
 0x659   :  { %v5615_v27 = vpop.f32.mrb[93].mxu0 }
 0x65a   :  { %v5652_v53 = vsub.f32 %v16581_v35, %v5615_v27  ;;  %v5617_v22 = vpop.f32.mrb[94].mxu0  ;;  %v14037_v27 = vadd.f32 %v13938_v36, %v13369_v11  ;;  %v5847_v11 = vsub.f32 %v5779_v19, %v13930_v6 }
 0x65b   :  { %v5619_v34 = vpop.f32.mrb[95].mxu0 }
 0x65c   :  { %v14030_v3 = vmul.f32 %v5652_v53, %v5613_v18  ;;  %v5653_v8 = vsub.f32 %v16583_v41, %v5619_v34  ;;  %v5722_v53 = vrot.slane %v14028_v23, 1  ;;  %v5785_v34 = vrot.slane %v14037_v27, 7 }
 0x65d   :  { %v5911_v18 = vsub.f32 %v13930_v6, %v5844_v48  ;;  %v5879_v41 = vmul.f32 %v5847_v11, %v16585_v5  ;;  %v14072_v48 = vadd.f32 %v13944_v57, %v13404_v14 }
 0x65e   :  { %16582 = vst [vmem:[#allocation83_spill] sm:$0xff] %v14030_v3  ;;  %v5685_v35 = vmul.f32 %v5653_v8, %v5617_v22  ;;  %v5721_v22 = vrot.slane %v14037_v27, 1  ;;  %v5784_v8 = vrot.slane %v14018_v59, 7 }
 0x660   :  { %v14042_v38 = vadd.f32 %v5685_v35, %v16527_v55  ;;  %v5846_v55 = vsub.f32 %v5780_v12, %v13927_v10  ;;  %v14059_v35 = vadd.f32 %v13947_v47, %v13391_v58  ;;  %v5777_v19 = vsel %vm4034_vm1, %v5721_v22, %v5722_v53 }
 0x661   :  { %v5778_v58 = vsel %vm4034_vm1, %v5720_v0, %v5721_v22  ;;  %v5842_v47 = vsel %vm4099_vm9, %v5784_v8, %v5785_v34  ;;  %v5849_v11 = vsub.f32 %v5777_v19, %v14037_v27 }
 0x662   :  { %16584 = vst [vmem:[#allocation23_spill] sm:$0xff] %v14042_v38  ;;  %v15869_v36 = vrot.slane %v14042_v38, 7  ;;  %v16587_v38 = vld [vmem:[#allocation63_spill] sm:$0xff]  ;;  %v5724_v14 = vrot.slane %v14059_v35, 1  ;;  %v5848_v0 = vsub.f32 %v5778_v58, %v14018_v59  ;;  %v5913_v22 = vsub.f32 %v14037_v27, %v5842_v47 }
 0x663   :  { %v5943_v3 = vmul.f32 %v5911_v18, %v16587_v38  ;;  %v5881_v18 = vmul.f32 %v5849_v11, %v16446_v13  ;;  %v14104_v47 = vadd.f32 %v13950_v43, %v13436_v31  ;;  %v16589_v11 = vld [vmem:[#allocation5_spill] sm:$0xff] }
 0x664   :  { %v5845_v16 = vsel %vm4099_vm9, %v15869_v36, %v5782_v54  ;;  %v5878_v54 = vmul.f32 %v5846_v55, %v16443_v62  ;;  %v16586_v36 = vld [vmem:[#allocation65_spill] sm:$0xff]  ;;  %v5787_v55 = vrot.slane %v14072_v48, 7 }
 0x665   :  { %v5910_v12 = vsub.f32 %v13927_v10, %v5845_v16  ;;  %v5843_v16 = vsel %vm4099_vm9, %v5783_v40, %v5784_v8  ;;  %v5975_v5 = vadd.f32 %v5943_v3, %v5879_v41  ;;  %v5723_v10 = vrot.slane %v14072_v48, 1  ;;  %v7779_v31 = vld [vmem:[%s15457_s5 + $0x14] ss:$8 sps:$4 sm:$0xff]  }
 0x666   :  { %v5912_v19 = vsub.f32 %v14018_v59, %v5843_v16  ;;  %v14093_v40 = vadd.f32 %v13953_v45, %v13425_v42  ;;  %v5786_v41 = vrot.slane %v14028_v23, 7  ;;  %v5880_v8 = vmul.f32 %v5848_v0, %v16448_v26 }
 0x667   :  { %v5942_v6 = vmul.f32 %v5910_v12, %v16586_v36  ;;  %v5775_v3 = vsel %vm4034_vm1, %v5723_v10, %v5724_v14  ;;  %v5776_v42 = vsel %vm4034_vm1, %v5722_v53, %v5723_v10 }
 0x668   :  { %v5840_v45 = vsel %vm4099_vm9, %v5786_v41, %v5787_v55  ;;  %v5944_v16 = vmul.f32 %v5912_v19, %v16589_v11  ;;  %v5851_v0 = vsub.f32 %v5775_v3, %v14072_v48  ;;  %v5841_v43 = vsel %vm4099_vm9, %v5785_v34, %v5786_v41  ;;  %v7781_v41 = vld [vmem:[%s15457_s5 + $0x24] ss:$8 sps:$4 sm:$0xff]  }
 0x669   :  { %v5974_v57 = vadd.f32 %v5942_v6, %v5878_v54  ;;  %v6023_v6 = vpack.c.bf16 %v14037_v27, %v14018_v59  ;;  %v7778_v54 = vld [vmem:[%s15457_s5] ss:$8 sps:$4 sm:$0xff]   ;;  %v5726_v10 = vrot.slane %v14093_v40, 1  ;;  %v5725_v19 = vrot.slane %v14104_v47, 1 }
 0x66a   :  { %v5976_v53 = vadd.f32 %v5944_v16, %v5880_v8  ;;  %v5914_v34 = vsub.f32 %v14028_v23, %v5841_v43  ;;  %v14135_v8 = vadd.f32 %v13959_v28, %v13467_v63  ;;  %v5788_v16 = vrot.slane %v14059_v35, 7 }
 0x66b   :  { %v6006_v12 = vpack.c.bf16 %v5975_v5, %v5974_v57  ;;  %v16588_v5 = vld [vmem:[#allocation72_spill] sm:$0xff]  ;;  %v14146_v43 = vadd.f32 %v13956_v25, %v13478_v20  ;;  %v5774_v63 = vsel %vm4034_vm1, %v5724_v14, %v5725_v19  ;;  %v7783_v20 = vld [vmem:[%s15457_s5 + $0x34] ss:$8 sps:$4 sm:$0xff]  }
 0x66c   :  { %v5945_v58 = vmul.f32 %v5913_v22, %v16588_v5  ;;  %v5850_v22 = vsub.f32 %v5776_v42, %v14028_v23  ;;  %v6024_v42 = vpack.c.bf16 %v14072_v48, %v14028_v23  ;;  %v5839_v25 = vsel %vm4099_vm9, %v5787_v55, %v5788_v16 }
 0x66d   :  { %6071 = vmatmul.mubr.bf16.vlgmr.msra.gmra.mrb[64].mxu1 %v6006_v12  ;;  %v5915_v12 = vsub.f32 %v14072_v48, %v5840_v45  ;;  %v5773_v45 = vsel %vm4034_vm1, %v5725_v19, %v5726_v10  ;;  %16592 = vst [vmem:[#allocation65_spill] sm:$0xff] %v14146_v43  ;;  %v5728_v14 = vrot.slane %v14135_v8, 1  ;;  %v5916_v55 = vsub.f32 %v14059_v35, %v5839_v25 }
 0x66e   :  { %6080 = vmatprep.mubr.bf16.mxu1 %v6023_v6  ;;  %7367 = vmatpush1.bf16.msra.mxu1 %v7778_v54  ;;  %v5977_v57 = vadd.f32 %v5945_v58, %v5881_v18  ;;  %v5789_v18 = vrot.slane %v14104_v47, 7  ;;  %v7780_v6 = vld [vmem:[%s15457_s5 + $0x10] ss:$8 sps:$4 sm:$0xff]   ;;  %v16590_v58 = vld [vmem:[#allocation84_spill] sm:$0xff] }
 0x66f   :  { %7352 = vmatprep.subr.bf16.mxu1 %v7779_v31  ;;  %v5883_v54 = vmul.f32 %v5851_v0, %v16590_v58  ;;  %v5947_v31 = vmul.f32 %v5915_v12, %v16455_v52  ;;  %v5853_v12 = vsub.f32 %v5773_v45, %v14104_v47  ;;  %v7784_v45 = vld [vmem:[%s15457_s5 + $0x30] ss:$8 sps:$4 sm:$0xff]  }
 0x670   :  { %v6007_v3 = vpack.c.bf16 %v5977_v57, %v5976_v53  ;;  %v16591_v57 = vld [vmem:[#allocation85_spill] sm:$0xff]  ;;  %v5838_v28 = vsel %vm4099_vm9, %v5788_v16, %v5789_v18  ;;  %v7782_v53 = vld [vmem:[%s15457_s5 + $0x20] ss:$8 sps:$4 sm:$0xff]   ;;  %v7785_v16 = vld [vmem:[%s15457_s5 + $0x44] ss:$8 sps:$4 sm:$0xff]  }
 0x671   :  { %v5882_v0 = vmul.f32 %v5850_v22, %v16591_v57  ;;  %v16734_v57 = vld [vmem:[#allocation122_spill] sm:$0xff] }
 0x672   :  { %7368 = vmatpush1.bf16.msra.mxu1 %v7780_v6  ;;  %v16593_v6 = vld [vmem:[#allocation87_spill] sm:$0xff] }
 0x673   :  { %7353 = vmatprep.subr.bf16.mxu1 %v7781_v41  ;;  %v5946_v22 = vmul.f32 %v5914_v34, %v16593_v6  ;;  %v5852_v41 = vsub.f32 %v5774_v63, %v14059_v35  ;;  %v5727_v34 = vrot.slane %v14146_v43, 1  ;;  %v6025_v63 = vpack.c.bf16 %v14104_v47, %v14059_v35 }
 0x675   :  { %6081 = vmatmul.mubr.bf16.gmra.mrb[68].mxu1 %v6007_v3  ;;  %v5979_v3 = vadd.f32 %v5947_v31, %v5883_v54  ;;  %v5978_v19 = vadd.f32 %v5946_v22, %v5882_v0  ;;  %v5791_v54 = vrot.slane %v14146_v43, 7  ;;  %v14177_v0 = vadd.f32 %v13965_v61, %v13509_v30 }
 0x676   :  { %6090 = vmatprep.mubr.bf16.mxu1 %v6024_v42  ;;  %7369 = vmatpush1.bf16.msra.mxu1 %v7782_v53  ;;  %v5917_v42 = vsub.f32 %v14104_v47, %v5838_v28  ;;  %v16594_v53 = vld [vmem:[#allocation92_spill] sm:$0xff]  ;;  %v5771_v28 = vsel %vm4034_vm1, %v5727_v34, %v5728_v14  ;;  %v5790_v22 = vrot.slane %v14093_v40, 7  ;;  %v5772_v30 = vsel %vm4034_vm1, %v5726_v10, %v5727_v34 }
 0x677   :  { %7354 = vmatprep.subr.bf16.mxu1 %v7783_v20  ;;  %v6008_v31 = vpack.c.bf16 %v5979_v3, %v5978_v19  ;;  %v5885_v20 = vmul.f32 %v5853_v12, %v16594_v53  ;;  %16595 = vst [vmem:[#allocation63_spill] sm:$0xff] %v14177_v0  ;;  %v16596_v3 = vld [vmem:[#allocation93_spill] sm:$0xff]  ;;  %v14188_v19 = vadd.f32 %v13962_v24, %v13520_v49  ;;  %v5730_v10 = vrot.slane %v14177_v0, 1 }
 0x678   :  { %v5884_v12 = vmul.f32 %v5852_v41, %v16596_v3  ;;  %v5949_v25 = vmul.f32 %v5917_v42, %v16460_v56  ;;  %v5836_v61 = vsel %vm4099_vm9, %v5790_v22, %v5791_v54  ;;  %v5855_v42 = vsub.f32 %v5771_v28, %v14146_v43  ;;  %v7787_v49 = vld [vmem:[%s15457_s5 + $0x54] ss:$8 sps:$4 sm:$0xff]   ;;  %v7788_v28 = vld [vmem:[%s15457_s5 + $0x50] ss:$8 sps:$4 sm:$0xff]  }
 0x679   :  { %16597 = vst [vmem:[#allocation72_spill] sm:$0xff] %v14188_v19  ;;  %v5837_v24 = vsel %vm4099_vm9, %v5789_v18, %v5790_v22  ;;  %v7789_v22 = vld [vmem:[%s15457_s5 + $0x64] ss:$8 sps:$4 sm:$0xff]  }
 0x67a   :  { %7370 = vmatpush1.bf16.msra.mxu1 %v7784_v45  ;;  %v7786_v45 = vld [vmem:[%s15457_s5 + $0x40] ss:$8 sps:$4 sm:$0xff]   ;;  %v5918_v18 = vsub.f32 %v14093_v40, %v5837_v24 }
 0x67b   :  { %7355 = vmatprep.subr.bf16.mxu1 %v7785_v16  ;;  %v5981_v16 = vadd.f32 %v5949_v25, %v5885_v20  ;;  %v5793_v20 = vrot.slane %v14188_v19, 7 }
 0x67d   :  { %6091 = vmatmul.mubr.bf16.gmra.mrb[72].mxu1 %v6008_v31  ;;  %v16598_v31 = vld [vmem:[#allocation31_spill] sm:$0xff] }
 0x67e   :  { %6100 = vmatprep.mubr.bf16.mxu1 %v6025_v63  ;;  %7371 = vmatpush1.bf16.msra.mxu1 %v7786_v45  ;;  %v5948_v41 = vmul.f32 %v5916_v55, %v16598_v31  ;;  %v5854_v63 = vsub.f32 %v5772_v30, %v14093_v40  ;;  %v5919_v45 = vsub.f32 %v14146_v43, %v5836_v61  ;;  %v5729_v55 = vrot.slane %v14188_v19, 1 }
 0x67f   :  { %7356 = vmatprep.subr.bf16.mxu1 %v7787_v49  ;;  %v5887_v49 = vmul.f32 %v5855_v42, %v16463_v37  ;;  %v6026_v30 = vpack.c.bf16 %v14146_v43, %v14093_v40 }
 0x680   :  { %v5980_v34 = vadd.f32 %v5948_v41, %v5884_v12  ;;  %v14219_v12 = vadd.f32 %v13971_v4, %v13551_v44  ;;  %v5769_v61 = vsel %vm4034_vm1, %v5729_v55, %v5730_v10  ;;  %v5792_v41 = vrot.slane %v14135_v8, 7 }
 0x681   :  { %v5951_v24 = vmul.f32 %v5919_v45, %v16465_v9  ;;  %v5770_v44 = vsel %vm4034_vm1, %v5728_v14, %v5729_v55  ;;  %v5857_v45 = vsub.f32 %v5769_v61, %v14188_v19  ;;  %v7792_v61 = vld [vmem:[%s15457_s5 + $0x70] ss:$8 sps:$4 sm:$0xff]  }
 0x682   :  { %7372 = vmatpush1.bf16.msra.mxu1 %v7788_v28  ;;  %v6009_v25 = vpack.c.bf16 %v5981_v16, %v5980_v34  ;;  %16599 = vst [vmem:[#allocation5_spill] sm:$0xff] %v14219_v12  ;;  %v16600_v16 = vld [vmem:[#allocation95_spill] sm:$0xff]  ;;  %v14230_v34 = vadd.f32 %v13968_v51, %v13562_v60  ;;  %v5834_v4 = vsel %vm4099_vm9, %v5792_v41, %v5793_v20  ;;  %v7791_v60 = vld [vmem:[%s15457_s5 + $0x74] ss:$8 sps:$4 sm:$0xff]   ;;  %v5732_v14 = vrot.slane %v14219_v12, 1 }
 0x683   :  { %7357 = vmatprep.subr.bf16.mxu1 %v7789_v22  ;;  %v5886_v42 = vmul.f32 %v5854_v63, %v16600_v16  ;;  %v7790_v28 = vld [vmem:[%s15457_s5 + $0x60] ss:$8 sps:$4 sm:$0xff]   ;;  %v5983_v22 = vadd.f32 %v5951_v24, %v5887_v49  ;;  %v5835_v51 = vsel %vm4099_vm9, %v5791_v54, %v5792_v41  ;;  %v7793_v41 = vld [vmem:[%s15457_s5 + $0x84] ss:$8 sps:$4 sm:$0xff]  }
 0x684   :  { %16601 = vst [vmem:[#allocation84_spill] sm:$0xff] %v14230_v34  ;;  %v5795_v49 = vrot.slane %v14230_v34, 7  ;;  %v5920_v54 = vsub.f32 %v14135_v8, %v5835_v51 }
 0x685   :  { %6101 = vmatmul.mubr.bf16.gmra.mrb[76].mxu1 %v6009_v25  ;;  %v16602_v25 = vld [vmem:[#allocation97_spill] sm:$0xff] }
 0x686   :  { %6110 = vmatprep.mubr.bf16.mxu1 %v6026_v30  ;;  %7373 = vmatpush1.bf16.msra.mxu1 %v7790_v28  ;;  %v5950_v63 = vmul.f32 %v5918_v18, %v16602_v25  ;;  %v5856_v30 = vsub.f32 %v5770_v44, %v14135_v8  ;;  %v5921_v28 = vsub.f32 %v14188_v19, %v5834_v4  ;;  %v5731_v18 = vrot.slane %v14230_v34, 1  ;;  %v16633_v25 = vld [vmem:[#allocation3_spill] sm:$0xff] }
 0x687   :  { %7358 = vmatprep.subr.bf16.mxu1 %v7791_v60  ;;  %v5889_v60 = vmul.f32 %v5857_v45, %v16467_v21  ;;  %v6027_v44 = vpack.c.bf16 %v14188_v19, %v14135_v8  ;;  %v16623_v21 = vld [vmem:[#allocation22_spill] sm:$0xff] }
 0x688   :  { %v5982_v55 = vadd.f32 %v5950_v63, %v5886_v42  ;;  %v14261_v42 = vadd.f32 %v13977_v46, %v13593_v39  ;;  %v5767_v4 = vsel %vm4034_vm1, %v5731_v18, %v5732_v14  ;;  %v5794_v63 = vrot.slane %v14177_v0, 7 }
 0x689   :  { %v5953_v51 = vmul.f32 %v5921_v28, %v16469_v17  ;;  %v5768_v39 = vsel %vm4034_vm1, %v5730_v10, %v5731_v18  ;;  %v5859_v28 = vsub.f32 %v5767_v4, %v14230_v34  ;;  %v7796_v4 = vld [vmem:[%s15457_s5 + $0x90] ss:$8 sps:$4 sm:$0xff]  }
 0x68a   :  { %7374 = vmatpush1.bf16.msra.mxu1 %v7792_v61  ;;  %v6010_v24 = vpack.c.bf16 %v5983_v22, %v5982_v55  ;;  %16603 = vst [vmem:[#allocation123_spill] sm:$0xff] %v14261_v42  ;;  %v16604_v22 = vld [vmem:[#allocation101_spill] sm:$0xff]  ;;  %v14272_v55 = vadd.f32 %v13974_v50, %v13604_v33  ;;  %v5832_v46 = vsel %vm4099_vm9, %v5794_v63, %v5795_v49  ;;  %v7794_v61 = vld [vmem:[%s15457_s5 + $0x80] ss:$8 sps:$4 sm:$0xff]   ;;  %v5734_v10 = vrot.slane %v14261_v42, 1  ;;  %v16613_v17 = vld [vmem:[#allocation98_spill] sm:$0xff] }
 0x68b   :  { %7359 = vmatprep.subr.bf16.mxu1 %v7793_v41  ;;  %v5888_v45 = vmul.f32 %v5856_v30, %v16604_v22  ;;  %v5952_v30 = vmul.f32 %v5920_v54, %v16470_v1  ;;  %v7795_v50 = vld [vmem:[%s15457_s5 + $0x94] ss:$8 sps:$4 sm:$0xff]   ;;  %v5833_v33 = vsel %vm4099_vm9, %v5793_v20, %v5794_v63  ;;  %v5858_v41 = vsub.f32 %v5768_v39, %v14177_v0  ;;  %v7797_v63 = vld [vmem:[%s15457_s5 + $0xa4] ss:$8 sps:$4 sm:$0xff]   ;;  %v7798_v22 = vld [vmem:[%s15457_s5 + $0xa0] ss:$8 sps:$4 sm:$0xff]  }
 0x68c   :  { %16605 = vst [vmem:[#allocation124_spill] sm:$0xff] %v14272_v55  ;;  %v5733_v54 = vrot.slane %v14272_v55, 1  ;;  %v5922_v20 = vsub.f32 %v14177_v0, %v5833_v33  ;;  %v16608_v39 = vld [vmem:[#allocation120_spill] sm:$0xff]  ;;  %v16612_v1 = vld [vmem:[#allocation27_spill] sm:$0xff] }
 0x68d   :  { %6111 = vmatmul.mubr.bf16.gmra.mrb[80].mxu1 %v6010_v24  ;;  %v5985_v24 = vadd.f32 %v5953_v51, %v5889_v60  ;;  %v5984_v18 = vadd.f32 %v5952_v30, %v5888_v45  ;;  %v5797_v60 = vrot.slane %v14272_v55, 7  ;;  %v16607_v45 = vld [vmem:[#allocation25_spill] sm:$0xff]  ;;  %v6028_v30 = vpack.c.bf16 %v14230_v34, %v14177_v0 }
 0x68e   :  { %6120 = vmatprep.mubr.bf16.mxu1 %v6027_v44  ;;  %7375 = vmatpush1.bf16.msra.mxu1 %v7794_v61  ;;  %v5923_v44 = vsub.f32 %v14230_v34, %v5832_v46  ;;  %v16606_v61 = vld [vmem:[#allocation89_spill] sm:$0xff]  ;;  %v14303_v46 = vadd.f32 %v16608_v39, %v16607_v45  ;;  %v5766_v45 = vsel %vm4034_vm1, %v5732_v14, %v5733_v54 }
 0x68f   :  { %7360 = vmatprep.subr.bf16.mxu1 %v7795_v50  ;;  %v6011_v51 = vpack.c.bf16 %v5985_v24, %v5984_v18  ;;  %v5891_v50 = vmul.f32 %v5859_v28, %v16606_v61  ;;  %v5796_v24 = vrot.slane %v14219_v12, 7  ;;  %v16610_v28 = vld [vmem:[#allocation49_spill] sm:$0xff]  ;;  %v16611_v18 = vld [vmem:[#allocation48_spill] sm:$0xff] }
 0x690   :  { %16609 = vst [vmem:[#allocation25_spill] sm:$0xff] %v14303_v46  ;;  %v5890_v33 = vmul.f32 %v5858_v41, %v16610_v28  ;;  %v5955_v61 = vmul.f32 %v5923_v44, %v16611_v18  ;;  %v5736_v14 = vrot.slane %v14303_v46, 1  ;;  %v16622_v18 = vld [vmem:[#allocation71_spill] sm:$0xff] }
 0x691   :  { %v5830_v39 = vsel %vm4099_vm9, %v5796_v24, %v5797_v60 }
 0x692   :  { %7376 = vmatpush1.bf16.msra.mxu1 %v7796_v4  ;;  %v5765_v4 = vsel %vm4034_vm1, %v5733_v54, %v5734_v10  ;;  %v5987_v28 = vadd.f32 %v5955_v61, %v5891_v50  ;;  %v7800_v50 = vld [vmem:[%s15457_s5 + $0xb0] ss:$8 sps:$4 sm:$0xff]  }
 0x693   :  { %7361 = vmatprep.subr.bf16.mxu1 %v7797_v63  ;;  %v14314_v63 = vadd.f32 %v16613_v17, %v16612_v1  ;;  %v5861_v44 = vsub.f32 %v5765_v4, %v14272_v55  ;;  %v7799_v17 = vld [vmem:[%s15457_s5 + $0xb4] ss:$8 sps:$4 sm:$0xff]   ;;  %v5831_v1 = vsel %vm4099_vm9, %v5795_v49, %v5796_v24  ;;  %v7801_v24 = vld [vmem:[%s15457_s5 + $0xc4] ss:$8 sps:$4 sm:$0xff]  }
 0x694   :  { %v5924_v49 = vsub.f32 %v14219_v12, %v5831_v1 }
 0x695   :  { %6121 = vmatmul.mubr.bf16.gmra.mrb[84].mxu1 %v6011_v51  ;;  %16614 = vst [vmem:[#allocation120_spill] sm:$0xff] %v14314_v63  ;;  %v16615_v51 = vld [vmem:[#allocation43_spill] sm:$0xff]  ;;  %v5799_v61 = vrot.slane %v14314_v63, 7 }
 0x696   :  { %6130 = vmatprep.mubr.bf16.mxu1 %v6028_v30  ;;  %7377 = vmatpush1.bf16.msra.mxu1 %v7798_v22  ;;  %v5954_v41 = vmul.f32 %v5922_v20, %v16615_v51  ;;  %v5860_v30 = vsub.f32 %v5766_v45, %v14219_v12  ;;  %v5925_v22 = vsub.f32 %v14272_v55, %v5830_v39  ;;  %v5735_v20 = vrot.slane %v14314_v63, 1  ;;  %v16618_v45 = vld [vmem:[#allocation117_spill] sm:$0xff] }
 0x697   :  { %7362 = vmatprep.subr.bf16.mxu1 %v7799_v17  ;;  %v16616_v17 = vld [vmem:[#allocation96_spill] sm:$0xff] }
 0x698   :  { %v5986_v54 = vadd.f32 %v5954_v41, %v5890_v33  ;;  %v5893_v51 = vmul.f32 %v5861_v44, %v16616_v17  ;;  %v16617_v33 = vld [vmem:[#allocation62_spill] sm:$0xff]  ;;  %v6029_v41 = vpack.c.bf16 %v14272_v55, %v14219_v12  ;;  %v16620_v44 = vld [vmem:[#allocation40_spill] sm:$0xff] }
 0x699   :  { %v14345_v39 = vadd.f32 %v16618_v45, %v16617_v33  ;;  %v5892_v1 = vmul.f32 %v5860_v30, %v16620_v44  ;;  %v5764_v33 = vsel %vm4034_vm1, %v5734_v10, %v5735_v20  ;;  %v7802_v55 = vld [vmem:[%s15457_s5 + $0xc0] ss:$8 sps:$4 sm:$0xff]  }
 0x69a   :  { %7378 = vmatpush1.bf16.msra.mxu1 %v7800_v50  ;;  %v6012_v4 = vpack.c.bf16 %v5987_v28, %v5986_v54  ;;  %v5763_v50 = vsel %vm4034_vm1, %v5735_v20, %v5736_v14  ;;  %v5798_v28 = vrot.slane %v14261_v42, 7  ;;  %v16621_v54 = vld [vmem:[#allocation17_spill] sm:$0xff]  ;;  %v16681_v12 = vld [vmem:[#allocation68_spill] sm:$0xff] }
 0x69b   :  { %7363 = vmatprep.subr.bf16.mxu1 %v7801_v24  ;;  %16619 = vst [vmem:[#allocation27_spill] sm:$0xff] %v14345_v39  ;;  %v5957_v17 = vmul.f32 %v5925_v22, %v16621_v54  ;;  %v14356_v24 = vadd.f32 %v16623_v21, %v16622_v18  ;;  %v5863_v22 = vsub.f32 %v5763_v50, %v14314_v63  ;;  %v7803_v21 = vld [vmem:[%s15457_s5 + $0xd4] ss:$8 sps:$4 sm:$0xff]   ;;  %v5738_v18 = vrot.slane %v14345_v39, 1 }
 0x69c   :  { %v5828_v45 = vsel %vm4099_vm9, %v5798_v28, %v5799_v61  ;;  %v5829_v10 = vsel %vm4099_vm9, %v5797_v60, %v5798_v28  ;;  %v7805_v28 = vld [vmem:[%s15457_s5 + $0xe4] ss:$8 sps:$4 sm:$0xff]   ;;  %v16632_v54 = vld [vmem:[#allocation74_spill] sm:$0xff] }
 0x69d   :  { %6131 = vmatmul.mubr.bf16.gmra.mrb[88].mxu1 %v6012_v4  ;;  %16624 = vst [vmem:[#allocation98_spill] sm:$0xff] %v14356_v24  ;;  %v16625_v4 = vld [vmem:[#allocation56_spill] sm:$0xff]  ;;  %v5989_v44 = vadd.f32 %v5957_v17, %v5893_v51  ;;  %v5801_v51 = vrot.slane %v14356_v24, 7  ;;  %v7804_v17 = vld [vmem:[%s15457_s5 + $0xd0] ss:$8 sps:$4 sm:$0xff]   ;;  %v5926_v60 = vsub.f32 %v14261_v42, %v5829_v10 }
 0x69e   :  { %6140 = vmatprep.mubr.bf16.mxu1 %v6029_v41  ;;  %7379 = vmatpush1.bf16.msra.mxu1 %v7802_v55  ;;  %v5956_v30 = vmul.f32 %v5924_v49, %v16625_v4  ;;  %v5862_v41 = vsub.f32 %v5764_v33, %v14261_v42  ;;  %v5927_v55 = vsub.f32 %v14314_v63, %v5828_v45  ;;  %v5737_v49 = vrot.slane %v14356_v24, 1  ;;  %v16628_v33 = vld [vmem:[#allocation6_spill] sm:$0xff] }
 0x69f   :  { %7364 = vmatprep.subr.bf16.mxu1 %v7803_v21  ;;  %v16626_v21 = vld [vmem:[#allocation36_spill] sm:$0xff] }
 0x6a0   :  { %v5988_v20 = vadd.f32 %v5956_v30, %v5892_v1  ;;  %v5895_v4 = vmul.f32 %v5863_v22, %v16626_v21  ;;  %v16627_v1 = vld [vmem:[#allocation29_spill] sm:$0xff]  ;;  %v6030_v30 = vpack.c.bf16 %v14314_v63, %v14261_v42  ;;  %v16630_v22 = vld [vmem:[#allocation47_spill] sm:$0xff]  ;;  %v16640_v42 = vld [vmem:[#allocation52_spill] sm:$0xff] }
 0x6a1   :  { %v14387_v45 = vadd.f32 %v16628_v33, %v16627_v1  ;;  %v5894_v10 = vmul.f32 %v5862_v41, %v16630_v22  ;;  %v5762_v1 = vsel %vm4034_vm1, %v5736_v14, %v5737_v49  ;;  %v7806_v63 = vld [vmem:[%s15457_s5 + $0xe0] ss:$8 sps:$4 sm:$0xff]  }
 0x6a2   :  { %7380 = vmatpush1.bf16.msra.mxu1 %v7804_v17  ;;  %v6013_v50 = vpack.c.bf16 %v5989_v44, %v5988_v20  ;;  %v5761_v17 = vsel %vm4034_vm1, %v5737_v49, %v5738_v18  ;;  %v5800_v44 = vrot.slane %v14303_v46, 7  ;;  %v16631_v20 = vld [vmem:[#allocation20_spill] sm:$0xff] }
 0x6a3   :  { %7365 = vmatprep.subr.bf16.mxu1 %v7805_v28  ;;  %16629 = vst [vmem:[#allocation62_spill] sm:$0xff] %v14387_v45  ;;  %v5959_v21 = vmul.f32 %v5927_v55, %v16631_v20  ;;  %v14398_v28 = vadd.f32 %v16633_v25, %v16632_v54  ;;  %v5865_v55 = vsub.f32 %v5761_v17, %v14356_v24  ;;  %v7807_v25 = vld [vmem:[%s15457_s5 + $0xf4] ss:$8 sps:$4 sm:$0xff]   ;;  %v5740_v54 = vrot.slane %v14387_v45, 1 }
 0x6a4   :  { %v5826_v33 = vsel %vm4099_vm9, %v5800_v44, %v5801_v51  ;;  %v5827_v14 = vsel %vm4099_vm9, %v5799_v61, %v5800_v44  ;;  %v16637_v44 = vld [vmem:[#allocation8_spill] sm:$0xff]  ;;  %v5802_v20 = vrot.slane %v14345_v39, 7 }
 0x6a5   :  { %6141 = vmatmul.mubr.bf16.gmra.mrb[92].mxu1 %v6013_v50  ;;  %16634 = vst [vmem:[#allocation117_spill] sm:$0xff] %v14398_v28  ;;  %v16635_v50 = vld [vmem:[#allocation54_spill] sm:$0xff]  ;;  %v5991_v22 = vadd.f32 %v5959_v21, %v5895_v4  ;;  %v5803_v4 = vrot.slane %v14398_v28, 7  ;;  %v5928_v61 = vsub.f32 %v14303_v46, %v5827_v14 }
 0x6a6   :  { %6150 = vmatprep.mubr.bf16.mxu1 %v6030_v30  ;;  %7381 = vmatpush1.bf16.msra.mxu1 %v7806_v63  ;;  %v5958_v41 = vmul.f32 %v5926_v60, %v16635_v50  ;;  %v5864_v30 = vsub.f32 %v5762_v1, %v14303_v46  ;;  %v5929_v63 = vsub.f32 %v14356_v24, %v5826_v33  ;;  %v5739_v60 = vrot.slane %v14398_v28, 1  ;;  %v7808_v21 = vld [vmem:[%s15457_s5 + $0xf0] ss:$8 sps:$4 sm:$0xff]  }
 0x6a7   :  { %7366 = vmatprep.subr.bf16.mxu1 %v7807_v25  ;;  %v16636_v25 = vld [vmem:[#allocation39_spill] sm:$0xff]  ;;  %v6031_v1 = vpack.c.bf16 %v14356_v24, %v14303_v46  ;;  %v16645_v24 = vld [vmem:[#allocation57_spill] sm:$0xff] }
 0x6a8   :  { %v5990_v49 = vadd.f32 %v5958_v41, %v5894_v10  ;;  %v5897_v50 = vmul.f32 %v5865_v55, %v16636_v25  ;;  %v16638_v10 = vld [vmem:[#allocation79_spill] sm:$0xff]  ;;  %v5759_v33 = vsel %vm4034_vm1, %v5739_v60, %v5740_v54  ;;  %v16643_v25 = vld [vmem:[#allocation16_spill] sm:$0xff]  ;;  %v5960_v46 = vmul.f32 %v5928_v61, %v16645_v24 }
 0x6a9   :  { %v14426_v41 = vadd.f32 %v16638_v10, %v16637_v44  ;;  %v16642_v55 = vld [vmem:[#allocation35_spill] sm:$0xff]  ;;  %v5760_v44 = vsel %vm4034_vm1, %v5738_v18, %v5739_v60  ;;  %v5824_v10 = vsel %vm4099_vm9, %v5802_v20, %v5803_v4 }
 0x6aa   :  { %7382 = vmatpush1.bf16.msra.mxu1 %v7808_v21  ;;  %v6014_v17 = vpack.c.bf16 %v5991_v22, %v5990_v49  ;;  %v5896_v21 = vmul.f32 %v5864_v30, %v16640_v42  ;;  %v16641_v22 = vld [vmem:[#allocation53_spill] sm:$0xff]  ;;  %v14437_v14 = vadd.f32 %v16643_v25, %v16642_v55  ;;  %v5825_v30 = vsel %vm4099_vm9, %v5801_v51, %v5802_v20  ;;  %v16646_v42 = vld [vmem:[#allocation4_spill] sm:$0xff] }
 0x6ab   :  { %16639 = vst [vmem:[#allocation71_spill] sm:$0xff] %v14426_v41  ;;  %v5961_v49 = vmul.f32 %v5929_v63, %v16641_v22  ;;  %v5742_v63 = vrot.slane %v14426_v41, 1  ;;  %v5866_v25 = vsub.f32 %v5760_v44, %v14345_v39  ;;  %v5804_v20 = vrot.slane %v14387_v45, 7 }
 0x6ac   :  { %16644 = vst [vmem:[#allocation22_spill] sm:$0xff] %v14437_v14  ;;  %v5992_v22 = vadd.f32 %v5960_v46, %v5896_v21  ;;  %v5741_v18 = vrot.slane %v14437_v14, 1  ;;  %v5805_v60 = vrot.slane %v14437_v14, 7  ;;  %v6032_v46 = vpack.c.bf16 %v14398_v28, %v14345_v39  ;;  %v16648_v21 = vld [vmem:[#allocation67_spill] sm:$0xff] }
 0x6ad   :  { %6151 = vmatmul.mubr.bf16.gmra.mrb[96].mxu1 %v6014_v17  ;;  %v5993_v34 = vadd.f32 %v5961_v49, %v5897_v50  ;;  %v5867_v17 = vsub.f32 %v5759_v33, %v14398_v28  ;;  %v5930_v50 = vsub.f32 %v14345_v39, %v5825_v30  ;;  %v16647_v33 = vld [vmem:[#allocation99_spill] sm:$0xff]  ;;  %v5898_v44 = vmul.f32 %v5866_v25, %v16648_v21  ;;  %v16653_v21 = vld [vmem:[#allocation10_spill] sm:$0xff] }
 0x6ae   :  { %6160 = vmatprep.mubr.bf16.mxu1 %v6031_v1  ;;  %v5931_v1 = vsub.f32 %v14398_v28, %v5824_v10  ;;  %v14456_v49 = vadd.f32 %v14007_v29, %v16647_v33  ;;  %v5757_v51 = vsel %vm4034_vm1, %v5741_v18, %v5742_v63  ;;  %v16650_v10 = vld [vmem:[#allocation90_spill] sm:$0xff]  ;;  %v5758_v29 = vsel %vm4034_vm1, %v5740_v54, %v5741_v18  ;;  %v16652_v33 = vld [vmem:[#allocation45_spill] sm:$0xff] }
 0x6af   :  { %v6015_v55 = vpack.c.bf16 %v5993_v34, %v5992_v22  ;;  %v5899_v61 = vmul.f32 %v5867_v17, %v16646_v42  ;;  %v16649_v34 = vld [vmem:[#allocation33_spill] sm:$0xff]  ;;  %v14467_v17 = vadd.f32 %v14004_v15, %v16650_v10  ;;  %v5822_v30 = vsel %vm4099_vm9, %v5804_v20, %v5805_v60 }
 0x6b0   :  { %v5963_v22 = vmul.f32 %v5931_v1, %v16649_v34  ;;  %v5962_v42 = vmul.f32 %v5930_v50, %v16652_v33  ;;  %v5823_v25 = vsel %vm4099_vm9, %v5803_v4, %v5804_v20  ;;  %v5744_v1 = vrot.slane %v14456_v49, 1 }
 0x6b1   :  { %16651 = vst [vmem:[#allocation29_spill] sm:$0xff] %v14467_v17  ;;  %v5868_v15 = vsub.f32 %v5758_v29, %v14387_v45  ;;  %v5743_v54 = vrot.slane %v14467_v17, 1  ;;  %v5807_v18 = vrot.slane %v14467_v17, 7  ;;  %v5806_v20 = vrot.slane %v14426_v41, 7 }
 0x6b2   :  { %v5995_v24 = vadd.f32 %v5963_v22, %v5899_v61  ;;  %v5994_v34 = vadd.f32 %v5962_v42, %v5898_v44  ;;  %v5932_v61 = vsub.f32 %v14387_v45, %v5823_v25  ;;  %v6033_v42 = vpack.c.bf16 %v14437_v14, %v14387_v45  ;;  %v16655_v44 = vld [vmem:[#allocation60_spill] sm:$0xff]  ;;  %v16672_v45 = vld [vmem:[#allocation21_spill] sm:$0xff] }
 0x6b3   :  { %v5755_v4 = vsel %vm4034_vm1, %v5743_v54, %v5744_v1  ;;  %v5900_v29 = vmul.f32 %v5868_v15, %v16655_v44  ;;  %v5820_v25 = vsel %vm4099_vm9, %v5806_v20, %v5807_v18  ;;  %v5821_v15 = vsel %vm4099_vm9, %v5805_v60, %v5806_v20  ;;  %v16659_v44 = vld [vmem:[#allocation50_spill] sm:$0xff] }
 0x6b4   :  { %v6016_v10 = vpack.c.bf16 %v5995_v24, %v5994_v34  ;;  %v16656_v24 = vld [vmem:[#allocation15_spill] sm:$0xff]  ;;  %v6034_v60 = vpack.c.bf16 %v14467_v17, %v14426_v41  ;;  %v5808_v20 = vrot.slane %v14456_v49, 7 }
 0x6b5   :  { %6161 = vmatmul.mubr.bf16.gmra.mrb[100].mxu1 %v6015_v55  ;;  %v5869_v55 = vsub.f32 %v5757_v51, %v14437_v14  ;;  %v16654_v51 = vld [vmem:[#allocation109_spill] sm:$0xff] }
 0x6b6   :  { %6170 = vmatprep.mubr.bf16.mxu1 %v6032_v46  ;;  %v5933_v46 = vsub.f32 %v14437_v14, %v5822_v30  ;;  %v14486_v22 = vadd.f32 %v14013_v32, %v16654_v51  ;;  %v16657_v30 = vld [vmem:[#allocation69_spill] sm:$0xff]  ;;  %v5756_v32 = vsel %vm4034_vm1, %v5742_v63, %v5743_v54 }
 0x6b7   :  { %v5901_v50 = vmul.f32 %v5869_v55, %v16653_v21  ;;  %v14497_v55 = vadd.f32 %v14010_v7, %v16657_v30  ;;  %v16658_v51 = vld [vmem:[#allocation41_spill] sm:$0xff]  ;;  %v5870_v7 = vsub.f32 %v5756_v32, %v14426_v41 }
 0x6b8   :  { %v5965_v34 = vmul.f32 %v5933_v46, %v16656_v24  ;;  %v5964_v21 = vmul.f32 %v5932_v61, %v16658_v51  ;;  %v5746_v46 = vrot.slane %v14486_v22, 1 }
 0x6b9   :  { %v5745_v63 = vrot.slane %v14497_v55, 1  ;;  %v5809_v54 = vrot.slane %v14497_v55, 7 }
 0x6ba   :  { %v5997_v33 = vadd.f32 %v5965_v34, %v5901_v50  ;;  %v5996_v24 = vadd.f32 %v5964_v21, %v5900_v29  ;;  %v5934_v50 = vsub.f32 %v14426_v41, %v5821_v15  ;;  %v16661_v34 = vld [vmem:[#allocation83_spill] sm:$0xff] }
 0x6bb   :  { %v5753_v21 = vsel %vm4034_vm1, %v5745_v63, %v5746_v46  ;;  %v16662_v29 = vld [vmem:[#allocation75_spill] sm:$0xff] }
 0x6bc   :  { %v6017_v30 = vpack.c.bf16 %v5997_v33, %v5996_v24  ;;  %v5902_v32 = vmul.f32 %v5870_v7, %v16662_v29  ;;  %v16663_v33 = vld [vmem:[#allocation73_spill] sm:$0xff]  ;;  %v5819_v7 = vsel %vm4099_vm9, %v5807_v18, %v5808_v20  ;;  %v16667_v29 = vld [vmem:[#allocation80_spill] sm:$0xff]  ;;  %v6035_v18 = vpack.c.bf16 %v14497_v55, %v14456_v49 }
 0x6bd   :  { %6171 = vmatmul.mubr.bf16.gmra.mrb[104].mxu1 %v6016_v10  ;;  %v5871_v10 = vsub.f32 %v5755_v4, %v14467_v17  ;;  %v16660_v4 = vld [vmem:[#allocation58_spill] sm:$0xff] }
 0x6be   :  { %6180 = vmatprep.mubr.bf16.mxu1 %v6033_v42  ;;  %v5935_v42 = vsub.f32 %v14467_v17, %v5820_v25  ;;  %v14516_v51 = vadd.f32 %v16661_v34, %v16660_v4  ;;  %v16664_v25 = vld [vmem:[#allocation14_spill] sm:$0xff]  ;;  %v5754_v4 = vsel %vm4034_vm1, %v5744_v1, %v5745_v63  ;;  %v5818_v34 = vsel %vm4099_vm9, %v5808_v20, %v5809_v54 }
 0x6bf   :  { %v5903_v61 = vmul.f32 %v5871_v10, %v16659_v44  ;;  %v16665_v10 = vld [vmem:[#allocation76_spill] sm:$0xff]  ;;  %v16666_v44 = vld [vmem:[#allocation81_spill] sm:$0xff]  ;;  %v16668_v20 = vld [vmem:[#allocation46_spill] sm:$0xff] }
 0x6c0   :  { %v5967_v24 = vmul.f32 %v5935_v42, %v16663_v33  ;;  %v14527_v15 = vadd.f32 %v16665_v10, %v16664_v25  ;;  %v5966_v17 = vmul.f32 %v5934_v50, %v16666_v44  ;;  %v5748_v42 = vrot.slane %v14516_v51, 1 }
 0x6c1   :  { %v5872_v25 = vsub.f32 %v5754_v4, %v14456_v49 }
 0x6c2   :  { %v5999_v14 = vadd.f32 %v5967_v24, %v5903_v61  ;;  %v5998_v33 = vadd.f32 %v5966_v17, %v5902_v32  ;;  %v5747_v1 = vrot.slane %v14527_v15, 1  ;;  %v5811_v63 = vrot.slane %v14527_v15, 7  ;;  %v16669_v24 = vld [vmem:[#allocation59_spill] sm:$0xff] }
 0x6c3   :  { %v5936_v61 = vsub.f32 %v14456_v49, %v5819_v7  ;;  %v5904_v32 = vmul.f32 %v5872_v25, %v16668_v20 }
 0x6c4   :  { %v6018_v10 = vpack.c.bf16 %v5999_v14, %v5998_v33  ;;  %v5751_v17 = vsel %vm4034_vm1, %v5747_v1, %v5748_v42  ;;  %v5752_v14 = vsel %vm4034_vm1, %v5746_v46, %v5747_v1  ;;  %v5812_v1 = vrot.slane %v14516_v51, 7 }
 0x6c5   :  { %6181 = vmatmul.mubr.bf16.gmra.mrb[108].mxu1 %v6017_v30  ;;  %v5873_v30 = vsub.f32 %v5753_v21, %v14497_v55  ;;  %v5810_v21 = vrot.slane %v14486_v22, 7  ;;  %v5875_v41 = vsub.f32 %v5751_v17, %v14527_v15 }
 0x6c6   :  { %6190 = vmatprep.mubr.bf16.mxu1 %v6034_v60  ;;  %v5937_v60 = vsub.f32 %v14497_v55, %v5818_v34  ;;  %v16670_v34 = vld [vmem:[#allocation78_spill] sm:$0xff] }
 0x6c7   :  { %v5905_v50 = vmul.f32 %v5873_v30, %v16667_v29  ;;  %v5816_v33 = vsel %vm4099_vm9, %v5810_v21, %v5811_v63  ;;  %v5968_v30 = vmul.f32 %v5936_v61, %v16670_v34  ;;  %v5817_v44 = vsel %vm4099_vm9, %v5809_v54, %v5810_v21  ;;  %v16673_v21 = vld [vmem:[#allocation12_spill] sm:$0xff] }
 0x6c8   :  { %v5969_v4 = vmul.f32 %v5937_v60, %v16669_v24  ;;  %v5874_v60 = vsub.f32 %v5752_v14, %v14486_v22  ;;  %v5938_v46 = vsub.f32 %v14486_v22, %v5817_v44  ;;  %v5907_v61 = vmul.f32 %v5875_v41, %v16672_v45  ;;  %v16676_v14 = vld [vmem:[#allocation77_spill] sm:$0xff]  ;;  %v16677_v41 = vld [vmem:[#allocation28_spill] sm:$0xff] }
 0x6c9   :  { %v6000_v25 = vadd.f32 %v5968_v30, %v5904_v32  ;;  %v16674_v17 = vrot.slane %v16673_v21, 1 }
 0x6ca   :  { %v6001_v7 = vadd.f32 %v5969_v4, %v5905_v50  ;;  %v6036_v50 = vpack.c.bf16 %v14527_v15, %v14486_v22 }
 0x6cc   :  { %v6019_v20 = vpack.c.bf16 %v6001_v7, %v6000_v25  ;;  %v16678_v7 = vld [vmem:[#allocation91_spill] sm:$0xff] }
 0x6cd   :  { %6191 = vmatmul.mubr.bf16.gmra.mrb[112].mxu1 %v6018_v10  ;;  %v16671_v10 = vld [vmem:[#allocation23_spill] sm:$0xff]  ;;  %v5970_v25 = vmul.f32 %v5938_v46, %v16678_v7 }
 0x6ce   :  { %6200 = vmatprep.mubr.bf16.mxu1 %v6035_v18  ;;  %v5749_v28 = vrot.slane %v16671_v10, 1  ;;  %v5939_v18 = vsub.f32 %v14527_v15, %v5816_v33  ;;  %v16675_v4 = vrot.slane %v16671_v10, 7  ;;  %v5906_v33 = vmul.f32 %v5874_v60, %v16676_v14  ;;  %v16679_v60 = vld [vmem:[#allocation51_spill] sm:$0xff] }
 0x6d0   :  { %v5750_v54 = vsel %vm4034_vm1, %v5748_v42, %v5749_v28  ;;  %v5781_v32 = vsel %vm4034_vm1, %v5749_v28, %v16674_v17  ;;  %v5814_v44 = vsel %vm4099_vm9, %v5812_v1, %v16675_v4  ;;  %v5971_v30 = vmul.f32 %v5939_v18, %v16677_v41  ;;  %v16680_v18 = vld [vmem:[#allocation7_spill] sm:$0xff] }
 0x6d1   :  { %v5815_v42 = vsel %vm4099_vm9, %v5811_v63, %v5812_v1  ;;  %v5876_v39 = vsub.f32 %v5750_v54, %v14516_v51  ;;  %v5877_v28 = vsub.f32 %v5781_v32, %v16671_v10  ;;  %v5941_v17 = vsub.f32 %v16671_v10, %v5814_v44  ;;  %v16682_v1 = vld [vmem:[#allocation64_spill] sm:$0xff] }
 0x6d2   :  { %v6003_v34 = vadd.f32 %v5971_v30, %v5907_v61  ;;  %v6002_v9 = vadd.f32 %v5970_v25, %v5906_v33  ;;  %v6037_v63 = vpack.c.bf16 %v16671_v10, %v14516_v51 }
 0x6d3   :  { %v5908_v16 = vmul.f32 %v5876_v39, %v16679_v60  ;;  %v5973_v46 = vmul.f32 %v5941_v17, %v16681_v12 }
 0x6d4   :  { %v6020_v4 = vpack.c.bf16 %v6003_v34, %v6002_v9  ;;  %v16683_v9 = vld [vmem:[#allocation26_spill] sm:$0xff] }
 0x6d5   :  { %6201 = vmatmul.mubr.bf16.gmra.mrb[116].mxu1 %v6019_v20  ;;  %v5940_v20 = vsub.f32 %v14516_v51, %v5815_v42 }
 0x6d6   :  { %6210 = vmatprep.mubr.bf16.mxu1 %v6036_v50  ;;  %v5909_v50 = vmul.f32 %v5877_v28, %v16680_v18  ;;  %v16684_v28 = vld [vmem:[#allocation24_spill] sm:$0xff] }
 0x6d7   :  { %v5972_v61 = vmul.f32 %v5940_v20, %v16682_v1 }
 0x6d8   :  { %v6005_v32 = vadd.f32 %v5973_v46, %v5909_v50  ;;  %v16687_v46 = vld [vmem:[#allocation82_spill] sm:$0xff] }
 0x6d9   :  { %v6004_v54 = vadd.f32 %v5972_v61, %v5908_v16 }
 0x6db   :  { %v6021_v44 = vpack.c.bf16 %v6005_v32, %v6004_v54 }
 0x6dd   :  { %6211 = vmatmul.mubr.bf16.gmra.mrb[120].mxu1 %v6020_v4  ;;  %v16685_v4 = vld [vmem:[#allocation114_spill] sm:$0xff] }
 0x6de   :  { %6220 = vmatprep.mubr.bf16.mxu1 %v6037_v63 }
 0x6e5   :  { %6221 = vmatmul.mubr.bf16.gmra.mrb[124].mxu1 %v6021_v44 }
 0x740   :  { %v6072_v33 = vpop.f32.mrb[64].mxu1 }
 0x741   :  { %v6074_v30 = vpop.f32.mrb[65].mxu1 }
 0x742   :  { %v6231_v34 = vsub.f32 %v16683_v9, %v6074_v30  ;;  %v6076_v39 = vpop.f32.mrb[66].mxu1 }
 0x743   :  { %v6078_v25 = vpop.f32.mrb[67].mxu1 }
 0x744   :  { %v6263_v42 = vmul.f32 %v6231_v34, %v6072_v33  ;;  %v6232_v17 = vsub.f32 %v16684_v28, %v6078_v25  ;;  %v16688_v33 = vld [vmem:[#allocation18_spill] sm:$0xff] }
 0x746   :  { %v6264_v37 = vmul.f32 %v6232_v17, %v6076_v39  ;;  %v14595_v31 = vadd.f32 %v6263_v42, %v16673_v21 }
 0x748   :  { %v14598_v20 = vadd.f32 %v6264_v37, %v16685_v4  ;;  %v6082_v16 = vpop.f32.mrb[68].mxu1  ;;  %v16689_v37 = vld [vmem:[#allocation44_spill] sm:$0xff] }
 0x749   :  { %v6084_v50 = vpop.f32.mrb[69].mxu1 }
 0x74a   :  { %16686 = vst [vmem:[#allocation6_spill] sm:$0xff] %v14598_v20  ;;  %v6233_v63 = vsub.f32 %v16687_v46, %v6084_v50  ;;  %v6086_v61 = vpop.f32.mrb[70].mxu1  ;;  %v6631_v54 = vpack.c.bf16 %v14598_v20, %v14595_v31  ;;  %v16690_v50 = vld [vmem:[#allocation38_spill] sm:$0xff] }
 0x74b   :  { %v6088_v32 = vpop.f32.mrb[71].mxu1 }
 0x74c   :  { %v14603_v44 = vmul.f32 %v6233_v63, %v6082_v16  ;;  %v6234_v30 = vsub.f32 %v16688_v33, %v6088_v32  ;;  %6679 = vmatprep.mubr.bf16.mxu0 %v6631_v54  ;;  %v16691_v63 = vld [vmem:[#allocation66_spill] sm:$0xff] }
 0x74e   :  { %v14606_v34 = vmul.f32 %v6234_v30, %v6086_v61  ;;  %v16692_v30 = vld [vmem:[#allocation11_spill] sm:$0xff] }
 0x750   :  { %v6092_v21 = vpop.f32.mrb[72].mxu1 }
 0x751   :  { %v6094_v39 = vpop.f32.mrb[73].mxu1 }
 0x752   :  { %v6235_v25 = vsub.f32 %v16689_v37, %v6094_v39  ;;  %v6096_v42 = vpop.f32.mrb[74].mxu1 }
 0x753   :  { %v6098_v17 = vpop.f32.mrb[75].mxu1 }
 0x754   :  { %v14609_v4 = vmul.f32 %v6235_v25, %v6092_v21  ;;  %v6236_v46 = vsub.f32 %v16690_v50, %v6098_v17  ;;  %v16693_v21 = vld [vmem:[#allocation42_spill] sm:$0xff] }
 0x756   :  { %v14612_v28 = vmul.f32 %v6236_v46, %v6096_v42  ;;  %v16694_v42 = vld [vmem:[#allocation55_spill] sm:$0xff] }
 0x758   :  { %v6102_v9 = vpop.f32.mrb[76].mxu1 }
 0x759   :  { %v6104_v16 = vpop.f32.mrb[77].mxu1 }
 0x75a   :  { %v6237_v19 = vsub.f32 %v16691_v63, %v6104_v16  ;;  %v6106_v32 = vpop.f32.mrb[78].mxu1 }
 0x75b   :  { %v6108_v54 = vpop.f32.mrb[79].mxu1 }
 0x75c   :  { %v14615_v61 = vmul.f32 %v6237_v19, %v6102_v9  ;;  %v6238_v33 = vsub.f32 %v16692_v30, %v6108_v54  ;;  %v16696_v19 = vld [vmem:[#allocation13_spill] sm:$0xff] }
 0x75e   :  { %v14618_v56 = vmul.f32 %v6238_v33, %v6106_v32  ;;  %v16698_v32 = vld [vmem:[#allocation88_spill] sm:$0xff] }
 0x760   :  { %v6112_v39 = vpop.f32.mrb[80].mxu1 }
 0x761   :  { %v6114_v37 = vpop.f32.mrb[81].mxu1 }
 0x762   :  { %v6239_v25 = vsub.f32 %v16693_v21, %v6114_v37  ;;  %v6116_v3 = vpop.f32.mrb[82].mxu1 }
 0x763   :  { %v6118_v17 = vpop.f32.mrb[83].mxu1 }
 0x764   :  { %v14621_v46 = vmul.f32 %v6239_v25, %v6112_v39  ;;  %v6240_v50 = vsub.f32 %v16694_v42, %v6118_v17  ;;  %v16700_v39 = vld [vmem:[#allocation9_spill] sm:$0xff] }
 0x766   :  { %v14624_v0 = vmul.f32 %v6240_v50, %v6116_v3  ;;  %v16702_v50 = vld [vmem:[#allocation19_spill] sm:$0xff] }
 0x768   :  { %16695 = vst [vmem:[#allocation74_spill] sm:$0xff] %v14624_v0  ;;  %v6122_v16 = vpop.f32.mrb[84].mxu1 }
 0x769   :  { %v6124_v63 = vpop.f32.mrb[85].mxu1 }
 0x76a   :  { %v6241_v9 = vsub.f32 %v16696_v19, %v6124_v63  ;;  %v6126_v53 = vpop.f32.mrb[86].mxu1 }
 0x76b   :  { %v6128_v54 = vpop.f32.mrb[87].mxu1 }
 0x76c   :  { %v14627_v33 = vmul.f32 %v6241_v9, %v6122_v16  ;;  %v6242_v30 = vsub.f32 %v16698_v32, %v6128_v54  ;;  %v16704_v16 = vld [vmem:[#allocation70_spill] sm:$0xff] }
 0x76e   :  { %16697 = vst [vmem:[#allocation3_spill] sm:$0xff] %v14627_v33  ;;  %v14630_v6 = vmul.f32 %v6242_v30, %v6126_v53  ;;  %v16706_v30 = vld [vmem:[#allocation102_spill] sm:$0xff] }
 0x770   :  { %16699 = vst [vmem:[#allocation8_spill] sm:$0xff] %v14630_v6  ;;  %v6132_v37 = vpop.f32.mrb[88].mxu1 }
 0x771   :  { %v6134_v21 = vpop.f32.mrb[89].mxu1 }
 0x772   :  { %v6243_v25 = vsub.f32 %v16700_v39, %v6134_v21  ;;  %v6136_v43 = vpop.f32.mrb[90].mxu1 }
 0x773   :  { %v6138_v17 = vpop.f32.mrb[91].mxu1 }
 0x774   :  { %v14633_v3 = vmul.f32 %v6243_v25, %v6132_v37  ;;  %v6244_v42 = vsub.f32 %v16702_v50, %v6138_v17  ;;  %v16708_v37 = vld [vmem:[#allocation103_spill] sm:$0xff] }
 0x776   :  { %16701 = vst [vmem:[#allocation79_spill] sm:$0xff] %v14633_v3  ;;  %v14636_v0 = vmul.f32 %v6244_v42, %v6136_v43  ;;  %v16710_v42 = vld [vmem:[#allocation104_spill] sm:$0xff] }
 0x778   :  { %16703 = vst [vmem:[#allocation35_spill] sm:$0xff] %v14636_v0  ;;  %v6142_v63 = vpop.f32.mrb[92].mxu1 }
 0x779   :  { %v6144_v19 = vpop.f32.mrb[93].mxu1 }
 0x77a   :  { %v6245_v9 = vsub.f32 %v16704_v16, %v6144_v19  ;;  %v6146_v52 = vpop.f32.mrb[94].mxu1 }
 0x77b   :  { %v6148_v54 = vpop.f32.mrb[95].mxu1 }
 0x77c   :  { %v14639_v53 = vmul.f32 %v6245_v9, %v6142_v63  ;;  %v6246_v32 = vsub.f32 %v16706_v30, %v6148_v54  ;;  %v16712_v63 = vld [vmem:[#allocation105_spill] sm:$0xff] }
 0x77e   :  { %16705 = vst [vmem:[#allocation16_spill] sm:$0xff] %v14639_v53  ;;  %v14642_v6 = vmul.f32 %v6246_v32, %v6146_v52  ;;  %v16714_v32 = vld [vmem:[#allocation106_spill] sm:$0xff] }
 0x780   :  { %16707 = vst [vmem:[#allocation99_spill] sm:$0xff] %v14642_v6  ;;  %v6152_v21 = vpop.f32.mrb[96].mxu1 }
 0x781   :  { %v6154_v39 = vpop.f32.mrb[97].mxu1 }
 0x782   :  { %v6247_v25 = vsub.f32 %v16708_v37, %v6154_v39  ;;  %v6156_v3 = vpop.f32.mrb[98].mxu1 }
 0x783   :  { %v6158_v17 = vpop.f32.mrb[99].mxu1 }
 0x784   :  { %v14645_v43 = vmul.f32 %v6247_v25, %v6152_v21  ;;  %v6248_v50 = vsub.f32 %v16710_v42, %v6158_v17  ;;  %v16716_v21 = vld [vmem:[#allocation107_spill] sm:$0xff] }
 0x786   :  { %16709 = vst [vmem:[#allocation90_spill] sm:$0xff] %v14645_v43  ;;  %v14648_v0 = vmul.f32 %v6248_v50, %v6156_v3  ;;  %v16718_v50 = vld [vmem:[#allocation108_spill] sm:$0xff] }
 0x788   :  { %16711 = vst [vmem:[#allocation109_spill] sm:$0xff] %v14648_v0  ;;  %v6162_v19 = vpop.f32.mrb[100].mxu1 }
 0x789   :  { %v6164_v16 = vpop.f32.mrb[101].mxu1 }
 0x78a   :  { %v6249_v9 = vsub.f32 %v16712_v63, %v6164_v16  ;;  %v6166_v53 = vpop.f32.mrb[102].mxu1 }
 0x78b   :  { %v6168_v54 = vpop.f32.mrb[103].mxu1 }
 0x78c   :  { %v14651_v52 = vmul.f32 %v6249_v9, %v6162_v19  ;;  %v6250_v30 = vsub.f32 %v16714_v32, %v6168_v54  ;;  %v16720_v19 = vld [vmem:[#allocation110_spill] sm:$0xff] }
 0x78e   :  { %16713 = vst [vmem:[#allocation69_spill] sm:$0xff] %v14651_v52  ;;  %v14654_v6 = vmul.f32 %v6250_v30, %v6166_v53  ;;  %v16722_v30 = vld [vmem:[#allocation111_spill] sm:$0xff] }
 0x790   :  { %16715 = vst [vmem:[#allocation58_spill] sm:$0xff] %v14654_v6  ;;  %v6172_v39 = vpop.f32.mrb[104].mxu1 }
 0x791   :  { %v6174_v37 = vpop.f32.mrb[105].mxu1 }
 0x792   :  { %v6251_v25 = vsub.f32 %v16716_v21, %v6174_v37  ;;  %v6176_v43 = vpop.f32.mrb[106].mxu1 }
 0x793   :  { %v6178_v17 = vpop.f32.mrb[107].mxu1 }
 0x794   :  { %v14657_v3 = vmul.f32 %v6251_v25, %v6172_v39  ;;  %v6252_v42 = vsub.f32 %v16718_v50, %v6178_v17  ;;  %v16724_v39 = vld [vmem:[#allocation112_spill] sm:$0xff] }
 0x796   :  { %16717 = vst [vmem:[#allocation83_spill] sm:$0xff] %v14657_v3  ;;  %v14660_v0 = vmul.f32 %v6252_v42, %v6176_v43  ;;  %v16726_v42 = vld [vmem:[#allocation113_spill] sm:$0xff] }
 0x798   :  { %16719 = vst [vmem:[#allocation14_spill] sm:$0xff] %v14660_v0  ;;  %v6182_v16 = vpop.f32.mrb[108].mxu1 }
 0x799   :  { %v6184_v63 = vpop.f32.mrb[109].mxu1 }
 0x79a   :  { %v6253_v9 = vsub.f32 %v16720_v19, %v6184_v63  ;;  %v6186_v52 = vpop.f32.mrb[110].mxu1 }
 0x79b   :  { %v6188_v54 = vpop.f32.mrb[111].mxu1 }
 0x79c   :  { %v14663_v53 = vmul.f32 %v6253_v9, %v6182_v16  ;;  %v6254_v32 = vsub.f32 %v16722_v30, %v6188_v54  ;;  %v16728_v16 = vld [vmem:[#allocation115_spill] sm:$0xff] }
 0x79e   :  { %16721 = vst [vmem:[#allocation76_spill] sm:$0xff] %v14663_v53  ;;  %v14666_v6 = vmul.f32 %v6254_v32, %v6186_v52  ;;  %v6328_v52 = vrot.slane %v14598_v20, 1  ;;  %v6392_v32 = vrot.slane %v14598_v20, 7 }
 0x7a0   :  { %16723 = vst [vmem:[#allocation80_spill] sm:$0xff] %v14666_v6  ;;  %v6192_v37 = vpop.f32.mrb[112].mxu1 }
 0x7a1   :  { %v6194_v21 = vpop.f32.mrb[113].mxu1 }
 0x7a2   :  { %v6255_v25 = vsub.f32 %v16724_v39, %v6194_v21  ;;  %v6196_v3 = vpop.f32.mrb[114].mxu1  ;;  %v16729_v21 = vld [vmem:[#allocation116_spill] sm:$0xff] }
 0x7a3   :  { %v6198_v17 = vpop.f32.mrb[115].mxu1 }
 0x7a4   :  { %v14669_v43 = vmul.f32 %v6255_v25, %v6192_v37  ;;  %v6256_v50 = vsub.f32 %v16726_v42, %v6198_v17  ;;  %v15898_v37 = vrot.slane %v14595_v31, 1  ;;  %v15899_v25 = vrot.slane %v14595_v31, 7 }
 0x7a6   :  { %16725 = vst [vmem:[#allocation59_spill] sm:$0xff] %v14669_v43  ;;  %v14672_v0 = vmul.f32 %v6256_v50, %v6196_v3  ;;  %v14682_v3 = vadd.f32 %v14603_v44, %v14018_v59  ;;  %v16731_v59 = vld [vmem:[#allocation118_spill] sm:$0xff] }
 0x7a8   :  { %16727 = vst [vmem:[#allocation23_spill] sm:$0xff] %v14672_v0  ;;  %v6202_v63 = vpop.f32.mrb[116].mxu1  ;;  %v16732_v0 = vld [vmem:[#allocation119_spill] sm:$0xff] }
 0x7a9   :  { %v6204_v19 = vpop.f32.mrb[117].mxu1 }
 0x7aa   :  { %v6257_v9 = vsub.f32 %v16728_v16, %v6204_v19  ;;  %v6206_v53 = vpop.f32.mrb[118].mxu1 }
 0x7ab   :  { %v6208_v54 = vpop.f32.mrb[119].mxu1 }
 0x7ac   :  { %v6289_v30 = vmul.f32 %v6257_v9, %v6202_v63  ;;  %v6258_v39 = vsub.f32 %v16729_v21, %v6208_v54  ;;  %v6389_v63 = vsel %vm4034_vm1, %v15898_v37, %v6328_v52  ;;  %v6453_v9 = vsel %vm4099_vm9, %v15899_v25, %v6392_v32 }
 0x7ad   :  { %v6455_v21 = vsub.f32 %v6389_v63, %v14595_v31  ;;  %v6520_v16 = vsub.f32 %v14598_v20, %v6453_v9  ;;  %v14706_v25 = vadd.f32 %v14606_v34, %v14037_v27 }
 0x7ae   :  { %v6290_v17 = vmul.f32 %v6258_v39, %v6206_v53  ;;  %v14696_v53 = vadd.f32 %v6289_v30, %v14456_v49 }
 0x7af   :  { %v14715_v9 = vmul.f32 %v6455_v21, %v16443_v62  ;;  %v14731_v62 = vadd.f32 %v14609_v4, %v14028_v23 }
 0x7b0   :  { %v14685_v50 = vadd.f32 %v6290_v17, %v14497_v55  ;;  %v6212_v19 = vpop.f32.mrb[120].mxu1  ;;  %16730 = vst [vmem:[#allocation21_spill] sm:$0xff] %v14696_v53  ;;  %v6329_v55 = vrot.slane %v14682_v3, 1 }
 0x7b1   :  { %v6214_v54 = vpop.f32.mrb[121].mxu1 }
 0x7b2   :  { %v6259_v44 = vsub.f32 %v16731_v59, %v6214_v54  ;;  %v6216_v39 = vpop.f32.mrb[122].mxu1  ;;  %v6418_v37 = vrot.slane %v14685_v50, 7  ;;  %v15900_v54 = vrot.slane %v14696_v53, 7  ;;  %v6388_v63 = vsel %vm4034_vm1, %v6328_v52, %v6329_v55 }
 0x7b3   :  { %v6218_v17 = vpop.f32.mrb[123].mxu1  ;;  %v15904_v52 = vrot.slane %v14685_v50, 1  ;;  %v6456_v4 = vsub.f32 %v6388_v63, %v14598_v20 }
 0x7b4   :  { %v6291_v42 = vmul.f32 %v6259_v44, %v6212_v19  ;;  %v6260_v6 = vsub.f32 %v16732_v0, %v6218_v17  ;;  %v14718_v19 = vmul.f32 %v6520_v16, %v16587_v38  ;;  %v6330_v38 = vrot.slane %v14706_v25, 1 }
 0x7b5   :  { %v6393_v16 = vrot.slane %v14682_v3, 7 }
 0x7b6   :  { %v14709_v49 = vadd.f32 %v6291_v42, %v14486_v22  ;;  %v6292_v30 = vmul.f32 %v6260_v6, %v6216_v39  ;;  %v6427_v6 = vsel %vm4099_vm9, %v15900_v54, %v6418_v37  ;;  %v16733_v39 = vld [vmem:[#allocation121_spill] sm:$0xff] }
 0x7b7   :  { %v6546_v53 = vsub.f32 %v14685_v50, %v6427_v6  ;;  %v14758_v20 = vsel %vm4099_vm9, %v6392_v32, %v6393_v16 }
 0x7b8   :  { %v6355_v44 = vrot.slane %v14709_v49, 1  ;;  %v6419_v27 = vrot.slane %v14709_v49, 7  ;;  %v14723_v34 = vadd.f32 %v6292_v30, %v14527_v15  ;;  %v6222_v22 = vpop.f32.mrb[124].mxu1 }
 0x7b9   :  { %v6224_v42 = vpop.f32.mrb[125].mxu1  ;;  %v6578_v32 = vmul.f32 %v6546_v53, %v16669_v24  ;;  %v16736_v24 = vrot.slane %v14706_v25, 7 }
 0x7ba   :  { %v6356_v15 = vrot.slane %v14723_v34, 1  ;;  %v6420_v21 = vrot.slane %v14723_v34, 7  ;;  %v6261_v17 = vsub.f32 %v16733_v39, %v6224_v42  ;;  %v6226_v30 = vpop.f32.mrb[126].mxu1  ;;  %v6645_v54 = vpack.c.bf16 %v14723_v34, %v14709_v49 }
 0x7bb   :  { %v6228_v0 = vpop.f32.mrb[127].mxu1  ;;  %v6426_v23 = vsel %vm4099_vm9, %v6418_v37, %v6419_v27  ;;  %v6362_v59 = vsel %vm4034_vm1, %v15904_v52, %v6355_v44  ;;  %v6331_v37 = vrot.slane %v14731_v62, 1 }
 0x7bc   :  { %v6293_v43 = vmul.f32 %v6261_v17, %v6222_v22  ;;  %v6262_v42 = vsub.f32 %v16734_v57, %v6228_v0  ;;  %6819 = vmatprep.mubr.bf16.mxu1 %v6645_v54  ;;  %v6361_v39 = vsel %vm4034_vm1, %v6355_v44, %v6356_v15  ;;  %v6425_v33 = vsel %vm4099_vm9, %v6419_v27, %v6420_v21 }
 0x7bd   :  { %v6482_v6 = vsub.f32 %v6362_v59, %v14685_v50  ;;  %v6483_v54 = vsub.f32 %v6361_v39, %v14709_v49  ;;  %v6387_v44 = vsel %vm4034_vm1, %v6329_v55, %v6330_v38  ;;  %v6547_v27 = vsub.f32 %v14709_v49, %v6426_v23 }
 0x7be   :  { %v14762_v22 = vadd.f32 %v6293_v43, %v14516_v51  ;;  %v6294_v0 = vmul.f32 %v6262_v42, %v6226_v30  ;;  %v6548_v17 = vsub.f32 %v14723_v34, %v6425_v33  ;;  %v16735_v51 = vld [vmem:[#allocation61_spill] sm:$0xff]  ;;  %v14779_v55 = vadd.f32 %v14615_v61, %v14059_v35 }
 0x7bf   :  { %v6514_v52 = vmul.f32 %v6482_v6, %v16667_v29  ;;  %v6488_v43 = vmul.f32 %v6456_v4, %v16735_v51  ;;  %v6386_v29 = vsel %vm4034_vm1, %v6330_v38, %v6331_v37  ;;  %v6451_v33 = vsel %vm4099_vm9, %v6393_v16, %v16736_v24 }
 0x7c0   :  { %v6357_v63 = vrot.slane %v14762_v22, 1  ;;  %v14773_v59 = vadd.f32 %v6294_v0, %v16671_v10  ;;  %v6421_v39 = vrot.slane %v14762_v22, 7  ;;  %v6515_v35 = vmul.f32 %v6483_v54, %v16676_v14 }
 0x7c1   :  { %v14789_v10 = vadd.f32 %v6578_v32, %v6514_v52  ;;  %v6579_v38 = vmul.f32 %v6547_v27, %v16678_v7  ;;  %v6580_v4 = vmul.f32 %v6548_v17, %v16677_v41  ;;  %v16737_v52 = vrot.slane %v14595_v31, 7 }
 0x7c2   :  { %v6422_v53 = vrot.slane %v14773_v59, 7  ;;  %v6360_v30 = vsel %vm4034_vm1, %v6356_v15, %v6357_v63  ;;  %v6358_v61 = vrot.slane %v14773_v59, 1  ;;  %v6424_v16 = vsel %vm4099_vm9, %v6420_v21, %v6421_v39 }
 0x7c3   :  { %v6484_v23 = vsub.f32 %v6360_v30, %v14723_v34  ;;  %v16738_v14 = vrot.slane %v14595_v31, 1  ;;  %v14819_v27 = vadd.f32 %v14612_v28, %v14072_v48  ;;  %v6457_v17 = vsub.f32 %v6387_v44, %v14682_v3 }
 0x7c4   :  { %v6454_v42 = vsel %vm4099_vm9, %v6422_v53, %v16737_v52  ;;  %v6359_v15 = vsel %vm4034_vm1, %v6357_v63, %v6358_v61  ;;  %v6423_v7 = vsel %vm4099_vm9, %v6421_v39, %v6422_v53  ;;  %v6458_v32 = vsub.f32 %v6386_v29, %v14706_v25 }
 0x7c5   :  { %v6390_v6 = vsel %vm4034_vm1, %v6358_v61, %v16738_v14  ;;  %v6516_v41 = vmul.f32 %v6484_v23, %v16672_v45  ;;  %v6519_v21 = vsub.f32 %v14595_v31, %v6454_v42  ;;  %v6485_v0 = vsub.f32 %v6359_v15, %v14762_v22 }
 0x7c6   :  { %v6486_v54 = vsub.f32 %v6390_v6, %v14773_v59  ;;  %v6550_v63 = vsub.f32 %v14773_v59, %v6423_v7  ;;  %v6611_v51 = vadd.f32 %v6579_v38, %v6515_v35  ;;  %v6549_v24 = vsub.f32 %v14762_v22, %v6424_v16 }
 0x7c7   :  { %v6612_v39 = vadd.f32 %v6580_v4, %v6516_v41  ;;  %v6551_v45 = vmul.f32 %v6519_v21, %v16586_v36  ;;  %v6584_v53 = vadd.f32 %v14718_v19, %v6488_v43  ;;  %v6517_v30 = vmul.f32 %v6485_v0, %v16679_v60 }
 0x7c8   :  { %v6522_v61 = vsub.f32 %v14706_v25, %v6451_v33  ;;  %v6333_v48 = vrot.slane %v14779_v55, 1  ;;  %v6518_v44 = vmul.f32 %v6486_v54, %v16680_v18  ;;  %v6582_v29 = vmul.f32 %v6550_v63, %v16681_v12  ;;  %v16740_v63 = vld [vmem:[#allocation3_spill] sm:$0xff] }
 0x7c9   :  { %v6629_v28 = vpack.c.bf16 %v6612_v39, %v6611_v51  ;;  %v6583_v23 = vadd.f32 %v6551_v45, %v14715_v9  ;;  %v6646_v36 = vpack.c.bf16 %v14773_v59, %v14762_v22  ;;  %v6332_v35 = vrot.slane %v14819_v27, 1  ;;  %v16741_v45 = vld [vmem:[#allocation85_spill] sm:$0xff] }
 0x7ca   :  { %v6396_v19 = vrot.slane %v14819_v27, 7  ;;  %v6581_v43 = vmul.f32 %v6549_v24, %v16682_v1  ;;  %v6490_v33 = vmul.f32 %v6458_v32, %v16446_v13  ;;  %v6521_v9 = vsub.f32 %v14682_v3, %v14758_v20 }
 0x7cb   :  { %6820 = vmatmul.mubr.bf16.vlgmr.msra.gmra.mrb[128].mxu1 %v6629_v28  ;;  %v6615_v60 = vpack.c.bf16 %v6584_v53, %v6583_v23  ;;  %v14843_v18 = vadd.f32 %v14621_v46, %v14093_v40  ;;  %v6632_v12 = vpack.c.bf16 %v14706_v25, %v14682_v3  ;;  %v6384_v38 = vsel %vm4034_vm1, %v6332_v35, %v6333_v48  ;;  %v16742_v53 = vld [vmem:[#allocation86_spill] sm:$0xff] }
 0x7cc   :  { %6829 = vmatprep.mubr.bf16.mxu1 %v6646_v36  ;;  %v6395_v4 = vrot.slane %v14731_v62, 7  ;;  %v6613_v1 = vadd.f32 %v6581_v43, %v6517_v30  ;;  %v6614_v16 = vadd.f32 %v6582_v29, %v6518_v44  ;;  %v6489_v13 = vmul.f32 %v6457_v17, %v16448_v26  ;;  %v16745_v44 = vld [vmem:[#allocation87_spill] sm:$0xff] }
 0x7cd   :  { %6680 = vmatmul.mubr.bf16.vlgmr.msra.gmra.mrb[96].mxu0 %v6615_v60  ;;  %v6554_v20 = vmul.f32 %v6522_v61, %v16588_v5  ;;  %v14854_v40 = vadd.f32 %v14618_v56, %v14104_v47  ;;  %v6385_v46 = vsel %vm4034_vm1, %v6331_v37, %v6332_v35  ;;  %v6553_v42 = vmul.f32 %v6521_v9, %v16589_v11  ;;  %v16744_v61 = vld [vmem:[#allocation74_spill] sm:$0xff] }
 0x7ce   :  { %6689 = vmatprep.mubr.bf16.mxu0 %v6632_v12  ;;  %v6449_v52 = vsel %vm4099_vm9, %v6395_v4, %v6396_v19  ;;  %v6460_v26 = vsub.f32 %v6384_v38, %v14819_v27  ;;  %v16739_v5 = vrot.slane %v14706_v25, 7  ;;  %v6335_v47 = vrot.slane %v14843_v18, 1 }
 0x7cf   :  { %v6586_v15 = vadd.f32 %v6554_v20, %v6490_v33  ;;  %v6630_v14 = vpack.c.bf16 %v6614_v16, %v6613_v1  ;;  %v6585_v6 = vadd.f32 %v6553_v42, %v6489_v13  ;;  %v6459_v7 = vsub.f32 %v6385_v46, %v14731_v62  ;;  %v16746_v1 = vld [vmem:[#allocation92_spill] sm:$0xff]  ;;  %v16747_v20 = vld [vmem:[#allocation63_spill] sm:$0xff] }
 0x7d0   :  { %v6450_v56 = vsel %vm4099_vm9, %v16739_v5, %v6395_v4  ;;  %v6524_v37 = vsub.f32 %v14819_v27, %v6449_v52  ;;  %v6334_v41 = vrot.slane %v14854_v40, 1  ;;  %v6398_v11 = vrot.slane %v14854_v40, 7  ;;  %v16748_v46 = vld [vmem:[#allocation79_spill] sm:$0xff] }
 0x7d1   :  { %v6616_v21 = vpack.c.bf16 %v6586_v15, %v6585_v6  ;;  %v6492_v0 = vmul.f32 %v6460_v26, %v16590_v58  ;;  %v6523_v54 = vsub.f32 %v14731_v62, %v6450_v56  ;;  %v14877_v17 = vadd.f32 %v16740_v63, %v14135_v8  ;;  %v16743_v58 = vld [vmem:[#allocation65_spill] sm:$0xff]  ;;  %v16750_v56 = vld [vmem:[#allocation32_spill] sm:$0xff] }
 0x7d2   :  { %v6633_v32 = vpack.c.bf16 %v14819_v27, %v14731_v62  ;;  %v6382_v51 = vsel %vm4034_vm1, %v6334_v41, %v6335_v47  ;;  %v6397_v39 = vrot.slane %v14779_v55, 7  ;;  %v6491_v24 = vmul.f32 %v6459_v7, %v16741_v45  ;;  %v16749_v26 = vld [vmem:[#allocation93_spill] sm:$0xff]  ;;  %v16751_v6 = vld [vmem:[#allocation72_spill] sm:$0xff] }
 0x7d3   :  { %6830 = vmatmul.mubr.bf16.gmra.mrb[132].mxu1 %v6630_v14  ;;  %v6556_v30 = vmul.f32 %v6524_v37, %v16742_v53  ;;  %v14888_v28 = vadd.f32 %v16744_v61, %v16743_v58  ;;  %v6383_v8 = vsel %vm4034_vm1, %v6333_v48, %v6334_v41  ;;  %v6555_v29 = vmul.f32 %v6523_v54, %v16745_v44  ;;  %v16752_v7 = vld [vmem:[#allocation8_spill] sm:$0xff]  ;;  %v16754_v61 = vld [vmem:[#allocation94_spill] sm:$0xff]  ;;  %v16755_v44 = vld [vmem:[#allocation5_spill] sm:$0xff] }
 0x7d4   :  { %v6447_v23 = vsel %vm4099_vm9, %v6397_v39, %v6398_v11  ;;  %v6462_v35 = vsub.f32 %v6382_v51, %v14854_v40  ;;  %v6448_v60 = vsel %vm4099_vm9, %v6396_v19, %v6397_v39  ;;  %v6337_v43 = vrot.slane %v14877_v17, 1 }
 0x7d5   :  { %6690 = vmatmul.mubr.bf16.gmra.mrb[100].mxu0 %v6616_v21  ;;  %v6588_v36 = vadd.f32 %v6556_v30, %v6492_v0  ;;  %v6587_v33 = vadd.f32 %v6555_v29, %v6491_v24  ;;  %v6461_v9 = vsub.f32 %v6383_v8, %v14779_v55  ;;  %v6526_v12 = vsub.f32 %v14854_v40, %v6447_v23  ;;  %v16753_v0 = vld [vmem:[#allocation31_spill] sm:$0xff]  ;;  %v16756_v29 = vld [vmem:[#allocation16_spill] sm:$0xff] }
 0x7d6   :  { %6699 = vmatprep.mubr.bf16.mxu0 %v6633_v32  ;;  %v6336_v48 = vrot.slane %v14888_v28, 1  ;;  %v6400_v38 = vrot.slane %v14888_v28, 7  ;;  %v6494_v16 = vmul.f32 %v6462_v35, %v16746_v1  ;;  %v6525_v13 = vsub.f32 %v14779_v55, %v6448_v60  ;;  %v16760_v1 = vld [vmem:[#allocation35_spill] sm:$0xff] }
 0x7d7   :  { %v6617_v4 = vpack.c.bf16 %v6588_v36, %v6587_v33  ;;  %v14907_v52 = vadd.f32 %v16748_v46, %v16747_v20  ;;  %v6634_v19 = vpack.c.bf16 %v14854_v40, %v14779_v55  ;;  %v6399_v15 = vrot.slane %v14843_v18, 7  ;;  %v16757_v33 = vld [vmem:[#allocation95_spill] sm:$0xff]  ;;  %v16761_v46 = vld [vmem:[#allocation97_spill] sm:$0xff] }
 0x7d8   :  { %v6380_v42 = vsel %vm4034_vm1, %v6336_v48, %v6337_v43  ;;  %v6493_v5 = vmul.f32 %v6461_v9, %v16749_v26  ;;  %v6558_v14 = vmul.f32 %v6526_v12, %v16750_v56  ;;  %v14918_v37 = vadd.f32 %v16752_v7, %v16751_v6  ;;  %v16758_v12 = vld [vmem:[#allocation34_spill] sm:$0xff] }
 0x7d9   :  { %v6381_v41 = vsel %vm4034_vm1, %v6335_v47, %v6336_v48  ;;  %v6445_v21 = vsel %vm4099_vm9, %v6399_v15, %v6400_v38  ;;  %v6557_v54 = vmul.f32 %v6525_v13, %v16753_v0  ;;  %v6464_v32 = vsub.f32 %v6380_v42, %v14888_v28 }
 0x7da   :  { %v6590_v63 = vadd.f32 %v6558_v14, %v6494_v16  ;;  %v6446_v51 = vsel %vm4099_vm9, %v6398_v11, %v6399_v15  ;;  %v6339_v39 = vrot.slane %v14907_v52, 1  ;;  %v6463_v24 = vsub.f32 %v6381_v41, %v14843_v18 }
 0x7db   :  { %v6589_v45 = vadd.f32 %v6557_v54, %v6493_v5  ;;  %v6528_v53 = vsub.f32 %v14888_v28, %v6445_v21  ;;  %v6338_v47 = vrot.slane %v14918_v37, 1  ;;  %v6402_v30 = vrot.slane %v14918_v37, 7  ;;  %v16762_v21 = vld [vmem:[#allocation100_spill] sm:$0xff] }
 0x7dc   :  { %v6496_v8 = vmul.f32 %v6464_v32, %v16754_v61  ;;  %v6527_v23 = vsub.f32 %v14843_v18, %v6446_v51  ;;  %v14937_v36 = vadd.f32 %v16756_v29, %v16755_v44  ;;  %v6635_v11 = vpack.c.bf16 %v14888_v28, %v14843_v18  ;;  %v16764_v32 = vld [vmem:[#allocation90_spill] sm:$0xff] }
 0x7dd   :  { %6700 = vmatmul.mubr.bf16.gmra.mrb[104].mxu0 %v6617_v4  ;;  %v6618_v58 = vpack.c.bf16 %v6590_v63, %v6589_v45  ;;  %v6378_v35 = vsel %vm4034_vm1, %v6338_v47, %v6339_v39  ;;  %v6401_v60 = vrot.slane %v14877_v17, 7  ;;  %v6495_v9 = vmul.f32 %v6463_v24, %v16757_v33  ;;  %v16759_v4 = vld [vmem:[#allocation84_spill] sm:$0xff]  ;;  %v16763_v63 = vld [vmem:[#allocation123_spill] sm:$0xff] }
 0x7de   :  { %6709 = vmatprep.mubr.bf16.mxu0 %v6634_v19  ;;  %v6560_v48 = vmul.f32 %v6528_v53, %v16758_v12  ;;  %v14948_v16 = vadd.f32 %v16760_v1, %v16759_v4  ;;  %v6379_v13 = vsel %vm4034_vm1, %v6337_v43, %v6338_v47  ;;  %v6559_v19 = vmul.f32 %v6527_v23, %v16761_v46  ;;  %v16765_v53 = vld [vmem:[#allocation101_spill] sm:$0xff]  ;;  %v16768_v23 = vld [vmem:[#allocation99_spill] sm:$0xff] }
 0x7df   :  { %v6443_v20 = vsel %vm4099_vm9, %v6401_v60, %v6402_v30  ;;  %v6466_v15 = vsub.f32 %v6378_v35, %v14918_v37  ;;  %v6444_v26 = vsel %vm4099_vm9, %v6400_v38, %v6401_v60  ;;  %v6341_v5 = vrot.slane %v14937_v36, 1  ;;  %v16769_v35 = vld [vmem:[#allocation30_spill] sm:$0xff] }
 0x7e0   :  { %v6592_v42 = vadd.f32 %v6560_v48, %v6496_v8  ;;  %v6591_v56 = vadd.f32 %v6559_v19, %v6495_v9  ;;  %v6465_v14 = vsub.f32 %v6379_v13, %v14877_v17  ;;  %v6530_v6 = vsub.f32 %v14918_v37, %v6443_v20  ;;  %v16767_v8 = vld [vmem:[#allocation124_spill] sm:$0xff]  ;;  %v16770_v19 = vld [vmem:[#allocation89_spill] sm:$0xff] }
 0x7e1   :  { %v6340_v43 = vrot.slane %v14948_v16, 1  ;;  %v6404_v7 = vrot.slane %v14948_v16, 7  ;;  %v6498_v0 = vmul.f32 %v6466_v15, %v16762_v21  ;;  %v6529_v54 = vsub.f32 %v14877_v17, %v6444_v26  ;;  %v16771_v26 = vld [vmem:[#allocation25_spill] sm:$0xff] }
 0x7e2   :  { %v6619_v41 = vpack.c.bf16 %v6592_v42, %v6591_v56  ;;  %v14967_v51 = vadd.f32 %v16764_v32, %v16763_v63  ;;  %v6636_v38 = vpack.c.bf16 %v14918_v37, %v14877_v17  ;;  %v6403_v24 = vrot.slane %v14907_v52, 7  ;;  %v16772_v56 = vld [vmem:[#allocation69_spill] sm:$0xff]  ;;  %v16775_v63 = vld [vmem:[#allocation120_spill] sm:$0xff] }
 0x7e3   :  { %v6376_v45 = vsel %vm4034_vm1, %v6340_v43, %v6341_v5  ;;  %v6497_v47 = vmul.f32 %v6465_v14, %v16765_v53  ;;  %v14978_v44 = vadd.f32 %v16768_v23, %v16767_v8  ;;  %v6377_v29 = vsel %vm4034_vm1, %v6339_v39, %v6340_v43  ;;  %v16776_v32 = vld [vmem:[#allocation109_spill] sm:$0xff]  ;;  %v16777_v53 = vld [vmem:[#allocation43_spill] sm:$0xff] }
 0x7e4   :  { %v6561_v60 = vmul.f32 %v6529_v54, %v16769_v35  ;;  %v6468_v9 = vsub.f32 %v6376_v45, %v14948_v16  ;;  %v6442_v12 = vsel %vm4099_vm9, %v6402_v30, %v6403_v24  ;;  %v6343_v48 = vrot.slane %v14967_v51, 1 }
 0x7e5   :  { %6710 = vmatmul.mubr.bf16.gmra.mrb[108].mxu0 %v6618_v58  ;;  %v16766_v58 = vld [vmem:[#allocation37_spill] sm:$0xff]  ;;  %v6467_v1 = vsub.f32 %v6377_v29, %v14907_v52  ;;  %v6342_v39 = vrot.slane %v14978_v44, 1  ;;  %v6406_v20 = vrot.slane %v14978_v44, 7  ;;  %v6531_v15 = vsub.f32 %v14907_v52, %v6442_v12 }
 0x7e6   :  { %6719 = vmatprep.mubr.bf16.mxu0 %v6635_v11  ;;  %v6562_v61 = vmul.f32 %v6530_v6, %v16766_v58  ;;  %v6441_v11 = vsel %vm4099_vm9, %v6403_v24, %v6404_v7  ;;  %v6593_v4 = vadd.f32 %v6561_v60, %v6497_v47  ;;  %v6500_v42 = vmul.f32 %v6468_v9, %v16770_v19  ;;  %v16778_v9 = vld [vmem:[#allocation96_spill] sm:$0xff] }
 0x7e7   :  { %v6532_v13 = vsub.f32 %v14948_v16, %v6441_v11  ;;  %v14997_v14 = vadd.f32 %v16772_v56, %v16771_v26  ;;  %v6637_v30 = vpack.c.bf16 %v14948_v16, %v14907_v52  ;;  %v6374_v6 = vsel %vm4034_vm1, %v6342_v39, %v6343_v48  ;;  %v16782_v26 = vld [vmem:[#allocation17_spill] sm:$0xff] }
 0x7e8   :  { %v6594_v33 = vadd.f32 %v6562_v61, %v6498_v0  ;;  %v6405_v43 = vrot.slane %v14937_v36, 7  ;;  %v16774_v0 = vld [vmem:[#allocation48_spill] sm:$0xff]  ;;  %v6375_v45 = vsel %vm4034_vm1, %v6341_v5, %v6342_v39  ;;  %v6563_v47 = vmul.f32 %v6531_v15, %v16777_v53 }
 0x7e9   :  { %v6564_v54 = vmul.f32 %v6532_v13, %v16774_v0  ;;  %v6470_v61 = vsub.f32 %v6374_v6, %v14978_v44  ;;  %v6345_v23 = vrot.slane %v14997_v14, 1  ;;  %v6469_v11 = vsub.f32 %v6375_v45, %v14937_v36  ;;  %v16780_v13 = vld [vmem:[#allocation83_spill] sm:$0xff]  ;;  %v16784_v6 = vld [vmem:[#allocation58_spill] sm:$0xff]  ;;  %v16785_v0 = vld [vmem:[#allocation56_spill] sm:$0xff] }
 0x7ea   :  { %v6620_v46 = vpack.c.bf16 %v6594_v33, %v6593_v4  ;;  %v6439_v24 = vsel %vm4099_vm9, %v6405_v43, %v6406_v20  ;;  %v6440_v8 = vsel %vm4099_vm9, %v6404_v7, %v6405_v43  ;;  %v6638_v7 = vpack.c.bf16 %v14978_v44, %v14937_v36 }
 0x7eb   :  { %v6596_v58 = vadd.f32 %v6564_v54, %v6500_v42  ;;  %v6534_v35 = vsub.f32 %v14978_v44, %v6439_v24  ;;  %v6502_v12 = vmul.f32 %v6470_v61, %v16778_v9  ;;  %v6533_v4 = vsub.f32 %v14937_v36, %v6440_v8  ;;  %v16781_v42 = vld [vmem:[#allocation40_spill] sm:$0xff] }
 0x7ec   :  { %v6407_v19 = vrot.slane %v14967_v51, 7  ;;  %v6501_v15 = vmul.f32 %v6469_v11, %v16781_v42  ;;  %v16792_v42 = vld [vmem:[#allocation14_spill] sm:$0xff] }
 0x7ed   :  { %6720 = vmatmul.mubr.bf16.gmra.mrb[112].mxu0 %v6619_v41  ;;  %v16773_v41 = vld [vmem:[#allocation49_spill] sm:$0xff]  ;;  %v6566_v56 = vmul.f32 %v6534_v35, %v16782_v26  ;;  %v6565_v54 = vmul.f32 %v6533_v4, %v16785_v0  ;;  %v6409_v4 = vrot.slane %v14997_v14, 7 }
 0x7ee   :  { %6729 = vmatprep.mubr.bf16.mxu0 %v6636_v38  ;;  %v6499_v21 = vmul.f32 %v6467_v1, %v16773_v41  ;;  %v15008_v38 = vadd.f32 %v16776_v32, %v16775_v63  ;;  %v16779_v1 = vld [vmem:[#allocation27_spill] sm:$0xff]  ;;  %v6438_v45 = vsel %vm4099_vm9, %v6406_v20, %v6407_v19 }
 0x7ef   :  { %v15027_v39 = vadd.f32 %v16780_v13, %v16779_v1  ;;  %v6598_v63 = vadd.f32 %v6566_v56, %v6502_v12  ;;  %v6597_v53 = vadd.f32 %v6565_v54, %v6501_v15  ;;  %v6535_v35 = vsub.f32 %v14967_v51, %v6438_v45  ;;  %v16789_v1 = vld [vmem:[#allocation47_spill] sm:$0xff] }
 0x7f0   :  { %v6595_v29 = vadd.f32 %v6563_v47, %v6499_v21  ;;  %v6344_v5 = vrot.slane %v15008_v38, 1  ;;  %v6408_v60 = vrot.slane %v15008_v38, 7  ;;  %v6639_v20 = vpack.c.bf16 %v15008_v38, %v14967_v51 }
 0x7f1   :  { %v6347_v24 = vrot.slane %v15027_v39, 1  ;;  %v6622_v8 = vpack.c.bf16 %v6598_v63, %v6597_v53 }
 0x7f2   :  { %v6621_v33 = vpack.c.bf16 %v6596_v58, %v6595_v29  ;;  %v6373_v41 = vsel %vm4034_vm1, %v6343_v48, %v6344_v5  ;;  %v6437_v21 = vsel %vm4099_vm9, %v6407_v19, %v6408_v60  ;;  %v16786_v29 = vld [vmem:[#allocation36_spill] sm:$0xff]  ;;  %v16791_v19 = vld [vmem:[#allocation117_spill] sm:$0xff]  ;;  %v6436_v0 = vsel %vm4099_vm9, %v6408_v60, %v6409_v4 }
 0x7f3   :  { %v6471_v47 = vsub.f32 %v6373_v41, %v14967_v51  ;;  %v6536_v58 = vsub.f32 %v15008_v38, %v6437_v21  ;;  %v15068_v15 = vadd.f32 %v16792_v42, %v16791_v19 }
 0x7f5   :  { %6730 = vmatmul.mubr.bf16.gmra.mrb[116].mxu0 %v6620_v46  ;;  %v6372_v46 = vsel %vm4034_vm1, %v6344_v5, %v6345_v23  ;;  %v16787_v5 = vld [vmem:[#allocation62_spill] sm:$0xff]  ;;  %v6503_v13 = vmul.f32 %v6471_v47, %v16789_v1  ;;  %v6412_v53 = vrot.slane %v15068_v15, 7 }
 0x7f6   :  { %6739 = vmatprep.mubr.bf16.mxu0 %v6637_v30  ;;  %v16783_v30 = vld [vmem:[#allocation98_spill] sm:$0xff]  ;;  %v6472_v32 = vsub.f32 %v6372_v46, %v15008_v38 }
 0x7f7   :  { %v15038_v43 = vadd.f32 %v16784_v6, %v16783_v30  ;;  %v16793_v30 = vld [vmem:[#allocation54_spill] sm:$0xff] }
 0x7f8   :  { %v6504_v11 = vmul.f32 %v6472_v32, %v16786_v29  ;;  %v6567_v6 = vmul.f32 %v6535_v35, %v16793_v30  ;;  %v16795_v29 = vld [vmem:[#allocation71_spill] sm:$0xff] }
 0x7f9   :  { %v6346_v48 = vrot.slane %v15038_v43, 1  ;;  %v6410_v61 = vrot.slane %v15038_v43, 7  ;;  %v6640_v60 = vpack.c.bf16 %v15038_v43, %v14997_v14 }
 0x7fa   :  { %v6599_v63 = vadd.f32 %v6567_v6, %v6503_v13  ;;  %v16799_v13 = vld [vmem:[#allocation22_spill] sm:$0xff] }
 0x7fb   :  { %v6370_v12 = vsel %vm4034_vm1, %v6346_v48, %v6347_v24  ;;  %v6371_v26 = vsel %vm4034_vm1, %v6345_v23, %v6346_v48  ;;  %v6435_v56 = vsel %vm4099_vm9, %v6409_v4, %v6410_v61  ;;  %v6348_v23 = vrot.slane %v15068_v15, 1  ;;  %v16798_v4 = vld [vmem:[#allocation53_spill] sm:$0xff] }
 0x7fc   :  { %v6474_v21 = vsub.f32 %v6370_v12, %v15038_v43  ;;  %v6473_v32 = vsub.f32 %v6371_v26, %v14997_v14  ;;  %v6538_v45 = vsub.f32 %v15038_v43, %v6435_v56  ;;  %v16801_v26 = vld [vmem:[#allocation57_spill] sm:$0xff] }
 0x7fd   :  { %6740 = vmatmul.mubr.bf16.gmra.mrb[120].mxu0 %v6621_v33  ;;  %v16788_v33 = vld [vmem:[#allocation76_spill] sm:$0xff]  ;;  %v6369_v19 = vsel %vm4034_vm1, %v6347_v24, %v6348_v23 }
 0x7fe   :  { %6749 = vmatprep.mubr.bf16.mxu0 %v6638_v7  ;;  %v15057_v9 = vadd.f32 %v16788_v33, %v16787_v5  ;;  %v16790_v7 = vld [vmem:[#allocation20_spill] sm:$0xff]  ;;  %v6411_v33 = vrot.slane %v15027_v39, 7  ;;  %v6570_v1 = vmul.f32 %v6538_v45, %v16798_v4 }
 0x7ff   :  { %v6568_v46 = vmul.f32 %v6536_v58, %v16790_v7  ;;  %v16794_v58 = vld [vmem:[#allocation39_spill] sm:$0xff]  ;;  %v16800_v7 = vld [vmem:[#allocation80_spill] sm:$0xff] }
 0x800   :  { %v6349_v54 = vrot.slane %v15057_v9, 1  ;;  %v6506_v48 = vmul.f32 %v6474_v21, %v16794_v58  ;;  %v6433_v42 = vsel %vm4099_vm9, %v6411_v33, %v6412_v53 }
 0x801   :  { %v6600_v41 = vadd.f32 %v6568_v46, %v6504_v11  ;;  %v16796_v11 = vld [vmem:[#allocation59_spill] sm:$0xff]  ;;  %v15098_v46 = vadd.f32 %v16800_v7, %v16799_v13  ;;  %v16807_v7 = vld [vmem:[#allocation45_spill] sm:$0xff] }
 0x802   :  { %v15087_v35 = vadd.f32 %v16796_v11, %v16795_v29  ;;  %v6368_v5 = vsel %vm4034_vm1, %v6348_v23, %v6349_v54  ;;  %v6602_v30 = vadd.f32 %v6570_v1, %v6506_v48  ;;  %v6413_v29 = vrot.slane %v15057_v9, 7  ;;  %v16803_v11 = vld [vmem:[#allocation67_spill] sm:$0xff] }
 0x803   :  { %v6623_v47 = vpack.c.bf16 %v6600_v41, %v6599_v63  ;;  %v6476_v6 = vsub.f32 %v6368_v5, %v15068_v15  ;;  %v6434_v41 = vsel %vm4099_vm9, %v6410_v61, %v6411_v33  ;;  %v6475_v63 = vsub.f32 %v6369_v19, %v15027_v39  ;;  %v16804_v5 = vld [vmem:[#allocation33_spill] sm:$0xff] }
 0x804   :  { %v6351_v21 = vrot.slane %v15087_v35, 1  ;;  %v6350_v24 = vrot.slane %v15098_v46, 1  ;;  %v6414_v45 = vrot.slane %v15098_v46, 7  ;;  %v6539_v48 = vsub.f32 %v15027_v39, %v6434_v41 }
 0x805   :  { %6750 = vmatmul.mubr.bf16.gmra.mrb[124].mxu0 %v6622_v8  ;;  %v6537_v8 = vsub.f32 %v14997_v14, %v6436_v0 }
 0x806   :  { %6759 = vmatprep.mubr.bf16.mxu0 %v6639_v20  ;;  %v16797_v20 = vld [vmem:[#allocation52_spill] sm:$0xff]  ;;  %v6366_v61 = vsel %vm4034_vm1, %v6350_v24, %v6351_v21  ;;  %v6367_v1 = vsel %vm4034_vm1, %v6349_v54, %v6350_v24  ;;  %v6431_v13 = vsel %vm4099_vm9, %v6413_v29, %v6414_v45  ;;  %v6571_v19 = vmul.f32 %v6539_v48, %v16807_v7 }
 0x807   :  { %v6505_v12 = vmul.f32 %v6473_v32, %v16797_v20  ;;  %v6569_v56 = vmul.f32 %v6537_v8, %v16801_v26  ;;  %v6540_v32 = vsub.f32 %v15068_v15, %v6433_v42  ;;  %v6641_v8 = vpack.c.bf16 %v15068_v15, %v15027_v39  ;;  %v16805_v20 = vld [vmem:[#allocation29_spill] sm:$0xff] }
 0x808   :  { %v6478_v26 = vsub.f32 %v6366_v61, %v15098_v46  ;;  %v6642_v48 = vpack.c.bf16 %v15098_v46, %v15057_v9  ;;  %v16810_v61 = vld [vmem:[#allocation60_spill] sm:$0xff] }
 0x809   :  { %v6601_v0 = vadd.f32 %v6569_v56, %v6505_v12  ;;  %v6572_v33 = vmul.f32 %v6540_v32, %v16804_v5  ;;  %v16806_v12 = vld [vmem:[#allocation23_spill] sm:$0xff]  ;;  %v6432_v56 = vsel %vm4099_vm9, %v6412_v53, %v6413_v29 }
 0x80a   :  { %v15124_v4 = vadd.f32 %v16806_v12, %v16805_v20  ;;  %v16812_v20 = vld [vmem:[#allocation41_spill] sm:$0xff] }
 0x80b   :  { %v6624_v23 = vpack.c.bf16 %v6602_v30, %v6601_v0  ;;  %v16808_v30 = vld [vmem:[#allocation21_spill] sm:$0xff]  ;;  %v6477_v0 = vsub.f32 %v6367_v1, %v15057_v9 }
 0x80c   :  { %v6352_v54 = vrot.slane %v15124_v4, 1  ;;  %v6416_v32 = vrot.slane %v15124_v4, 7 }
 0x80d   :  { %6760 = vmatmul.mubr.bf16.gmra.mrb[128].mxu0 %v6623_v47  ;;  %v16802_v47 = vld [vmem:[#allocation4_spill] sm:$0xff]  ;;  %v6509_v29 = vmul.f32 %v6477_v0, %v16810_v61  ;;  %v16818_v61 = vrot.slane %v16808_v30, 7 }
 0x80e   :  { %6769 = vmatprep.mubr.bf16.mxu0 %v6640_v60  ;;  %v6508_v58 = vmul.f32 %v6476_v6, %v16802_v47  ;;  %v6507_v60 = vmul.f32 %v6475_v63, %v16803_v11  ;;  %v6353_v6 = vrot.slane %v16808_v30, 1  ;;  %v6542_v63 = vsub.f32 %v15098_v46, %v6431_v13  ;;  %v16811_v11 = vld [vmem:[#allocation15_spill] sm:$0xff] }
 0x80f   :  { %v6365_v5 = vsel %vm4034_vm1, %v6351_v21, %v6352_v54 }
 0x810   :  { %v6604_v42 = vadd.f32 %v6572_v33, %v6508_v58  ;;  %v6603_v41 = vadd.f32 %v6571_v19, %v6507_v60  ;;  %v6541_v58 = vsub.f32 %v15057_v9, %v6432_v56  ;;  %v6364_v53 = vsel %vm4034_vm1, %v6352_v54, %v6353_v6  ;;  %v16814_v54 = vld [vmem:[#allocation75_spill] sm:$0xff] }
 0x811   :  { %v6574_v60 = vmul.f32 %v6542_v63, %v16811_v11  ;;  %v6480_v13 = vsub.f32 %v6364_v53, %v15124_v4  ;;  %v6643_v63 = vpack.c.bf16 %v15124_v4, %v15087_v35 }
 0x812   :  { %v6625_v24 = vpack.c.bf16 %v6604_v42, %v6603_v41  ;;  %v6573_v12 = vmul.f32 %v6541_v58, %v16812_v20  ;;  %v6479_v42 = vsub.f32 %v6365_v5, %v15087_v35  ;;  %v16813_v41 = vld [vmem:[#allocation50_spill] sm:$0xff]  ;;  %v6644_v20 = vpack.c.bf16 %v14685_v50, %v16808_v30 }
 0x813   :  { %v6512_v0 = vmul.f32 %v6480_v13, %v16813_v41 }
 0x814   :  { %v6605_v19 = vadd.f32 %v6573_v12, %v6509_v29  ;;  %v6428_v29 = vsel %vm4099_vm9, %v6416_v32, %v16818_v61  ;;  %v16819_v12 = vld [vmem:[#allocation46_spill] sm:$0xff] }
 0x815   :  { %6770 = vmatmul.mubr.bf16.gmra.mrb[132].mxu0 %v6624_v23  ;;  %v16809_v23 = vld [vmem:[#allocation10_spill] sm:$0xff] }
 0x816   :  { %6779 = vmatprep.mubr.bf16.mxu0 %v6641_v8  ;;  %v6510_v47 = vmul.f32 %v6478_v26, %v16809_v23  ;;  %v6415_v8 = vrot.slane %v15087_v35, 7  ;;  %v16815_v23 = vld [vmem:[#allocation73_spill] sm:$0xff] }
 0x818   :  { %v6429_v33 = vsel %vm4099_vm9, %v6415_v8, %v6416_v32  ;;  %v6606_v1 = vadd.f32 %v6574_v60, %v6510_v47  ;;  %v6430_v7 = vsel %vm4099_vm9, %v6414_v45, %v6415_v8  ;;  %v16816_v45 = vrot.slane %v14685_v50, 1 }
 0x819   :  { %v6544_v26 = vsub.f32 %v15124_v4, %v6429_v33  ;;  %v6543_v21 = vsub.f32 %v15087_v35, %v6430_v7  ;;  %v6545_v33 = vsub.f32 %v16808_v30, %v6428_v29  ;;  %vm7071_vm9 = vcmask 7168  }
 0x81a   :  { %v6626_v56 = vpack.c.bf16 %v6606_v1, %v6605_v19  ;;  %v6363_v58 = vsel %vm4034_vm1, %v6353_v6, %v16816_v45  ;;  %v16820_v1 = vld [vmem:[#allocation78_spill] sm:$0xff] }
 0x81b   :  { %v6576_v47 = vmul.f32 %v6544_v26, %v16815_v23  ;;  %v6481_v60 = vsub.f32 %v6363_v58, %v16808_v30  ;;  %v6577_v13 = vmul.f32 %v6545_v33, %v16820_v1  ;;  %v16823_v23 = vld [vmem:[#allocation119_spill] sm:$0xff] }
 0x81d   :  { %6780 = vmatmul.mubr.bf16.gmra.mrb[136].mxu0 %v6625_v24  ;;  %v6511_v24 = vmul.f32 %v6479_v42, %v16814_v54  ;;  %v6608_v8 = vadd.f32 %v6576_v47, %v6512_v0  ;;  %v6513_v6 = vmul.f32 %v6481_v60, %v16819_v12  ;;  %v16821_v42 = vld [vmem:[#allocation118_spill] sm:$0xff] }
 0x81e   :  { %6789 = vmatprep.mubr.bf16.mxu0 %v6642_v48  ;;  %v16817_v48 = vld [vmem:[#allocation81_spill] sm:$0xff]  ;;  %v16822_v54 = vld [vmem:[#allocation26_spill] sm:$0xff] }
 0x81f   :  { %v6575_v53 = vmul.f32 %v6543_v21, %v16817_v48  ;;  %v6609_v7 = vadd.f32 %v6577_v13, %v6513_v6  ;;  %v16825_v6 = vld [vmem:[#allocation6_spill] sm:$0xff]  ;;  %v16826_v13 = vld [vmem:[#allocation121_spill] sm:$0xff] }
 0x821   :  { %v6607_v11 = vadd.f32 %v6575_v53, %v6511_v24  ;;  %v6628_v19 = vpack.c.bf16 %v14789_v10, %v6609_v7  ;;  %v15186_v10 = vld [vmem:[%s15458_s6] ss:$0 sm:$0xff] }
 0x823   :  { %v6627_v5 = vpack.c.bf16 %v6608_v8, %v6607_v11  ;;  %v16824_v8 = vld [vmem:[#allocation24_spill] sm:$0xff] }
 0x825   :  { %6790 = vmatmul.mubr.bf16.gmra.mrb[140].mxu0 %v6626_v56 }
 0x826   :  { %6799 = vmatprep.mubr.bf16.mxu0 %v6643_v63 }
 0x82d   :  { %6800 = vmatmul.mubr.bf16.gmra.mrb[144].mxu0 %v6627_v5 }
 0x82e   :  { %6809 = vmatprep.mubr.bf16.mxu0 %v6644_v20 }
 0x835   :  { %6810 = vmatmul.mubr.bf16.gmra.mrb[148].mxu0 %v6628_v19 }
 0x89e   :  { %v6821_v2 = vpop.f32.mrb[128].mxu1 }
 0x89f   :  { %v6823_v32 = vpop.f32.mrb[129].mxu1 }
 0x8a0   :  { %v6868_v26 = vsub.f32 %v16821_v42, %v6823_v32  ;;  %v6681_v56 = vpop.f32.mrb[96].mxu0  ;;  %v6825_v41 = vpop.f32.mrb[130].mxu1 }
 0x8a1   :  { %v6683_v0 = vpop.f32.mrb[97].mxu0  ;;  %v6827_v21 = vpop.f32.mrb[131].mxu1 }
 0x8a2   :  { %v6900_v63 = vmul.f32 %v6868_v26, %v6821_v2  ;;  %v6840_v24 = vsub.f32 %v16822_v54, %v6683_v0  ;;  %v6869_v47 = vsub.f32 %v16823_v23, %v6827_v21  ;;  %v6685_v45 = vpop.f32.mrb[98].mxu0 }
 0x8a3   :  { %v6687_v58 = vpop.f32.mrb[99].mxu0 }
 0x8a4   :  { %v6872_v48 = vmul.f32 %v6840_v24, %v6681_v56  ;;  %v6901_v53 = vmul.f32 %v6869_v47, %v6825_v41  ;;  %v6841_v61 = vsub.f32 %v16824_v8, %v6687_v58  ;;  %v6932_v29 = vadd.f32 %v6900_v63, %v14709_v49  ;;  %v16827_v56 = vld [vmem:[#allocation82_spill] sm:$0xff] }
 0x8a5   :  { %v16828_v24 = vld [vmem:[#allocation18_spill] sm:$0xff] }
 0x8a6   :  { %v6873_v11 = vmul.f32 %v6841_v61, %v6685_v45  ;;  %v6831_v60 = vpop.f32.mrb[132].mxu1  ;;  %v6970_v5 = vmul.f32 %v15186_v10, %v6932_v29  ;;  %v6904_v33 = vadd.f32 %v6872_v48, %v14595_v31  ;;  %v6933_v12 = vadd.f32 %v6901_v53, %v14723_v34  ;;  %v16829_v61 = vld [vmem:[#allocation44_spill] sm:$0xff] }
 0x8a7   :  { %v6833_v20 = vpop.f32.mrb[133].mxu1 }
 0x8a8   :  { %v6905_v1 = vadd.f32 %v6873_v11, %v16825_v6  ;;  %v6870_v7 = vsub.f32 %v16826_v13, %v6833_v20  ;;  %7030 = vadd.xlane.f32.xlu1 %v6970_v5  ;;  %v6691_v19 = vpop.f32.mrb[100].mxu0  ;;  %v6835_v2 = vpop.f32.mrb[134].mxu1  ;;  %v6942_v32 = vmul.f32 %v15186_v10, %v6904_v33  ;;  %v6971_v47 = vmul.f32 %v15186_v10, %v6933_v12  ;;  %v16830_v33 = vld [vmem:[#allocation38_spill] sm:$0xff] }
 0x8a9   :  { %v6693_v42 = vpop.f32.mrb[101].mxu0  ;;  %v6837_v49 = vpop.f32.mrb[135].mxu1 }
 0x8aa   :  { %v15196_v26 = vmul.f32 %v6870_v7, %v6831_v60  ;;  %v6842_v41 = vsub.f32 %v16827_v56, %v6693_v42  ;;  %v6871_v31 = vsub.f32 %v16734_v57, %v6837_v49  ;;  %6974 = vadd.xlane.f32.xlu0 %v6942_v32  ;;  %v6695_v0 = vpop.f32.mrb[102].mxu0  ;;  %v6943_v34 = vmul.f32 %v15186_v10, %v6905_v1 }
 0x8ab   :  { %v6697_v21 = vpop.f32.mrb[103].mxu0 }
 0x8ac   :  { %v6874_v63 = vmul.f32 %v6842_v41, %v6691_v19  ;;  %v15201_v54 = vmul.f32 %v6871_v31, %v6835_v2  ;;  %v6843_v23 = vsub.f32 %v16828_v24, %v6697_v21  ;;  %6976 = vadd.xlane.f32.xlu1 %v6943_v34  ;;  %v16831_v19 = vld [vmem:[#allocation66_spill] sm:$0xff]  ;;  %v16832_v41 = vld [vmem:[#allocation11_spill] sm:$0xff] }
 0x8ad   :  { %v16833_v24 = vld [vmem:[#allocation42_spill] sm:$0xff] }
 0x8ae   :  { %v6906_v45 = vadd.f32 %v6874_v63, %v14682_v3  ;;  %v6875_v58 = vmul.f32 %v6843_v23, %v6695_v0  ;;  %7032 = vadd.xlane.f32.xlu0 %v6971_v47 }
 0x8b0   :  { %v6907_v48 = vadd.f32 %v6875_v58, %v14706_v25  ;;  %v6701_v57 = vpop.f32.mrb[104].mxu0  ;;  %v6944_v53 = vmul.f32 %v15186_v10, %v6906_v45 }
 0x8b1   :  { %v6703_v8 = vpop.f32.mrb[105].mxu0 }
 0x8b2   :  { %v6844_v29 = vsub.f32 %v16829_v61, %v6703_v8  ;;  %6978 = vadd.xlane.f32.xlu0 %v6944_v53  ;;  %v6705_v11 = vpop.f32.mrb[106].mxu0  ;;  %v6945_v12 = vmul.f32 %v15186_v10, %v6907_v48 }
 0x8b3   :  { %v6707_v60 = vpop.f32.mrb[107].mxu0 }
 0x8b4   :  { %v6876_v5 = vmul.f32 %v6844_v29, %v6701_v57  ;;  %v6845_v20 = vsub.f32 %v16830_v33, %v6707_v60  ;;  %v16834_v57 = vld [vmem:[#allocation55_spill] sm:$0xff]  ;;  %v16835_v60 = vld [vmem:[#allocation13_spill] sm:$0xff] }
 0x8b6   :  { %v6908_v3 = vadd.f32 %v6876_v5, %v14731_v62  ;;  %v6877_v6 = vmul.f32 %v6845_v20, %v6705_v11  ;;  %6980 = vadd.xlane.f32.xlu0 %v6945_v12 }
 0x8b8   :  { %v6909_v25 = vadd.f32 %v6877_v6, %v14819_v27  ;;  %v6711_v1 = vpop.f32.mrb[108].mxu0  ;;  %v6946_v13 = vmul.f32 %v15186_v10, %v6908_v3  ;;  %v16836_v6 = vld [vmem:[#allocation88_spill] sm:$0xff] }
 0x8b9   :  { %v6713_v7 = vpop.f32.mrb[109].mxu0 }
 0x8ba   :  { %v6846_v2 = vsub.f32 %v16831_v19, %v6713_v7  ;;  %6982 = vadd.xlane.f32.xlu1 %v6946_v13  ;;  %v6715_v32 = vpop.f32.mrb[110].mxu0  ;;  %v6947_v42 = vmul.f32 %v15186_v10, %v6909_v25 }
 0x8bb   :  { %v6717_v49 = vpop.f32.mrb[111].mxu0 }
 0x8bc   :  { %v6878_v56 = vmul.f32 %v6846_v2, %v6711_v1  ;;  %v6847_v31 = vsub.f32 %v16832_v41, %v6717_v49  ;;  %6984 = vadd.xlane.f32.xlu0 %v6947_v42  ;;  %v16837_v2 = vld [vmem:[#allocation9_spill] sm:$0xff] }
 0x8be   :  { %v6910_v62 = vadd.f32 %v6878_v56, %v14779_v55  ;;  %v6879_v0 = vmul.f32 %v6847_v31, %v6715_v32  ;;  %v16838_v31 = vld [vmem:[#allocation19_spill] sm:$0xff] }
 0x8c0   :  { %v6911_v27 = vadd.f32 %v6879_v0, %v14854_v40  ;;  %v6721_v34 = vpop.f32.mrb[112].mxu0  ;;  %v6948_v21 = vmul.f32 %v15186_v10, %v6910_v62 }
 0x8c1   :  { %v6723_v63 = vpop.f32.mrb[113].mxu0 }
 0x8c2   :  { %v6848_v23 = vsub.f32 %v16833_v24, %v6723_v63  ;;  %6986 = vadd.xlane.f32.xlu1 %v6948_v21  ;;  %v6725_v47 = vpop.f32.mrb[114].mxu0  ;;  %v6949_v45 = vmul.f32 %v15186_v10, %v6911_v27  ;;  %v16839_v63 = vld [vmem:[#allocation70_spill] sm:$0xff] }
 0x8c3   :  { %v6727_v58 = vpop.f32.mrb[115].mxu0 }
 0x8c4   :  { %v6880_v48 = vmul.f32 %v6848_v23, %v6721_v34  ;;  %v6849_v53 = vsub.f32 %v16834_v57, %v6727_v58  ;;  %6988 = vadd.xlane.f32.xlu0 %v6949_v45 }
 0x8c6   :  { %v6912_v55 = vadd.f32 %v6880_v48, %v14843_v18  ;;  %v6881_v8 = vmul.f32 %v6849_v53, %v6725_v47  ;;  %v16840_v48 = vld [vmem:[#allocation102_spill] sm:$0xff] }
 0x8c8   :  { %v6913_v40 = vadd.f32 %v6881_v8, %v14888_v28  ;;  %v6731_v61 = vpop.f32.mrb[116].mxu0  ;;  %v6950_v29 = vmul.f32 %v15186_v10, %v6912_v55 }
 0x8c9   :  { %v6733_v11 = vpop.f32.mrb[117].mxu0 }
 0x8ca   :  { %v6850_v5 = vsub.f32 %v16835_v60, %v6733_v11  ;;  %6990 = vadd.xlane.f32.xlu1 %v6950_v29  ;;  %v6735_v33 = vpop.f32.mrb[118].mxu0  ;;  %v6951_v20 = vmul.f32 %v15186_v10, %v6913_v40 }
 0x8cb   :  { %v6737_v12 = vpop.f32.mrb[119].mxu0 }
 0x8cc   :  { %v6882_v3 = vmul.f32 %v6850_v5, %v6731_v61  ;;  %v6851_v25 = vsub.f32 %v16836_v6, %v6737_v12  ;;  %6992 = vadd.xlane.f32.xlu0 %v6951_v20  ;;  %v16841_v61 = vld [vmem:[#allocation103_spill] sm:$0xff]  ;;  %v16842_v20 = vld [vmem:[#allocation104_spill] sm:$0xff] }
 0x8ce   :  { %v6914_v18 = vadd.f32 %v6882_v3, %v14877_v17  ;;  %v6883_v1 = vmul.f32 %v6851_v25, %v6735_v33 }
 0x8d0   :  { %v6915_v28 = vadd.f32 %v6883_v1, %v14918_v37  ;;  %v6741_v13 = vpop.f32.mrb[120].mxu0  ;;  %v6952_v7 = vmul.f32 %v15186_v10, %v6914_v18  ;;  %v16843_v1 = vld [vmem:[#allocation105_spill] sm:$0xff] }
 0x8d1   :  { %v6743_v19 = vpop.f32.mrb[121].mxu0 }
 0x8d2   :  { %v6852_v32 = vsub.f32 %v16837_v2, %v6743_v19  ;;  %6994 = vadd.xlane.f32.xlu1 %v6952_v7  ;;  %v6745_v42 = vpop.f32.mrb[122].mxu0  ;;  %v6953_v49 = vmul.f32 %v15186_v10, %v6915_v28 }
 0x8d3   :  { %v6747_v56 = vpop.f32.mrb[123].mxu0 }
 0x8d4   :  { %v6884_v41 = vmul.f32 %v6852_v32, %v6741_v13  ;;  %v6853_v62 = vsub.f32 %v16838_v31, %v6747_v56  ;;  %6996 = vadd.xlane.f32.xlu0 %v6953_v49  ;;  %v16844_v32 = vld [vmem:[#allocation106_spill] sm:$0xff] }
 0x8d6   :  { %v6916_v17 = vadd.f32 %v6884_v41, %v14907_v52  ;;  %v6885_v0 = vmul.f32 %v6853_v62, %v6745_v42  ;;  %v16845_v62 = vld [vmem:[#allocation107_spill] sm:$0xff] }
 0x8d8   :  { %v6917_v37 = vadd.f32 %v6885_v0, %v14948_v16  ;;  %v6751_v27 = vpop.f32.mrb[124].mxu0  ;;  %v6954_v34 = vmul.f32 %v15186_v10, %v6916_v17 }
 0x8d9   :  { %v6753_v21 = vpop.f32.mrb[125].mxu0 }
 0x8da   :  { %v6854_v24 = vsub.f32 %v16839_v63, %v6753_v21  ;;  %6998 = vadd.xlane.f32.xlu1 %v6954_v34  ;;  %v6755_v23 = vpop.f32.mrb[126].mxu0  ;;  %v6955_v47 = vmul.f32 %v15186_v10, %v6917_v37  ;;  %v16846_v21 = vld [vmem:[#allocation108_spill] sm:$0xff] }
 0x8db   :  { %v6757_v45 = vpop.f32.mrb[127].mxu0 }
 0x8dc   :  { %v6886_v58 = vmul.f32 %v6854_v24, %v6751_v27  ;;  %v6855_v57 = vsub.f32 %v16840_v48, %v6757_v45  ;;  %7000 = vadd.xlane.f32.xlu0 %v6955_v47 }
 0x8de   :  { %v6918_v52 = vadd.f32 %v6886_v58, %v14937_v36  ;;  %v6887_v53 = vmul.f32 %v6855_v57, %v6755_v23  ;;  %v16847_v58 = vld [vmem:[#allocation110_spill] sm:$0xff] }
 0x8e0   :  { %v6919_v16 = vadd.f32 %v6887_v53, %v14978_v44  ;;  %v6761_v55 = vpop.f32.mrb[128].mxu0  ;;  %v6956_v8 = vmul.f32 %v15186_v10, %v6918_v52 }
 0x8e1   :  { %v6763_v40 = vpop.f32.mrb[129].mxu0 }
 0x8e2   :  { %v6856_v29 = vsub.f32 %v16841_v61, %v6763_v40  ;;  %7002 = vadd.xlane.f32.xlu1 %v6956_v8  ;;  %v6765_v11 = vpop.f32.mrb[130].mxu0  ;;  %v6957_v60 = vmul.f32 %v15186_v10, %v6919_v16 }
 0x8e3   :  { %v6767_v5 = vpop.f32.mrb[131].mxu0 }
 0x8e4   :  { %v6888_v33 = vmul.f32 %v6856_v29, %v6761_v55  ;;  %v6857_v12 = vsub.f32 %v16842_v20, %v6767_v5  ;;  %7004 = vadd.xlane.f32.xlu0 %v6957_v60  ;;  %v16848_v55 = vld [vmem:[#allocation111_spill] sm:$0xff]  ;;  %v16849_v60 = vld [vmem:[#allocation112_spill] sm:$0xff] }
 0x8e6   :  { %v6920_v36 = vadd.f32 %v6888_v33, %v14967_v51  ;;  %v6889_v3 = vmul.f32 %v6857_v12, %v6765_v11 }
 0x8e8   :  { %v6921_v44 = vadd.f32 %v6889_v3, %v15008_v38  ;;  %v6771_v6 = vpop.f32.mrb[132].mxu0  ;;  %v6958_v25 = vmul.f32 %v15186_v10, %v6920_v36  ;;  %v16850_v3 = vld [vmem:[#allocation113_spill] sm:$0xff] }
 0x8e9   :  { %v6773_v18 = vpop.f32.mrb[133].mxu0 }
 0x8ea   :  { %v6858_v28 = vsub.f32 %v16843_v1, %v6773_v18  ;;  %7006 = vadd.xlane.f32.xlu1 %v6958_v25  ;;  %v6775_v13 = vpop.f32.mrb[134].mxu0  ;;  %v6959_v7 = vmul.f32 %v15186_v10, %v6921_v44 }
 0x8eb   :  { %v6777_v19 = vpop.f32.mrb[135].mxu0 }
 0x8ec   :  { %v6890_v2 = vmul.f32 %v6858_v28, %v6771_v6  ;;  %v6859_v42 = vsub.f32 %v16844_v32, %v6777_v19  ;;  %7008 = vadd.xlane.f32.xlu0 %v6959_v7  ;;  %v16851_v28 = vld [vmem:[#allocation115_spill] sm:$0xff] }
 0x8ee   :  { %v6922_v51 = vadd.f32 %v6890_v2, %v14997_v14  ;;  %v6891_v49 = vmul.f32 %v6859_v42, %v6775_v13  ;;  %v16852_v42 = vld [vmem:[#allocation116_spill] sm:$0xff] }
 0x8f0   :  { %v6923_v38 = vadd.f32 %v6891_v49, %v15038_v43  ;;  %v6781_v56 = vpop.f32.mrb[136].mxu0  ;;  %v6960_v41 = vmul.f32 %v15186_v10, %v6922_v51 }
 0x8f1   :  { %v6783_v31 = vpop.f32.mrb[137].mxu0 }
 0x8f2   :  { %v6860_v17 = vsub.f32 %v16845_v62, %v6783_v31  ;;  %7010 = vadd.xlane.f32.xlu1 %v6960_v41  ;;  %v6785_v0 = vpop.f32.mrb[138].mxu0  ;;  %v6961_v37 = vmul.f32 %v15186_v10, %v6923_v38  ;;  %v6935_v41 = vadd.f32 %v15201_v54, %v14773_v59 }
 0x8f3   :  { %v6787_v27 = vpop.f32.mrb[139].mxu0 }
 0x8f4   :  { %v6892_v34 = vmul.f32 %v6860_v17, %v6781_v56  ;;  %v6861_v63 = vsub.f32 %v16846_v21, %v6787_v27  ;;  %7012 = vadd.xlane.f32.xlu0 %v6961_v37 }
 0x8f6   :  { %v6924_v14 = vadd.f32 %v6892_v34, %v15027_v39  ;;  %v6893_v24 = vmul.f32 %v6861_v63, %v6785_v0 }
 0x8f8   :  { %v6925_v43 = vadd.f32 %v6893_v24, %v15068_v15  ;;  %v6791_v23 = vpop.f32.mrb[140].mxu0  ;;  %v6962_v47 = vmul.f32 %v15186_v10, %v6924_v14 }
 0x8f9   :  { %v6793_v45 = vpop.f32.mrb[141].mxu0 }
 0x8fa   :  { %v6862_v48 = vsub.f32 %v16847_v58, %v6793_v45  ;;  %7014 = vadd.xlane.f32.xlu1 %v6962_v47  ;;  %v6795_v57 = vpop.f32.mrb[142].mxu0  ;;  %v6963_v52 = vmul.f32 %v15186_v10, %v6925_v43 }
 0x8fb   :  { %v6797_v53 = vpop.f32.mrb[143].mxu0 }
 0x8fc   :  { %v6894_v16 = vmul.f32 %v6862_v48, %v6791_v23  ;;  %v6863_v8 = vsub.f32 %v16848_v55, %v6797_v53  ;;  %7016 = vadd.xlane.f32.xlu0 %v6963_v52 }
 0x8fe   :  { %v6926_v39 = vadd.f32 %v6894_v16, %v15057_v9  ;;  %v6895_v40 = vmul.f32 %v6863_v8, %v6795_v57 }
 0x900   :  { %v6927_v15 = vadd.f32 %v6895_v40, %v15098_v46  ;;  %v6801_v61 = vpop.f32.mrb[144].mxu0  ;;  %v6964_v29 = vmul.f32 %v15186_v10, %v6926_v39 }
 0x901   :  { %v6803_v11 = vpop.f32.mrb[145].mxu0 }
 0x902   :  { %v6864_v5 = vsub.f32 %v16849_v60, %v6803_v11  ;;  %7018 = vadd.xlane.f32.xlu1 %v6964_v29  ;;  %v6805_v33 = vpop.f32.mrb[146].mxu0  ;;  %v6965_v20 = vmul.f32 %v15186_v10, %v6927_v15 }
 0x903   :  { %v6807_v12 = vpop.f32.mrb[147].mxu0 }
 0x904   :  { %v6896_v36 = vmul.f32 %v6864_v5, %v6801_v61  ;;  %v6865_v44 = vsub.f32 %v16850_v3, %v6807_v12  ;;  %7020 = vadd.xlane.f32.xlu0 %v6965_v20 }
 0x906   :  { %v6928_v9 = vadd.f32 %v6896_v36, %v15087_v35  ;;  %v6897_v6 = vmul.f32 %v6865_v44, %v6805_v33 }
 0x908   :  { %v6929_v46 = vadd.f32 %v6897_v6, %v15124_v4  ;;  %v6811_v25 = vpop.f32.mrb[148].mxu0  ;;  %v6966_v18 = vmul.f32 %v15186_v10, %v6928_v9  ;;  %v6934_v4 = vadd.f32 %v15196_v26, %v14762_v22  ;;  %v15290_v22 = vstv %s15459_s7 }
 0x909   :  { %v6813_v1 = vpop.f32.mrb[149].mxu0 }
 0x90a   :  { %v6866_v13 = vsub.f32 %v16851_v28, %v6813_v1  ;;  %7022 = vadd.xlane.f32.xlu1 %v6966_v18  ;;  %v6815_v7 = vpop.f32.mrb[150].mxu0  ;;  %v6967_v19 = vmul.f32 %v15186_v10, %v6929_v46  ;;  %v6972_v62 = vmul.f32 %v15186_v10, %v6934_v4 }
 0x90b   :  { %v6817_v2 = vpop.f32.mrb[151].mxu0 }
 0x90c   :  { %v6898_v32 = vmul.f32 %v6866_v13, %v6811_v25  ;;  %v6867_v51 = vsub.f32 %v16852_v42, %v6817_v2  ;;  %7024 = vadd.xlane.f32.xlu0 %v6967_v19 }
 0x90e   :  { %v6930_v35 = vadd.f32 %v6898_v32, %v16808_v30  ;;  %v6899_v49 = vmul.f32 %v6867_v51, %v6815_v7  ;;  %v6973_v30 = vmul.f32 %v15186_v10, %v6935_v41 }
 0x910   :  { %v6931_v38 = vadd.f32 %v6899_v49, %v14685_v50  ;;  %v6968_v56 = vmul.f32 %v15186_v10, %v6930_v35 }
 0x912   :  { %7026 = vadd.xlane.f32.xlu1 %v6968_v56  ;;  %v6969_v31 = vmul.f32 %v15186_v10, %v6931_v38 }
 0x914   :  { %7028 = vadd.xlane.f32.xlu0 %v6969_v31 }
 0x916   :  { %7034 = vadd.xlane.f32.xlu1 %v6972_v62 }
 0x918   :  { %7036 = vadd.xlane.f32.xlu0 %v6973_v30 }
 0x935   :  { %v7031_v50 = vpop.xlane.xlu1 %7030 }
 0x936   :  { %v7067_v26 = vadd.f32 %v15290_v22, %v7031_v50 }
 0x937   :  { %v6975_v59 = vpop.xlane.xlu0 %6974 }
 0x938   :  { %7100 = vst.msk [vmem:[%s15460_s8 + $0xe0] sm:$0xff] %vm7071_vm9, %v7067_v26  ;;  %v7039_v54 = vadd.f32 %v15290_v22, %v6975_v59 }
 0x939   :  { %v6977_v17 = vpop.xlane.xlu1 %6976 }
 0x93a   :  { %7072 = vst.msk [vmem:[%s15460_s8] sm:$0xff] %vm7071_vm9, %v7039_v54  ;;  %v7040_v10 = vadd.f32 %v15290_v22, %v6977_v17 }
 0x93b   :  { %v7033_v0 = vpop.xlane.xlu0 %7032 }
 0x93c   :  { %7073 = vst.msk [vmem:[%s15460_s8 + $0x8] sm:$0xff] %vm7071_vm9, %v7040_v10  ;;  %v7068_v37 = vadd.f32 %v15290_v22, %v7033_v0 }
 0x93e   :  { %7101 = vst.msk [vmem:[%s15460_s8 + $0xe8] sm:$0xff] %vm7071_vm9, %v7068_v37 }
 0x93f   :  { %v6979_v27 = vpop.xlane.xlu0 %6978 }
 0x940   :  { %v7041_v34 = vadd.f32 %v15290_v22, %v6979_v27 }
 0x942   :  { %7074 = vst.msk [vmem:[%s15460_s8 + $0x10] sm:$0xff] %vm7071_vm9, %v7041_v34 }
 0x943   :  { %v6981_v21 = vpop.xlane.xlu0 %6980 }
 0x944   :  { %v7042_v63 = vadd.f32 %v15290_v22, %v6981_v21 }
 0x946   :  { %7075 = vst.msk [vmem:[%s15460_s8 + $0x18] sm:$0xff] %vm7071_vm9, %v7042_v63 }
 0x947   :  { %v6983_v14 = vpop.xlane.xlu1 %6982 }
 0x948   :  { %v7043_v24 = vadd.f32 %v15290_v22, %v6983_v14 }
 0x949   :  { %v6985_v43 = vpop.xlane.xlu0 %6984 }
 0x94a   :  { %7076 = vst.msk [vmem:[%s15460_s8 + $0x20] sm:$0xff] %vm7071_vm9, %v7043_v24  ;;  %v7044_v23 = vadd.f32 %v15290_v22, %v6985_v43 }
 0x94c   :  { %7077 = vst.msk [vmem:[%s15460_s8 + $0x28] sm:$0xff] %vm7071_vm9, %v7044_v23 }
 0x94f   :  { %v6987_v47 = vpop.xlane.xlu1 %6986 }
 0x950   :  { %v7045_v45 = vadd.f32 %v15290_v22, %v6987_v47 }
 0x951   :  { %v6989_v58 = vpop.xlane.xlu0 %6988 }
 0x952   :  { %7078 = vst.msk [vmem:[%s15460_s8 + $0x30] sm:$0xff] %vm7071_vm9, %v7045_v45  ;;  %v7046_v48 = vadd.f32 %v15290_v22, %v6989_v58 }
 0x954   :  { %7079 = vst.msk [vmem:[%s15460_s8 + $0x38] sm:$0xff] %vm7071_vm9, %v7046_v48 }
 0x957   :  { %v6991_v57 = vpop.xlane.xlu1 %6990 }
 0x958   :  { %v7047_v52 = vadd.f32 %v15290_v22, %v6991_v57 }
 0x959   :  { %v6993_v53 = vpop.xlane.xlu0 %6992 }
 0x95a   :  { %7080 = vst.msk [vmem:[%s15460_s8 + $0x40] sm:$0xff] %vm7071_vm9, %v7047_v52  ;;  %v7048_v16 = vadd.f32 %v15290_v22, %v6993_v53 }
 0x95c   :  { %7081 = vst.msk [vmem:[%s15460_s8 + $0x48] sm:$0xff] %vm7071_vm9, %v7048_v16 }
 0x95f   :  { %v6995_v55 = vpop.xlane.xlu1 %6994 }
 0x960   :  { %v7049_v8 = vadd.f32 %v15290_v22, %v6995_v55 }
 0x961   :  { %v6997_v39 = vpop.xlane.xlu0 %6996 }
 0x962   :  { %7082 = vst.msk [vmem:[%s15460_s8 + $0x50] sm:$0xff] %vm7071_vm9, %v7049_v8  ;;  %v7050_v40 = vadd.f32 %v15290_v22, %v6997_v39 }
 0x964   :  { %7083 = vst.msk [vmem:[%s15460_s8 + $0x58] sm:$0xff] %vm7071_vm9, %v7050_v40 }
 0x967   :  { %v6999_v15 = vpop.xlane.xlu1 %6998 }
 0x968   :  { %v7051_v61 = vadd.f32 %v15290_v22, %v6999_v15 }
 0x969   :  { %v7001_v29 = vpop.xlane.xlu0 %7000 }
 0x96a   :  { %7084 = vst.msk [vmem:[%s15460_s8 + $0x60] sm:$0xff] %vm7071_vm9, %v7051_v61  ;;  %v7052_v11 = vadd.f32 %v15290_v22, %v7001_v29 }
 0x96c   :  { %7085 = vst.msk [vmem:[%s15460_s8 + $0x68] sm:$0xff] %vm7071_vm9, %v7052_v11 }
 0x96f   :  { %v7003_v60 = vpop.xlane.xlu1 %7002 }
 0x970   :  { %v7053_v5 = vadd.f32 %v15290_v22, %v7003_v60 }
 0x971   :  { %v7005_v33 = vpop.xlane.xlu0 %7004 }
 0x972   :  { %7086 = vst.msk [vmem:[%s15460_s8 + $0x70] sm:$0xff] %vm7071_vm9, %v7053_v5  ;;  %v7054_v20 = vadd.f32 %v15290_v22, %v7005_v33 }
 0x974   :  { %7087 = vst.msk [vmem:[%s15460_s8 + $0x78] sm:$0xff] %vm7071_vm9, %v7054_v20 }
 0x977   :  { %v7007_v12 = vpop.xlane.xlu1 %7006 }
 0x978   :  { %v7055_v36 = vadd.f32 %v15290_v22, %v7007_v12 }
 0x979   :  { %v7009_v3 = vpop.xlane.xlu0 %7008 }
 0x97a   :  { %7088 = vst.msk [vmem:[%s15460_s8 + $0x80] sm:$0xff] %vm7071_vm9, %v7055_v36  ;;  %v7056_v44 = vadd.f32 %v15290_v22, %v7009_v3 }
 0x97c   :  { %7089 = vst.msk [vmem:[%s15460_s8 + $0x88] sm:$0xff] %vm7071_vm9, %v7056_v44 }
 0x97f   :  { %v7011_v9 = vpop.xlane.xlu1 %7010 }
 0x980   :  { %v7057_v6 = vadd.f32 %v15290_v22, %v7011_v9 }
 0x981   :  { %v7013_v46 = vpop.xlane.xlu0 %7012 }
 0x982   :  { %7090 = vst.msk [vmem:[%s15460_s8 + $0x90] sm:$0xff] %vm7071_vm9, %v7057_v6  ;;  %v7058_v25 = vadd.f32 %v15290_v22, %v7013_v46 }
 0x984   :  { %7091 = vst.msk [vmem:[%s15460_s8 + $0x98] sm:$0xff] %vm7071_vm9, %v7058_v25 }
 0x987   :  { %v7015_v18 = vpop.xlane.xlu1 %7014 }
 0x988   :  { %v7059_v1 = vadd.f32 %v15290_v22, %v7015_v18 }
 0x989   :  { %v7017_v28 = vpop.xlane.xlu0 %7016 }
 0x98a   :  { %7092 = vst.msk [vmem:[%s15460_s8 + $0xa0] sm:$0xff] %vm7071_vm9, %v7059_v1  ;;  %v7060_v13 = vadd.f32 %v15290_v22, %v7017_v28 }
 0x98c   :  { %7093 = vst.msk [vmem:[%s15460_s8 + $0xa8] sm:$0xff] %vm7071_vm9, %v7060_v13 }
 0x98f   :  { %v7019_v7 = vpop.xlane.xlu1 %7018 }
 0x990   :  { %v7061_v19 = vadd.f32 %v15290_v22, %v7019_v7 }
 0x991   :  { %v7021_v2 = vpop.xlane.xlu0 %7020 }
 0x992   :  { %7094 = vst.msk [vmem:[%s15460_s8 + $0xb0] sm:$0xff] %vm7071_vm9, %v7061_v19  ;;  %v7062_v32 = vadd.f32 %v15290_v22, %v7021_v2 }
 0x994   :  { %7095 = vst.msk [vmem:[%s15460_s8 + $0xb8] sm:$0xff] %vm7071_vm9, %v7062_v32 }
 0x997   :  { %v7023_v42 = vpop.xlane.xlu1 %7022 }
 0x998   :  { %v7063_v51 = vadd.f32 %v15290_v22, %v7023_v42 }
 0x999   :  { %v7025_v35 = vpop.xlane.xlu0 %7024 }
 0x99a   :  { %7096 = vst.msk [vmem:[%s15460_s8 + $0xc0] sm:$0xff] %vm7071_vm9, %v7063_v51  ;;  %v7064_v49 = vadd.f32 %v15290_v22, %v7025_v35 }
 0x99c   :  { %7097 = vst.msk [vmem:[%s15460_s8 + $0xc8] sm:$0xff] %vm7071_vm9, %v7064_v49 }
 0x99f   :  { %v7027_v4 = vpop.xlane.xlu1 %7026 }
 0x9a0   :  { %v7065_v38 = vadd.f32 %v15290_v22, %v7027_v4 }
 0x9a1   :  { %v7029_v56 = vpop.xlane.xlu0 %7028 }
 0x9a2   :  { %7098 = vst.msk [vmem:[%s15460_s8 + $0xd0] sm:$0xff] %vm7071_vm9, %v7065_v38  ;;  %v7066_v41 = vadd.f32 %v15290_v22, %v7029_v56 }
 0x9a3   :  { %v7035_v31 = vpop.xlane.xlu1 %7034 }
 0x9a4   :  { %7099 = vst.msk [vmem:[%s15460_s8 + $0xd8] sm:$0xff] %vm7071_vm9, %v7066_v41  ;;  %v7069_v62 = vadd.f32 %v15290_v22, %v7035_v31 }
 0x9a5   :  { %v7037_v30 = vpop.xlane.xlu0 %7036 }
 0x9a6   :  { %7102 = vst.msk [vmem:[%s15460_s8 + $0xf0] sm:$0xff] %vm7071_vm9, %v7069_v62  ;;  %v7070_v50 = vadd.f32 %v15290_v22, %v7037_v30 }
 0x9a8   :  { %7103 = vst.msk [vmem:[%s15460_s8 + $0xf8] sm:$0xff] %vm7071_vm9, %v7070_v50 }

</bundles_post_ra>
